<compile_context>
chip_gen: v5e
topology: v5e:2x2
jax: 0.10.0
libtpu: 0.0.40
codegen_flags: <defaults>
</compile_context>

<pallas_src>
import jax
import jax.numpy as jnp
from jax.experimental import pallas as pl
from jax.experimental.pallas import tpu as pltpu

EPS = 1e-3  # BatchNorm2d eps=0.001


def conv_bn_kernel(x_ref, w_ref, gb_ref, o_ref):
    # x_ref:  (Cin, HW)      f32
    # w_ref:  (Cout, Cin)    bf16 (pre-cast in the wrapper / caller)
    # gb_ref: (Cout, 2)      f32  (col 0 = gamma, col 1 = beta)
    # o_ref:  (Cout, HW)     f32
    x_bf = x_ref[...].astype(jnp.bfloat16)
    w_bf = w_ref[...]
    # 1x1 conv == matmul: bf16 operands at full MXU rate, f32 accumulation.
    y = jnp.dot(w_bf, x_bf, preferred_element_type=jnp.float32)  # (Cout, HW)

    # Single-pass batch statistics over the spatial (lane) axis.
    inv_hw = 1.0 / y.shape[1]
    s1 = jnp.sum(y, axis=1, keepdims=True)        # (Cout, 1)
    s2 = jnp.sum(y * y, axis=1, keepdims=True)    # (Cout, 1)
    mean = s1 * inv_hw
    # Biased (training-mode) variance, clamped: cancellation can push it
    # slightly negative, and rsqrt(negative) would give NaN.
    var = jnp.maximum(s2 * inv_hw - mean * mean, 0.0)

    # Fold normalization + affine into one per-channel scale/shift.
    gamma = gb_ref[:, 0:1]
    beta = gb_ref[:, 1:2]
    scale = gamma * jax.lax.rsqrt(var + EPS)
    shift = beta - mean * scale
    o_ref[...] = y * scale + shift


def conv2d_bn_forward(x_nchw, w_oi, gamma, beta):
    """x_nchw: (1, Cin, H, W) f32; w_oi: (Cout, Cin) (bf16 preferred);
    gamma/beta: (Cout,)."""
    N, Cin, H, W = x_nchw.shape
    Cout = w_oi.shape[0]
    if N != 1:
        # TODO(synk): N>1 needs either an NHWC path or two-pass (partial
        # sum/sumsq) batch statistics across an N grid axis.
        raise NotImplementedError("kernel specialised for the module's N=1 input")
    HW = H * W

    # Free (view-level) reshapes — no transposes, no extra HBM traffic.
    x2d = x_nchw.reshape(Cin, HW)                              # (Cin, HW) f32
    w2d = w_oi.astype(jnp.bfloat16)                            # no-op if already bf16
    gb = jnp.stack(
        [gamma.astype(jnp.float32), beta.astype(jnp.float32)], axis=1
    )                                                          # (Cout, 2)

    # Single grid step: single-TC chips gain nothing from a Cout split, and on
    # v7x the split would replicate the x DMA.  All blocks == full arrays, so
    # the (8,128) BlockSpec constraint is satisfied trivially.
    n_blk = 1

    cost = pl.CostEstimate(
        flops=2 * Cin * HW * Cout,
        transcendentals=Cout,                                  # rsqrt per channel
        bytes_accessed=(x2d.size * 4 + w2d.size * 2 + gb.size * 4 + Cout * HW * 4),
    )

    out2d = pl.pallas_call(
        conv_bn_kernel,
        out_shape=jax.ShapeDtypeStruct((Cout, HW), jnp.float32),
        grid_spec=pltpu.PrefetchScalarGridSpec(
            num_scalar_prefetch=0,
            grid=(n_blk,),
            in_specs=[
                pl.BlockSpec((Cin, HW), lambda j: (0, 0)),      # x: resident
                pl.BlockSpec((Cout, Cin), lambda j: (0, 0)),    # weights (bf16)
                pl.BlockSpec((Cout, 2), lambda j: (0, 0)),      # gamma|beta
            ],
            out_specs=pl.BlockSpec((Cout, HW), lambda j: (0, 0)),
        ),
        compiler_params=pltpu.CompilerParams(
            dimension_semantics=("arbitrary",),
        ),
        cost_estimate=cost,
    )(x2d, w2d, gb)

    # (Cout, HW) -> (1, Cout, H, W): free reshape.
    return out2d.reshape(N, Cout, H, W)


def reference_forward(x_nchw, w_oi, gamma, beta, matmul_dtype=jnp.float32):
    """Pure-JAX reference: 1x1 conv + training-mode batchnorm (N=1)."""
    N, Cin, H, W = x_nchw.shape
    Cout = w_oi.shape[0]
    x2d = x_nchw.reshape(Cin, H * W)
    y = jnp.dot(w_oi.astype(matmul_dtype), x2d.astype(matmul_dtype),
                preferred_element_type=jnp.float32)             # (Cout, HW)
    mean = jnp.mean(y, axis=1, keepdims=True)
    var = jnp.mean((y - mean) ** 2, axis=1, keepdims=True)      # biased variance
    yn = (y - mean) * jax.lax.rsqrt(var + EPS) * gamma.reshape(Cout, 1) \
         + beta.reshape(Cout, 1)
    return yn.reshape(N, Cout, H, W)


if __name__ == "__main__":
    # Shapes consistent with the module: Conv2d(1344->224, 1x1), input (1, 1344, 14, 14).
    N, Cin, H, W, Cout = 1, 1344, 14, 14, 224

    key = jax.random.PRNGKey(0)
    kx, kw, kg, kb = jax.random.split(key, 4)
    x = jax.random.normal(kx, (N, Cin, H, W), dtype=jnp.float32)
    bound = 1.0 / (Cin ** 0.5)
    w = jax.random.uniform(kw, (Cout, Cin), dtype=jnp.float32, minval=-bound, maxval=bound)
    # Affine BN params (random, to exercise the scale/shift path).
    gamma = jax.random.uniform(kg, (Cout,), dtype=jnp.float32, minval=0.5, maxval=1.5)
    beta = 0.1 * jax.random.normal(kb, (Cout,), dtype=jnp.float32)

    # One-time weight cast (outside jit): the kernel DMAs bf16 weights.
    w_bf16 = w.astype(jnp.bfloat16)

    fwd = jax.jit(conv2d_bn_forward)
    out = fwd(x, w_bf16, gamma, beta)
    jax.block_until_ready(out)
    assert out.shape == (N, Cout, H, W), out.shape
    assert not bool(jnp.any(jnp.isnan(out))), "NaN in kernel output"

    # Tight check vs a reference using the same bf16 MXU operands / f32 accumulation.
    ref_bf16 = reference_forward(x, w_bf16, gamma, beta, matmul_dtype=jnp.bfloat16)
    err_b = float(jnp.max(jnp.abs(out - ref_bf16)))
    assert jnp.allclose(out, ref_bf16, atol=5e-4, rtol=5e-4), err_b

    # Loose check vs the full-f32 reference (bf16 operand rounding over K=1344).
    ref_f32 = reference_forward(x, w, gamma, beta, matmul_dtype=jnp.float32)
    err_f = float(jnp.max(jnp.abs(out - ref_f32)))
    assert jnp.allclose(out, ref_f32, atol=2e-2, rtol=2e-2), err_f

    print("KERNEL_OK")
</pallas_src>

<mosaic_0001>
module attributes {stable_mosaic.version = 11 : i64} {
  func.func @conv_bn_kernel(%arg0: i32, %arg1: memref<1344x196xf32, #tpu.memory_space<vmem>>, %arg2: memref<224x1344xbf16, #tpu.memory_space<vmem>>, %arg3: memref<224x2xf32, #tpu.memory_space<vmem>>, %arg4: memref<224x196xf32, #tpu.memory_space<vmem>>) attributes {dimension_semantics = [#tpu.dimension_semantics<arbitrary>], iteration_bounds = array<i64: 1>, scalar_prefetch = 0 : i64, scratch_operands = 0 : i64, tpu.core_type = #tpu.core_type<tc>, window_params = [{pipeline_mode = #tpu.pipeline_mode<synchronous>, transform_indices = @transform_0, window_bounds = array<i64: 1344, 196>}, {pipeline_mode = #tpu.pipeline_mode<synchronous>, transform_indices = @transform_1, window_bounds = array<i64: 224, 1344>}, {pipeline_mode = #tpu.pipeline_mode<synchronous>, transform_indices = @transform_2, window_bounds = array<i64: 224, 2>}, {pipeline_mode = #tpu.pipeline_mode<synchronous>, transform_indices = @transform_3, window_bounds = array<i64: 224, 196>}]} {
    %c0 = arith.constant 0 : index
    %c0_0 = arith.constant 0 : index
    %0 = vector.load %arg1[%c0, %c0_0] : memref<1344x196xf32, #tpu.memory_space<vmem>>, vector<1344x196xf32>
    %1 = arith.truncf %0 : vector<1344x196xf32> to vector<1344x196xbf16>
    %c0_1 = arith.constant 0 : index
    %c0_2 = arith.constant 0 : index
    %2 = vector.load %arg2[%c0_1, %c0_2] : memref<224x1344xbf16, #tpu.memory_space<vmem>>, vector<224x1344xbf16>
    %cst = arith.constant dense<0.000000e+00> : vector<224x196xf32>
    %3 = tpu.matmul %2, %1, %cst {dimension_numbers = #tpu.dot_dimension_numbers<[1], [0], [0], [1], [0, 0, 1, 1], [], []>} : vector<224x1344xbf16>, vector<1344x196xbf16>, vector<224x196xf32> -> vector<224x196xf32>
    %cst_3 = arith.constant dense<0.000000e+00> : vector<224xf32>
    %4 = vector.multi_reduction <add>, %3, %cst_3 [1] : vector<224x196xf32> to vector<224xf32>
    %5 = vector.shape_cast %4 : vector<224xf32> to vector<224x1xf32>
    %6 = arith.mulf %3, %3 : vector<224x196xf32>
    %cst_4 = arith.constant dense<0.000000e+00> : vector<224xf32>
    %7 = vector.multi_reduction <add>, %6, %cst_4 [1] : vector<224x196xf32> to vector<224xf32>
    %8 = vector.shape_cast %7 : vector<224xf32> to vector<224x1xf32>
    %cst_5 = arith.constant 0.00510204071 : f32
    %9 = vector.broadcast %cst_5 : f32 to vector<224x1xf32>
    %10 = arith.mulf %5, %9 : vector<224x1xf32>
    %cst_6 = arith.constant 0.00510204071 : f32
    %11 = vector.broadcast %cst_6 : f32 to vector<224x1xf32>
    %12 = arith.mulf %8, %11 : vector<224x1xf32>
    %13 = arith.mulf %10, %10 : vector<224x1xf32>
    %14 = arith.subf %12, %13 : vector<224x1xf32>
    %cst_7 = arith.constant 0.000000e+00 : f32
    %15 = vector.broadcast %cst_7 : f32 to vector<224x1xf32>
    %16 = arith.maximumf %14, %15 : vector<224x1xf32>
    %c0_8 = arith.constant 0 : index
    %c0_9 = arith.constant 0 : index
    %17 = vector.load %arg3[%c0_8, %c0_9] : memref<224x2xf32, #tpu.memory_space<vmem>>, vector<224x1xf32>
    %c0_10 = arith.constant 0 : index
    %c1 = arith.constant 1 : index
    %18 = vector.load %arg3[%c0_10, %c1] : memref<224x2xf32, #tpu.memory_space<vmem>>, vector<224x1xf32>
    %cst_11 = arith.constant 1.000000e-03 : f32
    %19 = vector.broadcast %cst_11 : f32 to vector<224x1xf32>
    %20 = arith.addf %16, %19 : vector<224x1xf32>
    %21 = math.rsqrt %20 : vector<224x1xf32>
    %22 = arith.mulf %17, %21 : vector<224x1xf32>
    %23 = arith.mulf %10, %22 : vector<224x1xf32>
    %24 = arith.subf %18, %23 : vector<224x1xf32>
    %25 = vector.broadcast %22 : vector<224x1xf32> to vector<224x196xf32>
    %26 = arith.mulf %3, %25 : vector<224x196xf32>
    %27 = vector.broadcast %24 : vector<224x1xf32> to vector<224x196xf32>
    %28 = arith.addf %26, %27 : vector<224x196xf32>
    %c0_12 = arith.constant 0 : index
    %c0_13 = arith.constant 0 : index
    %29 = vector.load %arg4[%c0_12, %c0_13] : memref<224x196xf32, #tpu.memory_space<vmem>>, vector<224x196xf32>
    tpu.vector_store %arg4[%c0_12, %c0_13], %28 {strides = array<i32>} : memref<224x196xf32, #tpu.memory_space<vmem>>, vector<224x196xf32>,
    return
  }
  func.func @transform_0(%arg0: i32) -> (i32, i32) {
    %c0_i32 = arith.constant 0 : i32
    %c0_i32_0 = arith.constant 0 : i32
    %c0_i32_1 = arith.constant 0 : i32
    return %c0_i32, %c0_i32_0 : i32, i32
  }
  func.func @transform_1(%arg0: i32) -> (i32, i32) {
    %c0_i32 = arith.constant 0 : i32
    %c0_i32_0 = arith.constant 0 : i32
    %c0_i32_1 = arith.constant 0 : i32
    return %c0_i32, %c0_i32_0 : i32, i32
  }
  func.func @transform_2(%arg0: i32) -> (i32, i32) {
    %c0_i32 = arith.constant 0 : i32
    %c0_i32_0 = arith.constant 0 : i32
    %c0_i32_1 = arith.constant 0 : i32
    return %c0_i32, %c0_i32_0 : i32, i32
  }
  func.func @transform_3(%arg0: i32) -> (i32, i32) {
    %c0_i32 = arith.constant 0 : i32
    %c0_i32_0 = arith.constant 0 : i32
    %c0_i32_1 = arith.constant 0 : i32
    return %c0_i32, %c0_i32_0 : i32, i32
  }
}

</mosaic_0001>

<bundles_post_ra>
// kernel: conv2d_bn_forward.1
= control target key start
LH: loop header
LB: loop body
LE: loop exit
PB: predicated region body
PF: predicated region fallthrough
CT: control target
= control target key end

     0   :  { %vm1457_vm0 = vcmask 523264   ;;  %vm3238_vm1 = vcmask 556032   ;;  %s5551_s28 = smov 1   ;;  %s9974_s0 = inlined_call_operand.vmem [shape: f32[1344,196], index: 0, kind: input, shape index: {}]   ;;  %s9975_s1 = inlined_call_operand.vmem [shape: bf16[224,1344], index: 1, kind: input, shape index: {}]   ;;  %s9976_s2 = inlined_call_operand.vmem [shape: f32[224,2], index: 2, kind: input, shape index: {}]   ;;  %s9977_s3 = inlined_call_operand.vmem [shape: f32[224,196], index: 3, kind: output, shape index: {}]  }
   0x1   :  { %v43_v0 = vld [vmem:[%s9974_s0 + $0xe0] sm:$0xff]  ;;  %v45_v1 = vld [vmem:[%s9974_s0 + $0xf0] sm:$0xff]  ;;  %v4953_v46 = vld [vmem:[%s9975_s1 + $0x268] sm:$0xf] }
   0x2   :  { %v75_v2 = vld [vmem:[%s9974_s0 + $0x1e0] sm:$0xff]  ;;  %v365_v3 = vpack.c.bf16 %v45_v1, %v43_v0  ;;  %v77_v4 = vld [vmem:[%s9974_s0 + $0x1f0] sm:$0xff]  ;;  %v5364_v49 = vld [vmem:[%s9975_s1 + $0x26c] sm:$0xf] }
   0x3   :  { %v39_v5 = vld [vmem:[%s9974_s0 + $0xc0] sm:$0xff]  ;;  %v41_v6 = vld [vmem:[%s9974_s0 + $0xd0] sm:$0xff]  ;;  %v381_v7 = vpack.c.bf16 %v77_v4, %v75_v2  ;;  %v4955_v50 = vld [vmem:[%s9975_s1 + $0x294] sm:$0xf0] }
   0x4   :  { %v71_v8 = vld [vmem:[%s9974_s0 + $0x1c0] sm:$0xff]  ;;  %v73_v9 = vld [vmem:[%s9974_s0 + $0x1d0] sm:$0xff]  ;;  %5441 = vmatpush.bf16.msra.mxu2 %v365_v3  ;;  %1500 = vmatpush.bf16.msra.mxu0 %v365_v3  ;;  %v363_v10 = vpack.c.bf16 %v41_v6, %v39_v5  ;;  %v5292_v56 = vld [vmem:[%s9975_s1 + $0x28] sm:$0xf0] }
   0x5   :  { %5449 = vmatpush.bf16.msra.mxu3 %v381_v7  ;;  %1579 = vmatpush.bf16.msra.mxu1 %v381_v7  ;;  %v379_v11 = vpack.c.bf16 %v73_v9, %v71_v8  ;;  %v35_v12 = vld [vmem:[%s9974_s0 + $0xa0] sm:$0xff]  ;;  %v37_v13 = vld [vmem:[%s9974_s0 + $0xb0] sm:$0xff]  ;;  %v5733_v8 = vor.u32 %v5364_v49, %v4955_v50 }
   0x6   :  { %v67_v14 = vld [vmem:[%s9974_s0 + $0x1a0] sm:$0xff]  ;;  %v69_v15 = vld [vmem:[%s9974_s0 + $0x1b0] sm:$0xff]  ;;  %v361_v16 = vpack.c.bf16 %v37_v13, %v35_v12 }
   0x7   :  { %v377_v17 = vpack.c.bf16 %v69_v15, %v67_v14  ;;  %v31_v18 = vld [vmem:[%s9974_s0 + $0x80] sm:$0xff]  ;;  %v33_v19 = vld [vmem:[%s9974_s0 + $0x90] sm:$0xff]  ;;  %10187 = vst [vmem:[#allocation3_spill] sm:$0xff] %v5733_v8 }
   0x8   :  { %5442 = vmatpush.bf16.msra.mxu2 %v363_v10  ;;  %1501 = vmatpush.bf16.msra.mxu0 %v363_v10  ;;  %v63_v20 = vld [vmem:[%s9974_s0 + $0x180] sm:$0xff]  ;;  %v65_v21 = vld [vmem:[%s9974_s0 + $0x190] sm:$0xff]  ;;  %v359_v22 = vpack.c.bf16 %v33_v19, %v31_v18 }
   0x9   :  { %5450 = vmatpush.bf16.msra.mxu3 %v379_v11  ;;  %1580 = vmatpush.bf16.msra.mxu1 %v379_v11  ;;  %v375_v23 = vpack.c.bf16 %v65_v21, %v63_v20  ;;  %v27_v24 = vld [vmem:[%s9974_s0 + $0x60] sm:$0xff]  ;;  %v29_v25 = vld [vmem:[%s9974_s0 + $0x70] sm:$0xff] }
   0xa   :  { %v59_v26 = vld [vmem:[%s9974_s0 + $0x160] sm:$0xff]  ;;  %v61_v27 = vld [vmem:[%s9974_s0 + $0x170] sm:$0xff]  ;;  %v357_v28 = vpack.c.bf16 %v29_v25, %v27_v24 }
   0xb   :  { %v373_v29 = vpack.c.bf16 %v61_v27, %v59_v26  ;;  %v23_v30 = vld [vmem:[%s9974_s0 + $0x40] sm:$0xff]  ;;  %v25_v31 = vld [vmem:[%s9974_s0 + $0x50] sm:$0xff] }
   0xc   :  { %5443 = vmatpush.bf16.msra.mxu2 %v361_v16  ;;  %1502 = vmatpush.bf16.msra.mxu0 %v361_v16  ;;  %v55_v32 = vld [vmem:[%s9974_s0 + $0x140] sm:$0xff]  ;;  %v57_v33 = vld [vmem:[%s9974_s0 + $0x150] sm:$0xff]  ;;  %v355_v34 = vpack.c.bf16 %v25_v31, %v23_v30 }
   0xd   :  { %5451 = vmatpush.bf16.msra.mxu3 %v377_v17  ;;  %1581 = vmatpush.bf16.msra.mxu1 %v377_v17  ;;  %v371_v35 = vpack.c.bf16 %v57_v33, %v55_v32  ;;  %v19_v36 = vld [vmem:[%s9974_s0 + $0x20] sm:$0xff]  ;;  %v21_v37 = vld [vmem:[%s9974_s0 + $0x30] sm:$0xff] }
   0xe   :  { %v51_v38 = vld [vmem:[%s9974_s0 + $0x120] sm:$0xff]  ;;  %v53_v39 = vld [vmem:[%s9974_s0 + $0x130] sm:$0xff]  ;;  %v353_v40 = vpack.c.bf16 %v21_v37, %v19_v36 }
   0xf   :  { %v15_v41 = vld [vmem:[%s9974_s0] sm:$0xff]  ;;  %v369_v42 = vpack.c.bf16 %v53_v39, %v51_v38  ;;  %v17_v43 = vld [vmem:[%s9974_s0 + $0x10] sm:$0xff]  ;;  %v5380_v39 = vld [vmem:[%s9975_s1 + $0x2e8] sm:$0xf0] }
  0x10   :  { %5444 = vmatpush.bf16.msra.mxu2 %v359_v22  ;;  %1503 = vmatpush.bf16.msra.mxu0 %v359_v22  ;;  %v47_v44 = vld [vmem:[%s9974_s0 + $0x100] sm:$0xff]  ;;  %v49_v45 = vld [vmem:[%s9974_s0 + $0x110] sm:$0xff]  ;;  %v351_v54 = vpack.c.bf16 %v17_v43, %v15_v41  ;;  %v4689_v41 = vld [vmem:[%s9975_s1 + $0x58] sm:$0xf] }
  0x11   :  { %5452 = vmatpush.bf16.msra.mxu3 %v375_v23  ;;  %1582 = vmatpush.bf16.msra.mxu1 %v375_v23  ;;  %v5369_v47 = vld [vmem:[%s9975_s1 + $0x290] sm:$0xf0]  ;;  %v107_v48 = vld [vmem:[%s9974_s0 + $0x2e0] sm:$0xff]  ;;  %v367_v58 = vpack.c.bf16 %v49_v45, %v47_v44  ;;  %v4647_v59 = vld [vmem:[%s9975_s1 + $0x2c] sm:$0xf0] }
  0x12   :  { %v109_v51 = vld [vmem:[%s9974_s0 + $0x2f0] sm:$0xff]  ;;  %v139_v52 = vld [vmem:[%s9974_s0 + $0x3e0] sm:$0xff]  ;;  %v5720_v3 = vor.u32 %v5369_v47, %v4953_v46  ;;  %v5298_v44 = vld [vmem:[%s9975_s1 + $0x5c] sm:$0xf] }
  0x13   :  { %v141_v53 = vld [vmem:[%s9974_s0 + $0x3f0] sm:$0xff]  ;;  %v4645_v55 = vld [vmem:[%s9975_s1] sm:$0xf]  ;;  %v5287_v57 = vld [vmem:[%s9975_s1 + $0x4] sm:$0xf]  ;;  %v397_v62 = vpack.c.bf16 %v109_v51, %v107_v48 }
  0x14   :  { %5445 = vmatpush.bf16.msra.mxu2 %v357_v28  ;;  %1504 = vmatpush.bf16.msra.mxu0 %v357_v28  ;;  %v171_v60 = vld [vmem:[%s9974_s0 + $0x4e0] sm:$0xff]  ;;  %v173_v61 = vld [vmem:[%s9974_s0 + $0x4f0] sm:$0xff]  ;;  %v413_v63 = vpack.c.bf16 %v141_v53, %v139_v52  ;;  %10186 = vst [vmem:[#allocation2_spill] sm:$0xff] %v5720_v3  ;;  %v5722_v4 = vor.u32 %v5292_v56, %v4645_v55  ;;  %v4691_v45 = vld [vmem:[%s9975_s1 + $0x84] sm:$0xf0] }
  0x15   :  { %5453 = vmatpush.bf16.msra.mxu3 %v373_v29  ;;  %1583 = vmatpush.bf16.msra.mxu1 %v373_v29  ;;  %v203_v0 = vld [vmem:[%s9974_s0 + $0x5e0] sm:$0xff]  ;;  %v205_v1 = vld [vmem:[%s9974_s0 + $0x5f0] sm:$0xff]  ;;  %v5735_v9 = vor.u32 %v5287_v57, %v4647_v59  ;;  %v429_v10 = vpack.c.bf16 %v173_v61, %v171_v60  ;;  %v5819_v49 = vor.u32 %v5298_v44, %v4691_v45 }
  0x16   :  { %v103_v2 = vld [vmem:[%s9974_s0 + $0x2c0] sm:$0xff]  ;;  %v105_v5 = vld [vmem:[%s9974_s0 + $0x2d0] sm:$0xff]  ;;  %v445_v11 = vpack.c.bf16 %v205_v1, %v203_v0  ;;  %v5386_v0 = vld [vmem:[%s9975_s1 + $0x31c] sm:$0xf] }
  0x17   :  { %v135_v6 = vld [vmem:[%s9974_s0 + $0x3c0] sm:$0xff]  ;;  %v137_v7 = vld [vmem:[%s9974_s0 + $0x3d0] sm:$0xff]  ;;  %v395_v14 = vpack.c.bf16 %v105_v5, %v103_v2  ;;  %v5314_v2 = vld [vmem:[%s9975_s1 + $0xd8] sm:$0xf0] }
  0x18   :  { %5446 = vmatpush.bf16.msra.mxu2 %v355_v34  ;;  %1505 = vmatpush.bf16.msra.mxu0 %v355_v34  ;;  %v167_v12 = vld [vmem:[%s9974_s0 + $0x4c0] sm:$0xff]  ;;  %v169_v13 = vld [vmem:[%s9974_s0 + $0x4d0] sm:$0xff]  ;;  %v411_v15 = vpack.c.bf16 %v137_v7, %v135_v6  ;;  %v5043_v5 = vld [vmem:[%s9975_s1 + $0x344] sm:$0xf0] }
  0x19   :  { %5454 = vmatpush.bf16.msra.mxu3 %v371_v35  ;;  %1584 = vmatpush.bf16.msra.mxu1 %v371_v35  ;;  %v199_v16 = vld [vmem:[%s9974_s0 + $0x5c0] sm:$0xff]  ;;  %v201_v17 = vld [vmem:[%s9974_s0 + $0x5d0] sm:$0xff]  ;;  %v427_v22 = vpack.c.bf16 %v169_v13, %v167_v12  ;;  %v5877_v12 = vor.u32 %v5386_v0, %v5043_v5 }
  0x1a   :  { %v99_v18 = vld [vmem:[%s9974_s0 + $0x2a0] sm:$0xff]  ;;  %v101_v19 = vld [vmem:[%s9974_s0 + $0x2b0] sm:$0xff]  ;;  %v443_v23 = vpack.c.bf16 %v201_v17, %v199_v16 }
  0x1b   :  { %v131_v20 = vld [vmem:[%s9974_s0 + $0x3a0] sm:$0xff]  ;;  %v133_v21 = vld [vmem:[%s9974_s0 + $0x3b0] sm:$0xff]  ;;  %v393_v26 = vpack.c.bf16 %v101_v19, %v99_v18  ;;  %10191 = vst [vmem:[#allocation7_spill] sm:$0xff] %v5877_v12 }
  0x1c   :  { %5447 = vmatpush.bf16.msra.mxu2 %v353_v40  ;;  %1506 = vmatpush.bf16.msra.mxu0 %v353_v40  ;;  %v163_v24 = vld [vmem:[%s9974_s0 + $0x4a0] sm:$0xff]  ;;  %v165_v25 = vld [vmem:[%s9974_s0 + $0x4b0] sm:$0xff]  ;;  %v409_v27 = vpack.c.bf16 %v133_v21, %v131_v20 }
  0x1d   :  { %5455 = vmatpush.bf16.msra.mxu3 %v369_v42  ;;  %1585 = vmatpush.bf16.msra.mxu1 %v369_v42  ;;  %v195_v28 = vld [vmem:[%s9974_s0 + $0x5a0] sm:$0xff]  ;;  %v197_v29 = vld [vmem:[%s9974_s0 + $0x5b0] sm:$0xff]  ;;  %v425_v34 = vpack.c.bf16 %v165_v25, %v163_v24 }
  0x1e   :  { %v95_v30 = vld [vmem:[%s9974_s0 + $0x280] sm:$0xff]  ;;  %v97_v31 = vld [vmem:[%s9974_s0 + $0x290] sm:$0xff]  ;;  %v441_v35 = vpack.c.bf16 %v197_v29, %v195_v28  ;;  %v4777_v29 = vld [vmem:[%s9975_s1 + $0x108] sm:$0xf] }
  0x1f   :  { %v127_v32 = vld [vmem:[%s9974_s0 + $0x380] sm:$0xff]  ;;  %v129_v33 = vld [vmem:[%s9974_s0 + $0x390] sm:$0xff]  ;;  %v391_v36 = vpack.c.bf16 %v97_v31, %v95_v30 }
  0x20   :  { %5448 = vmatpush.bf16.msra.mxu2 %v351_v54  ;;  %1507 = vmatpush.bf16.msra.mxu0 %v351_v54  ;;  %v407_v37 = vpack.c.bf16 %v129_v33, %v127_v32  ;;  %v4997_v38 = vld [vmem:[%s9975_s1 + $0x2c0] sm:$0xf]  ;;  %v5375_v40 = vld [vmem:[%s9975_s1 + $0x2c4] sm:$0xf]  ;;  %v4999_v43 = vld [vmem:[%s9975_s1 + $0x2ec] sm:$0xf0] }
  0x21   :  { %5456 = vmatpush.bf16.msra.mxu3 %v367_v58  ;;  %1586 = vmatpush.bf16.msra.mxu1 %v367_v58  ;;  %v5303_v42 = vld [vmem:[%s9975_s1 + $0x80] sm:$0xf0]  ;;  %v5813_v46 = vor.u32 %v5380_v39, %v4997_v38  ;;  %v5817_v48 = vor.u32 %v5375_v40, %v4999_v43  ;;  %v161_v51 = vld [vmem:[%s9974_s0 + $0x490] sm:$0xff]  ;;  %v4735_v7 = vld [vmem:[%s9975_s1 + $0xdc] sm:$0xf0] }
  0x22   :  { %v5815_v47 = vor.u32 %v5303_v42, %v4689_v41  ;;  %v159_v50 = vld [vmem:[%s9974_s0 + $0x480] sm:$0xff]  ;;  %v193_v54 = vld [vmem:[%s9974_s0 + $0x590] sm:$0xff]  ;;  %v5320_v32 = vld [vmem:[%s9975_s1 + $0x10c] sm:$0xf] }
  0x23   :  { %1543 = vmatmul.bf16.vlgmr.msra.gmra.mxu2 %v5720_v3  ;;  %1508 = vmatmul.bf16.vlgmr.msra.gmra.mxu0 %v5722_v4  ;;  %10188 = vst [vmem:[#allocation4_spill] sm:$0xff] %v5813_v46  ;;  %v423_v52 = vpack.c.bf16 %v161_v51, %v159_v50  ;;  %v191_v53 = vld [vmem:[%s9974_s0 + $0x580] sm:$0xff]  ;;  %v93_v57 = vld [vmem:[%s9974_s0 + $0x270] sm:$0xff]  ;;  %v4779_v33 = vld [vmem:[%s9975_s1 + $0x134] sm:$0xf0] }
  0x24   :  { %1658 = vmatpush.bf16.msrb.mxu2 %v397_v62  ;;  %1622 = vmatmul.bf16.vlgmr.msra.gmra.mxu3 %v5733_v8  ;;  %10189 = vst [vmem:[#allocation5_spill] sm:$0xff] %v5817_v48  ;;  %v91_v55 = vld [vmem:[%s9974_s0 + $0x260] sm:$0xff]  ;;  %v439_v56 = vpack.c.bf16 %v193_v54, %v191_v53  ;;  %v125_v59 = vld [vmem:[%s9974_s0 + $0x370] sm:$0xff]  ;;  %v5041_v62 = vld [vmem:[%s9975_s1 + $0x318] sm:$0xf] }
  0x25   :  { %1737 = vmatpush.bf16.msrb.mxu3 %v413_v63  ;;  %1587 = vmatmul.bf16.vlgmr.msra.gmra.mxu1 %v5735_v9  ;;  %v123_v58 = vld [vmem:[%s9974_s0 + $0x360] sm:$0xff]  ;;  %v389_v60 = vpack.c.bf16 %v93_v57, %v91_v55  ;;  %v4733_v1 = vld [vmem:[%s9975_s1 + $0xb0] sm:$0xf]  ;;  %v5309_v6 = vld [vmem:[%s9975_s1 + $0xb4] sm:$0xf] }
  0x26   :  { %1816 = vmatpush.bf16.msrb.mxu0 %v429_v10  ;;  %1895 = vmatpush.bf16.msrb.mxu1 %v445_v11  ;;  %v405_v61 = vpack.c.bf16 %v125_v59, %v123_v58  ;;  %v5391_v63 = vld [vmem:[%s9975_s1 + $0x340] sm:$0xf0]  ;;  %v5875_v11 = vor.u32 %v5314_v2, %v4733_v1  ;;  %v5879_v13 = vor.u32 %v5309_v6, %v4735_v7  ;;  %v189_v18 = vld [vmem:[%s9974_s0 + $0x570] sm:$0xff]  ;;  %v5087_v31 = vld [vmem:[%s9975_s1 + $0x39c] sm:$0xf0] }
  0x27   :  { %v5873_v10 = vor.u32 %v5391_v63, %v5041_v62  ;;  %v187_v17 = vld [vmem:[%s9974_s0 + $0x560] sm:$0xff]  ;;  %v89_v21 = vld [vmem:[%s9974_s0 + $0x250] sm:$0xff]  ;;  %v5129_v57 = vld [vmem:[%s9975_s1 + $0x3c8] sm:$0xf] }
  0x28   :  { %1659 = vmatpush.bf16.msrb.mxu2 %v395_v14  ;;  %v155_v14 = vld [vmem:[%s9974_s0 + $0x460] sm:$0xff]  ;;  %v437_v20 = vpack.c.bf16 %v189_v18, %v187_v17  ;;  %v5397_v28 = vld [vmem:[%s9975_s1 + $0x374] sm:$0xf]  ;;  %v5408_v59 = vld [vmem:[%s9975_s1 + $0x3cc] sm:$0xf] }
  0x29   :  { %1738 = vmatpush.bf16.msrb.mxu3 %v411_v15  ;;  %10190 = vst [vmem:[#allocation6_spill] sm:$0xff] %v5873_v10  ;;  %v157_v15 = vld [vmem:[%s9974_s0 + $0x470] sm:$0xff]  ;;  %v87_v19 = vld [vmem:[%s9974_s0 + $0x240] sm:$0xff]  ;;  %v5131_v62 = vld [vmem:[%s9975_s1 + $0x3f4] sm:$0xf0] }
  0x2a   :  { %1817 = vmatpush.bf16.msrb.mxu0 %v427_v22  ;;  %1896 = vmatpush.bf16.msrb.mxu1 %v443_v23  ;;  %v421_v16 = vpack.c.bf16 %v157_v15, %v155_v14  ;;  %v119_v22 = vld [vmem:[%s9974_s0 + $0x340] sm:$0xff]  ;;  %v121_v23 = vld [vmem:[%s9974_s0 + $0x350] sm:$0xff]  ;;  %v387_v24 = vpack.c.bf16 %v89_v21, %v87_v19  ;;  %v6003_v5 = vor.u32 %v5408_v59, %v5131_v62  ;;  %v5430_v62 = vld [vmem:[%s9975_s1 + $0x47c] sm:$0xf] }
  0x2b   :  { %v403_v25 = vpack.c.bf16 %v121_v23, %v119_v22  ;;  %v5325_v30 = vld [vmem:[%s9975_s1 + $0x130] sm:$0xf0]  ;;  %v151_v38 = vld [vmem:[%s9974_s0 + $0x440] sm:$0xff]  ;;  %v4823_v0 = vld [vmem:[%s9975_s1 + $0x18c] sm:$0xf0] }
  0x2c   :  { %1660 = vmatpush.bf16.msrb.mxu2 %v393_v26  ;;  %v5085_v26 = vld [vmem:[%s9975_s1 + $0x370] sm:$0xf]  ;;  %v183_v41 = vld [vmem:[%s9974_s0 + $0x540] sm:$0xff]  ;;  %v5413_v58 = vld [vmem:[%s9975_s1 + $0x3f0] sm:$0xf0]  ;;  %10197 = vst [vmem:[#allocation13_spill] sm:$0xff] %v6003_v5 }
  0x2d   :  { %1739 = vmatpush.bf16.msrb.mxu3 %v409_v27  ;;  %v5402_v27 = vld [vmem:[%s9975_s1 + $0x398] sm:$0xf0]  ;;  %v153_v39 = vld [vmem:[%s9974_s0 + $0x450] sm:$0xff]  ;;  %v83_v43 = vld [vmem:[%s9974_s0 + $0x220] sm:$0xff]  ;;  %v5999_v1 = vor.u32 %v5413_v58, %v5129_v57 }
  0x2e   :  { %1818 = vmatpush.bf16.msrb.mxu0 %v425_v34  ;;  %1897 = vmatpush.bf16.msrb.mxu1 %v441_v35  ;;  %v5933_v34 = vor.u32 %v5402_v27, %v5085_v26  ;;  %v5935_v35 = vor.u32 %v5325_v30, %v4777_v29  ;;  %v419_v40 = vpack.c.bf16 %v153_v39, %v151_v38  ;;  %v185_v42 = vld [vmem:[%s9974_s0 + $0x550] sm:$0xff]  ;;  %v115_v50 = vld [vmem:[%s9974_s0 + $0x320] sm:$0xff]  ;;  %v5424_v29 = vld [vmem:[%s9975_s1 + $0x448] sm:$0xf0] }
  0x2f   :  { %v435_v44 = vpack.c.bf16 %v185_v42, %v183_v41  ;;  %v85_v45 = vld [vmem:[%s9974_s0 + $0x230] sm:$0xff]  ;;  %v147_v54 = vld [vmem:[%s9974_s0 + $0x420] sm:$0xff]  ;;  %10195 = vst [vmem:[#allocation11_spill] sm:$0xff] %v5999_v1  ;;  %v5342_v38 = vld [vmem:[%s9975_s1 + $0x1bc] sm:$0xf] }
  0x30   :  { %1661 = vmatpush.bf16.msrb.mxu2 %v391_v36  ;;  %10192 = vst [vmem:[#allocation8_spill] sm:$0xff] %v5933_v34  ;;  %v5937_v36 = vor.u32 %v5397_v28, %v5087_v31  ;;  %v117_v51 = vld [vmem:[%s9974_s0 + $0x330] sm:$0xff]  ;;  %v5331_v63 = vld [vmem:[%s9975_s1 + $0x164] sm:$0xf]  ;;  %v5173_v28 = vld [vmem:[%s9975_s1 + $0x420] sm:$0xf] }
  0x31   :  { %1740 = vmatpush.bf16.msrb.mxu3 %v407_v37  ;;  %10193 = vst [vmem:[#allocation9_spill] sm:$0xff] %v5935_v35  ;;  %v5939_v37 = vor.u32 %v5320_v32, %v4779_v33  ;;  %v401_v53 = vpack.c.bf16 %v117_v51, %v115_v50  ;;  %v149_v55 = vld [vmem:[%s9974_s0 + $0x430] sm:$0xff]  ;;  %v6005_v6 = vor.u32 %v5331_v63, %v4823_v0  ;;  %v179_v7 = vld [vmem:[%s9974_s0 + $0x520] sm:$0xff]  ;;  %v4865_v31 = vld [vmem:[%s9975_s1 + $0x1b8] sm:$0xf] }
  0x32   :  { %1819 = vmatpush.bf16.msrb.mxu0 %v423_v52  ;;  %1898 = vmatpush.bf16.msrb.mxu1 %v439_v56  ;;  %10194 = vst [vmem:[#allocation10_spill] sm:$0xff] %v5937_v36  ;;  %v385_v52 = vpack.c.bf16 %v85_v45, %v83_v43  ;;  %v417_v56 = vpack.c.bf16 %v149_v55, %v147_v54  ;;  %v181_v14 = vld [vmem:[%s9974_s0 + $0x530] sm:$0xff]  ;;  %v111_v18 = vld [vmem:[%s9974_s0 + $0x300] sm:$0xff]  ;;  %v4867_v39 = vld [vmem:[%s9975_s1 + $0x1e4] sm:$0xf0] }
  0x33   :  { %1548 = vmatmul.bf16.gmra.mxu2 %v5813_v46  ;;  %1513 = vmatmul.bf16.gmra.mxu0 %v5815_v47  ;;  %10198 = vst [vmem:[#allocation14_spill] sm:$0xff] %v6005_v6  ;;  %v433_v15 = vpack.c.bf16 %v181_v14, %v179_v7  ;;  %v81_v17 = vld [vmem:[%s9974_s0 + $0x210] sm:$0xff]  ;;  %v143_v21 = vld [vmem:[%s9974_s0 + $0x400] sm:$0xff]  ;;  %v6071_v43 = vor.u32 %v5342_v38, %v4867_v39  ;;  %v5358_v0 = vld [vmem:[%s9975_s1 + $0x238] sm:$0xf0] }
  0x34   :  { %1627 = vmatmul.bf16.gmra.mxu3 %v5817_v48  ;;  %1662 = vmatpush.bf16.msrb.mxu2 %v389_v60  ;;  %v4821_v60 = vld [vmem:[%s9975_s1 + $0x160] sm:$0xf]  ;;  %v145_v22 = vld [vmem:[%s9974_s0 + $0x410] sm:$0xff]  ;;  %v5419_v30 = vld [vmem:[%s9975_s1 + $0x424] sm:$0xf] }
  0x35   :  { %1592 = vmatmul.bf16.gmra.mxu1 %v5819_v49  ;;  %1741 = vmatpush.bf16.msrb.mxu3 %v405_v61  ;;  %v5336_v61 = vld [vmem:[%s9975_s1 + $0x188] sm:$0xf0]  ;;  %v177_v26 = vld [vmem:[%s9974_s0 + $0x510] sm:$0xff]  ;;  %v5347_v32 = vld [vmem:[%s9975_s1 + $0x1e0] sm:$0xf0]  ;;  %10202 = vst [vmem:[#allocation18_spill] sm:$0xff] %v6071_v43 }
  0x36   :  { %1820 = vmatpush.bf16.msrb.mxu0 %v421_v16  ;;  %1899 = vmatpush.bf16.msrb.mxu1 %v437_v20  ;;  %v6001_v2 = vor.u32 %v5336_v61, %v4821_v60  ;;  %v79_v16 = vld [vmem:[%s9974_s0 + $0x200] sm:$0xff]  ;;  %v113_v20 = vld [vmem:[%s9974_s0 + $0x310] sm:$0xff]  ;;  %v6067_v41 = vor.u32 %v5347_v32, %v4865_v31  ;;  %v5217_v60 = vld [vmem:[%s9975_s1 + $0x478] sm:$0xf] }
  0x37   :  { %v383_v19 = vpack.c.bf16 %v81_v17, %v79_v16  ;;  %v399_v23 = vpack.c.bf16 %v113_v20, %v111_v18  ;;  %v5175_v33 = vld [vmem:[%s9975_s1 + $0x44c] sm:$0xf0]  ;;  %v267_v50 = vld [vmem:[%s9974_s0 + $0x7e0] sm:$0xff]  ;;  %v5219_v7 = vld [vmem:[%s9975_s1 + $0x4a4] sm:$0xf0] }
  0x38   :  { %1663 = vmatpush.bf16.msrb.mxu2 %v387_v24  ;;  %10196 = vst [vmem:[#allocation12_spill] sm:$0xff] %v6001_v2  ;;  %v415_v24 = vpack.c.bf16 %v145_v22, %v143_v21  ;;  %v6069_v42 = vor.u32 %v5419_v30, %v5175_v33  ;;  %v237_v45 = vld [vmem:[%s9974_s0 + $0x6f0] sm:$0xff]  ;;  %v299_v54 = vld [vmem:[%s9974_s0 + $0x8e0] sm:$0xff]  ;;  %v6129_v18 = vor.u32 %v5430_v62, %v5219_v7  ;;  %v4653_v20 = vld [vmem:[%s9975_s1 + $0x8] sm:$0xf] }
  0x39   :  { %1742 = vmatpush.bf16.msrb.mxu3 %v403_v25  ;;  %v175_v25 = vld [vmem:[%s9974_s0 + $0x500] sm:$0xff]  ;;  %10200 = vst [vmem:[#allocation16_spill] sm:$0xff] %v6067_v41  ;;  %v301_v55 = vld [vmem:[%s9974_s0 + $0x8f0] sm:$0xff]  ;;  %v5288_v22 = vld [vmem:[%s9975_s1 + $0xc] sm:$0xf] }
  0x3a   :  { %1821 = vmatpush.bf16.msrb.mxu0 %v419_v40  ;;  %1900 = vmatpush.bf16.msrb.mxu1 %v435_v44  ;;  %v431_v27 = vpack.c.bf16 %v177_v26, %v175_v25  ;;  %v6065_v40 = vor.u32 %v5424_v29, %v5173_v28  ;;  %10201 = vst [vmem:[#allocation17_spill] sm:$0xff] %v6069_v42  ;;  %v235_v44 = vld [vmem:[%s9974_s0 + $0x6e0] sm:$0xff]  ;;  %v333_v58 = vld [vmem:[%s9974_s0 + $0x9f0] sm:$0xff]  ;;  %v4655_v25 = vld [vmem:[%s9975_s1 + $0x34] sm:$0xf0] }
  0x3b   :  { %v461_v51 = vpack.c.bf16 %v237_v45, %v235_v44  ;;  %v493_v57 = vpack.c.bf16 %v301_v55, %v299_v54  ;;  %v5435_v61 = vld [vmem:[%s9975_s1 + $0x4a0] sm:$0xf0]  ;;  %v4909_v63 = vld [vmem:[%s9975_s1 + $0x210] sm:$0xf]  ;;  %v5353_v14 = vld [vmem:[%s9975_s1 + $0x214] sm:$0xf]  ;;  %v6165_v30 = vor.u32 %v5288_v22, %v4655_v25 }
  0x3c   :  { %1664 = vmatpush.bf16.msrb.mxu2 %v385_v52  ;;  %10199 = vst [vmem:[#allocation15_spill] sm:$0xff] %v6065_v40  ;;  %v269_v52 = vld [vmem:[%s9974_s0 + $0x7f0] sm:$0xff]  ;;  %v6125_v16 = vor.u32 %v5435_v61, %v5217_v60  ;;  %v6127_v17 = vor.u32 %v5358_v0, %v4909_v63  ;;  %v231_v32 = vld [vmem:[%s9974_s0 + $0x6c0] sm:$0xff]  ;;  %v5300_v62 = vld [vmem:[%s9975_s1 + $0x6c] sm:$0xf] }
  0x3d   :  { %1743 = vmatpush.bf16.msrb.mxu3 %v401_v53  ;;  %v477_v53 = vpack.c.bf16 %v269_v52, %v267_v50  ;;  %10205 = vst [vmem:[#allocation21_spill] sm:$0xff] %v6129_v18  ;;  %v5293_v21 = vld [vmem:[%s9975_s1 + $0x30] sm:$0xf0]  ;;  %v263_v38 = vld [vmem:[%s9974_s0 + $0x7c0] sm:$0xff]  ;;  %v4699_v61 = vld [vmem:[%s9975_s1 + $0x8c] sm:$0xf0] }
  0x3e   :  { %1822 = vmatpush.bf16.msrb.mxu0 %v417_v56  ;;  %1901 = vmatpush.bf16.msrb.mxu1 %v433_v15  ;;  %v331_v56 = vld [vmem:[%s9974_s0 + $0x9e0] sm:$0xff]  ;;  %10203 = vst [vmem:[#allocation19_spill] sm:$0xff] %v6125_v16  ;;  %v5289_v26 = vld [vmem:[%s9975_s1 + $0x14] sm:$0xf]  ;;  %v6161_v28 = vor.u32 %v5293_v21, %v4653_v20  ;;  %v4707_v63 = vld [vmem:[%s9975_s1 + $0x94] sm:$0xf0] }
  0x3f   :  { %v509_v59 = vpack.c.bf16 %v333_v58, %v331_v56  ;;  %v4911_v15 = vld [vmem:[%s9975_s1 + $0x23c] sm:$0xf0]  ;;  %10204 = vst [vmem:[#allocation20_spill] sm:$0xff] %v6127_v17  ;;  %v233_v33 = vld [vmem:[%s9974_s0 + $0x6d0] sm:$0xff]  ;;  %v5304_v56 = vld [vmem:[%s9975_s1 + $0x88] sm:$0xf0]  ;;  %v6227_v20 = vor.u32 %v5300_v62, %v4707_v63 }
  0x40   :  { %1665 = vmatpush.bf16.msrb.mxu2 %v383_v19  ;;  %v6131_v19 = vor.u32 %v5353_v14, %v4911_v15  ;;  %10208 = vst [vmem:[#allocation24_spill] sm:$0xff] %v6165_v30  ;;  %v459_v39 = vpack.c.bf16 %v233_v33, %v231_v32  ;;  %v265_v44 = vld [vmem:[%s9974_s0 + $0x7d0] sm:$0xff]  ;;  %v295_v50 = vld [vmem:[%s9974_s0 + $0x8c0] sm:$0xff] }
  0x41   :  { %1744 = vmatpush.bf16.msrb.mxu3 %v399_v23  ;;  %v4661_v23 = vld [vmem:[%s9975_s1 + $0x10] sm:$0xf]  ;;  %v475_v45 = vpack.c.bf16 %v265_v44, %v263_v38  ;;  %v4697_v55 = vld [vmem:[%s9975_s1 + $0x60] sm:$0xf]  ;;  %v5299_v58 = vld [vmem:[%s9975_s1 + $0x64] sm:$0xf] }
  0x42   :  { %1823 = vmatpush.bf16.msrb.mxu0 %v415_v24  ;;  %1902 = vmatpush.bf16.msrb.mxu1 %v431_v27  ;;  %10206 = vst [vmem:[#allocation22_spill] sm:$0xff] %v6131_v19  ;;  %v5294_v24 = vld [vmem:[%s9975_s1 + $0x38] sm:$0xf0]  ;;  %v4663_v27 = vld [vmem:[%s9975_s1 + $0x3c] sm:$0xf0]  ;;  %v329_v54 = vld [vmem:[%s9974_s0 + $0x9d0] sm:$0xff]  ;;  %v6221_v0 = vor.u32 %v5304_v56, %v4697_v55  ;;  %v6225_v15 = vor.u32 %v5299_v58, %v4699_v61 }
  0x43   :  { %1553 = vmatmul.bf16.gmra.mxu2 %v5873_v10  ;;  %1518 = vmatmul.bf16.gmra.mxu0 %v5875_v11  ;;  %v6163_v29 = vor.u32 %v5294_v24, %v4661_v23  ;;  %v6167_v31 = vor.u32 %v5289_v26, %v4663_v27  ;;  %v5305_v60 = vld [vmem:[%s9975_s1 + $0x90] sm:$0xf0]  ;;  %10212 = vst [vmem:[#allocation28_spill] sm:$0xff] %v6227_v20  ;;  %v227_v33 = vld [vmem:[%s9974_s0 + $0x6a0] sm:$0xff]  ;;  %v4741_v44 = vld [vmem:[%s9975_s1 + $0xb8] sm:$0xf] }
  0x44   :  { %1632 = vmatmul.bf16.gmra.mxu3 %v5877_v12  ;;  %1974 = vmatpush.bf16.msra.mxu2 %v461_v51  ;;  %v297_v51 = vld [vmem:[%s9974_s0 + $0x8d0] sm:$0xff]  ;;  %10211 = vst [vmem:[#allocation27_spill] sm:$0xff] %v6225_v15  ;;  %v4743_v56 = vld [vmem:[%s9975_s1 + $0xe4] sm:$0xf0] }
  0x45   :  { %1597 = vmatmul.bf16.gmra.mxu1 %v5879_v13  ;;  %2053 = vmatpush.bf16.msra.mxu3 %v477_v53  ;;  %10207 = vst [vmem:[#allocation23_spill] sm:$0xff] %v6163_v29  ;;  %v491_v52 = vpack.c.bf16 %v297_v51, %v295_v50  ;;  %v327_v53 = vld [vmem:[%s9974_s0 + $0x9c0] sm:$0xff]  ;;  %v229_v38 = vld [vmem:[%s9974_s0 + $0x6b0] sm:$0xff] }
  0x46   :  { %2132 = vmatpush.bf16.msra.mxu0 %v493_v57  ;;  %2211 = vmatpush.bf16.msra.mxu1 %v509_v59  ;;  %10209 = vst [vmem:[#allocation25_spill] sm:$0xff] %v6167_v31  ;;  %v507_v57 = vpack.c.bf16 %v329_v54, %v327_v53  ;;  %v4705_v59 = vld [vmem:[%s9975_s1 + $0x68] sm:$0xf]  ;;  %v457_v50 = vpack.c.bf16 %v229_v38, %v227_v33  ;;  %v261_v51 = vld [vmem:[%s9974_s0 + $0x7b0] sm:$0xff]  ;;  %v4749_v53 = vld [vmem:[%s9975_s1 + $0xc0] sm:$0xf] }
  0x47   :  { %v6223_v7 = vor.u32 %v5305_v60, %v4705_v59  ;;  %v5316_v54 = vld [vmem:[%s9975_s1 + $0xe8] sm:$0xf0]  ;;  %v4751_v58 = vld [vmem:[%s9975_s1 + $0xec] sm:$0xf0] }
  0x48   :  { %1975 = vmatpush.bf16.msra.mxu2 %v459_v39  ;;  %v259_v39 = vld [vmem:[%s9974_s0 + $0x7a0] sm:$0xff]  ;;  %v6277_v62 = vor.u32 %v5316_v54, %v4749_v53  ;;  %v293_v33 = vld [vmem:[%s9974_s0 + $0x8b0] sm:$0xff] }
  0x49   :  { %2054 = vmatpush.bf16.msra.mxu3 %v475_v45  ;;  %10210 = vst [vmem:[#allocation26_spill] sm:$0xff] %v6223_v7  ;;  %v5315_v45 = vld [vmem:[%s9975_s1 + $0xe0] sm:$0xf0]  ;;  %v473_v55 = vpack.c.bf16 %v261_v51, %v259_v39 }
  0x4a   :  { %2133 = vmatpush.bf16.msra.mxu0 %v491_v52  ;;  %2212 = vmatpush.bf16.msra.mxu1 %v507_v57  ;;  %v5310_v52 = vld [vmem:[%s9975_s1 + $0xbc] sm:$0xf]  ;;  %v5311_v57 = vld [vmem:[%s9975_s1 + $0xc4] sm:$0xf]  ;;  %v6275_v61 = vor.u32 %v5315_v45, %v4741_v44  ;;  %10213 = vst [vmem:[#allocation29_spill] sm:$0xff] %v6277_v62 }
  0x4b   :  { %v323_v51 = vld [vmem:[%s9974_s0 + $0x9a0] sm:$0xff] }
  0x4c   :  { %1976 = vmatpush.bf16.msra.mxu2 %v457_v50 }
  0x4d   :  { %2055 = vmatpush.bf16.msra.mxu3 %v473_v55 }
  0x53   :  { %1558 = vmatmul.bf16.gmra.mxu2 %v5933_v34  ;;  %1523 = vmatmul.bf16.gmra.mxu0 %v5935_v35  ;;  %v315_v34 = vld [vmem:[%s9974_s0 + $0x960] sm:$0xff] }
  0x54   :  { %1637 = vmatmul.bf16.gmra.mxu3 %v5937_v36 }
  0x55   :  { %1602 = vmatmul.bf16.gmra.mxu1 %v5939_v37 }
  0x63   :  { %1563 = vmatmul.bf16.gmra.mxu2 %v5999_v1  ;;  %1528 = vmatmul.bf16.gmra.mxu0 %v6001_v2 }
  0x64   :  { %1642 = vmatmul.bf16.gmra.mxu3 %v6003_v5 }
  0x65   :  { %1607 = vmatmul.bf16.gmra.mxu1 %v6005_v6 }
  0x73   :  { %1568 = vmatmul.bf16.gmra.mxu2 %v6065_v40  ;;  %1533 = vmatmul.bf16.gmra.mxu0 %v6067_v41 }
  0x74   :  { %1647 = vmatmul.bf16.gmra.mxu3 %v6069_v42 }
  0x75   :  { %1612 = vmatmul.bf16.gmra.mxu1 %v6071_v43 }
  0x83   :  { %1573 = vmatmul.bf16.gmra.mxu2 %v6125_v16  ;;  %1538 = vmatmul.bf16.gmra.mxu0 %v6127_v17 }
  0x84   :  { %1652 = vmatmul.bf16.gmra.mxu3 %v6129_v18 }
  0x85   :  { %1617 = vmatmul.bf16.gmra.mxu1 %v6131_v19 }
  0x93   :  { %1666 = vmatmul.bf16.vlgmr.msrb.gmra.mxu2 %v6161_v28  ;;  %1824 = vmatmul.bf16.vlgmr.msrb.gmra.mxu0 %v6163_v29 }
  0x94   :  { %1745 = vmatmul.bf16.vlgmr.msrb.gmra.mxu3 %v6165_v30 }
  0x95   :  { %1903 = vmatmul.bf16.vlgmr.msrb.gmra.mxu1 %v6167_v31 }
  0xa0   :  { %v1509_v14 = vpop.f32.mrf.mxu0 }
  0xa2   :  { %v1588_v21 = vpop.f32.mrf.mxu1 }
  0xa3   :  { %v6229_v22 = vadd.f32 %v1588_v21, %v1509_v14  ;;  %1671 = vmatmul.bf16.gmra.mxu2 %v6221_v0  ;;  %1829 = vmatmul.bf16.gmra.mxu0 %v6223_v7  ;;  %v6281_v21 = vor.u32 %v5310_v52, %v4743_v56  ;;  %v325_v52 = vld [vmem:[%s9974_s0 + $0x9b0] sm:$0xff] }
  0xa4   :  { %1750 = vmatmul.bf16.gmra.mxu3 %v6225_v15  ;;  %v505_v54 = vpack.c.bf16 %v325_v52, %v323_v51  ;;  %v4785_v56 = vld [vmem:[%s9975_s1 + $0x110] sm:$0xf] }
  0xa5   :  { %1908 = vmatmul.bf16.gmra.mxu1 %v6227_v20  ;;  %10214 = vst [vmem:[#allocation30_spill] sm:$0xff] %v6281_v21  ;;  %v287_v20 = vld [vmem:[%s9974_s0 + $0x880] sm:$0xff]  ;;  %v289_v15 = vld [vmem:[%s9974_s0 + $0x890] sm:$0xff] }
  0xa6   :  { %v1544_v23 = vpop.f32.mrf.mxu2  ;;  %2213 = vmatpush.bf16.msra.mxu1 %v505_v54 }
  0xa7   :  { %v1623_v24 = vpop.f32.mrf.mxu3 }
  0xa8   :  { %v6235_v25 = vadd.f32 %v1623_v24, %v1544_v23  ;;  %v1511_v26 = vpop.f32.mrf.mxu0  ;;  %v6283_v23 = vor.u32 %v5311_v57, %v4751_v58  ;;  %v5326_v57 = vld [vmem:[%s9975_s1 + $0x138] sm:$0xf0]  ;;  %v5321_v58 = vld [vmem:[%s9975_s1 + $0x114] sm:$0xf] }
  0xaa   :  { %v1590_v27 = vpop.f32.mrf.mxu1  ;;  %10215 = vst [vmem:[#allocation31_spill] sm:$0xff] %v6283_v23 }
  0xab   :  { %v6237_v32 = vadd.f32 %v1590_v27, %v1511_v26  ;;  %v291_v27 = vld [vmem:[%s9974_s0 + $0x8a0] sm:$0xff] }
  0xac   :  { %v489_v38 = vpack.c.bf16 %v293_v33, %v291_v27  ;;  %v4795_v27 = vld [vmem:[%s9975_s1 + $0x144] sm:$0xf0] }
  0xae   :  { %v1546_v59 = vpop.f32.mrf.mxu2  ;;  %2134 = vmatpush.bf16.msra.mxu0 %v489_v38 }
  0xaf   :  { %v1625_v60 = vpop.f32.mrf.mxu3 }
  0xb0   :  { %v6279_v63 = vadd.f32 %v1625_v60, %v1546_v59  ;;  %v1514_v14 = vpop.f32.mrf.mxu0  ;;  %v4793_v59 = vld [vmem:[%s9975_s1 + $0x118] sm:$0xf]  ;;  %v5327_v60 = vld [vmem:[%s9975_s1 + $0x140] sm:$0xf0] }
  0xb2   :  { %v1593_v24 = vpop.f32.mrf.mxu1 }
  0xb3   :  { %v6285_v26 = vadd.f32 %v1593_v24, %v1514_v14  ;;  %1676 = vmatmul.bf16.gmra.mxu2 %v6275_v61  ;;  %1834 = vmatmul.bf16.gmra.mxu0 %v6277_v62  ;;  %v4787_v14 = vld [vmem:[%s9975_s1 + $0x13c] sm:$0xf0]  ;;  %v5322_v24 = vld [vmem:[%s9975_s1 + $0x11c] sm:$0xf] }
  0xb4   :  { %1755 = vmatmul.bf16.gmra.mxu3 %v6281_v21  ;;  %v6337_v52 = vor.u32 %v5321_v58, %v4787_v14  ;;  %v223_v58 = vld [vmem:[%s9974_s0 + $0x680] sm:$0xff]  ;;  %v225_v14 = vld [vmem:[%s9974_s0 + $0x690] sm:$0xff] }
  0xb5   :  { %1913 = vmatmul.bf16.gmra.mxu1 %v6283_v23 }
  0xb6   :  { %v1549_v39 = vpop.f32.mrf.mxu2  ;;  %10218 = vst [vmem:[#allocation34_spill] sm:$0xff] %v6337_v52 }
  0xb7   :  { %v1628_v44 = vpop.f32.mrf.mxu3 }
  0xb8   :  { %v6297_v45 = vadd.f32 %v1628_v44, %v1549_v39  ;;  %v1516_v50 = vpop.f32.mrf.mxu0  ;;  %v6331_v39 = vor.u32 %v5326_v57, %v4785_v56  ;;  %v6333_v44 = vor.u32 %v5327_v60, %v4793_v59 }
  0xba   :  { %v1595_v53 = vpop.f32.mrf.mxu1  ;;  %10216 = vst [vmem:[#allocation32_spill] sm:$0xff] %v6331_v39 }
  0xbb   :  { %v6305_v55 = vadd.f32 %v1595_v53, %v1516_v50  ;;  %10217 = vst [vmem:[#allocation33_spill] sm:$0xff] %v6333_v44  ;;  %v6339_v53 = vor.u32 %v5322_v24, %v4795_v27  ;;  %v255_v24 = vld [vmem:[%s9974_s0 + $0x780] sm:$0xff] }
  0xbd   :  { %10219 = vst [vmem:[#allocation35_spill] sm:$0xff] %v6339_v53 }
  0xbe   :  { %v1551_v33 = vpop.f32.mrf.mxu2 }
  0xbf   :  { %v1630_v38 = vpop.f32.mrf.mxu3 }
  0xc0   :  { %v6335_v50 = vadd.f32 %v1630_v38, %v1551_v33  ;;  %v1519_v51 = vpop.f32.mrf.mxu0  ;;  %v455_v33 = vpack.c.bf16 %v225_v14, %v223_v58  ;;  %v257_v38 = vld [vmem:[%s9974_s0 + $0x790] sm:$0xff]  ;;  %v5332_v58 = vld [vmem:[%s9975_s1 + $0x16c] sm:$0xf] }
  0xc1   :  { %v4837_v14 = vld [vmem:[%s9975_s1 + $0x170] sm:$0xf] }
  0xc2   :  { %v1598_v54 = vpop.f32.mrf.mxu1  ;;  %1977 = vmatpush.bf16.msra.mxu2 %v455_v33  ;;  %v4839_v33 = vld [vmem:[%s9975_s1 + $0x19c] sm:$0xf0] }
  0xc3   :  { %v6341_v62 = vadd.f32 %v1598_v54, %v1519_v51  ;;  %1681 = vmatmul.bf16.gmra.mxu2 %v6331_v39  ;;  %1839 = vmatmul.bf16.gmra.mxu0 %v6333_v44  ;;  %v471_v54 = vpack.c.bf16 %v257_v38, %v255_v24  ;;  %v4831_v24 = vld [vmem:[%s9975_s1 + $0x194] sm:$0xf0] }
  0xc4   :  { %1760 = vmatmul.bf16.gmra.mxu3 %v6337_v52  ;;  %v6393_v21 = vor.u32 %v5332_v58, %v4831_v24  ;;  %v321_v58 = vld [vmem:[%s9974_s0 + $0x990] sm:$0xff] }
  0xc5   :  { %1918 = vmatmul.bf16.gmra.mxu1 %v6339_v53  ;;  %2056 = vmatpush.bf16.msra.mxu3 %v471_v54 }
  0xc6   :  { %v1554_v56 = vpop.f32.mrf.mxu2  ;;  %10222 = vst [vmem:[#allocation38_spill] sm:$0xff] %v6393_v21 }
  0xc7   :  { %v1633_v57 = vpop.f32.mrf.mxu3 }
  0xc8   :  { %v6347_v59 = vadd.f32 %v1633_v57, %v1554_v56  ;;  %v1521_v60 = vpop.f32.mrf.mxu0  ;;  %v4829_v56 = vld [vmem:[%s9975_s1 + $0x168] sm:$0xf]  ;;  %v5337_v57 = vld [vmem:[%s9975_s1 + $0x190] sm:$0xf0] }
  0xc9   :  { %v6387_v53 = vor.u32 %v5337_v57, %v4829_v56  ;;  %v487_v56 = vpack.c.bf16 %v289_v15, %v287_v20 }
  0xca   :  { %v1600_v27 = vpop.f32.mrf.mxu1 }
  0xcb   :  { %v6361_v51 = vadd.f32 %v1600_v27, %v1521_v60  ;;  %v5338_v60 = vld [vmem:[%s9975_s1 + $0x198] sm:$0xf0]  ;;  %v5333_v27 = vld [vmem:[%s9975_s1 + $0x174] sm:$0xf]  ;;  %10220 = vst [vmem:[#allocation36_spill] sm:$0xff] %v6387_v53  ;;  %2135 = vmatpush.bf16.msra.mxu0 %v487_v56 }
  0xcc   :  { %v6389_v52 = vor.u32 %v5338_v60, %v4837_v14  ;;  %v6395_v7 = vor.u32 %v5333_v27, %v4839_v33  ;;  %v4873_v33 = vld [vmem:[%s9975_s1 + $0x1c0] sm:$0xf]  ;;  %v4881_v56 = vld [vmem:[%s9975_s1 + $0x1c8] sm:$0xf] }
  0xce   :  { %v1556_v38 = vpop.f32.mrf.mxu2  ;;  %10221 = vst [vmem:[#allocation37_spill] sm:$0xff] %v6389_v52 }
  0xcf   :  { %v1635_v44 = vpop.f32.mrf.mxu3  ;;  %10223 = vst [vmem:[#allocation39_spill] sm:$0xff] %v6395_v7 }
  0xd0   :  { %v6391_v23 = vadd.f32 %v1635_v44, %v1556_v38  ;;  %v1524_v54 = vpop.f32.mrf.mxu0  ;;  %v319_v44 = vld [vmem:[%s9974_s0 + $0x980] sm:$0xff]  ;;  %v5348_v38 = vld [vmem:[%s9975_s1 + $0x1e8] sm:$0xf0] }
  0xd1   :  { %v503_v15 = vpack.c.bf16 %v321_v58, %v319_v44  ;;  %v5349_v44 = vld [vmem:[%s9975_s1 + $0x1f0] sm:$0xf0]  ;;  %v4875_v58 = vld [vmem:[%s9975_s1 + $0x1ec] sm:$0xf0] }
  0xd2   :  { %v1603_v29 = vpop.f32.mrf.mxu1 }
  0xd3   :  { %v6403_v57 = vadd.f32 %v1603_v29, %v1524_v54  ;;  %1686 = vmatmul.bf16.gmra.mxu2 %v6387_v53  ;;  %1844 = vmatmul.bf16.gmra.mxu0 %v6389_v52  ;;  %v5343_v54 = vld [vmem:[%s9975_s1 + $0x1c4] sm:$0xf]  ;;  %v6445_v52 = vor.u32 %v5349_v44, %v4881_v56 }
  0xd4   :  { %1765 = vmatmul.bf16.gmra.mxu3 %v6393_v21  ;;  %2214 = vmatpush.bf16.msra.mxu1 %v503_v15  ;;  %v5344_v15 = vld [vmem:[%s9975_s1 + $0x1cc] sm:$0xf]  ;;  %v6449_v31 = vor.u32 %v5343_v54, %v4875_v58  ;;  %v253_v54 = vld [vmem:[%s9974_s0 + $0x770] sm:$0xff] }
  0xd5   :  { %1923 = vmatmul.bf16.gmra.mxu1 %v6395_v7  ;;  %10225 = vst [vmem:[#allocation41_spill] sm:$0xff] %v6445_v52 }
  0xd6   :  { %v1559_v29 = vpop.f32.mrf.mxu2  ;;  %10226 = vst [vmem:[#allocation42_spill] sm:$0xff] %v6449_v31 }
  0xd7   :  { %v1638_v20 = vpop.f32.mrf.mxu3 }
  0xd8   :  { %v6415_v14 = vadd.f32 %v1638_v20, %v1559_v29  ;;  %v1526_v60 = vpop.f32.mrf.mxu0  ;;  %v4883_v29 = vld [vmem:[%s9975_s1 + $0x1f4] sm:$0xf0] }
  0xd9   :  { %v6451_v30 = vor.u32 %v5344_v15, %v4883_v29 }
  0xda   :  { %v1605_v24 = vpop.f32.mrf.mxu1 }
  0xdb   :  { %v6417_v27 = vadd.f32 %v1605_v24, %v1526_v60  ;;  %v6443_v24 = vor.u32 %v5348_v38, %v4873_v33  ;;  %10227 = vst [vmem:[#allocation43_spill] sm:$0xff] %v6451_v30  ;;  %v219_v33 = vld [vmem:[%s9974_s0 + $0x660] sm:$0xff]  ;;  %v221_v38 = vld [vmem:[%s9974_s0 + $0x670] sm:$0xff] }
  0xdd   :  { %10224 = vst [vmem:[#allocation40_spill] sm:$0xff] %v6443_v24 }
  0xde   :  { %v1561_v20 = vpop.f32.mrf.mxu2 }
  0xdf   :  { %v1640_v60 = vpop.f32.mrf.mxu3 }
  0xe0   :  { %v6447_v7 = vadd.f32 %v1640_v60, %v1561_v20  ;;  %v1529_v21 = vpop.f32.mrf.mxu0 }
  0xe2   :  { %v1608_v16 = vpop.f32.mrf.mxu1 }
  0xe3   :  { %v6453_v18 = vadd.f32 %v1608_v16, %v1529_v21  ;;  %1691 = vmatmul.bf16.gmra.mxu2 %v6443_v24  ;;  %1849 = vmatmul.bf16.gmra.mxu0 %v6445_v52  ;;  %v251_v16 = vld [vmem:[%s9974_s0 + $0x760] sm:$0xff]  ;;  %v453_v21 = vpack.c.bf16 %v221_v38, %v219_v33  ;;  %v285_v33 = vld [vmem:[%s9974_s0 + $0x870] sm:$0xff]  ;;  %v4917_v38 = vld [vmem:[%s9975_s1 + $0x218] sm:$0xf] }
  0xe4   :  { %1770 = vmatmul.bf16.gmra.mxu3 %v6449_v31  ;;  %v469_v44 = vpack.c.bf16 %v253_v54, %v251_v16  ;;  %v283_v52 = vld [vmem:[%s9974_s0 + $0x860] sm:$0xff]  ;;  %v5354_v54 = vld [vmem:[%s9975_s1 + $0x21c] sm:$0xf] }
  0xe5   :  { %1928 = vmatmul.bf16.gmra.mxu1 %v6451_v30  ;;  %1978 = vmatpush.bf16.msra.mxu2 %v453_v21  ;;  %v5359_v16 = vld [vmem:[%s9975_s1 + $0x240] sm:$0xf0]  ;;  %v485_v21 = vpack.c.bf16 %v285_v33, %v283_v52 }
  0xe6   :  { %v1564_v56 = vpop.f32.mrf.mxu2  ;;  %2057 = vmatpush.bf16.msra.mxu3 %v469_v44  ;;  %v5360_v44 = vld [vmem:[%s9975_s1 + $0x248] sm:$0xf0]  ;;  %v5355_v52 = vld [vmem:[%s9975_s1 + $0x224] sm:$0xf]  ;;  %v6505_v30 = vor.u32 %v5359_v16, %v4917_v38 }
  0xe7   :  { %v1643_v58 = vpop.f32.mrf.mxu3  ;;  %2136 = vmatpush.bf16.msra.mxu0 %v485_v21  ;;  %v317_v21 = vld [vmem:[%s9974_s0 + $0x970] sm:$0xff] }
  0xe8   :  { %v6471_v15 = vadd.f32 %v1643_v58, %v1564_v56  ;;  %v1531_v29 = vpop.f32.mrf.mxu0  ;;  %v4925_v56 = vld [vmem:[%s9975_s1 + $0x220] sm:$0xf]  ;;  %v4919_v58 = vld [vmem:[%s9975_s1 + $0x244] sm:$0xf0]  ;;  %10228 = vst [vmem:[#allocation44_spill] sm:$0xff] %v6505_v30  ;;  %v501_v38 = vpack.c.bf16 %v317_v21, %v315_v34 }
  0xe9   :  { %v6507_v31 = vor.u32 %v5360_v44, %v4925_v56  ;;  %v6511_v1 = vor.u32 %v5354_v54, %v4919_v58  ;;  %v4961_v34 = vld [vmem:[%s9975_s1 + $0x270] sm:$0xf]  ;;  %v4963_v21 = vld [vmem:[%s9975_s1 + $0x29c] sm:$0xf0] }
  0xea   :  { %v1610_v20 = vpop.f32.mrf.mxu1  ;;  %2215 = vmatpush.bf16.msra.mxu1 %v501_v38  ;;  %v5366_v38 = vld [vmem:[%s9975_s1 + $0x27c] sm:$0xf] }
  0xeb   :  { %v6473_v60 = vadd.f32 %v1610_v20, %v1531_v29  ;;  %v4927_v29 = vld [vmem:[%s9975_s1 + $0x24c] sm:$0xf0]  ;;  %10229 = vst [vmem:[#allocation45_spill] sm:$0xff] %v6507_v31 }
  0xec   :  { %10230 = vst [vmem:[#allocation46_spill] sm:$0xff] %v6511_v1  ;;  %v6513_v5 = vor.u32 %v5355_v52, %v4927_v29 }
  0xee   :  { %v1566_v20 = vpop.f32.mrf.mxu2  ;;  %10231 = vst [vmem:[#allocation47_spill] sm:$0xff] %v6513_v5 }
  0xef   :  { %v1645_v33 = vpop.f32.mrf.mxu3 }
  0xf0   :  { %v6509_v40 = vadd.f32 %v1645_v33, %v1566_v20  ;;  %v1534_v42 = vpop.f32.mrf.mxu0  ;;  %v4969_v20 = vld [vmem:[%s9975_s1 + $0x278] sm:$0xf]  ;;  %v5371_v33 = vld [vmem:[%s9975_s1 + $0x2a0] sm:$0xf0] }
  0xf2   :  { %v1613_v36 = vpop.f32.mrf.mxu1 }
  0xf3   :  { %v6521_v16 = vadd.f32 %v1613_v36, %v1534_v42  ;;  %1696 = vmatmul.bf16.gmra.mxu2 %v6505_v30  ;;  %1854 = vmatmul.bf16.gmra.mxu0 %v6507_v31  ;;  %v5370_v36 = vld [vmem:[%s9975_s1 + $0x298] sm:$0xf0]  ;;  %v5365_v42 = vld [vmem:[%s9975_s1 + $0x274] sm:$0xf]  ;;  %v6557_v31 = vor.u32 %v5371_v33, %v4969_v20 }
  0xf4   :  { %1775 = vmatmul.bf16.gmra.mxu3 %v6511_v1  ;;  %v6561_v10 = vor.u32 %v5365_v42, %v4963_v21  ;;  %v247_v42 = vld [vmem:[%s9974_s0 + $0x740] sm:$0xff] }
  0xf5   :  { %1933 = vmatmul.bf16.gmra.mxu1 %v6513_v5  ;;  %10233 = vst [vmem:[#allocation49_spill] sm:$0xff] %v6557_v31 }
  0xf6   :  { %v1569_v54 = vpop.f32.mrf.mxu2  ;;  %10234 = vst [vmem:[#allocation50_spill] sm:$0xff] %v6561_v10 }
  0xf7   :  { %v1648_v56 = vpop.f32.mrf.mxu3 }
  0xf8   :  { %v6527_v44 = vadd.f32 %v1648_v56, %v1569_v54  ;;  %v1536_v58 = vpop.f32.mrf.mxu0  ;;  %v4971_v54 = vld [vmem:[%s9975_s1 + $0x2a4] sm:$0xf0] }
  0xf9   :  { %v6563_v12 = vor.u32 %v5366_v38, %v4971_v54 }
  0xfa   :  { %v1615_v52 = vpop.f32.mrf.mxu1 }
  0xfb   :  { %v6529_v29 = vadd.f32 %v1615_v52, %v1536_v58  ;;  %v6555_v52 = vor.u32 %v5370_v36, %v4961_v34  ;;  %10235 = vst [vmem:[#allocation51_spill] sm:$0xff] %v6563_v12  ;;  %v215_v34 = vld [vmem:[%s9974_s0 + $0x640] sm:$0xff]  ;;  %v217_v36 = vld [vmem:[%s9974_s0 + $0x650] sm:$0xff] }
  0xfd   :  { %10232 = vst [vmem:[#allocation48_spill] sm:$0xff] %v6555_v52 }
  0xfe   :  { %v1571_v56 = vpop.f32.mrf.mxu2 }
  0xff   :  { %v1650_v58 = vpop.f32.mrf.mxu3 }
 0x100   :  { %v6559_v5 = vadd.f32 %v1650_v58, %v1571_v56  ;;  %v1539_v1 = vpop.f32.mrf.mxu0 }
 0x102   :  { %v1618_v46 = vpop.f32.mrf.mxu1 }
 0x103   :  { %v6565_v48 = vadd.f32 %v1618_v46, %v1539_v1  ;;  %1701 = vmatmul.bf16.gmra.mxu2 %v6555_v52  ;;  %1859 = vmatmul.bf16.gmra.mxu0 %v6557_v31  ;;  %v451_v46 = vpack.c.bf16 %v217_v36, %v215_v34  ;;  %v249_v1 = vld [vmem:[%s9974_s0 + $0x750] sm:$0xff]  ;;  %v5005_v31 = vld [vmem:[%s9975_s1 + $0x2c8] sm:$0xf]  ;;  %v5376_v36 = vld [vmem:[%s9975_s1 + $0x2cc] sm:$0xf] }
 0x104   :  { %1780 = vmatmul.bf16.gmra.mxu3 %v6561_v10  ;;  %v467_v20 = vpack.c.bf16 %v249_v1, %v247_v42  ;;  %v5381_v34 = vld [vmem:[%s9975_s1 + $0x2f0] sm:$0xf0]  ;;  %v279_v42 = vld [vmem:[%s9974_s0 + $0x840] sm:$0xff] }
 0x105   :  { %1938 = vmatmul.bf16.gmra.mxu1 %v6563_v12  ;;  %1979 = vmatpush.bf16.msra.mxu2 %v451_v46  ;;  %v281_v46 = vld [vmem:[%s9974_s0 + $0x850] sm:$0xff]  ;;  %v311_v1 = vld [vmem:[%s9974_s0 + $0x940] sm:$0xff] }
 0x106   :  { %v1574_v33 = vpop.f32.mrf.mxu2  ;;  %2058 = vmatpush.bf16.msra.mxu3 %v467_v20  ;;  %v5013_v20 = vld [vmem:[%s9975_s1 + $0x2d0] sm:$0xf]  ;;  %v5377_v12 = vld [vmem:[%s9975_s1 + $0x2d4] sm:$0xf]  ;;  %v5015_v10 = vld [vmem:[%s9975_s1 + $0x2fc] sm:$0xf0] }
 0x107   :  { %v1653_v21 = vpop.f32.mrf.mxu3  ;;  %v6631_v24 = vor.u32 %v5377_v12, %v5015_v10  ;;  %v5049_v10 = vld [vmem:[%s9975_s1 + $0x320] sm:$0xf]  ;;  %v5392_v12 = vld [vmem:[%s9975_s1 + $0x348] sm:$0xf0] }
 0x108   :  { %v6583_v38 = vadd.f32 %v1653_v21, %v1574_v33  ;;  %v1541_v54 = vpop.f32.mrf.mxu0  ;;  %v5382_v33 = vld [vmem:[%s9975_s1 + $0x2f8] sm:$0xf0]  ;;  %v483_v21 = vpack.c.bf16 %v281_v46, %v279_v42  ;;  %v6623_v46 = vor.u32 %v5381_v34, %v5005_v31 }
 0x109   :  { %v6625_v8 = vor.u32 %v5382_v33, %v5013_v20  ;;  %10239 = vst [vmem:[#allocation55_spill] sm:$0xff] %v6631_v24  ;;  %v5387_v33 = vld [vmem:[%s9975_s1 + $0x324] sm:$0xf] }
 0x10a   :  { %v1620_v56 = vpop.f32.mrf.mxu1  ;;  %2137 = vmatpush.bf16.msra.mxu0 %v483_v21  ;;  %10236 = vst [vmem:[#allocation52_spill] sm:$0xff] %v6623_v46  ;;  %v213_v21 = vld [vmem:[%s9974_s0 + $0x630] sm:$0xff] }
 0x10b   :  { %v6585_v58 = vadd.f32 %v1620_v56, %v1541_v54  ;;  %v313_v54 = vld [vmem:[%s9974_s0 + $0x950] sm:$0xff]  ;;  %v5007_v56 = vld [vmem:[%s9975_s1 + $0x2f4] sm:$0xf0]  ;;  %10237 = vst [vmem:[#allocation53_spill] sm:$0xff] %v6625_v8 }
 0x10c   :  { %v499_v52 = vpack.c.bf16 %v313_v54, %v311_v1  ;;  %v6629_v19 = vor.u32 %v5376_v36, %v5007_v56  ;;  %v243_v54 = vld [vmem:[%s9974_s0 + $0x720] sm:$0xff]  ;;  %v5393_v56 = vld [vmem:[%s9975_s1 + $0x350] sm:$0xf0] }
 0x10e   :  { %v1576_v3 = vpop.f32.mrf.mxu2  ;;  %2216 = vmatpush.bf16.msra.mxu1 %v499_v52  ;;  %10238 = vst [vmem:[#allocation54_spill] sm:$0xff] %v6629_v19 }
 0x10f   :  { %v1655_v42 = vpop.f32.mrf.mxu3 }
 0x110   :  { %v6627_v30 = vadd.f32 %v1655_v42, %v1576_v3  ;;  %v1825_v17 = vpop.f32.mrf.mxu0 }
 0x112   :  { %v1904_v41 = vpop.f32.mrf.mxu1 }
 0x113   :  { %1706 = vmatmul.bf16.gmra.mxu2 %v6623_v46  ;;  %1864 = vmatmul.bf16.gmra.mxu0 %v6625_v8  ;;  %v6677_v46 = vor.u32 %v5392_v12, %v5049_v10 }
 0x114   :  { %1785 = vmatmul.bf16.gmra.mxu3 %v6629_v19 }
 0x115   :  { %1943 = vmatmul.bf16.gmra.mxu1 %v6631_v24  ;;  %10240 = vst [vmem:[#allocation56_spill] sm:$0xff] %v6677_v46 }
 0x116   :  { %v1667_v31 = vpop.f32.mrf.mxu2 }
 0x117   :  { %v1668_v34 = vadd.f32 %v1667_v31, %v6229_v22  ;;  %v1746_v52 = vpop.f32.mrf.mxu3  ;;  %v211_v22 = vld [vmem:[%s9974_s0 + $0x620] sm:$0xff]  ;;  %v245_v31 = vld [vmem:[%s9974_s0 + $0x730] sm:$0xff] }
 0x118   :  { %v1827_v3 = vpop.f32.mrf.mxu0  ;;  %v449_v42 = vpack.c.bf16 %v213_v21, %v211_v22  ;;  %v465_v8 = vpack.c.bf16 %v245_v31, %v243_v54  ;;  %v5398_v31 = vld [vmem:[%s9975_s1 + $0x37c] sm:$0xf] }
 0x119   :  { %v1747_v1 = vadd.f32 %v1746_v52, %v1668_v34  ;;  %v5051_v34 = vld [vmem:[%s9975_s1 + $0x34c] sm:$0xf0]  ;;  %v5388_v52 = vld [vmem:[%s9975_s1 + $0x32c] sm:$0xf] }
 0x11a   :  { %v1906_v20 = vpop.f32.mrf.mxu1  ;;  %1980 = vmatpush.bf16.msra.mxu2 %v449_v42  ;;  %2059 = vmatpush.bf16.msra.mxu3 %v465_v8  ;;  %v6681_v2 = vor.u32 %v5387_v33, %v5051_v34  ;;  %v275_v8 = vld [vmem:[%s9974_s0 + $0x820] sm:$0xff]  ;;  %v5404_v34 = vld [vmem:[%s9975_s1 + $0x3a8] sm:$0xf0] }
 0x11b   :  { %v1826_v36 = vadd.f32 %v1825_v17, %v1747_v1  ;;  %v5057_v17 = vld [vmem:[%s9975_s1 + $0x328] sm:$0xf]  ;;  %v5059_v1 = vld [vmem:[%s9975_s1 + $0x354] sm:$0xf0]  ;;  %v5403_v42 = vld [vmem:[%s9975_s1 + $0x3a0] sm:$0xf0] }
 0x11c   :  { %v6679_v43 = vor.u32 %v5393_v56, %v5057_v17  ;;  %10242 = vst [vmem:[#allocation58_spill] sm:$0xff] %v6681_v2  ;;  %v6683_v6 = vor.u32 %v5388_v52, %v5059_v1  ;;  %v5093_v17 = vld [vmem:[%s9975_s1 + $0x378] sm:$0xf]  ;;  %v5095_v1 = vld [vmem:[%s9975_s1 + $0x3a4] sm:$0xf0] }
 0x11d   :  { %v6674_v24 = vadd.f32 %v1904_v41, %v1826_v36  ;;  %v277_v41 = vld [vmem:[%s9974_s0 + $0x830] sm:$0xff] }
 0x11e   :  { %v1669_v22 = vpop.f32.mrf.mxu2  ;;  %10241 = vst [vmem:[#allocation57_spill] sm:$0xff] %v6679_v43 }
 0x11f   :  { %v1670_v21 = vadd.f32 %v1669_v22, %v6237_v32  ;;  %v1748_v19 = vpop.f32.mrf.mxu3  ;;  %10243 = vst [vmem:[#allocation59_spill] sm:$0xff] %v6683_v6  ;;  %v481_v32 = vpack.c.bf16 %v277_v41, %v275_v8  ;;  %v5399_v22 = vld [vmem:[%s9975_s1 + $0x384] sm:$0xf] }
 0x120   :  { %v1830_v53 = vpop.f32.mrf.mxu0 }
 0x121   :  { %v1749_v39 = vadd.f32 %v1748_v19, %v1670_v21  ;;  %2138 = vmatpush.bf16.msra.mxu0 %v481_v32  ;;  %v5103_v21 = vld [vmem:[%s9975_s1 + $0x3ac] sm:$0xf0] }
 0x122   :  { %v1909_v35 = vpop.f32.mrf.mxu1 }
 0x123   :  { %v1828_v54 = vadd.f32 %v1827_v3, %v1749_v39  ;;  %1711 = vmatmul.bf16.gmra.mxu2 %v6677_v46  ;;  %1869 = vmatmul.bf16.gmra.mxu0 %v6679_v43 }
 0x124   :  { %1790 = vmatmul.bf16.gmra.mxu3 %v6681_v2 }
 0x125   :  { %1948 = vmatmul.bf16.gmra.mxu1 %v6683_v6  ;;  %v6695_v19 = vadd.f32 %v1906_v20, %v1828_v54  ;;  %v307_v20 = vld [vmem:[%s9974_s0 + $0x920] sm:$0xff] }
 0x126   :  { %v1672_v39 = vpop.f32.mrf.mxu2 }
 0x127   :  { %v1673_v3 = vadd.f32 %v1672_v39, %v6285_v26  ;;  %v1751_v10 = vpop.f32.mrf.mxu3  ;;  %v309_v26 = vld [vmem:[%s9974_s0 + $0x930] sm:$0xff]  ;;  %v6731_v39 = vor.u32 %v5403_v42, %v5093_v17 }
 0x128   :  { %v1832_v12 = vpop.f32.mrf.mxu0  ;;  %v497_v52 = vpack.c.bf16 %v309_v26, %v307_v20  ;;  %v6737_v20 = vor.u32 %v5399_v22, %v5103_v21  ;;  %v5145_v22 = vld [vmem:[%s9975_s1 + $0x3d8] sm:$0xf]  ;;  %v5415_v21 = vld [vmem:[%s9975_s1 + $0x400] sm:$0xf0] }
 0x129   :  { %v1752_v36 = vadd.f32 %v1751_v10, %v1673_v3  ;;  %10244 = vst [vmem:[#allocation60_spill] sm:$0xff] %v6731_v39 }
 0x12a   :  { %v1911_v33 = vpop.f32.mrf.mxu1  ;;  %2217 = vmatpush.bf16.msra.mxu1 %v497_v52  ;;  %10247 = vst [vmem:[#allocation63_spill] sm:$0xff] %v6737_v20 }
 0x12b   :  { %v1831_v56 = vadd.f32 %v1830_v53, %v1752_v36  ;;  %v5101_v53 = vld [vmem:[%s9975_s1 + $0x380] sm:$0xf]  ;;  %v6735_v36 = vor.u32 %v5398_v31, %v5095_v1 }
 0x12c   :  { %v6733_v3 = vor.u32 %v5404_v34, %v5101_v53  ;;  %v5414_v34 = vld [vmem:[%s9975_s1 + $0x3f8] sm:$0xf0]  ;;  %v239_v1 = vld [vmem:[%s9974_s0 + $0x700] sm:$0xff] }
 0x12d   :  { %v6728_v54 = vadd.f32 %v1909_v35, %v1831_v56  ;;  %10246 = vst [vmem:[#allocation62_spill] sm:$0xff] %v6735_v36 }
 0x12e   :  { %v1674_v8 = vpop.f32.mrf.mxu2  ;;  %10245 = vst [vmem:[#allocation61_spill] sm:$0xff] %v6733_v3 }
 0x12f   :  { %v1675_v41 = vadd.f32 %v1674_v8, %v6305_v55  ;;  %v1753_v32 = vpop.f32.mrf.mxu3 }
 0x130   :  { %v1835_v10 = vpop.f32.mrf.mxu0 }
 0x131   :  { %v1754_v26 = vadd.f32 %v1753_v32, %v1675_v41  ;;  %v241_v41 = vld [vmem:[%s9974_s0 + $0x710] sm:$0xff]  ;;  %v5139_v32 = vld [vmem:[%s9975_s1 + $0x3fc] sm:$0xf0] }
 0x132   :  { %v1914_v43 = vpop.f32.mrf.mxu1 }
 0x133   :  { %v1833_v6 = vadd.f32 %v1832_v12, %v1754_v26  ;;  %1716 = vmatmul.bf16.gmra.mxu2 %v6731_v39  ;;  %1874 = vmatmul.bf16.gmra.mxu0 %v6733_v3  ;;  %v5137_v12 = vld [vmem:[%s9975_s1 + $0x3d0] sm:$0xf]  ;;  %v5147_v26 = vld [vmem:[%s9975_s1 + $0x404] sm:$0xf0]  ;;  %v6787_v3 = vor.u32 %v5415_v21, %v5145_v22 }
 0x134   :  { %1795 = vmatmul.bf16.gmra.mxu3 %v6735_v36 }
 0x135   :  { %1953 = vmatmul.bf16.gmra.mxu1 %v6737_v20  ;;  %v6743_v35 = vadd.f32 %v1911_v33, %v1833_v6  ;;  %v5409_v6 = vld [vmem:[%s9975_s1 + $0x3d4] sm:$0xf]  ;;  %10249 = vst [vmem:[#allocation65_spill] sm:$0xff] %v6787_v3 }
 0x136   :  { %v1677_v55 = vpop.f32.mrf.mxu2  ;;  %v209_v33 = vld [vmem:[%s9974_s0 + $0x610] sm:$0xff]  ;;  %v6789_v36 = vor.u32 %v5409_v6, %v5139_v32 }
 0x137   :  { %v1678_v17 = vadd.f32 %v1677_v55, %v6341_v62  ;;  %v1756_v56 = vpop.f32.mrf.mxu3  ;;  %v207_v62 = vld [vmem:[%s9974_s0 + $0x600] sm:$0xff]  ;;  %v463_v55 = vpack.c.bf16 %v241_v41, %v239_v1 }
 0x138   :  { %v1837_v42 = vpop.f32.mrf.mxu0  ;;  %v447_v8 = vpack.c.bf16 %v209_v33, %v207_v62  ;;  %v6785_v33 = vor.u32 %v5414_v34, %v5137_v12  ;;  %10250 = vst [vmem:[#allocation66_spill] sm:$0xff] %v6789_v36 }
 0x139   :  { %v1757_v31 = vadd.f32 %v1756_v56, %v1678_v17  ;;  %2060 = vmatpush.bf16.msra.mxu3 %v463_v55  ;;  %v5425_v55 = vld [vmem:[%s9975_s1 + $0x450] sm:$0xf0] }
 0x13a   :  { %v1916_v53 = vpop.f32.mrf.mxu1  ;;  %1981 = vmatpush.bf16.msra.mxu2 %v447_v8  ;;  %10248 = vst [vmem:[#allocation64_spill] sm:$0xff] %v6785_v33 }
 0x13b   :  { %v1836_v52 = vadd.f32 %v1835_v10, %v1757_v31  ;;  %v5410_v10 = vld [vmem:[%s9975_s1 + $0x3dc] sm:$0xf] }
 0x13c   :  { %v6791_v2 = vor.u32 %v5410_v10, %v5147_v26  ;;  %v5181_v26 = vld [vmem:[%s9975_s1 + $0x428] sm:$0xf] }
 0x13d   :  { %v6782_v17 = vadd.f32 %v1914_v43, %v1836_v52  ;;  %v271_v43 = vld [vmem:[%s9974_s0 + $0x800] sm:$0xff] }
 0x13e   :  { %v1679_v56 = vpop.f32.mrf.mxu2  ;;  %10251 = vst [vmem:[#allocation67_spill] sm:$0xff] %v6791_v2 }
 0x13f   :  { %v1680_v31 = vadd.f32 %v1679_v56, %v6361_v51  ;;  %v1758_v62 = vpop.f32.mrf.mxu3  ;;  %v273_v51 = vld [vmem:[%s9974_s0 + $0x810] sm:$0xff]  ;;  %v5183_v56 = vld [vmem:[%s9975_s1 + $0x454] sm:$0xf0] }
 0x140   :  { %v1840_v20 = vpop.f32.mrf.mxu0  ;;  %v479_v12 = vpack.c.bf16 %v273_v51, %v271_v43 }
 0x141   :  { %v1759_v39 = vadd.f32 %v1758_v62, %v1680_v31  ;;  %v5421_v31 = vld [vmem:[%s9975_s1 + $0x434] sm:$0xf]  ;;  %v5191_v62 = vld [vmem:[%s9975_s1 + $0x45c] sm:$0xf0] }
 0x142   :  { %v1919_v46 = vpop.f32.mrf.mxu1  ;;  %2139 = vmatpush.bf16.msra.mxu0 %v479_v12 }
 0x143   :  { %v1838_v1 = vadd.f32 %v1837_v42, %v1759_v39  ;;  %1721 = vmatmul.bf16.gmra.mxu2 %v6785_v33  ;;  %1879 = vmatmul.bf16.gmra.mxu0 %v6787_v3  ;;  %v303_v39 = vld [vmem:[%s9974_s0 + $0x900] sm:$0xff]  ;;  %v305_v42 = vld [vmem:[%s9974_s0 + $0x910] sm:$0xff] }
 0x144   :  { %1800 = vmatmul.bf16.gmra.mxu3 %v6789_v36  ;;  %v495_v34 = vpack.c.bf16 %v305_v42, %v303_v39  ;;  %v6839_v39 = vor.u32 %v5425_v55, %v5181_v26  ;;  %v46_v26 = vld [vmem:[%s9974_s0 + $0xf8] sm:$0xff] }
 0x145   :  { %1958 = vmatmul.bf16.gmra.mxu1 %v6791_v2  ;;  %v6809_v52 = vadd.f32 %v1916_v53, %v1838_v1  ;;  %v5420_v53 = vld [vmem:[%s9975_s1 + $0x42c] sm:$0xf] }
 0x146   :  { %v1682_v6 = vpop.f32.mrf.mxu2  ;;  %2218 = vmatpush.bf16.msra.mxu1 %v495_v34  ;;  %10252 = vst [vmem:[#allocation68_spill] sm:$0xff] %v6839_v39 }
 0x147   :  { %v1683_v22 = vadd.f32 %v1682_v6, %v6403_v57  ;;  %v1761_v21 = vpop.f32.mrf.mxu3  ;;  %v5189_v57 = vld [vmem:[%s9975_s1 + $0x430] sm:$0xf]  ;;  %v6843_v6 = vor.u32 %v5420_v53, %v5183_v56 }
 0x148   :  { %v1842_v8 = vpop.f32.mrf.mxu0 }
 0x149   :  { %v1762_v41 = vadd.f32 %v1761_v21, %v1683_v22  ;;  %10254 = vst [vmem:[#allocation70_spill] sm:$0xff] %v6843_v6  ;;  %v6845_v22 = vor.u32 %v5421_v31, %v5191_v62 }
 0x14a   :  { %v1921_v32 = vpop.f32.mrf.mxu1 }
 0x14b   :  { %v1841_v10 = vadd.f32 %v1840_v20, %v1762_v41  ;;  %v5426_v20 = vld [vmem:[%s9975_s1 + $0x458] sm:$0xf0]  ;;  %10255 = vst [vmem:[#allocation71_spill] sm:$0xff] %v6845_v22 }
 0x14c   :  { %v6841_v42 = vor.u32 %v5426_v20, %v5189_v57 }
 0x14d   :  { %v6836_v1 = vadd.f32 %v1919_v46, %v1841_v10  ;;  %v349_v46 = vld [vmem:[%s9974_s0 + $0xa70] sm:$0xff] }
 0x14e   :  { %v1684_v43 = vpop.f32.mrf.mxu2  ;;  %10253 = vst [vmem:[#allocation69_spill] sm:$0xff] %v6841_v42 }
 0x14f   :  { %v1685_v51 = vadd.f32 %v1684_v43, %v6417_v27  ;;  %v1763_v12 = vpop.f32.mrf.mxu3  ;;  %v347_v27 = vld [vmem:[%s9974_s0 + $0xa60] sm:$0xff] }
 0x150   :  { %v1845_v34 = vpop.f32.mrf.mxu0  ;;  %v517_v10 = vpack.c.bf16 %v349_v46, %v347_v27  ;;  %v5437_v27 = vld [vmem:[%s9975_s1 + $0x4b0] sm:$0xf0] }
 0x151   :  { %v1764_v21 = vadd.f32 %v1763_v12, %v1685_v51  ;;  %v5225_v51 = vld [vmem:[%s9975_s1 + $0x480] sm:$0xf] }
 0x152   :  { %v1924_v41 = vpop.f32.mrf.mxu1  ;;  %2294 = vmatpush.bf16.msrb.mxu2 %v517_v10  ;;  %v5432_v10 = vld [vmem:[%s9975_s1 + $0x48c] sm:$0xf] }
 0x153   :  { %v1843_v3 = vadd.f32 %v1842_v8, %v1764_v21  ;;  %1726 = vmatmul.bf16.gmra.mxu2 %v6839_v39  ;;  %1884 = vmatmul.bf16.gmra.mxu0 %v6841_v42  ;;  %v44_v8 = vld [vmem:[%s9974_s0 + $0xe8] sm:$0xff]  ;;  %v5431_v21 = vld [vmem:[%s9975_s1 + $0x484] sm:$0xf] }
 0x154   :  { %1805 = vmatmul.bf16.gmra.mxu3 %v6843_v6  ;;  %v366_v57 = vpack.c.bf16 %v46_v26, %v44_v8  ;;  %v5227_v8 = vld [vmem:[%s9975_s1 + $0x4ac] sm:$0xf0]  ;;  %v5235_v26 = vld [vmem:[%s9975_s1 + $0x4b4] sm:$0xf0] }
 0x155   :  { %1963 = vmatmul.bf16.gmra.mxu1 %v6845_v22  ;;  %v6863_v55 = vadd.f32 %v1921_v32, %v1843_v3  ;;  %v5436_v3 = vld [vmem:[%s9975_s1 + $0x4a8] sm:$0xf0]  ;;  %v6903_v42 = vor.u32 %v5431_v21, %v5227_v8  ;;  %v6905_v22 = vor.u32 %v5432_v10, %v5235_v26  ;;  %v4669_v8 = vld [vmem:[%s9975_s1 + $0x18] sm:$0xf]  ;;  %v5295_v10 = vld [vmem:[%s9975_s1 + $0x40] sm:$0xf0] }
 0x156   :  { %v1687_v53 = vpop.f32.mrf.mxu2  ;;  %2369 = vmatpush.bf16.msrb.mxu3 %v366_v57  ;;  %v76_v32 = vld [vmem:[%s9974_s0 + $0x1e8] sm:$0xff] }
 0x157   :  { %v1688_v20 = vadd.f32 %v1687_v53, %v6453_v18  ;;  %v1766_v56 = vpop.f32.mrf.mxu3  ;;  %v78_v18 = vld [vmem:[%s9974_s0 + $0x1f8] sm:$0xff]  ;;  %10258 = vst [vmem:[#allocation74_spill] sm:$0xff] %v6903_v42  ;;  %v4671_v26 = vld [vmem:[%s9975_s1 + $0x44] sm:$0xf0] }
 0x158   :  { %v1847_v31 = vpop.f32.mrf.mxu0  ;;  %v382_v46 = vpack.c.bf16 %v78_v18, %v76_v32  ;;  %10259 = vst [vmem:[#allocation75_spill] sm:$0xff] %v6905_v22 }
 0x159   :  { %v1767_v62 = vadd.f32 %v1766_v56, %v1688_v20 }
 0x15a   :  { %v1926_v43 = vpop.f32.mrf.mxu1  ;;  %2448 = vmatpush.bf16.msrb.mxu0 %v382_v46 }
 0x15b   :  { %v1846_v12 = vadd.f32 %v1845_v34, %v1767_v62  ;;  %v5233_v34 = vld [vmem:[%s9975_s1 + $0x488] sm:$0xf]  ;;  %v6899_v62 = vor.u32 %v5436_v3, %v5225_v51 }
 0x15c   :  { %v6901_v32 = vor.u32 %v5437_v27, %v5233_v34 }
 0x15d   :  { %v6896_v53 = vadd.f32 %v1924_v41, %v1846_v12  ;;  %10256 = vst [vmem:[#allocation72_spill] sm:$0xff] %v6899_v62  ;;  %v110_v41 = vld [vmem:[%s9974_s0 + $0x2f8] sm:$0xff] }
 0x15e   :  { %v1689_v57 = vpop.f32.mrf.mxu2  ;;  %10257 = vst [vmem:[#allocation73_spill] sm:$0xff] %v6901_v32 }
 0x15f   :  { %v1690_v20 = vadd.f32 %v1689_v57, %v6473_v60  ;;  %v1768_v56 = vpop.f32.mrf.mxu3  ;;  %v108_v60 = vld [vmem:[%s9974_s0 + $0x2e8] sm:$0xff]  ;;  %v5291_v57 = vld [vmem:[%s9975_s1 + $0x24] sm:$0xf] }
 0x160   :  { %v1850_v18 = vpop.f32.mrf.mxu0  ;;  %v398_v51 = vpack.c.bf16 %v110_v41, %v108_v60 }
 0x161   :  { %v1769_v6 = vadd.f32 %v1768_v56, %v1690_v20  ;;  %v4679_v20 = vld [vmem:[%s9975_s1 + $0x4c] sm:$0xf0] }
 0x162   :  { %v1929_v2 = vpop.f32.mrf.mxu1  ;;  %2527 = vmatpush.bf16.msrb.mxu1 %v398_v51  ;;  %v6947_v51 = vor.u32 %v5295_v10, %v4669_v8 }
 0x163   :  { %v1848_v36 = vadd.f32 %v1847_v31, %v1769_v6  ;;  %1731 = vmatmul.bf16.gmra.mxu2 %v6899_v62  ;;  %1889 = vmatmul.bf16.gmra.mxu0 %v6901_v32 }
 0x164   :  { %1810 = vmatmul.bf16.gmra.mxu3 %v6903_v42  ;;  %10260 = vst [vmem:[#allocation76_spill] sm:$0xff] %v6947_v51 }
 0x165   :  { %1968 = vmatmul.bf16.gmra.mxu1 %v6905_v22  ;;  %v6917_v12 = vadd.f32 %v1926_v43, %v1848_v36  ;;  %v5290_v36 = vld [vmem:[%s9975_s1 + $0x1c] sm:$0xf]  ;;  %v5296_v43 = vld [vmem:[%s9975_s1 + $0x48] sm:$0xf0] }
 0x166   :  { %v1692_v6 = vpop.f32.mrf.mxu2 }
 0x167   :  { %v1693_v31 = vadd.f32 %v1692_v6, %v6521_v16  ;;  %v1771_v3 = vpop.f32.mrf.mxu3  ;;  %v4677_v16 = vld [vmem:[%s9975_s1 + $0x20] sm:$0xf] }
 0x168   :  { %v1852_v21 = vpop.f32.mrf.mxu0  ;;  %v6949_v6 = vor.u32 %v5296_v43, %v4677_v16 }
 0x169   :  { %v1772_v34 = vadd.f32 %v1771_v3, %v1693_v31  ;;  %v6951_v3 = vor.u32 %v5290_v36, %v4671_v26  ;;  %v4713_v26 = vld [vmem:[%s9975_s1 + $0x70] sm:$0xf] }
 0x16a   :  { %v1931_v27 = vpop.f32.mrf.mxu1  ;;  %10261 = vst [vmem:[#allocation77_spill] sm:$0xff] %v6949_v6 }
 0x16b   :  { %v1851_v46 = vadd.f32 %v1850_v18, %v1772_v34  ;;  %10262 = vst [vmem:[#allocation78_spill] sm:$0xff] %v6951_v3  ;;  %v6953_v34 = vor.u32 %v5291_v57, %v4679_v20  ;;  %v5306_v57 = vld [vmem:[%s9975_s1 + $0x98] sm:$0xf0] }
 0x16d   :  { %v6944_v56 = vadd.f32 %v1929_v2, %v1851_v46  ;;  %10263 = vst [vmem:[#allocation79_spill] sm:$0xff] %v6953_v34  ;;  %v40_v2 = vld [vmem:[%s9974_s0 + $0xc8] sm:$0xff] }
 0x16e   :  { %v1694_v18 = vpop.f32.mrf.mxu2 }
 0x16f   :  { %v1695_v60 = vadd.f32 %v1694_v18, %v6529_v29  ;;  %v1773_v41 = vpop.f32.mrf.mxu3  ;;  %v42_v29 = vld [vmem:[%s9974_s0 + $0xd8] sm:$0xff]  ;;  %v104_v18 = vld [vmem:[%s9974_s0 + $0x2c8] sm:$0xff] }
 0x170   :  { %v1855_v31 = vpop.f32.mrf.mxu0  ;;  %v364_v46 = vpack.c.bf16 %v42_v29, %v40_v2  ;;  %v106_v2 = vld [vmem:[%s9974_s0 + $0x2d8] sm:$0xff]  ;;  %v4715_v29 = vld [vmem:[%s9975_s1 + $0x9c] sm:$0xf0] }
 0x171   :  { %v1774_v32 = vadd.f32 %v1773_v41, %v1695_v60  ;;  %v4721_v60 = vld [vmem:[%s9975_s1 + $0x78] sm:$0xf]  ;;  %v5307_v41 = vld [vmem:[%s9975_s1 + $0xa0] sm:$0xf0] }
 0x172   :  { %v1934_v22 = vpop.f32.mrf.mxu1  ;;  %2370 = vmatpush.bf16.msrb.mxu3 %v364_v46  ;;  %v5302_v46 = vld [vmem:[%s9975_s1 + $0x7c] sm:$0xf] }
 0x173   :  { %v1853_v42 = vadd.f32 %v1852_v21, %v1774_v32  ;;  %1982 = vmatmul.bf16.vlgmr.msra.gmra.mxu2 %v6947_v51  ;;  %2140 = vmatmul.bf16.vlgmr.msra.gmra.mxu0 %v6949_v6  ;;  %v7007_v6 = vor.u32 %v5306_v57, %v4713_v26 }
 0x174   :  { %2061 = vmatmul.bf16.vlgmr.msra.gmra.mxu3 %v6951_v3 }
 0x175   :  { %2219 = vmatmul.bf16.vlgmr.msra.gmra.mxu1 %v6953_v34  ;;  %v6965_v8 = vadd.f32 %v1931_v27, %v1853_v42  ;;  %v5301_v42 = vld [vmem:[%s9975_s1 + $0x74] sm:$0xf]  ;;  %v74_v27 = vld [vmem:[%s9974_s0 + $0x1d8] sm:$0xff]  ;;  %10264 = vst [vmem:[#allocation80_spill] sm:$0xff] %v7007_v6  ;;  %v7009_v34 = vor.u32 %v5307_v41, %v4721_v60 }
 0x176   :  { %v1697_v32 = vpop.f32.mrf.mxu2  ;;  %v7011_v51 = vor.u32 %v5301_v42, %v4715_v29  ;;  %v5318_v29 = vld [vmem:[%s9975_s1 + $0xf8] sm:$0xf0] }
 0x177   :  { %v1698_v21 = vadd.f32 %v1697_v32, %v6565_v48  ;;  %v1776_v10 = vpop.f32.mrf.mxu3  ;;  %v72_v48 = vld [vmem:[%s9974_s0 + $0x1c8] sm:$0xff]  ;;  %10265 = vst [vmem:[#allocation81_spill] sm:$0xff] %v7009_v34 }
 0x178   :  { %v1857_v36 = vpop.f32.mrf.mxu0  ;;  %v4723_v32 = vld [vmem:[%s9975_s1 + $0xa4] sm:$0xf0]  ;;  %10266 = vst [vmem:[#allocation82_spill] sm:$0xff] %v7011_v51 }
 0x179   :  { %v1777_v16 = vadd.f32 %v1776_v10, %v1698_v21  ;;  %v396_v21 = vpack.c.bf16 %v106_v2, %v104_v18  ;;  %v7013_v62 = vor.u32 %v5302_v46, %v4723_v32  ;;  %v36_v2 = vld [vmem:[%s9974_s0 + $0xa8] sm:$0xff]  ;;  %v38_v32 = vld [vmem:[%s9974_s0 + $0xb8] sm:$0xff] }
 0x17a   :  { %v1936_v43 = vpop.f32.mrf.mxu1 }
 0x17b   :  { %v1856_v20 = vadd.f32 %v1855_v31, %v1777_v16  ;;  %v380_v31 = vpack.c.bf16 %v74_v27, %v72_v48  ;;  %2528 = vmatpush.bf16.msrb.mxu1 %v396_v21  ;;  %10267 = vst [vmem:[#allocation83_spill] sm:$0xff] %v7013_v62  ;;  %v4759_v21 = vld [vmem:[%s9975_s1 + $0xf4] sm:$0xf0] }
 0x17d   :  { %v7004_v10 = vadd.f32 %v1934_v22, %v1856_v20  ;;  %2449 = vmatpush.bf16.msrb.mxu0 %v380_v31  ;;  %v345_v31 = vld [vmem:[%s9974_s0 + $0xa50] sm:$0xff] }
 0x17e   :  { %v1699_v16 = vpop.f32.mrf.mxu2 }
 0x17f   :  { %v1700_v48 = vadd.f32 %v1699_v16, %v6585_v58  ;;  %v1778_v27 = vpop.f32.mrf.mxu3  ;;  %v5313_v16 = vld [vmem:[%s9975_s1 + $0xd4] sm:$0xf] }
 0x180   :  { %v1860_v3 = vpop.f32.mrf.mxu0 }
 0x181   :  { %v1779_v39 = vadd.f32 %v1778_v27, %v1700_v48  ;;  %v4767_v48 = vld [vmem:[%s9975_s1 + $0xfc] sm:$0xf0]  ;;  %v362_v27 = vpack.c.bf16 %v38_v32, %v36_v2 }
 0x182   :  { %v1939_v33 = vpop.f32.mrf.mxu1 }
 0x183   :  { %v1858_v18 = vadd.f32 %v1857_v36, %v1779_v39  ;;  %1987 = vmatmul.bf16.gmra.mxu2 %v7007_v6  ;;  %2145 = vmatmul.bf16.gmra.mxu0 %v7009_v34  ;;  %v4757_v39 = vld [vmem:[%s9975_s1 + $0xc8] sm:$0xf]  ;;  %v5317_v36 = vld [vmem:[%s9975_s1 + $0xf0] sm:$0xf0] }
 0x184   :  { %2066 = vmatmul.bf16.gmra.mxu3 %v7011_v51 }
 0x185   :  { %2224 = vmatmul.bf16.gmra.mxu1 %v7013_v62  ;;  %v7019_v58 = vadd.f32 %v1936_v43, %v1858_v18  ;;  %v5312_v43 = vld [vmem:[%s9975_s1 + $0xcc] sm:$0xf]  ;;  %2371 = vmatpush.bf16.msrb.mxu3 %v362_v27  ;;  %v7067_v62 = vor.u32 %v5313_v16, %v4767_v48  ;;  %v5323_v16 = vld [vmem:[%s9975_s1 + $0x124] sm:$0xf]  ;;  %v4809_v48 = vld [vmem:[%s9975_s1 + $0x128] sm:$0xf] }
 0x186   :  { %v1702_v22 = vpop.f32.mrf.mxu2  ;;  %v7065_v34 = vor.u32 %v5312_v43, %v4759_v21  ;;  %v5328_v21 = vld [vmem:[%s9975_s1 + $0x148] sm:$0xf0]  ;;  %v5329_v27 = vld [vmem:[%s9975_s1 + $0x150] sm:$0xf0] }
 0x187   :  { %v1703_v26 = vadd.f32 %v1702_v22, %v6235_v25  ;;  %v1781_v57 = vpop.f32.mrf.mxu3  ;;  %v343_v25 = vld [vmem:[%s9974_s0 + $0xa40] sm:$0xff]  ;;  %10271 = vst [vmem:[#allocation87_spill] sm:$0xff] %v7067_v62 }
 0x188   :  { %v1862_v20 = vpop.f32.mrf.mxu0  ;;  %v515_v46 = vpack.c.bf16 %v345_v31, %v343_v25  ;;  %10270 = vst [vmem:[#allocation86_spill] sm:$0xff] %v7065_v34 }
 0x189   :  { %v1782_v42 = vadd.f32 %v1781_v57, %v1703_v26 }
 0x18a   :  { %v1941_v60 = vpop.f32.mrf.mxu1  ;;  %2295 = vmatpush.bf16.msrb.mxu2 %v515_v46  ;;  %v4801_v46 = vld [vmem:[%s9975_s1 + $0x120] sm:$0xf] }
 0x18b   :  { %v1861_v41 = vadd.f32 %v1860_v3, %v1782_v42  ;;  %v4765_v3 = vld [vmem:[%s9975_s1 + $0xd0] sm:$0xf]  ;;  %v7061_v42 = vor.u32 %v5317_v36, %v4757_v39 }
 0x18c   :  { %v7063_v25 = vor.u32 %v5318_v29, %v4765_v3 }
 0x18d   :  { %v7058_v18 = vadd.f32 %v1939_v33, %v1861_v41  ;;  %10268 = vst [vmem:[#allocation84_spill] sm:$0xff] %v7061_v42  ;;  %v70_v33 = vld [vmem:[%s9974_s0 + $0x1b8] sm:$0xff] }
 0x18e   :  { %v1704_v22 = vpop.f32.mrf.mxu2  ;;  %10269 = vst [vmem:[#allocation85_spill] sm:$0xff] %v7063_v25 }
 0x18f   :  { %v1705_v26 = vadd.f32 %v1704_v22, %v6279_v63  ;;  %v1783_v57 = vpop.f32.mrf.mxu3  ;;  %v68_v63 = vld [vmem:[%s9974_s0 + $0x1a8] sm:$0xff] }
 0x190   :  { %v1865_v31 = vpop.f32.mrf.mxu0  ;;  %v378_v39 = vpack.c.bf16 %v70_v33, %v68_v63 }
 0x191   :  { %v1784_v51 = vadd.f32 %v1783_v57, %v1705_v26  ;;  %v4803_v26 = vld [vmem:[%s9975_s1 + $0x14c] sm:$0xf0]  ;;  %v5324_v57 = vld [vmem:[%s9975_s1 + $0x12c] sm:$0xf] }
 0x192   :  { %v1944_v6 = vpop.f32.mrf.mxu1  ;;  %2450 = vmatpush.bf16.msrb.mxu0 %v378_v39 }
 0x193   :  { %v1863_v2 = vadd.f32 %v1862_v20, %v1784_v51  ;;  %1992 = vmatmul.bf16.gmra.mxu2 %v7061_v42  ;;  %2150 = vmatmul.bf16.gmra.mxu0 %v7063_v25 }
 0x194   :  { %2071 = vmatmul.bf16.gmra.mxu3 %v7065_v34 }
 0x195   :  { %2229 = vmatmul.bf16.gmra.mxu1 %v7067_v62  ;;  %v7079_v36 = vadd.f32 %v1941_v60, %v1863_v2  ;;  %v100_v60 = vld [vmem:[%s9974_s0 + $0x2a8] sm:$0xff] }
 0x196   :  { %v1707_v51 = vpop.f32.mrf.mxu2 }
 0x197   :  { %v1708_v20 = vadd.f32 %v1707_v51, %v6297_v45  ;;  %v1786_v41 = vpop.f32.mrf.mxu3  ;;  %v102_v45 = vld [vmem:[%s9974_s0 + $0x2b8] sm:$0xff]  ;;  %v7115_v51 = vor.u32 %v5328_v21, %v4801_v46 }
 0x198   :  { %v1867_v43 = vpop.f32.mrf.mxu0  ;;  %v394_v22 = vpack.c.bf16 %v102_v45, %v100_v60 }
 0x199   :  { %v1787_v3 = vadd.f32 %v1786_v41, %v1708_v20  ;;  %10272 = vst [vmem:[#allocation88_spill] sm:$0xff] %v7115_v51  ;;  %v7117_v20 = vor.u32 %v5329_v27, %v4809_v48 }
 0x19a   :  { %v1946_v29 = vpop.f32.mrf.mxu1  ;;  %2529 = vmatpush.bf16.msrb.mxu1 %v394_v22  ;;  %v5339_v22 = vld [vmem:[%s9975_s1 + $0x1a0] sm:$0xf0] }
 0x19b   :  { %v1866_v32 = vadd.f32 %v1865_v31, %v1787_v3  ;;  %v4811_v31 = vld [vmem:[%s9975_s1 + $0x154] sm:$0xf0]  ;;  %10273 = vst [vmem:[#allocation89_spill] sm:$0xff] %v7117_v20  ;;  %v7119_v3 = vor.u32 %v5323_v16, %v4803_v26  ;;  %v4853_v26 = vld [vmem:[%s9975_s1 + $0x180] sm:$0xf] }
 0x19c   :  { %v7121_v60 = vor.u32 %v5324_v57, %v4811_v31  ;;  %v5340_v57 = vld [vmem:[%s9975_s1 + $0x1a8] sm:$0xf0] }
 0x19d   :  { %v7112_v2 = vadd.f32 %v1944_v6, %v1866_v32  ;;  %10274 = vst [vmem:[#allocation90_spill] sm:$0xff] %v7119_v3 }
 0x19e   :  { %v1709_v63 = vpop.f32.mrf.mxu2  ;;  %10275 = vst [vmem:[#allocation91_spill] sm:$0xff] %v7121_v60 }
 0x19f   :  { %v1710_v33 = vadd.f32 %v1709_v63, %v6335_v50  ;;  %v1788_v39 = vpop.f32.mrf.mxu3  ;;  %v4847_v63 = vld [vmem:[%s9975_s1 + $0x1a4] sm:$0xf0] }
 0x1a0   :  { %v1870_v41 = vpop.f32.mrf.mxu0 }
 0x1a1   :  { %v1789_v45 = vadd.f32 %v1788_v39, %v1710_v33  ;;  %v5335_v33 = vld [vmem:[%s9975_s1 + $0x184] sm:$0xf]  ;;  %v4855_v39 = vld [vmem:[%s9975_s1 + $0x1ac] sm:$0xf0] }
 0x1a2   :  { %v1949_v25 = vpop.f32.mrf.mxu1 }
 0x1a3   :  { %v1868_v62 = vadd.f32 %v1867_v43, %v1789_v45  ;;  %1997 = vmatmul.bf16.gmra.mxu2 %v7115_v51  ;;  %2155 = vmatmul.bf16.gmra.mxu0 %v7117_v20  ;;  %v4845_v43 = vld [vmem:[%s9975_s1 + $0x178] sm:$0xf]  ;;  %v7169_v20 = vor.u32 %v5335_v33, %v4855_v39 }
 0x1a4   :  { %2076 = vmatmul.bf16.gmra.mxu3 %v7119_v3 }
 0x1a5   :  { %2234 = vmatmul.bf16.gmra.mxu1 %v7121_v60  ;;  %v7127_v50 = vadd.f32 %v1946_v29, %v1868_v62  ;;  %v32_v62 = vld [vmem:[%s9974_s0 + $0x88] sm:$0xff]  ;;  %v5334_v29 = vld [vmem:[%s9975_s1 + $0x17c] sm:$0xf]  ;;  %10279 = vst [vmem:[#allocation95_spill] sm:$0xff] %v7169_v20 }
 0x1a6   :  { %v1712_v6 = vpop.f32.mrf.mxu2 }
 0x1a7   :  { %v1713_v46 = vadd.f32 %v1712_v6, %v6347_v59  ;;  %v1791_v32 = vpop.f32.mrf.mxu3  ;;  %v34_v59 = vld [vmem:[%s9974_s0 + $0x98] sm:$0xff] }
 0x1a8   :  { %v1872_v21 = vpop.f32.mrf.mxu0  ;;  %v360_v31 = vpack.c.bf16 %v34_v59, %v32_v62  ;;  %v7167_v59 = vor.u32 %v5334_v29, %v4847_v63 }
 0x1a9   :  { %v1792_v16 = vadd.f32 %v1791_v32, %v1713_v46  ;;  %v7163_v32 = vor.u32 %v5339_v22, %v4845_v43 }
 0x1aa   :  { %v1951_v48 = vpop.f32.mrf.mxu1  ;;  %2372 = vmatpush.bf16.msrb.mxu3 %v360_v31  ;;  %10278 = vst [vmem:[#allocation94_spill] sm:$0xff] %v7167_v59 }
 0x1ab   :  { %v1871_v27 = vadd.f32 %v1870_v41, %v1792_v16  ;;  %10276 = vst [vmem:[#allocation92_spill] sm:$0xff] %v7163_v32  ;;  %v7165_v16 = vor.u32 %v5340_v57, %v4853_v26 }
 0x1ad   :  { %v7160_v41 = vadd.f32 %v1949_v25, %v1871_v27  ;;  %10277 = vst [vmem:[#allocation93_spill] sm:$0xff] %v7165_v16  ;;  %v66_v25 = vld [vmem:[%s9974_s0 + $0x198] sm:$0xff] }
 0x1ae   :  { %v1714_v45 = vpop.f32.mrf.mxu2 }
 0x1af   :  { %v1715_v6 = vadd.f32 %v1714_v45, %v6391_v23  ;;  %v1793_v46 = vpop.f32.mrf.mxu3  ;;  %v64_v23 = vld [vmem:[%s9974_s0 + $0x188] sm:$0xff]  ;;  %v4889_v45 = vld [vmem:[%s9975_s1 + $0x1d0] sm:$0xf] }
 0x1b0   :  { %v1875_v62 = vpop.f32.mrf.mxu0  ;;  %v376_v43 = vpack.c.bf16 %v66_v25, %v64_v23  ;;  %v4899_v23 = vld [vmem:[%s9975_s1 + $0x204] sm:$0xf0] }
 0x1b1   :  { %v1794_v60 = vadd.f32 %v1793_v46, %v1715_v6  ;;  %v5350_v6 = vld [vmem:[%s9975_s1 + $0x1f8] sm:$0xf0]  ;;  %v4891_v46 = vld [vmem:[%s9975_s1 + $0x1fc] sm:$0xf0] }
 0x1b2   :  { %v1954_v3 = vpop.f32.mrf.mxu1  ;;  %2451 = vmatpush.bf16.msrb.mxu0 %v376_v43 }
 0x1b3   :  { %v1873_v34 = vadd.f32 %v1872_v21, %v1794_v60  ;;  %2002 = vmatmul.bf16.gmra.mxu2 %v7163_v32  ;;  %2160 = vmatmul.bf16.gmra.mxu0 %v7165_v16  ;;  %v96_v60 = vld [vmem:[%s9974_s0 + $0x288] sm:$0xff]  ;;  %v98_v21 = vld [vmem:[%s9974_s0 + $0x298] sm:$0xff] }
 0x1b4   :  { %2081 = vmatmul.bf16.gmra.mxu3 %v7167_v59  ;;  %v392_v27 = vpack.c.bf16 %v98_v21, %v96_v60 }
 0x1b5   :  { %2239 = vmatmul.bf16.gmra.mxu1 %v7169_v20  ;;  %v7187_v22 = vadd.f32 %v1951_v48, %v1873_v34  ;;  %v5345_v34 = vld [vmem:[%s9975_s1 + $0x1d4] sm:$0xf]  ;;  %v5351_v48 = vld [vmem:[%s9975_s1 + $0x200] sm:$0xf0] }
 0x1b6   :  { %v1717_v29 = vpop.f32.mrf.mxu2  ;;  %2530 = vmatpush.bf16.msrb.mxu1 %v392_v27  ;;  %v7217_v27 = vor.u32 %v5350_v6, %v4889_v45 }
 0x1b7   :  { %v1718_v26 = vadd.f32 %v1717_v29, %v6415_v14  ;;  %v1796_v57 = vpop.f32.mrf.mxu3  ;;  %v4897_v14 = vld [vmem:[%s9975_s1 + $0x1d8] sm:$0xf] }
 0x1b8   :  { %v1877_v31 = vpop.f32.mrf.mxu0  ;;  %10280 = vst [vmem:[#allocation96_spill] sm:$0xff] %v7217_v27  ;;  %v7219_v29 = vor.u32 %v5351_v48, %v4897_v14 }
 0x1b9   :  { %v1797_v63 = vadd.f32 %v1796_v57, %v1718_v26  ;;  %v7221_v57 = vor.u32 %v5345_v34, %v4891_v46 }
 0x1ba   :  { %v1956_v33 = vpop.f32.mrf.mxu1  ;;  %10281 = vst [vmem:[#allocation97_spill] sm:$0xff] %v7219_v29 }
 0x1bb   :  { %v1876_v39 = vadd.f32 %v1875_v62, %v1797_v63  ;;  %v5346_v62 = vld [vmem:[%s9975_s1 + $0x1dc] sm:$0xf]  ;;  %10282 = vst [vmem:[#allocation98_spill] sm:$0xff] %v7221_v57 }
 0x1bc   :  { %v7223_v63 = vor.u32 %v5346_v62, %v4899_v23 }
 0x1bd   :  { %v7214_v25 = vadd.f32 %v1954_v3, %v1876_v39  ;;  %v341_v3 = vld [vmem:[%s9974_s0 + $0xa30] sm:$0xff]  ;;  %v30_v39 = vld [vmem:[%s9974_s0 + $0x78] sm:$0xff] }
 0x1be   :  { %v1719_v43 = vpop.f32.mrf.mxu2  ;;  %10283 = vst [vmem:[#allocation99_spill] sm:$0xff] %v7223_v63 }
 0x1bf   :  { %v1720_v60 = vadd.f32 %v1719_v43, %v6447_v7  ;;  %v1798_v21 = vpop.f32.mrf.mxu3  ;;  %v339_v7 = vld [vmem:[%s9974_s0 + $0xa20] sm:$0xff]  ;;  %v4933_v43 = vld [vmem:[%s9975_s1 + $0x228] sm:$0xf] }
 0x1c0   :  { %v1880_v26 = vpop.f32.mrf.mxu0 }
 0x1c1   :  { %v1799_v16 = vadd.f32 %v1798_v21, %v1720_v60  ;;  %v5356_v21 = vld [vmem:[%s9975_s1 + $0x22c] sm:$0xf] }
 0x1c2   :  { %v1959_v20 = vpop.f32.mrf.mxu1 }
 0x1c3   :  { %v1878_v59 = vadd.f32 %v1877_v31, %v1799_v16  ;;  %2007 = vmatmul.bf16.gmra.mxu2 %v7217_v27  ;;  %2165 = vmatmul.bf16.gmra.mxu0 %v7219_v29  ;;  %v28_v16 = vld [vmem:[%s9974_s0 + $0x68] sm:$0xff]  ;;  %v513_v31 = vpack.c.bf16 %v341_v3, %v339_v7  ;;  %v5362_v7 = vld [vmem:[%s9975_s1 + $0x258] sm:$0xf0] }
 0x1c4   :  { %2086 = vmatmul.bf16.gmra.mxu3 %v7221_v57  ;;  %v358_v34 = vpack.c.bf16 %v30_v39, %v28_v16  ;;  %v4935_v16 = vld [vmem:[%s9975_s1 + $0x254] sm:$0xf0]  ;;  %v4943_v39 = vld [vmem:[%s9975_s1 + $0x25c] sm:$0xf0] }
 0x1c5   :  { %2244 = vmatmul.bf16.gmra.mxu1 %v7223_v63  ;;  %v7241_v45 = vadd.f32 %v1956_v33, %v1878_v59  ;;  %2296 = vmatpush.bf16.msrb.mxu2 %v513_v31  ;;  %v5361_v59 = vld [vmem:[%s9975_s1 + $0x250] sm:$0xf0]  ;;  %v60_v33 = vld [vmem:[%s9974_s0 + $0x168] sm:$0xff]  ;;  %v7281_v29 = vor.u32 %v5356_v21, %v4935_v16  ;;  %v4977_v16 = vld [vmem:[%s9975_s1 + $0x280] sm:$0xf] }
 0x1c6   :  { %v1722_v6 = vpop.f32.mrf.mxu2  ;;  %2373 = vmatpush.bf16.msrb.mxu3 %v358_v34  ;;  %v5357_v31 = vld [vmem:[%s9975_s1 + $0x234] sm:$0xf] }
 0x1c7   :  { %v1723_v14 = vadd.f32 %v1722_v6, %v6471_v15  ;;  %v1801_v48 = vpop.f32.mrf.mxu3  ;;  %v62_v15 = vld [vmem:[%s9974_s0 + $0x178] sm:$0xff]  ;;  %10286 = vst [vmem:[#allocation102_spill] sm:$0xff] %v7281_v29  ;;  %v7283_v63 = vor.u32 %v5357_v31, %v4943_v39  ;;  %v5372_v31 = vld [vmem:[%s9975_s1 + $0x2a8] sm:$0xf0]  ;;  %v4979_v39 = vld [vmem:[%s9975_s1 + $0x2ac] sm:$0xf0] }
 0x1c8   :  { %v1882_v46 = vpop.f32.mrf.mxu0  ;;  %v374_v3 = vpack.c.bf16 %v62_v15, %v60_v33 }
 0x1c9   :  { %v1802_v62 = vadd.f32 %v1801_v48, %v1723_v14  ;;  %10287 = vst [vmem:[#allocation103_spill] sm:$0xff] %v7283_v63 }
 0x1ca   :  { %v1961_v23 = vpop.f32.mrf.mxu1  ;;  %2452 = vmatpush.bf16.msrb.mxu0 %v374_v3 }
 0x1cb   :  { %v1881_v60 = vadd.f32 %v1880_v26, %v1802_v62  ;;  %v4941_v26 = vld [vmem:[%s9975_s1 + $0x230] sm:$0xf]  ;;  %v7277_v62 = vor.u32 %v5361_v59, %v4933_v43 }
 0x1cc   :  { %v7279_v33 = vor.u32 %v5362_v7, %v4941_v26 }
 0x1cd   :  { %v7274_v6 = vadd.f32 %v1959_v20, %v1881_v60  ;;  %10284 = vst [vmem:[#allocation100_spill] sm:$0xff] %v7277_v62  ;;  %v94_v20 = vld [vmem:[%s9974_s0 + $0x278] sm:$0xff] }
 0x1ce   :  { %v1724_v34 = vpop.f32.mrf.mxu2  ;;  %10285 = vst [vmem:[#allocation101_spill] sm:$0xff] %v7279_v33 }
 0x1cf   :  { %v1725_v14 = vadd.f32 %v1724_v34, %v6509_v40  ;;  %v1803_v48 = vpop.f32.mrf.mxu3  ;;  %v92_v40 = vld [vmem:[%s9974_s0 + $0x268] sm:$0xff] }
 0x1d0   :  { %v1885_v15 = vpop.f32.mrf.mxu0  ;;  %v390_v43 = vpack.c.bf16 %v94_v20, %v92_v40  ;;  %v5368_v34 = vld [vmem:[%s9975_s1 + $0x28c] sm:$0xf] }
 0x1d1   :  { %v1804_v57 = vadd.f32 %v1803_v48, %v1725_v14  ;;  %v4987_v14 = vld [vmem:[%s9975_s1 + $0x2b4] sm:$0xf0] }
 0x1d2   :  { %v1964_v27 = vpop.f32.mrf.mxu1  ;;  %2531 = vmatpush.bf16.msrb.mxu1 %v390_v43  ;;  %v7325_v43 = vor.u32 %v5372_v31, %v4977_v16 }
 0x1d3   :  { %v1883_v32 = vadd.f32 %v1882_v46, %v1804_v57  ;;  %2012 = vmatmul.bf16.gmra.mxu2 %v7277_v62  ;;  %2170 = vmatmul.bf16.gmra.mxu0 %v7279_v33 }
 0x1d4   :  { %2091 = vmatmul.bf16.gmra.mxu3 %v7281_v29  ;;  %10288 = vst [vmem:[#allocation104_spill] sm:$0xff] %v7325_v43 }
 0x1d5   :  { %2249 = vmatmul.bf16.gmra.mxu1 %v7283_v63  ;;  %v7295_v60 = vadd.f32 %v1961_v23, %v1883_v32  ;;  %v5367_v32 = vld [vmem:[%s9975_s1 + $0x284] sm:$0xf]  ;;  %v5373_v23 = vld [vmem:[%s9975_s1 + $0x2b0] sm:$0xf0] }
 0x1d6   :  { %v1727_v57 = vpop.f32.mrf.mxu2 }
 0x1d7   :  { %v1728_v46 = vadd.f32 %v1727_v57, %v6527_v44  ;;  %v1806_v59 = vpop.f32.mrf.mxu3  ;;  %v4985_v44 = vld [vmem:[%s9975_s1 + $0x288] sm:$0xf] }
 0x1d8   :  { %v1887_v21 = vpop.f32.mrf.mxu0  ;;  %v7327_v57 = vor.u32 %v5373_v23, %v4985_v44 }
 0x1d9   :  { %v1807_v26 = vadd.f32 %v1806_v59, %v1728_v46  ;;  %v7329_v59 = vor.u32 %v5367_v32, %v4979_v39  ;;  %v5021_v39 = vld [vmem:[%s9975_s1 + $0x2d8] sm:$0xf] }
 0x1da   :  { %v1966_v7 = vpop.f32.mrf.mxu1  ;;  %10289 = vst [vmem:[#allocation105_spill] sm:$0xff] %v7327_v57 }
 0x1db   :  { %v1886_v3 = vadd.f32 %v1885_v15, %v1807_v26  ;;  %10290 = vst [vmem:[#allocation106_spill] sm:$0xff] %v7329_v59  ;;  %v7331_v26 = vor.u32 %v5368_v34, %v4987_v14  ;;  %v5383_v34 = vld [vmem:[%s9975_s1 + $0x300] sm:$0xf0] }
 0x1dd   :  { %v7322_v48 = vadd.f32 %v1964_v27, %v1886_v3  ;;  %10291 = vst [vmem:[#allocation107_spill] sm:$0xff] %v7331_v26  ;;  %v26_v27 = vld [vmem:[%s9974_s0 + $0x58] sm:$0xff] }
 0x1de   :  { %v1729_v15 = vpop.f32.mrf.mxu2 }
 0x1df   :  { %v1730_v40 = vadd.f32 %v1729_v15, %v6559_v5  ;;  %v1808_v20 = vpop.f32.mrf.mxu3  ;;  %v24_v5 = vld [vmem:[%s9974_s0 + $0x48] sm:$0xff] }
 0x1e0   :  { %v1890_v46 = vpop.f32.mrf.mxu0  ;;  %v356_v3 = vpack.c.bf16 %v26_v27, %v24_v5  ;;  %v88_v15 = vld [vmem:[%s9974_s0 + $0x248] sm:$0xff]  ;;  %v90_v5 = vld [vmem:[%s9974_s0 + $0x258] sm:$0xff] }
 0x1e1   :  { %v1809_v33 = vadd.f32 %v1808_v20, %v1730_v40  ;;  %v5029_v40 = vld [vmem:[%s9975_s1 + $0x2e0] sm:$0xf]  ;;  %v5384_v20 = vld [vmem:[%s9975_s1 + $0x308] sm:$0xf0]  ;;  %v5023_v27 = vld [vmem:[%s9975_s1 + $0x304] sm:$0xf0] }
 0x1e2   :  { %v1969_v63 = vpop.f32.mrf.mxu1  ;;  %2374 = vmatpush.bf16.msrb.mxu3 %v356_v3  ;;  %v5379_v3 = vld [vmem:[%s9975_s1 + $0x2e4] sm:$0xf] }
 0x1e3   :  { %v1888_v29 = vadd.f32 %v1887_v21, %v1809_v33  ;;  %2017 = vmatmul.bf16.gmra.mxu2 %v7325_v43  ;;  %2175 = vmatmul.bf16.gmra.mxu0 %v7327_v57  ;;  %v7385_v57 = vor.u32 %v5383_v34, %v5021_v39 }
 0x1e4   :  { %2096 = vmatmul.bf16.gmra.mxu3 %v7329_v59 }
 0x1e5   :  { %2254 = vmatmul.bf16.gmra.mxu1 %v7331_v26  ;;  %v7343_v16 = vadd.f32 %v1966_v7, %v1888_v29  ;;  %v5378_v29 = vld [vmem:[%s9975_s1 + $0x2dc] sm:$0xf]  ;;  %10292 = vst [vmem:[#allocation108_spill] sm:$0xff] %v7385_v57  ;;  %v7387_v26 = vor.u32 %v5384_v20, %v5029_v40 }
 0x1e6   :  { %v1732_v33 = vpop.f32.mrf.mxu2  ;;  %v58_v7 = vld [vmem:[%s9974_s0 + $0x158] sm:$0xff]  ;;  %v7389_v43 = vor.u32 %v5378_v29, %v5023_v27  ;;  %v5395_v27 = vld [vmem:[%s9975_s1 + $0x360] sm:$0xf0] }
 0x1e7   :  { %v1733_v21 = vadd.f32 %v1732_v33, %v6583_v38  ;;  %v1811_v31 = vpop.f32.mrf.mxu3  ;;  %v56_v38 = vld [vmem:[%s9974_s0 + $0x148] sm:$0xff]  ;;  %v5031_v33 = vld [vmem:[%s9975_s1 + $0x30c] sm:$0xf0]  ;;  %10293 = vst [vmem:[#allocation109_spill] sm:$0xff] %v7387_v26 }
 0x1e8   :  { %v1892_v32 = vpop.f32.mrf.mxu0  ;;  %10294 = vst [vmem:[#allocation110_spill] sm:$0xff] %v7389_v43  ;;  %v7391_v62 = vor.u32 %v5379_v3, %v5031_v33  ;;  %v22_v33 = vld [vmem:[%s9974_s0 + $0x38] sm:$0xff] }
 0x1e9   :  { %v1812_v44 = vadd.f32 %v1811_v31, %v1733_v21  ;;  %v388_v21 = vpack.c.bf16 %v90_v5, %v88_v15  ;;  %v20_v5 = vld [vmem:[%s9974_s0 + $0x28] sm:$0xff] }
 0x1ea   :  { %v1971_v23 = vpop.f32.mrf.mxu1  ;;  %10295 = vst [vmem:[#allocation111_spill] sm:$0xff] %v7391_v62 }
 0x1eb   :  { %v1891_v14 = vadd.f32 %v1890_v46, %v1812_v44  ;;  %v372_v46 = vpack.c.bf16 %v58_v7, %v56_v38  ;;  %2532 = vmatpush.bf16.msrb.mxu1 %v388_v21  ;;  %v5067_v21 = vld [vmem:[%s9975_s1 + $0x35c] sm:$0xf0] }
 0x1ed   :  { %v7382_v31 = vadd.f32 %v1969_v63, %v1891_v14  ;;  %2453 = vmatpush.bf16.msrb.mxu0 %v372_v46  ;;  %v337_v46 = vld [vmem:[%s9974_s0 + $0xa10] sm:$0xff] }
 0x1ee   :  { %v1734_v44 = vpop.f32.mrf.mxu2 }
 0x1ef   :  { %v1735_v38 = vadd.f32 %v1734_v44, %v6627_v30  ;;  %v1813_v7 = vpop.f32.mrf.mxu3  ;;  %v5390_v44 = vld [vmem:[%s9975_s1 + $0x33c] sm:$0xf] }
 0x1f0   :  { %v2141_v59 = vpop.f32.mrf.mxu0 }
 0x1f1   :  { %v1814_v51 = vadd.f32 %v1813_v7, %v1735_v38  ;;  %v5075_v38 = vld [vmem:[%s9975_s1 + $0x364] sm:$0xf0]  ;;  %v354_v7 = vpack.c.bf16 %v22_v33, %v20_v5 }
 0x1f2   :  { %v2220_v42 = vpop.f32.mrf.mxu1 }
 0x1f3   :  { %v1893_v15 = vadd.f32 %v1892_v32, %v1814_v51  ;;  %2022 = vmatmul.bf16.gmra.mxu2 %v7385_v57  ;;  %2180 = vmatmul.bf16.gmra.mxu0 %v7387_v26  ;;  %v5065_v51 = vld [vmem:[%s9975_s1 + $0x330] sm:$0xf]  ;;  %v5394_v32 = vld [vmem:[%s9975_s1 + $0x358] sm:$0xf0] }
 0x1f4   :  { %2101 = vmatmul.bf16.gmra.mxu3 %v7389_v43 }
 0x1f5   :  { %2259 = vmatmul.bf16.gmra.mxu1 %v7391_v62  ;;  %v7397_v30 = vadd.f32 %v1971_v23, %v1893_v15  ;;  %v5389_v23 = vld [vmem:[%s9975_s1 + $0x334] sm:$0xf]  ;;  %2375 = vmatpush.bf16.msrb.mxu3 %v354_v7  ;;  %v7445_v62 = vor.u32 %v5390_v44, %v5075_v38  ;;  %v5400_v44 = vld [vmem:[%s9975_s1 + $0x38c] sm:$0xf]  ;;  %v5117_v38 = vld [vmem:[%s9975_s1 + $0x390] sm:$0xf] }
 0x1f6   :  { %v1983_v63 = vpop.f32.mrf.mxu2  ;;  %v7443_v26 = vor.u32 %v5389_v23, %v5067_v21  ;;  %v5405_v21 = vld [vmem:[%s9975_s1 + $0x3b0] sm:$0xf0]  ;;  %v5406_v7 = vld [vmem:[%s9975_s1 + $0x3b8] sm:$0xf0] }
 0x1f7   :  { %v1984_v39 = vadd.f32 %v1983_v63, %v6674_v24  ;;  %v2062_v34 = vpop.f32.mrf.mxu3  ;;  %v335_v24 = vld [vmem:[%s9974_s0 + $0xa00] sm:$0xff]  ;;  %10298 = vst [vmem:[#allocation114_spill] sm:$0xff] %v7445_v62 }
 0x1f8   :  { %v2143_v14 = vpop.f32.mrf.mxu0  ;;  %v511_v3 = vpack.c.bf16 %v337_v46, %v335_v24  ;;  %10297 = vst [vmem:[#allocation113_spill] sm:$0xff] %v7443_v26 }
 0x1f9   :  { %v2063_v29 = vadd.f32 %v2062_v34, %v1984_v39 }
 0x1fa   :  { %v2222_v40 = vpop.f32.mrf.mxu1  ;;  %2297 = vmatpush.bf16.msrb.mxu2 %v511_v3  ;;  %v5109_v3 = vld [vmem:[%s9975_s1 + $0x388] sm:$0xf] }
 0x1fb   :  { %v2142_v20 = vadd.f32 %v2141_v59, %v2063_v29  ;;  %v5073_v59 = vld [vmem:[%s9975_s1 + $0x338] sm:$0xf]  ;;  %v7439_v29 = vor.u32 %v5394_v32, %v5065_v51 }
 0x1fc   :  { %v7441_v24 = vor.u32 %v5395_v27, %v5073_v59 }
 0x1fd   :  { %v7436_v15 = vadd.f32 %v2220_v42, %v2142_v20  ;;  %v54_v42 = vld [vmem:[%s9974_s0 + $0x138] sm:$0xff] }
 0x1fe   :  { %v1985_v63 = vpop.f32.mrf.mxu2  ;;  %10296 = vst [vmem:[#allocation112_spill] sm:$0xff] %v7441_v24 }
 0x1ff   :  { %v1986_v39 = vadd.f32 %v1985_v63, %v6695_v19  ;;  %v2064_v34 = vpop.f32.mrf.mxu3  ;;  %v52_v19 = vld [vmem:[%s9974_s0 + $0x128] sm:$0xff] }
 0x200   :  { %v2146_v46 = vpop.f32.mrf.mxu0  ;;  %v370_v51 = vpack.c.bf16 %v54_v42, %v52_v19 }
 0x201   :  { %v2065_v43 = vadd.f32 %v2064_v34, %v1986_v39  ;;  %v5111_v39 = vld [vmem:[%s9975_s1 + $0x3b4] sm:$0xf0]  ;;  %v5401_v34 = vld [vmem:[%s9975_s1 + $0x394] sm:$0xf] }
 0x202   :  { %v2225_v57 = vpop.f32.mrf.mxu1  ;;  %2454 = vmatpush.bf16.msrb.mxu0 %v370_v51 }
 0x203   :  { %v2144_v5 = vadd.f32 %v2143_v14, %v2065_v43  ;;  %2027 = vmatmul.bf16.gmra.mxu2 %v7439_v29  ;;  %2185 = vmatmul.bf16.gmra.mxu0 %v7441_v24 }
 0x204   :  { %2106 = vmatmul.bf16.gmra.mxu3 %v7443_v26 }
 0x205   :  { %2264 = vmatmul.bf16.gmra.mxu1 %v7445_v62  ;;  %v7457_v32 = vadd.f32 %v2222_v40, %v2144_v5  ;;  %v84_v40 = vld [vmem:[%s9974_s0 + $0x228] sm:$0xff] }
 0x206   :  { %v1988_v43 = vpop.f32.mrf.mxu2 }
 0x207   :  { %v1989_v14 = vadd.f32 %v1988_v43, %v6728_v54  ;;  %v2067_v20 = vpop.f32.mrf.mxu3  ;;  %v86_v54 = vld [vmem:[%s9974_s0 + $0x238] sm:$0xff]  ;;  %v7493_v43 = vor.u32 %v5405_v21, %v5109_v3 }
 0x208   :  { %v2148_v23 = vpop.f32.mrf.mxu0  ;;  %v386_v63 = vpack.c.bf16 %v86_v54, %v84_v40 }
 0x209   :  { %v2068_v59 = vadd.f32 %v2067_v20, %v1989_v14  ;;  %v7495_v14 = vor.u32 %v5406_v7, %v5117_v38 }
 0x20a   :  { %v2227_v27 = vpop.f32.mrf.mxu1  ;;  %2533 = vmatpush.bf16.msrb.mxu1 %v386_v63  ;;  %v5416_v63 = vld [vmem:[%s9975_s1 + $0x408] sm:$0xf0] }
 0x20b   :  { %v2147_v33 = vadd.f32 %v2146_v46, %v2068_v59  ;;  %v5119_v46 = vld [vmem:[%s9975_s1 + $0x3bc] sm:$0xf0]  ;;  %10299 = vst [vmem:[#allocation115_spill] sm:$0xff] %v7495_v14  ;;  %v7497_v59 = vor.u32 %v5400_v44, %v5111_v39  ;;  %v5161_v39 = vld [vmem:[%s9975_s1 + $0x3e8] sm:$0xf] }
 0x20c   :  { %v7499_v40 = vor.u32 %v5401_v34, %v5119_v46  ;;  %v5417_v34 = vld [vmem:[%s9975_s1 + $0x410] sm:$0xf0] }
 0x20d   :  { %v7490_v5 = vadd.f32 %v2225_v57, %v2147_v33  ;;  %10300 = vst [vmem:[#allocation116_spill] sm:$0xff] %v7497_v59 }
 0x20e   :  { %v1990_v19 = vpop.f32.mrf.mxu2  ;;  %10301 = vst [vmem:[#allocation117_spill] sm:$0xff] %v7499_v40 }
 0x20f   :  { %v1991_v42 = vadd.f32 %v1990_v19, %v6743_v35  ;;  %v2069_v51 = vpop.f32.mrf.mxu3  ;;  %v5155_v19 = vld [vmem:[%s9975_s1 + $0x40c] sm:$0xf0] }
 0x210   :  { %v2151_v20 = vpop.f32.mrf.mxu0 }
 0x211   :  { %v2070_v54 = vadd.f32 %v2069_v51, %v1991_v42  ;;  %v5412_v42 = vld [vmem:[%s9975_s1 + $0x3ec] sm:$0xf]  ;;  %v5163_v51 = vld [vmem:[%s9975_s1 + $0x414] sm:$0xf0] }
 0x212   :  { %v2230_v24 = vpop.f32.mrf.mxu1 }
 0x213   :  { %v2149_v62 = vadd.f32 %v2148_v23, %v2070_v54  ;;  %2032 = vmatmul.bf16.gmra.mxu2 %v7493_v43  ;;  %2190 = vmatmul.bf16.gmra.mxu0 %v7495_v14  ;;  %v5153_v23 = vld [vmem:[%s9975_s1 + $0x3e0] sm:$0xf]  ;;  %v7547_v14 = vor.u32 %v5412_v42, %v5163_v51 }
 0x214   :  { %2111 = vmatmul.bf16.gmra.mxu3 %v7497_v59 }
 0x215   :  { %2269 = vmatmul.bf16.gmra.mxu1 %v7499_v40  ;;  %v7505_v35 = vadd.f32 %v2227_v27, %v2149_v62  ;;  %v16_v62 = vld [vmem:[%s9974_s0 + $0x8] sm:$0xff]  ;;  %v5411_v27 = vld [vmem:[%s9975_s1 + $0x3e4] sm:$0xf]  ;;  %10305 = vst [vmem:[#allocation121_spill] sm:$0xff] %v7547_v14 }
 0x216   :  { %v1993_v57 = vpop.f32.mrf.mxu2 }
 0x217   :  { %v1994_v3 = vadd.f32 %v1993_v57, %v6782_v17  ;;  %v2072_v33 = vpop.f32.mrf.mxu3  ;;  %v18_v17 = vld [vmem:[%s9974_s0 + $0x18] sm:$0xff] }
 0x218   :  { %v2153_v21 = vpop.f32.mrf.mxu0  ;;  %v352_v46 = vpack.c.bf16 %v18_v17, %v16_v62  ;;  %v7545_v17 = vor.u32 %v5411_v27, %v5155_v19 }
 0x219   :  { %v2073_v44 = vadd.f32 %v2072_v33, %v1994_v3  ;;  %v7541_v33 = vor.u32 %v5416_v63, %v5153_v23 }
 0x21a   :  { %v2232_v38 = vpop.f32.mrf.mxu1  ;;  %2376 = vmatpush.bf16.msrb.mxu3 %v352_v46  ;;  %10304 = vst [vmem:[#allocation120_spill] sm:$0xff] %v7545_v17 }
 0x21b   :  { %v2152_v7 = vadd.f32 %v2151_v20, %v2073_v44  ;;  %10302 = vst [vmem:[#allocation118_spill] sm:$0xff] %v7541_v33  ;;  %v7543_v44 = vor.u32 %v5417_v34, %v5161_v39 }
 0x21d   :  { %v7538_v20 = vadd.f32 %v2230_v24, %v2152_v7  ;;  %10303 = vst [vmem:[#allocation119_spill] sm:$0xff] %v7543_v44  ;;  %v50_v24 = vld [vmem:[%s9974_s0 + $0x118] sm:$0xff] }
 0x21e   :  { %v1995_v54 = vpop.f32.mrf.mxu2 }
 0x21f   :  { %v1996_v57 = vadd.f32 %v1995_v54, %v6809_v52  ;;  %v2074_v3 = vpop.f32.mrf.mxu3  ;;  %v48_v52 = vld [vmem:[%s9974_s0 + $0x108] sm:$0xff]  ;;  %v5197_v54 = vld [vmem:[%s9975_s1 + $0x438] sm:$0xf] }
 0x220   :  { %v2156_v62 = vpop.f32.mrf.mxu0  ;;  %v368_v23 = vpack.c.bf16 %v50_v24, %v48_v52  ;;  %v5207_v52 = vld [vmem:[%s9975_s1 + $0x46c] sm:$0xf0] }
 0x221   :  { %v2075_v40 = vadd.f32 %v2074_v3, %v1996_v57  ;;  %v5427_v57 = vld [vmem:[%s9975_s1 + $0x460] sm:$0xf0]  ;;  %v5199_v3 = vld [vmem:[%s9975_s1 + $0x464] sm:$0xf0] }
 0x222   :  { %v2235_v59 = vpop.f32.mrf.mxu1  ;;  %2455 = vmatpush.bf16.msrb.mxu0 %v368_v23 }
 0x223   :  { %v2154_v26 = vadd.f32 %v2153_v21, %v2075_v40  ;;  %2037 = vmatmul.bf16.gmra.mxu2 %v7541_v33  ;;  %2195 = vmatmul.bf16.gmra.mxu0 %v7543_v44  ;;  %v80_v40 = vld [vmem:[%s9974_s0 + $0x208] sm:$0xff]  ;;  %v82_v21 = vld [vmem:[%s9974_s0 + $0x218] sm:$0xff] }
 0x224   :  { %2116 = vmatmul.bf16.gmra.mxu3 %v7545_v17  ;;  %v384_v7 = vpack.c.bf16 %v82_v21, %v80_v40 }
 0x225   :  { %2274 = vmatmul.bf16.gmra.mxu1 %v7547_v14  ;;  %v7565_v63 = vadd.f32 %v2232_v38, %v2154_v26  ;;  %v5422_v26 = vld [vmem:[%s9975_s1 + $0x43c] sm:$0xf]  ;;  %v5428_v38 = vld [vmem:[%s9975_s1 + $0x468] sm:$0xf0] }
 0x226   :  { %v1998_v27 = vpop.f32.mrf.mxu2  ;;  %2534 = vmatpush.bf16.msrb.mxu1 %v384_v7  ;;  %v7595_v7 = vor.u32 %v5427_v57, %v5197_v54 }
 0x227   :  { %v1999_v39 = vadd.f32 %v1998_v27, %v6836_v1  ;;  %v2077_v34 = vpop.f32.mrf.mxu3  ;;  %v5205_v1 = vld [vmem:[%s9975_s1 + $0x440] sm:$0xf] }
 0x228   :  { %v2158_v46 = vpop.f32.mrf.mxu0  ;;  %10306 = vst [vmem:[#allocation122_spill] sm:$0xff] %v7595_v7  ;;  %v7597_v27 = vor.u32 %v5428_v38, %v5205_v1 }
 0x229   :  { %v2078_v19 = vadd.f32 %v2077_v34, %v1999_v39  ;;  %v7599_v34 = vor.u32 %v5422_v26, %v5199_v3 }
 0x22a   :  { %v2237_v42 = vpop.f32.mrf.mxu1  ;;  %10307 = vst [vmem:[#allocation123_spill] sm:$0xff] %v7597_v27 }
 0x22b   :  { %v2157_v51 = vadd.f32 %v2156_v62, %v2078_v19  ;;  %v5423_v62 = vld [vmem:[%s9975_s1 + $0x444] sm:$0xf]  ;;  %10308 = vst [vmem:[#allocation124_spill] sm:$0xff] %v7599_v34 }
 0x22c   :  { %v7601_v19 = vor.u32 %v5423_v62, %v5207_v52 }
 0x22d   :  { %v7592_v24 = vadd.f32 %v2235_v59, %v2157_v51  ;;  %v142_v59 = vld [vmem:[%s9974_s0 + $0x3f8] sm:$0xff] }
 0x22e   :  { %v2000_v23 = vpop.f32.mrf.mxu2  ;;  %10309 = vst [vmem:[#allocation125_spill] sm:$0xff] %v7601_v19  ;;  %v174_v51 = vld [vmem:[%s9974_s0 + $0x4f8] sm:$0xff] }
 0x22f   :  { %v2001_v40 = vadd.f32 %v2000_v23, %v6863_v55  ;;  %v2079_v21 = vpop.f32.mrf.mxu3  ;;  %v140_v55 = vld [vmem:[%s9974_s0 + $0x3e8] sm:$0xff]  ;;  %v5241_v23 = vld [vmem:[%s9975_s1 + $0x490] sm:$0xf] }
 0x230   :  { %v2161_v39 = vpop.f32.mrf.mxu0 }
 0x231   :  { %v2080_v44 = vadd.f32 %v2079_v21, %v2001_v40  ;;  %v5433_v21 = vld [vmem:[%s9975_s1 + $0x494] sm:$0xf] }
 0x232   :  { %v2240_v14 = vpop.f32.mrf.mxu1 }
 0x233   :  { %v2159_v17 = vadd.f32 %v2158_v46, %v2080_v44  ;;  %2042 = vmatmul.bf16.gmra.mxu2 %v7595_v7  ;;  %2200 = vmatmul.bf16.gmra.mxu0 %v7597_v27  ;;  %v172_v44 = vld [vmem:[%s9974_s0 + $0x4e8] sm:$0xff]  ;;  %v414_v46 = vpack.c.bf16 %v142_v59, %v140_v55  ;;  %v5439_v55 = vld [vmem:[%s9975_s1 + $0x4c0] sm:$0xf0] }
 0x234   :  { %2121 = vmatmul.bf16.gmra.mxu3 %v7599_v34  ;;  %v430_v26 = vpack.c.bf16 %v174_v51, %v172_v44  ;;  %v5243_v44 = vld [vmem:[%s9975_s1 + $0x4bc] sm:$0xf0]  ;;  %v5251_v51 = vld [vmem:[%s9975_s1 + $0x4c4] sm:$0xf0] }
 0x235   :  { %2279 = vmatmul.bf16.gmra.mxu1 %v7601_v19  ;;  %v7619_v54 = vadd.f32 %v2237_v42, %v2159_v17  ;;  %2606 = vmatpush.bf16.msra.mxu2 %v414_v46  ;;  %v5438_v17 = vld [vmem:[%s9975_s1 + $0x4b8] sm:$0xf0]  ;;  %v204_v42 = vld [vmem:[%s9974_s0 + $0x5e8] sm:$0xff]  ;;  %v7659_v27 = vor.u32 %v5433_v21, %v5243_v44 }
 0x236   :  { %v2003_v57 = vpop.f32.mrf.mxu2  ;;  %2685 = vmatpush.bf16.msra.mxu3 %v430_v26  ;;  %v5434_v46 = vld [vmem:[%s9975_s1 + $0x49c] sm:$0xf]  ;;  %v4685_v44 = vld [vmem:[%s9975_s1 + $0x28] sm:$0xf] }
 0x237   :  { %v2004_v1 = vadd.f32 %v2003_v57, %v6896_v53  ;;  %v2082_v38 = vpop.f32.mrf.mxu3  ;;  %v206_v53 = vld [vmem:[%s9974_s0 + $0x5f8] sm:$0xff]  ;;  %10311 = vst [vmem:[#allocation127_spill] sm:$0xff] %v7659_v27  ;;  %v7661_v19 = vor.u32 %v5434_v46, %v5251_v51  ;;  %v5297_v46 = vld [vmem:[%s9975_s1 + $0x50] sm:$0xf0] }
 0x238   :  { %v2163_v3 = vpop.f32.mrf.mxu0  ;;  %v446_v59 = vpack.c.bf16 %v206_v53, %v204_v42 }
 0x239   :  { %v2083_v62 = vadd.f32 %v2082_v38, %v2004_v1  ;;  %10312 = vst [vmem:[#allocation128_spill] sm:$0xff] %v7661_v19 }
 0x23a   :  { %v2242_v52 = vpop.f32.mrf.mxu1  ;;  %2764 = vmatpush.bf16.msra.mxu0 %v446_v59 }
 0x23b   :  { %v2162_v40 = vadd.f32 %v2161_v39, %v2083_v62  ;;  %v5249_v39 = vld [vmem:[%s9975_s1 + $0x498] sm:$0xf]  ;;  %v7655_v62 = vor.u32 %v5438_v17, %v5241_v23 }
 0x23c   :  { %v7657_v42 = vor.u32 %v5439_v55, %v5249_v39 }
 0x23d   :  { %v7652_v57 = vadd.f32 %v2240_v14, %v2162_v40  ;;  %v238_v14 = vld [vmem:[%s9974_s0 + $0x6f8] sm:$0xff] }
 0x23e   :  { %v2005_v26 = vpop.f32.mrf.mxu2  ;;  %10310 = vst [vmem:[#allocation126_spill] sm:$0xff] %v7657_v42 }
 0x23f   :  { %v2006_v1 = vadd.f32 %v2005_v26, %v6917_v12  ;;  %v2084_v38 = vpop.f32.mrf.mxu3  ;;  %v236_v12 = vld [vmem:[%s9974_s0 + $0x6e8] sm:$0xff] }
 0x240   :  { %v2166_v53 = vpop.f32.mrf.mxu0  ;;  %v462_v23 = vpack.c.bf16 %v238_v14, %v236_v12  ;;  %v168_v14 = vld [vmem:[%s9974_s0 + $0x4c8] sm:$0xff] }
 0x241   :  { %v2085_v34 = vadd.f32 %v2084_v38, %v2006_v1 }
 0x242   :  { %v2245_v7 = vpop.f32.mrf.mxu1  ;;  %2843 = vmatpush.bf16.msra.mxu1 %v462_v23 }
 0x243   :  { %v2164_v33 = vadd.f32 %v2163_v3, %v2085_v34  ;;  %2047 = vmatmul.bf16.gmra.mxu2 %v7655_v62  ;;  %2205 = vmatmul.bf16.gmra.mxu0 %v7657_v42 }
 0x244   :  { %2126 = vmatmul.bf16.gmra.mxu3 %v7659_v27  ;;  %v10346_v27 = vld [vmem:[#allocation15_spill] sm:$0xff] }
 0x245   :  { %2284 = vmatmul.bf16.gmra.mxu1 %v7661_v19  ;;  %v7673_v40 = vadd.f32 %v2242_v52, %v2164_v33  ;;  %v5213_v19 = vld [vmem:[%s9975_s1 + $0x448] sm:$0xf] }
 0x246   :  { %v2008_v34 = vpop.f32.mrf.mxu2 }
 0x247   :  { %v2009_v3 = vadd.f32 %v2008_v34, %v6944_v56  ;;  %v2087_v17 = vpop.f32.mrf.mxu3  ;;  %v7685_v56 = vor.u32 %v5297_v46, %v4685_v44 }
 0x248   :  { %v2168_v21 = vpop.f32.mrf.mxu0 }
 0x249   :  { %v2088_v39 = vadd.f32 %v2087_v17, %v2009_v3 }
 0x24a   :  { %v2247_v55 = vpop.f32.mrf.mxu1 }
 0x24b   :  { %v2167_v59 = vadd.f32 %v2166_v53, %v2088_v39 }
 0x24d   :  { %v7682_v51 = vadd.f32 %v2245_v7, %v2167_v59  ;;  %v136_v7 = vld [vmem:[%s9974_s0 + $0x3c8] sm:$0xff] }
 0x24e   :  { %v2010_v33 = vpop.f32.mrf.mxu2 }
 0x24f   :  { %v2011_v52 = vadd.f32 %v2010_v33, %v6965_v8  ;;  %v2089_v26 = vpop.f32.mrf.mxu3  ;;  %v138_v8 = vld [vmem:[%s9974_s0 + $0x3d8] sm:$0xff] }
 0x250   :  { %v2171_v1 = vpop.f32.mrf.mxu0  ;;  %v412_v23 = vpack.c.bf16 %v138_v8, %v136_v7  ;;  %v202_v33 = vld [vmem:[%s9974_s0 + $0x5d8] sm:$0xff] }
 0x251   :  { %v2090_v38 = vadd.f32 %v2089_v26, %v2011_v52  ;;  %v5308_v52 = vld [vmem:[%s9975_s1 + $0xa8] sm:$0xf0] }
 0x252   :  { %v2250_v53 = vpop.f32.mrf.mxu1  ;;  %2607 = vmatpush.bf16.msra.mxu2 %v412_v23 }
 0x253   :  { %v2169_v12 = vadd.f32 %v2168_v21, %v2090_v38  ;;  %5259 = vmatmul.msk.bf16.vlgmr.msrb.gmra.mxu2 %vm1457_vm0, %v7685_v56  ;;  %2456 = vmatmul.bf16.vlgmr.msrb.gmra.mxu0 %v5735_v9  ;;  %v170_v9 = vld [vmem:[%s9974_s0 + $0x4d8] sm:$0xff] }
 0x254   :  { %2377 = vmatmul.bf16.vlgmr.msrb.gmra.mxu3 %v5722_v4  ;;  %v428_v34 = vpack.c.bf16 %v170_v9, %v168_v14 }
 0x255   :  { %2535 = vmatmul.bf16.vlgmr.msrb.gmra.mxu1 %v6161_v28  ;;  %v7704_v3 = vadd.f32 %v2247_v55, %v2169_v12  ;;  %v200_v28 = vld [vmem:[%s9974_s0 + $0x5c8] sm:$0xff] }
 0x256   :  { %v2013_v17 = vpop.f32.mrf.mxu2  ;;  %2686 = vmatpush.bf16.msra.mxu3 %v428_v34  ;;  %v232_v55 = vld [vmem:[%s9974_s0 + $0x6c8] sm:$0xff]  ;;  %v444_v26 = vpack.c.bf16 %v202_v33, %v200_v28 }
 0x257   :  { %v2014_v21 = vadd.f32 %v2013_v17, %v7004_v10  ;;  %v2092_v39 = vpop.f32.mrf.mxu3  ;;  %v4729_v10 = vld [vmem:[%s9975_s1 + $0x80] sm:$0xf] }
 0x258   :  { %v2173_v59 = vpop.f32.mrf.mxu0  ;;  %2765 = vmatpush.bf16.msra.mxu0 %v444_v26  ;;  %v7728_v23 = vor.u32 %v5308_v52, %v4729_v10  ;;  %v166_v10 = vld [vmem:[%s9974_s0 + $0x4b8] sm:$0xff] }
 0x259   :  { %v2093_v44 = vadd.f32 %v2092_v39, %v2014_v21 }
 0x25a   :  { %v2252_v46 = vpop.f32.mrf.mxu1 }
 0x25b   :  { %v2172_v4 = vadd.f32 %v2171_v1, %v2093_v44  ;;  %v234_v1 = vld [vmem:[%s9974_s0 + $0x6d8] sm:$0xff] }
 0x25c   :  { %v460_v38 = vpack.c.bf16 %v234_v1, %v232_v55 }
 0x25d   :  { %v7725_v12 = vadd.f32 %v2250_v53, %v2172_v4 }
 0x25e   :  { %v2015_v7 = vpop.f32.mrf.mxu2  ;;  %2844 = vmatpush.bf16.msra.mxu1 %v460_v38 }
 0x25f   :  { %v2016_v8 = vadd.f32 %v2015_v7, %v7019_v58  ;;  %v2094_v14 = vpop.f32.mrf.mxu3 }
 0x260   :  { %v2176_v9 = vpop.f32.mrf.mxu0 }
 0x261   :  { %v2095_v34 = vadd.f32 %v2094_v14, %v2016_v8 }
 0x262   :  { %v2255_v17 = vpop.f32.mrf.mxu1 }
 0x263   :  { %v2174_v21 = vadd.f32 %v2173_v59, %v2095_v34  ;;  %5260 = vmatmul.msk.bf16.gmra.mxu2 %vm1457_vm0, %v7728_v23  ;;  %2461 = vmatmul.bf16.gmra.mxu0 %v5819_v49  ;;  %v132_v59 = vld [vmem:[%s9974_s0 + $0x3a8] sm:$0xff] }
 0x264   :  { %2382 = vmatmul.bf16.gmra.mxu3 %v5815_v47  ;;  %v134_v47 = vld [vmem:[%s9974_s0 + $0x3b8] sm:$0xff]  ;;  %v164_v49 = vld [vmem:[%s9974_s0 + $0x4a8] sm:$0xff] }
 0x265   :  { %2540 = vmatmul.bf16.gmra.mxu1 %v6221_v0  ;;  %v7735_v53 = vadd.f32 %v2252_v46, %v2174_v21  ;;  %v4773_v0 = vld [vmem:[%s9975_s1 + $0xd8] sm:$0xf]  ;;  %v410_v46 = vpack.c.bf16 %v134_v47, %v132_v59  ;;  %v426_v52 = vpack.c.bf16 %v166_v10, %v164_v49  ;;  %v228_v59 = vld [vmem:[%s9974_s0 + $0x6a8] sm:$0xff] }
 0x266   :  { %v2018_v58 = vpop.f32.mrf.mxu2  ;;  %v230_v47 = vld [vmem:[%s9974_s0 + $0x6b8] sm:$0xff] }
 0x267   :  { %v2019_v39 = vadd.f32 %v2018_v58, %v7058_v18  ;;  %v2097_v44 = vpop.f32.mrf.mxu3  ;;  %v5319_v18 = vld [vmem:[%s9975_s1 + $0x100] sm:$0xf0]  ;;  %2608 = vmatpush.bf16.msra.mxu2 %v410_v46  ;;  %2687 = vmatpush.bf16.msra.mxu3 %v426_v52  ;;  %v458_v49 = vpack.c.bf16 %v230_v47, %v228_v59  ;;  %v162_v59 = vld [vmem:[%s9974_s0 + $0x498] sm:$0xff] }
 0x268   :  { %v2178_v4 = vpop.f32.mrf.mxu0  ;;  %v7759_v8 = vor.u32 %v5319_v18, %v4773_v0 }
 0x269   :  { %v2098_v28 = vadd.f32 %v2097_v44, %v2019_v39  ;;  %2845 = vmatpush.bf16.msra.mxu1 %v458_v49 }
 0x26a   :  { %v2257_v33 = vpop.f32.mrf.mxu1 }
 0x26b   :  { %v2177_v55 = vadd.f32 %v2176_v9, %v2098_v28 }
 0x26d   :  { %v7756_v26 = vadd.f32 %v2255_v17, %v2177_v55  ;;  %v198_v17 = vld [vmem:[%s9974_s0 + $0x5b8] sm:$0xff] }
 0x26e   :  { %v2020_v1 = vpop.f32.mrf.mxu2 }
 0x26f   :  { %v2021_v38 = vadd.f32 %v2020_v1, %v7079_v36  ;;  %v2099_v7 = vpop.f32.mrf.mxu3  ;;  %v196_v36 = vld [vmem:[%s9974_s0 + $0x5a8] sm:$0xff] }
 0x270   :  { %v2181_v14 = vpop.f32.mrf.mxu0  ;;  %v442_v58 = vpack.c.bf16 %v198_v17, %v196_v36 }
 0x271   :  { %v2100_v9 = vadd.f32 %v2099_v7, %v2021_v38 }
 0x272   :  { %v2260_v34 = vpop.f32.mrf.mxu1  ;;  %2766 = vmatpush.bf16.msra.mxu0 %v442_v58 }
 0x273   :  { %v2179_v21 = vadd.f32 %v2178_v4, %v2100_v9  ;;  %5261 = vmatmul.msk.bf16.gmra.mxu2 %vm1457_vm0, %v7759_v8  ;;  %2466 = vmatmul.bf16.gmra.mxu0 %v5879_v13  ;;  %v10313_v9 = vld [vmem:[#allocation9_spill] sm:$0xff] }
 0x274   :  { %2387 = vmatmul.bf16.gmra.mxu3 %v5875_v11 }
 0x275   :  { %2545 = vmatmul.bf16.gmra.mxu1 %v6275_v61  ;;  %v7772_v39 = vadd.f32 %v2257_v33, %v2179_v21  ;;  %v4817_v33 = vld [vmem:[%s9975_s1 + $0x130] sm:$0xf] }
 0x276   :  { %v2023_v44 = vpop.f32.mrf.mxu2 }
 0x277   :  { %v2024_v4 = vadd.f32 %v2023_v44, %v7112_v2  ;;  %v2102_v28 = vpop.f32.mrf.mxu3  ;;  %v5330_v2 = vld [vmem:[%s9975_s1 + $0x158] sm:$0xf0] }
 0x278   :  { %v2183_v13 = vpop.f32.mrf.mxu0  ;;  %v7790_v52 = vor.u32 %v5330_v2, %v4817_v33 }
 0x279   :  { %v2103_v11 = vadd.f32 %v2102_v28, %v2024_v4 }
 0x27a   :  { %v2262_v55 = vpop.f32.mrf.mxu1 }
 0x27b   :  { %v2182_v61 = vadd.f32 %v2181_v14, %v2103_v11  ;;  %v160_v11 = vld [vmem:[%s9974_s0 + $0x488] sm:$0xff] }
 0x27c   :  { %v424_v47 = vpack.c.bf16 %v162_v59, %v160_v11 }
 0x27d   :  { %v7787_v0 = vadd.f32 %v2260_v34, %v2182_v61  ;;  %v10314_v34 = vld [vmem:[#allocation32_spill] sm:$0xff] }
 0x27e   :  { %v2025_v18 = vpop.f32.mrf.mxu2  ;;  %2688 = vmatpush.bf16.msra.mxu3 %v424_v47  ;;  %v4905_v47 = vld [vmem:[%s9975_s1 + $0x1e0] sm:$0xf] }
 0x27f   :  { %v2026_v46 = vadd.f32 %v2025_v18, %v7127_v50  ;;  %v2104_v10 = vpop.f32.mrf.mxu3 }
 0x280   :  { %v2186_v1 = vpop.f32.mrf.mxu0 }
 0x281   :  { %v2105_v38 = vadd.f32 %v2104_v10, %v2026_v46 }
 0x282   :  { %v2265_v7 = vpop.f32.mrf.mxu1 }
 0x283   :  { %v2184_v14 = vadd.f32 %v2183_v13, %v2105_v38  ;;  %5262 = vmatmul.msk.bf16.gmra.mxu2 %vm1457_vm0, %v7790_v52  ;;  %2471 = vmatmul.bf16.gmra.mxu0 %v5939_v37  ;;  %v128_v13 = vld [vmem:[%s9974_s0 + $0x388] sm:$0xff]  ;;  %v130_v37 = vld [vmem:[%s9974_s0 + $0x398] sm:$0xff] }
 0x284   :  { %2392 = vmatmul.bf16.gmra.mxu3 %v10313_v9  ;;  %v408_v61 = vpack.c.bf16 %v130_v37, %v128_v13  ;;  %v10315_v9 = vld [vmem:[#allocation14_spill] sm:$0xff] }
 0x285   :  { %2550 = vmatmul.bf16.gmra.mxu1 %v10314_v34  ;;  %v7797_v21 = vadd.f32 %v2262_v55, %v2184_v14  ;;  %v5341_v55 = vld [vmem:[%s9975_s1 + $0x1b0] sm:$0xf0] }
 0x286   :  { %v2028_v36 = vpop.f32.mrf.mxu2  ;;  %2609 = vmatpush.bf16.msra.mxu2 %v408_v61  ;;  %v10316_v34 = vld [vmem:[#allocation12_spill] sm:$0xff] }
 0x287   :  { %v2029_v50 = vadd.f32 %v2028_v36, %v7160_v41  ;;  %v2107_v17 = vpop.f32.mrf.mxu3  ;;  %v4861_v41 = vld [vmem:[%s9975_s1 + $0x188] sm:$0xf]  ;;  %v10317_v36 = vld [vmem:[#allocation36_spill] sm:$0xff] }
 0x288   :  { %v2188_v58 = vpop.f32.mrf.mxu0  ;;  %v7821_v46 = vor.u32 %v5341_v55, %v4861_v41 }
 0x289   :  { %v2108_v44 = vadd.f32 %v2107_v17, %v2029_v50  ;;  %v224_v17 = vld [vmem:[%s9974_s0 + $0x688] sm:$0xff] }
 0x28a   :  { %v2267_v4 = vpop.f32.mrf.mxu1 }
 0x28b   :  { %v2187_v28 = vadd.f32 %v2186_v1, %v2108_v44 }
 0x28d   :  { %v7818_v33 = vadd.f32 %v2265_v7, %v2187_v28  ;;  %v192_v7 = vld [vmem:[%s9974_s0 + $0x588] sm:$0xff] }
 0x28e   :  { %v2030_v2 = vpop.f32.mrf.mxu2 }
 0x28f   :  { %v2031_v49 = vadd.f32 %v2030_v2, %v7187_v22  ;;  %v2109_v18 = vpop.f32.mrf.mxu3  ;;  %v194_v22 = vld [vmem:[%s9974_s0 + $0x598] sm:$0xff]  ;;  %v5352_v2 = vld [vmem:[%s9975_s1 + $0x208] sm:$0xf0] }
 0x290   :  { %v2191_v10 = vpop.f32.mrf.mxu0  ;;  %v440_v50 = vpack.c.bf16 %v194_v22, %v192_v7  ;;  %v10318_v22 = vld [vmem:[#allocation18_spill] sm:$0xff] }
 0x291   :  { %v2110_v1 = vadd.f32 %v2109_v18, %v2031_v49 }
 0x292   :  { %v2270_v38 = vpop.f32.mrf.mxu1  ;;  %2767 = vmatpush.bf16.msra.mxu0 %v440_v50  ;;  %v156_v50 = vld [vmem:[%s9974_s0 + $0x468] sm:$0xff] }
 0x293   :  { %v2189_v14 = vadd.f32 %v2188_v58, %v2110_v1  ;;  %5263 = vmatmul.msk.bf16.gmra.mxu2 %vm1457_vm0, %v7821_v46  ;;  %2476 = vmatmul.bf16.gmra.mxu0 %v10315_v9  ;;  %v226_v58 = vld [vmem:[%s9974_s0 + $0x698] sm:$0xff]  ;;  %v7852_v1 = vor.u32 %v5352_v2, %v4905_v47 }
 0x294   :  { %2397 = vmatmul.bf16.gmra.mxu3 %v10316_v34  ;;  %v456_v44 = vpack.c.bf16 %v226_v58, %v224_v17  ;;  %v10319_v34 = vld [vmem:[#allocation16_spill] sm:$0xff]  ;;  %v158_v58 = vld [vmem:[%s9974_s0 + $0x478] sm:$0xff] }
 0x295   :  { %2555 = vmatmul.bf16.gmra.mxu1 %v10317_v36  ;;  %v7840_v28 = vadd.f32 %v2267_v4, %v2189_v14  ;;  %v10320_v36 = vld [vmem:[#allocation40_spill] sm:$0xff] }
 0x296   :  { %v2033_v13 = vpop.f32.mrf.mxu2  ;;  %2846 = vmatpush.bf16.msra.mxu1 %v456_v44 }
 0x297   :  { %v2034_v37 = vadd.f32 %v2033_v13, %v7214_v25  ;;  %v2112_v11 = vpop.f32.mrf.mxu3 }
 0x298   :  { %v2193_v41 = vpop.f32.mrf.mxu0 }
 0x299   :  { %v2113_v55 = vadd.f32 %v2112_v11, %v2034_v37  ;;  %v422_v37 = vpack.c.bf16 %v158_v58, %v156_v50  ;;  %v10322_v58 = vld [vmem:[#allocation20_spill] sm:$0xff] }
 0x29a   :  { %v2272_v61 = vpop.f32.mrf.mxu1 }
 0x29b   :  { %v2192_v59 = vadd.f32 %v2191_v10, %v2113_v55  ;;  %2689 = vmatpush.bf16.msra.mxu3 %v422_v37 }
 0x29d   :  { %v7849_v4 = vadd.f32 %v2270_v38, %v2192_v59  ;;  %v126_v38 = vld [vmem:[%s9974_s0 + $0x378] sm:$0xff] }
 0x29e   :  { %v2035_v49 = vpop.f32.mrf.mxu2 }
 0x29f   :  { %v2036_v18 = vadd.f32 %v2035_v49, %v7241_v45  ;;  %v2114_v25 = vpop.f32.mrf.mxu3  ;;  %v124_v45 = vld [vmem:[%s9974_s0 + $0x368] sm:$0xff] }
 0x2a0   :  { %v2196_v14 = vpop.f32.mrf.mxu0  ;;  %v406_v17 = vpack.c.bf16 %v126_v38, %v124_v45  ;;  %v188_v49 = vld [vmem:[%s9974_s0 + $0x568] sm:$0xff] }
 0x2a1   :  { %v2115_v9 = vadd.f32 %v2114_v25, %v2036_v18  ;;  %v4949_v18 = vld [vmem:[%s9975_s1 + $0x238] sm:$0xf] }
 0x2a2   :  { %v2275_v7 = vpop.f32.mrf.mxu1  ;;  %2610 = vmatpush.bf16.msra.mxu2 %v406_v17  ;;  %v10321_v17 = vld [vmem:[#allocation22_spill] sm:$0xff] }
 0x2a3   :  { %v2194_v10 = vadd.f32 %v2193_v41, %v2115_v9  ;;  %5264 = vmatmul.msk.bf16.gmra.mxu2 %vm1457_vm0, %v7852_v1  ;;  %2481 = vmatmul.bf16.gmra.mxu0 %v10318_v22 }
 0x2a4   :  { %2402 = vmatmul.bf16.gmra.mxu3 %v10319_v34 }
 0x2a5   :  { %2560 = vmatmul.bf16.gmra.mxu1 %v10320_v36  ;;  %v7871_v44 = vadd.f32 %v2272_v61, %v2194_v10  ;;  %v190_v61 = vld [vmem:[%s9974_s0 + $0x578] sm:$0xff] }
 0x2a6   :  { %v2038_v13 = vpop.f32.mrf.mxu2  ;;  %v438_v25 = vpack.c.bf16 %v190_v61, %v188_v49 }
 0x2a7   :  { %v2039_v11 = vadd.f32 %v2038_v13, %v7274_v6  ;;  %v2117_v41 = vpop.f32.mrf.mxu3  ;;  %v5363_v6 = vld [vmem:[%s9975_s1 + $0x260] sm:$0xf0]  ;;  %v10323_v13 = vld [vmem:[#allocation44_spill] sm:$0xff] }
 0x2a8   :  { %v2198_v55 = vpop.f32.mrf.mxu0  ;;  %2768 = vmatpush.bf16.msra.mxu0 %v438_v25  ;;  %v7889_v34 = vor.u32 %v5363_v6, %v4949_v18  ;;  %v4993_v6 = vld [vmem:[%s9975_s1 + $0x290] sm:$0xf]  ;;  %v5374_v25 = vld [vmem:[%s9975_s1 + $0x2b8] sm:$0xf0] }
 0x2a9   :  { %v2118_v59 = vadd.f32 %v2117_v41, %v2039_v11 }
 0x2aa   :  { %v2277_v47 = vpop.f32.mrf.mxu1 }
 0x2ab   :  { %v2197_v2 = vadd.f32 %v2196_v14, %v2118_v59 }
 0x2ad   :  { %v7886_v9 = vadd.f32 %v2275_v7, %v2197_v2  ;;  %v220_v7 = vld [vmem:[%s9974_s0 + $0x668] sm:$0xff] }
 0x2ae   :  { %v2040_v14 = vpop.f32.mrf.mxu2 }
 0x2af   :  { %v2041_v10 = vadd.f32 %v2040_v14, %v7295_v60  ;;  %v2119_v22 = vpop.f32.mrf.mxu3  ;;  %v222_v60 = vld [vmem:[%s9974_s0 + $0x678] sm:$0xff] }
 0x2b0   :  { %v2201_v36 = vpop.f32.mrf.mxu0  ;;  %v454_v37 = vpack.c.bf16 %v222_v60, %v220_v7 }
 0x2b1   :  { %v2120_v45 = vadd.f32 %v2119_v22, %v2041_v10 }
 0x2b2   :  { %v2280_v38 = vpop.f32.mrf.mxu1  ;;  %2847 = vmatpush.bf16.msra.mxu1 %v454_v37  ;;  %v10324_v37 = vld [vmem:[#allocation3_spill] sm:$0xff] }
 0x2b3   :  { %v2199_v50 = vadd.f32 %v2198_v55, %v2120_v45  ;;  %5265 = vmatmul.msk.bf16.gmra.mxu2 %vm1457_vm0, %v7889_v34  ;;  %2486 = vmatmul.bf16.gmra.mxu0 %v10321_v17 }
 0x2b4   :  { %2407 = vmatmul.bf16.gmra.mxu3 %v10322_v58 }
 0x2b5   :  { %2565 = vmatmul.bf16.gmra.mxu1 %v10323_v13  ;;  %v7902_v11 = vadd.f32 %v2277_v47, %v2199_v50  ;;  %v122_v50 = vld [vmem:[%s9974_s0 + $0x358] sm:$0xff] }
 0x2b6   :  { %v2043_v41 = vpop.f32.mrf.mxu2 }
 0x2b7   :  { %v2044_v55 = vadd.f32 %v2043_v41, %v7322_v48  ;;  %v2122_v59 = vpop.f32.mrf.mxu3  ;;  %v7914_v48 = vor.u32 %v5374_v25, %v4993_v6  ;;  %v10325_v41 = vld [vmem:[#allocation2_spill] sm:$0xff] }
 0x2b8   :  { %v2203_v2 = vpop.f32.mrf.mxu0 }
 0x2b9   :  { %v2123_v49 = vadd.f32 %v2122_v59, %v2044_v55  ;;  %v10326_v55 = vld [vmem:[#allocation48_spill] sm:$0xff] }
 0x2ba   :  { %v2282_v61 = vpop.f32.mrf.mxu1 }
 0x2bb   :  { %v2202_v18 = vadd.f32 %v2201_v36, %v2123_v49  ;;  %v120_v36 = vld [vmem:[%s9974_s0 + $0x348] sm:$0xff] }
 0x2bc   :  { %v404_v60 = vpack.c.bf16 %v122_v50, %v120_v36 }
 0x2bd   :  { %v7911_v14 = vadd.f32 %v2280_v38, %v2202_v18  ;;  %v152_v38 = vld [vmem:[%s9974_s0 + $0x448] sm:$0xff] }
 0x2be   :  { %v2045_v47 = vpop.f32.mrf.mxu2  ;;  %2611 = vmatpush.bf16.msra.mxu2 %v404_v60  ;;  %v5385_v60 = vld [vmem:[%s9975_s1 + $0x310] sm:$0xf0] }
 0x2bf   :  { %v2046_v10 = vadd.f32 %v2045_v47, %v7343_v16  ;;  %v2124_v22 = vpop.f32.mrf.mxu3  ;;  %v154_v16 = vld [vmem:[%s9974_s0 + $0x458] sm:$0xff] }
 0x2c0   :  { %v2206_v45 = vpop.f32.mrf.mxu0  ;;  %v420_v58 = vpack.c.bf16 %v154_v16, %v152_v38  ;;  %v186_v47 = vld [vmem:[%s9974_s0 + $0x558] sm:$0xff] }
 0x2c1   :  { %v2125_v17 = vadd.f32 %v2124_v22, %v2046_v10  ;;  %v216_v10 = vld [vmem:[%s9974_s0 + $0x648] sm:$0xff] }
 0x2c2   :  { %v2285_v7 = vpop.f32.mrf.mxu1  ;;  %2690 = vmatpush.bf16.msra.mxu3 %v420_v58 }
 0x2c3   :  { %v2204_v13 = vadd.f32 %v2203_v2, %v2125_v17  ;;  %5266 = vmatmul.msk.bf16.gmra.mxu2 %vm1457_vm0, %v7914_v48  ;;  %2491 = vmatmul.bf16.gmra.mxu0 %v10324_v37  ;;  %v184_v2 = vld [vmem:[%s9974_s0 + $0x548] sm:$0xff] }
 0x2c4   :  { %2412 = vmatmul.bf16.gmra.mxu3 %v10325_v41  ;;  %v436_v36 = vpack.c.bf16 %v186_v47, %v184_v2  ;;  %v5037_v17 = vld [vmem:[%s9975_s1 + $0x2e8] sm:$0xf]  ;;  %v10328_v2 = vld [vmem:[#allocation4_spill] sm:$0xff] }
 0x2c5   :  { %2570 = vmatmul.bf16.gmra.mxu1 %v10326_v55  ;;  %v7933_v59 = vadd.f32 %v2282_v61, %v2204_v13  ;;  %v7957_v41 = vor.u32 %v5385_v60, %v5037_v17  ;;  %v10329_v47 = vld [vmem:[#allocation52_spill] sm:$0xff] }
 0x2c6   :  { %v2048_v49 = vpop.f32.mrf.mxu2  ;;  %2769 = vmatpush.bf16.msra.mxu0 %v436_v36 }
 0x2c7   :  { %v2049_v18 = vadd.f32 %v2048_v49, %v7382_v31  ;;  %v2127_v6 = vpop.f32.mrf.mxu3  ;;  %v218_v31 = vld [vmem:[%s9974_s0 + $0x658] sm:$0xff] }
 0x2c8   :  { %v2208_v25 = vpop.f32.mrf.mxu0  ;;  %v452_v50 = vpack.c.bf16 %v218_v31, %v216_v10 }
 0x2c9   :  { %v2128_v22 = vadd.f32 %v2127_v6, %v2049_v18  ;;  %v10327_v6 = vld [vmem:[#allocation5_spill] sm:$0xff] }
 0x2ca   :  { %v2287_v61 = vpop.f32.mrf.mxu1  ;;  %2848 = vmatpush.bf16.msra.mxu1 %v452_v50  ;;  %v118_v50 = vld [vmem:[%s9974_s0 + $0x338] sm:$0xff] }
 0x2cb   :  { %v2207_v38 = vadd.f32 %v2206_v45, %v2128_v22 }
 0x2cd   :  { %v7954_v16 = vadd.f32 %v2285_v7, %v2207_v38 }
 0x2ce   :  { %v2050_v58 = vpop.f32.mrf.mxu2 }
 0x2cf   :  { %v2051_v13 = vadd.f32 %v2050_v58, %v7397_v30  ;;  %v2129_v37 = vpop.f32.mrf.mxu3 }
 0x2d0   :  { %v2457_v55 = vpop.f32.mrf.mxu0 }
 0x2d1   :  { %v2130_v45 = vadd.f32 %v2129_v37, %v2051_v13  ;;  %v5081_v13 = vld [vmem:[%s9975_s1 + $0x340] sm:$0xf]  ;;  %v5396_v37 = vld [vmem:[%s9975_s1 + $0x368] sm:$0xf0] }
 0x2d2   :  { %v2536_v49 = vpop.f32.mrf.mxu1 }
 0x2d3   :  { %v2209_v18 = vadd.f32 %v2208_v25, %v2130_v45  ;;  %5267 = vmatmul.msk.bf16.gmra.mxu2 %vm1457_vm0, %v7957_v41  ;;  %2496 = vmatmul.bf16.gmra.mxu0 %v10327_v6  ;;  %v116_v25 = vld [vmem:[%s9974_s0 + $0x328] sm:$0xff]  ;;  %v7992_v6 = vor.u32 %v5396_v37, %v5081_v13  ;;  %v214_v37 = vld [vmem:[%s9974_s0 + $0x638] sm:$0xff] }
 0x2d4   :  { %2417 = vmatmul.bf16.gmra.mxu3 %v10328_v2  ;;  %v402_v17 = vpack.c.bf16 %v118_v50, %v116_v25  ;;  %v10332_v25 = vld [vmem:[#allocation56_spill] sm:$0xff]  ;;  %v212_v13 = vld [vmem:[%s9974_s0 + $0x628] sm:$0xff] }
 0x2d5   :  { %2575 = vmatmul.bf16.gmra.mxu1 %v10329_v47  ;;  %v7964_v7 = vadd.f32 %v2287_v61, %v2209_v18  ;;  %v148_v61 = vld [vmem:[%s9974_s0 + $0x428] sm:$0xff] }
 0x2d6   :  { %v2299_v10 = vpop.f32.mrf.mxu2  ;;  %2612 = vmatpush.bf16.msra.mxu2 %v402_v17 }
 0x2d7   :  { %v7967_v30 = vadd.f32 %v2299_v10, %v7436_v15  ;;  %v2378_v22 = vpop.f32.mrf.mxu3  ;;  %v150_v15 = vld [vmem:[%s9974_s0 + $0x438] sm:$0xff] }
 0x2d8   :  { %v2458_v36 = vadd.f32 %v2457_v55, %v2378_v22  ;;  %v2459_v31 = vpop.f32.mrf.mxu0  ;;  %v418_v60 = vpack.c.bf16 %v150_v15, %v148_v61  ;;  %v10330_v22 = vld [vmem:[#allocation7_spill] sm:$0xff] }
 0x2da   :  { %v2538_v38 = vpop.f32.mrf.mxu1  ;;  %v7981_v58 = vadd.f32 %v2536_v49, %v2458_v36  ;;  %2691 = vmatpush.bf16.msra.mxu3 %v418_v60  ;;  %v10331_v36 = vld [vmem:[#allocation6_spill] sm:$0xff] }
 0x2de   :  { %v2301_v55 = vpop.f32.mrf.mxu2 }
 0x2df   :  { %v7990_v45 = vadd.f32 %v2301_v55, %v7457_v32  ;;  %v2380_v18 = vpop.f32.mrf.mxu3  ;;  %v180_v32 = vld [vmem:[%s9974_s0 + $0x528] sm:$0xff] }
 0x2e0   :  { %v2460_v2 = vadd.f32 %v2459_v31, %v2380_v18  ;;  %v2462_v49 = vpop.f32.mrf.mxu0  ;;  %v182_v31 = vld [vmem:[%s9974_s0 + $0x538] sm:$0xff]  ;;  %v450_v18 = vpack.c.bf16 %v214_v37, %v212_v13  ;;  %v10335_v13 = vld [vmem:[#allocation60_spill] sm:$0xff] }
 0x2e1   :  { %v434_v50 = vpack.c.bf16 %v182_v31, %v180_v32 }
 0x2e2   :  { %v2541_v47 = vpop.f32.mrf.mxu1  ;;  %v7994_v10 = vadd.f32 %v2538_v38, %v2460_v2  ;;  %2849 = vmatpush.bf16.msra.mxu1 %v450_v18 }
 0x2e3   :  { %5268 = vmatmul.msk.bf16.gmra.mxu2 %vm1457_vm0, %v7992_v6  ;;  %2501 = vmatmul.bf16.gmra.mxu0 %v10330_v22 }
 0x2e4   :  { %2422 = vmatmul.bf16.gmra.mxu3 %v10331_v36  ;;  %2770 = vmatpush.bf16.msra.mxu0 %v434_v50 }
 0x2e5   :  { %2580 = vmatmul.bf16.gmra.mxu1 %v10332_v25 }
 0x2e6   :  { %v2304_v38 = vpop.f32.mrf.mxu2 }
 0x2e7   :  { %v8008_v17 = vadd.f32 %v2304_v38, %v7490_v5  ;;  %v2383_v61 = vpop.f32.mrf.mxu3  ;;  %v5125_v5 = vld [vmem:[%s9975_s1 + $0x398] sm:$0xf] }
 0x2e8   :  { %v2463_v15 = vadd.f32 %v2462_v49, %v2383_v61  ;;  %v2464_v60 = vpop.f32.mrf.mxu0  ;;  %v5407_v49 = vld [vmem:[%s9975_s1 + $0x3c0] sm:$0xf0] }
 0x2e9   :  { %v8027_v32 = vor.u32 %v5407_v49, %v5125_v5  ;;  %v10333_v61 = vld [vmem:[#allocation10_spill] sm:$0xff]  ;;  %v114_v49 = vld [vmem:[%s9974_s0 + $0x318] sm:$0xff] }
 0x2ea   :  { %v2543_v55 = vpop.f32.mrf.mxu1  ;;  %v8016_v2 = vadd.f32 %v2541_v47, %v2463_v15  ;;  %v10334_v15 = vld [vmem:[#allocation8_spill] sm:$0xff] }
 0x2ee   :  { %v2306_v22 = vpop.f32.mrf.mxu2 }
 0x2ef   :  { %v8025_v36 = vadd.f32 %v2306_v22, %v7505_v35  ;;  %v2385_v25 = vpop.f32.mrf.mxu3  ;;  %v144_v22 = vld [vmem:[%s9974_s0 + $0x408] sm:$0xff] }
 0x2f0   :  { %v2465_v31 = vadd.f32 %v2464_v60, %v2385_v25  ;;  %v2467_v50 = vpop.f32.mrf.mxu0 }
 0x2f2   :  { %v2546_v47 = vpop.f32.mrf.mxu1  ;;  %v8029_v38 = vadd.f32 %v2543_v55, %v2465_v31  ;;  %v112_v55 = vld [vmem:[%s9974_s0 + $0x308] sm:$0xff] }
 0x2f3   :  { %5269 = vmatmul.msk.bf16.gmra.mxu2 %vm1457_vm0, %v8027_v32  ;;  %2506 = vmatmul.bf16.gmra.mxu0 %v10333_v61  ;;  %v400_v31 = vpack.c.bf16 %v114_v49, %v112_v55 }
 0x2f4   :  { %2427 = vmatmul.bf16.gmra.mxu3 %v10334_v15  ;;  %v5169_v15 = vld [vmem:[%s9975_s1 + $0x3f0] sm:$0xf] }
 0x2f5   :  { %2585 = vmatmul.bf16.gmra.mxu1 %v10335_v13  ;;  %2613 = vmatpush.bf16.msra.mxu2 %v400_v31  ;;  %v5418_v13 = vld [vmem:[%s9975_s1 + $0x418] sm:$0xf0] }
 0x2f6   :  { %v2309_v37 = vpop.f32.mrf.mxu2  ;;  %v8062_v49 = vor.u32 %v5418_v13, %v5169_v15  ;;  %v178_v31 = vld [vmem:[%s9974_s0 + $0x518] sm:$0xff]  ;;  %v10340_v15 = vld [vmem:[#allocation11_spill] sm:$0xff] }
 0x2f7   :  { %v8037_v35 = vadd.f32 %v2309_v37, %v7538_v20  ;;  %v2388_v18 = vpop.f32.mrf.mxu3  ;;  %v146_v20 = vld [vmem:[%s9974_s0 + $0x418] sm:$0xff]  ;;  %v208_v13 = vld [vmem:[%s9974_s0 + $0x608] sm:$0xff] }
 0x2f8   :  { %v2468_v5 = vadd.f32 %v2467_v50, %v2388_v18  ;;  %v2469_v60 = vpop.f32.mrf.mxu0  ;;  %v416_v50 = vpack.c.bf16 %v146_v20, %v144_v22  ;;  %10338 = vst [vmem:[#allocation14_spill] sm:$0xff] %v8062_v49 }
 0x2f9   :  { %10336 = vst [vmem:[#allocation9_spill] sm:$0xff] %v8037_v35  ;;  %v10370_v35 = vld [vmem:[#allocation29_spill] sm:$0xff] }
 0x2fa   :  { %v2548_v25 = vpop.f32.mrf.mxu1  ;;  %v8051_v61 = vadd.f32 %v2546_v47, %v2468_v5  ;;  %2692 = vmatpush.bf16.msra.mxu3 %v416_v50  ;;  %v176_v5 = vld [vmem:[%s9974_s0 + $0x508] sm:$0xff] }
 0x2fb   :  { %v432_v42 = vpack.c.bf16 %v178_v31, %v176_v5 }
 0x2fd   :  { %2771 = vmatpush.bf16.msra.mxu0 %v432_v42  ;;  %v5429_v42 = vld [vmem:[%s9975_s1 + $0x470] sm:$0xf0] }
 0x2fe   :  { %v2311_v37 = vpop.f32.mrf.mxu2 }
 0x2ff   :  { %v8060_v18 = vadd.f32 %v2311_v37, %v7565_v63  ;;  %v2390_v55 = vpop.f32.mrf.mxu3  ;;  %v10339_v63 = vld [vmem:[#allocation13_spill] sm:$0xff] }
 0x300   :  { %v2470_v22 = vadd.f32 %v2469_v60, %v2390_v55  ;;  %v2472_v47 = vpop.f32.mrf.mxu0  ;;  %v10341_v60 = vld [vmem:[#allocation64_spill] sm:$0xff]  ;;  %v210_v37 = vld [vmem:[%s9974_s0 + $0x618] sm:$0xff] }
 0x301   :  { %10337 = vst [vmem:[#allocation32_spill] sm:$0xff] %v8060_v18 }
 0x302   :  { %v2551_v20 = vpop.f32.mrf.mxu1  ;;  %v8070_v50 = vadd.f32 %v2548_v25, %v2470_v22  ;;  %v448_v25 = vpack.c.bf16 %v210_v37, %v208_v13 }
 0x303   :  { %5270 = vmatmul.msk.bf16.gmra.mxu2 %vm1457_vm0, %v8062_v49  ;;  %2511 = vmatmul.bf16.gmra.mxu0 %v10339_v63 }
 0x304   :  { %2432 = vmatmul.bf16.gmra.mxu3 %v10340_v15  ;;  %2850 = vmatpush.bf16.msra.mxu1 %v448_v25 }
 0x305   :  { %2590 = vmatmul.bf16.gmra.mxu1 %v10341_v60 }
 0x306   :  { %v2314_v55 = vpop.f32.mrf.mxu2 }
 0x307   :  { %v8084_v22 = vadd.f32 %v2314_v55, %v7592_v24  ;;  %v2393_v5 = vpop.f32.mrf.mxu3  ;;  %v8097_v55 = vor.u32 %v5429_v42, %v5213_v19  ;;  %v270_v19 = vld [vmem:[%s9974_s0 + $0x7f8] sm:$0xff] }
 0x308   :  { %v2473_v31 = vadd.f32 %v2472_v47, %v2393_v5  ;;  %v2474_v63 = vpop.f32.mrf.mxu0  ;;  %v302_v42 = vld [vmem:[%s9974_s0 + $0x8f8] sm:$0xff] }
 0x309   :  { %10342 = vst [vmem:[#allocation12_spill] sm:$0xff] %v8084_v22  ;;  %v10347_v22 = vld [vmem:[#allocation68_spill] sm:$0xff] }
 0x30a   :  { %v2553_v15 = vpop.f32.mrf.mxu1  ;;  %v8086_v60 = vadd.f32 %v2551_v20, %v2473_v31  ;;  %10344 = vst [vmem:[#allocation18_spill] sm:$0xff] %v8097_v55  ;;  %v10345_v31 = vld [vmem:[#allocation17_spill] sm:$0xff] }
 0x30e   :  { %v2316_v13 = vpop.f32.mrf.mxu2 }
 0x30f   :  { %v8095_v37 = vadd.f32 %v2316_v13, %v7619_v54  ;;  %v2395_v24 = vpop.f32.mrf.mxu3  ;;  %v268_v54 = vld [vmem:[%s9974_s0 + $0x7e8] sm:$0xff] }
 0x310   :  { %v2475_v47 = vadd.f32 %v2474_v63, %v2395_v24  ;;  %v2477_v25 = vpop.f32.mrf.mxu0  ;;  %v300_v63 = vld [vmem:[%s9974_s0 + $0x8e8] sm:$0xff] }
 0x311   :  { %10343 = vst [vmem:[#allocation36_spill] sm:$0xff] %v8095_v37  ;;  %v494_v13 = vpack.c.bf16 %v302_v42, %v300_v63 }
 0x312   :  { %v2556_v5 = vpop.f32.mrf.mxu1  ;;  %v8099_v20 = vadd.f32 %v2553_v15, %v2475_v47  ;;  %v478_v15 = vpack.c.bf16 %v270_v19, %v268_v54  ;;  %v334_v54 = vld [vmem:[%s9974_s0 + $0x9f8] sm:$0xff] }
 0x313   :  { %5271 = vmatmul.msk.bf16.gmra.mxu2 %vm1457_vm0, %v8097_v55  ;;  %2516 = vmatmul.bf16.gmra.mxu0 %v10345_v31  ;;  %v332_v55 = vld [vmem:[%s9974_s0 + $0x9e8] sm:$0xff] }
 0x314   :  { %2437 = vmatmul.bf16.gmra.mxu3 %v10346_v27  ;;  %2922 = vmatpush.bf16.msrb.mxu2 %v478_v15  ;;  %v510_v19 = vpack.c.bf16 %v334_v54, %v332_v55 }
 0x315   :  { %2595 = vmatmul.bf16.gmra.mxu1 %v10347_v22  ;;  %3001 = vmatpush.bf16.msrb.mxu3 %v494_v13 }
 0x316   :  { %v2319_v27 = vpop.f32.mrf.mxu2  ;;  %3080 = vmatpush.bf16.msrb.mxu0 %v510_v19 }
 0x317   :  { %v8119_v22 = vadd.f32 %v2319_v27, %v7652_v57  ;;  %v2398_v24 = vpop.f32.mrf.mxu3  ;;  %v5257_v57 = vld [vmem:[%s9975_s1 + $0x4a0] sm:$0xf] }
 0x318   :  { %v2478_v47 = vadd.f32 %v2477_v25, %v2398_v24  ;;  %v2479_v31 = vpop.f32.mrf.mxu0  ;;  %v5440_v25 = vld [vmem:[%s9975_s1 + $0x4c8] sm:$0xf0]  ;;  %v350_v24 = vld [vmem:[%s9974_s0 + $0xa78] sm:$0xff] }
 0x319   :  { %10348 = vst [vmem:[#allocation16_spill] sm:$0xff] %v8119_v22  ;;  %v8138_v27 = vor.u32 %v5440_v25, %v5257_v57  ;;  %v10352_v57 = vld [vmem:[#allocation19_spill] sm:$0xff] }
 0x31a   :  { %v2558_v37 = vpop.f32.mrf.mxu1  ;;  %v8127_v18 = vadd.f32 %v2556_v5, %v2478_v47  ;;  %v348_v5 = vld [vmem:[%s9974_s0 + $0xa68] sm:$0xff] }
 0x31b   :  { %10350 = vst [vmem:[#allocation22_spill] sm:$0xff] %v8138_v27  ;;  %v518_v54 = vpack.c.bf16 %v350_v24, %v348_v5 }
 0x31d   :  { %3163 = vmatpush.bf16.msrb.mxu1 %v518_v54  ;;  %v264_v54 = vld [vmem:[%s9974_s0 + $0x7c8] sm:$0xff] }
 0x31e   :  { %v2321_v63 = vpop.f32.mrf.mxu2 }
 0x31f   :  { %v8136_v15 = vadd.f32 %v2321_v63, %v7673_v40  ;;  %v2400_v42 = vpop.f32.mrf.mxu3  ;;  %v10351_v40 = vld [vmem:[#allocation21_spill] sm:$0xff] }
 0x320   :  { %v2480_v13 = vadd.f32 %v2479_v31, %v2400_v42  ;;  %v2482_v55 = vpop.f32.mrf.mxu0  ;;  %v10353_v31 = vld [vmem:[#allocation72_spill] sm:$0xff] }
 0x321   :  { %10349 = vst [vmem:[#allocation40_spill] sm:$0xff] %v8136_v15 }
 0x322   :  { %v2561_v47 = vpop.f32.mrf.mxu1  ;;  %v8146_v19 = vadd.f32 %v2558_v37, %v2480_v13 }
 0x323   :  { %5272 = vmatmul.msk.bf16.gmra.mxu2 %vm1457_vm0, %v8138_v27  ;;  %2521 = vmatmul.bf16.gmra.mxu0 %v10351_v40 }
 0x324   :  { %2442 = vmatmul.bf16.gmra.mxu3 %v10352_v57 }
 0x325   :  { %2600 = vmatmul.bf16.gmra.mxu1 %v10353_v31 }
 0x326   :  { %v2324_v25 = vpop.f32.mrf.mxu2 }
 0x327   :  { %v8154_v63 = vadd.f32 %v2324_v25, %v7682_v51  ;;  %v2403_v42 = vpop.f32.mrf.mxu3  ;;  %v266_v51 = vld [vmem:[%s9974_s0 + $0x7d8] sm:$0xff]  ;;  %v10356_v25 = vld [vmem:[#allocation24_spill] sm:$0xff] }
 0x328   :  { %v2483_v15 = vadd.f32 %v2482_v55, %v2403_v42  ;;  %v2484_v22 = vpop.f32.mrf.mxu0  ;;  %v10357_v42 = vld [vmem:[#allocation25_spill] sm:$0xff] }
 0x329   :  { %10354 = vst [vmem:[#allocation20_spill] sm:$0xff] %v8154_v63 }
 0x32a   :  { %v2563_v5 = vpop.f32.mrf.mxu1  ;;  %v8156_v37 = vadd.f32 %v2561_v47, %v2483_v15  ;;  %v296_v15 = vld [vmem:[%s9974_s0 + $0x8c8] sm:$0xff]  ;;  %v476_v47 = vpack.c.bf16 %v266_v51, %v264_v54 }
 0x32c   :  { %2923 = vmatpush.bf16.msrb.mxu2 %v476_v47 }
 0x32e   :  { %v2326_v13 = vpop.f32.mrf.mxu2 }
 0x32f   :  { %v8159_v24 = vadd.f32 %v2326_v13, %v7704_v3  ;;  %v2405_v40 = vpop.f32.mrf.mxu3  ;;  %v298_v3 = vld [vmem:[%s9974_s0 + $0x8d8] sm:$0xff]  ;;  %v10358_v13 = vld [vmem:[#allocation23_spill] sm:$0xff] }
 0x330   :  { %v2485_v27 = vadd.f32 %v2484_v22, %v2405_v40  ;;  %v2487_v57 = vpop.f32.mrf.mxu0  ;;  %v492_v22 = vpack.c.bf16 %v298_v3, %v296_v15  ;;  %v10359_v40 = vld [vmem:[#allocation76_spill] sm:$0xff] }
 0x331   :  { %10355 = vst [vmem:[#allocation44_spill] sm:$0xff] %v8159_v24 }
 0x332   :  { %v2566_v55 = vpop.f32.mrf.mxu1  ;;  %v8173_v31 = vadd.f32 %v2563_v5, %v2485_v27  ;;  %3002 = vmatpush.bf16.msrb.mxu3 %v492_v22  ;;  %v328_v27 = vld [vmem:[%s9974_s0 + $0x9c8] sm:$0xff]  ;;  %v330_v5 = vld [vmem:[%s9974_s0 + $0x9d8] sm:$0xff] }
 0x333   :  { %2614 = vmatmul.bf16.vlgmr.msra.gmra.mxu2 %v10356_v25  ;;  %2772 = vmatmul.bf16.vlgmr.msra.gmra.mxu0 %v10357_v42  ;;  %v508_v3 = vpack.c.bf16 %v330_v5, %v328_v27  ;;  %v10365_v27 = vld [vmem:[#allocation80_spill] sm:$0xff] }
 0x334   :  { %2693 = vmatmul.bf16.vlgmr.msra.gmra.mxu3 %v10358_v13 }
 0x335   :  { %2851 = vmatmul.bf16.vlgmr.msra.gmra.mxu1 %v10359_v40  ;;  %3081 = vmatpush.bf16.msrb.mxu0 %v508_v3  ;;  %v10362_v40 = vld [vmem:[#allocation27_spill] sm:$0xff] }
 0x336   :  { %v2329_v24 = vpop.f32.mrf.mxu2 }
 0x337   :  { %v8180_v54 = vadd.f32 %v2329_v24, %v7725_v12  ;;  %v2408_v51 = vpop.f32.mrf.mxu3 }
 0x338   :  { %v2488_v63 = vadd.f32 %v2487_v57, %v2408_v51  ;;  %v2489_v49 = vpop.f32.mrf.mxu0  ;;  %v10363_v51 = vld [vmem:[#allocation28_spill] sm:$0xff] }
 0x339   :  { %10360 = vst [vmem:[#allocation3_spill] sm:$0xff] %v8180_v54  ;;  %v10364_v54 = vld [vmem:[#allocation26_spill] sm:$0xff] }
 0x33a   :  { %v2568_v15 = vpop.f32.mrf.mxu1  ;;  %v8188_v25 = vadd.f32 %v2566_v55, %v2488_v63 }
 0x33e   :  { %v2331_v47 = vpop.f32.mrf.mxu2 }
 0x33f   :  { %v8191_v12 = vadd.f32 %v2331_v47, %v7735_v53  ;;  %v2410_v24 = vpop.f32.mrf.mxu3 }
 0x340   :  { %v2490_v57 = vadd.f32 %v2489_v49, %v2410_v24  ;;  %v2492_v22 = vpop.f32.mrf.mxu0  ;;  %v260_v49 = vld [vmem:[%s9974_s0 + $0x7a8] sm:$0xff] }
 0x341   :  { %10361 = vst [vmem:[#allocation2_spill] sm:$0xff] %v8191_v12  ;;  %v10369_v12 = vld [vmem:[#allocation31_spill] sm:$0xff] }
 0x342   :  { %v2571_v42 = vpop.f32.mrf.mxu1  ;;  %v8193_v13 = vadd.f32 %v2568_v15, %v2490_v57  ;;  %v262_v15 = vld [vmem:[%s9974_s0 + $0x7b8] sm:$0xff] }
 0x343   :  { %2619 = vmatmul.bf16.gmra.mxu2 %v10362_v40  ;;  %2777 = vmatmul.bf16.gmra.mxu0 %v10363_v51  ;;  %v474_v24 = vpack.c.bf16 %v262_v15, %v260_v49 }
 0x344   :  { %2698 = vmatmul.bf16.gmra.mxu3 %v10364_v54  ;;  %v292_v54 = vld [vmem:[%s9974_s0 + $0x8a8] sm:$0xff] }
 0x345   :  { %2856 = vmatmul.bf16.gmra.mxu1 %v10365_v27  ;;  %2924 = vmatpush.bf16.msrb.mxu2 %v474_v24 }
 0x346   :  { %v2334_v63 = vpop.f32.mrf.mxu2 }
 0x347   :  { %v8200_v55 = vadd.f32 %v2334_v63, %v7756_v26  ;;  %v2413_v53 = vpop.f32.mrf.mxu3  ;;  %v294_v26 = vld [vmem:[%s9974_s0 + $0x8b8] sm:$0xff] }
 0x348   :  { %v2493_v5 = vadd.f32 %v2492_v22, %v2413_v53  ;;  %v2494_v3 = vpop.f32.mrf.mxu0  ;;  %v490_v57 = vpack.c.bf16 %v294_v26, %v292_v54  ;;  %v346_v26 = vld [vmem:[%s9974_s0 + $0xa58] sm:$0xff] }
 0x349   :  { %10366 = vst [vmem:[#allocation48_spill] sm:$0xff] %v8200_v55  ;;  %v10368_v55 = vld [vmem:[#allocation30_spill] sm:$0xff] }
 0x34a   :  { %v2573_v47 = vpop.f32.mrf.mxu1  ;;  %v8214_v22 = vadd.f32 %v2571_v42, %v2493_v5  ;;  %3003 = vmatpush.bf16.msrb.mxu3 %v490_v57  ;;  %v10371_v42 = vld [vmem:[#allocation84_spill] sm:$0xff]  ;;  %v324_v5 = vld [vmem:[%s9974_s0 + $0x9a8] sm:$0xff] }
 0x34e   :  { %v2336_v40 = vpop.f32.mrf.mxu2 }
 0x34f   :  { %v8217_v51 = vadd.f32 %v2336_v40, %v7772_v39  ;;  %v2415_v27 = vpop.f32.mrf.mxu3  ;;  %v326_v39 = vld [vmem:[%s9974_s0 + $0x9b8] sm:$0xff] }
 0x350   :  { %v2495_v63 = vadd.f32 %v2494_v3, %v2415_v27  ;;  %v2497_v53 = vpop.f32.mrf.mxu0  ;;  %v506_v3 = vpack.c.bf16 %v326_v39, %v324_v5 }
 0x351   :  { %10367 = vst [vmem:[#allocation5_spill] sm:$0xff] %v8217_v51  ;;  %v10408_v51 = vld [vmem:[#allocation58_spill] sm:$0xff] }
 0x352   :  { %v2576_v49 = vpop.f32.mrf.mxu1  ;;  %v8219_v15 = vadd.f32 %v2573_v47, %v2495_v63  ;;  %3082 = vmatpush.bf16.msrb.mxu0 %v506_v3 }
 0x353   :  { %2624 = vmatmul.bf16.gmra.mxu2 %v10368_v55  ;;  %2782 = vmatmul.bf16.gmra.mxu0 %v10369_v12 }
 0x354   :  { %2703 = vmatmul.bf16.gmra.mxu3 %v10370_v35  ;;  %v344_v35 = vld [vmem:[%s9974_s0 + $0xa48] sm:$0xff] }
 0x355   :  { %2861 = vmatmul.bf16.gmra.mxu1 %v10371_v42  ;;  %v516_v40 = vpack.c.bf16 %v346_v26, %v344_v35  ;;  %v10377_v35 = vld [vmem:[#allocation88_spill] sm:$0xff] }
 0x356   :  { %v2339_v24 = vpop.f32.mrf.mxu2 }
 0x357   :  { %v8232_v47 = vadd.f32 %v2339_v24, %v7787_v0  ;;  %v2418_v55 = vpop.f32.mrf.mxu3  ;;  %3164 = vmatpush.bf16.msrb.mxu1 %v516_v40  ;;  %v10374_v24 = vld [vmem:[#allocation34_spill] sm:$0xff] }
 0x358   :  { %v2498_v12 = vadd.f32 %v2497_v53, %v2418_v55  ;;  %v2499_v54 = vpop.f32.mrf.mxu0  ;;  %v10375_v55 = vld [vmem:[#allocation35_spill] sm:$0xff] }
 0x359   :  { %10372 = vst [vmem:[#allocation4_spill] sm:$0xff] %v8232_v47  ;;  %v10376_v47 = vld [vmem:[#allocation33_spill] sm:$0xff] }
 0x35a   :  { %v2578_v57 = vpop.f32.mrf.mxu1  ;;  %v8240_v27 = vadd.f32 %v2576_v49, %v2498_v12 }
 0x35e   :  { %v2341_v63 = vpop.f32.mrf.mxu2 }
 0x35f   :  { %v8243_v0 = vadd.f32 %v2341_v63, %v7797_v21  ;;  %v2420_v42 = vpop.f32.mrf.mxu3 }
 0x360   :  { %v2500_v53 = vadd.f32 %v2499_v54, %v2420_v42  ;;  %v2502_v5 = vpop.f32.mrf.mxu0  ;;  %v256_v54 = vld [vmem:[%s9974_s0 + $0x788] sm:$0xff] }
 0x361   :  { %10373 = vst [vmem:[#allocation52_spill] sm:$0xff] %v8243_v0 }
 0x362   :  { %v2581_v39 = vpop.f32.mrf.mxu1  ;;  %v8245_v3 = vadd.f32 %v2578_v57, %v2500_v53  ;;  %v258_v57 = vld [vmem:[%s9974_s0 + $0x798] sm:$0xff] }
 0x363   :  { %2629 = vmatmul.bf16.gmra.mxu2 %v10374_v24  ;;  %2787 = vmatmul.bf16.gmra.mxu0 %v10375_v55  ;;  %v472_v42 = vpack.c.bf16 %v258_v57, %v256_v54  ;;  %v320_v54 = vld [vmem:[%s9974_s0 + $0x988] sm:$0xff]  ;;  %v322_v57 = vld [vmem:[%s9974_s0 + $0x998] sm:$0xff] }
 0x364   :  { %2708 = vmatmul.bf16.gmra.mxu3 %v10376_v47  ;;  %v288_v47 = vld [vmem:[%s9974_s0 + $0x888] sm:$0xff] }
 0x365   :  { %2866 = vmatmul.bf16.gmra.mxu1 %v10377_v35  ;;  %2925 = vmatpush.bf16.msrb.mxu2 %v472_v42  ;;  %v10380_v42 = vld [vmem:[#allocation38_spill] sm:$0xff] }
 0x366   :  { %v2344_v49 = vpop.f32.mrf.mxu2 }
 0x367   :  { %v8252_v12 = vadd.f32 %v2344_v49, %v7818_v33  ;;  %v2423_v21 = vpop.f32.mrf.mxu3  ;;  %v290_v33 = vld [vmem:[%s9974_s0 + $0x898] sm:$0xff] }
 0x368   :  { %v2503_v26 = vadd.f32 %v2502_v5, %v2423_v21  ;;  %v2504_v40 = vpop.f32.mrf.mxu0  ;;  %v488_v53 = vpack.c.bf16 %v290_v33, %v288_v47  ;;  %v10381_v33 = vld [vmem:[#allocation39_spill] sm:$0xff] }
 0x369   :  { %10378 = vst [vmem:[#allocation7_spill] sm:$0xff] %v8252_v12 }
 0x36a   :  { %v2583_v63 = vpop.f32.mrf.mxu1  ;;  %v8266_v5 = vadd.f32 %v2581_v39, %v2503_v26  ;;  %3004 = vmatpush.bf16.msrb.mxu3 %v488_v53  ;;  %v504_v39 = vpack.c.bf16 %v322_v57, %v320_v54 }
 0x36c   :  { %3083 = vmatpush.bf16.msrb.mxu0 %v504_v39  ;;  %v10386_v39 = vld [vmem:[#allocation42_spill] sm:$0xff] }
 0x36e   :  { %v2346_v24 = vpop.f32.mrf.mxu2 }
 0x36f   :  { %v8269_v55 = vadd.f32 %v2346_v24, %v7840_v28  ;;  %v2425_v35 = vpop.f32.mrf.mxu3  ;;  %v10382_v28 = vld [vmem:[#allocation37_spill] sm:$0xff] }
 0x370   :  { %v2505_v49 = vadd.f32 %v2504_v40, %v2425_v35  ;;  %v2507_v21 = vpop.f32.mrf.mxu0  ;;  %v10383_v40 = vld [vmem:[#allocation92_spill] sm:$0xff] }
 0x371   :  { %10379 = vst [vmem:[#allocation6_spill] sm:$0xff] %v8269_v55 }
 0x372   :  { %v2586_v47 = vpop.f32.mrf.mxu1  ;;  %v8277_v26 = vadd.f32 %v2583_v63, %v2505_v49 }
 0x373   :  { %2634 = vmatmul.bf16.gmra.mxu2 %v10380_v42  ;;  %2792 = vmatmul.bf16.gmra.mxu0 %v10381_v33 }
 0x374   :  { %2713 = vmatmul.bf16.gmra.mxu3 %v10382_v28 }
 0x375   :  { %2871 = vmatmul.bf16.gmra.mxu1 %v10383_v40 }
 0x376   :  { %v2349_v53 = vpop.f32.mrf.mxu2 }
 0x377   :  { %v8284_v24 = vadd.f32 %v2349_v53, %v7849_v4  ;;  %v2428_v35 = vpop.f32.mrf.mxu3  ;;  %v10387_v4 = vld [vmem:[#allocation43_spill] sm:$0xff]  ;;  %v10388_v53 = vld [vmem:[#allocation41_spill] sm:$0xff] }
 0x378   :  { %v2508_v55 = vadd.f32 %v2507_v21, %v2428_v35  ;;  %v2509_v12 = vpop.f32.mrf.mxu0  ;;  %v10389_v21 = vld [vmem:[#allocation96_spill] sm:$0xff] }
 0x379   :  { %10384 = vst [vmem:[#allocation56_spill] sm:$0xff] %v8284_v24 }
 0x37a   :  { %v2588_v0 = vpop.f32.mrf.mxu1  ;;  %v8286_v54 = vadd.f32 %v2586_v47, %v2508_v55  ;;  %v252_v55 = vld [vmem:[%s9974_s0 + $0x768] sm:$0xff]  ;;  %v286_v47 = vld [vmem:[%s9974_s0 + $0x878] sm:$0xff] }
 0x37e   :  { %v2351_v63 = vpop.f32.mrf.mxu2 }
 0x37f   :  { %v8289_v49 = vadd.f32 %v2351_v63, %v7871_v44  ;;  %v2430_v57 = vpop.f32.mrf.mxu3  ;;  %v254_v44 = vld [vmem:[%s9974_s0 + $0x778] sm:$0xff] }
 0x380   :  { %v2510_v42 = vadd.f32 %v2509_v12, %v2430_v57  ;;  %v2512_v33 = vpop.f32.mrf.mxu0  ;;  %v470_v12 = vpack.c.bf16 %v254_v44, %v252_v55  ;;  %v318_v55 = vld [vmem:[%s9974_s0 + $0x978] sm:$0xff] }
 0x381   :  { %10385 = vst [vmem:[#allocation10_spill] sm:$0xff] %v8289_v49 }
 0x382   :  { %v2591_v28 = vpop.f32.mrf.mxu1  ;;  %v8291_v40 = vadd.f32 %v2588_v0, %v2510_v42  ;;  %v284_v0 = vld [vmem:[%s9974_s0 + $0x868] sm:$0xff]  ;;  %2926 = vmatpush.bf16.msrb.mxu2 %v470_v12 }
 0x383   :  { %2639 = vmatmul.bf16.gmra.mxu2 %v10386_v39  ;;  %2797 = vmatmul.bf16.gmra.mxu0 %v10387_v4  ;;  %v486_v63 = vpack.c.bf16 %v286_v47, %v284_v0 }
 0x384   :  { %2718 = vmatmul.bf16.gmra.mxu3 %v10388_v53 }
 0x385   :  { %2876 = vmatmul.bf16.gmra.mxu1 %v10389_v21  ;;  %3005 = vmatpush.bf16.msrb.mxu3 %v486_v63  ;;  %v316_v21 = vld [vmem:[%s9974_s0 + $0x968] sm:$0xff]  ;;  %v342_v63 = vld [vmem:[%s9974_s0 + $0xa38] sm:$0xff] }
 0x386   :  { %v2354_v35 = vpop.f32.mrf.mxu2  ;;  %v502_v44 = vpack.c.bf16 %v318_v55, %v316_v21  ;;  %v10393_v55 = vld [vmem:[#allocation47_spill] sm:$0xff] }
 0x387   :  { %v8310_v57 = vadd.f32 %v2354_v35, %v7886_v9  ;;  %v2433_v42 = vpop.f32.mrf.mxu3  ;;  %v340_v35 = vld [vmem:[%s9974_s0 + $0xa28] sm:$0xff] }
 0x388   :  { %v2513_v39 = vadd.f32 %v2512_v33, %v2433_v42  ;;  %v2514_v4 = vpop.f32.mrf.mxu0  ;;  %3084 = vmatpush.bf16.msrb.mxu0 %v502_v44  ;;  %v514_v21 = vpack.c.bf16 %v342_v63, %v340_v35 }
 0x389   :  { %10390 = vst [vmem:[#allocation8_spill] sm:$0xff] %v8310_v57 }
 0x38a   :  { %v2593_v53 = vpop.f32.mrf.mxu1  ;;  %v8318_v49 = vadd.f32 %v2591_v28, %v2513_v39  ;;  %v10392_v39 = vld [vmem:[#allocation46_spill] sm:$0xff]  ;;  %3165 = vmatpush.bf16.msrb.mxu1 %v514_v21 }
 0x38b   :  { %v10398_v21 = vld [vmem:[#allocation50_spill] sm:$0xff] }
 0x38e   :  { %v2356_v9 = vpop.f32.mrf.mxu2 }
 0x38f   :  { %v8321_v0 = vadd.f32 %v2356_v9, %v7902_v11  ;;  %v2435_v33 = vpop.f32.mrf.mxu3  ;;  %v10394_v11 = vld [vmem:[#allocation45_spill] sm:$0xff] }
 0x390   :  { %v2515_v12 = vadd.f32 %v2514_v4, %v2435_v33  ;;  %v2517_v47 = vpop.f32.mrf.mxu0  ;;  %v10395_v4 = vld [vmem:[#allocation100_spill] sm:$0xff] }
 0x391   :  { %10391 = vst [vmem:[#allocation60_spill] sm:$0xff] %v8321_v0 }
 0x392   :  { %v2596_v42 = vpop.f32.mrf.mxu1  ;;  %v8329_v28 = vadd.f32 %v2593_v53, %v2515_v12 }
 0x393   :  { %2644 = vmatmul.bf16.gmra.mxu2 %v10392_v39  ;;  %2802 = vmatmul.bf16.gmra.mxu0 %v10393_v55 }
 0x394   :  { %2723 = vmatmul.bf16.gmra.mxu3 %v10394_v11 }
 0x395   :  { %2881 = vmatmul.bf16.gmra.mxu1 %v10395_v4 }
 0x396   :  { %v2359_v44 = vpop.f32.mrf.mxu2 }
 0x397   :  { %v8336_v9 = vadd.f32 %v2359_v44, %v7911_v14  ;;  %v2438_v33 = vpop.f32.mrf.mxu3  ;;  %v10399_v14 = vld [vmem:[#allocation51_spill] sm:$0xff]  ;;  %v282_v44 = vld [vmem:[%s9974_s0 + $0x858] sm:$0xff] }
 0x398   :  { %v2518_v0 = vadd.f32 %v2517_v47, %v2438_v33  ;;  %v2519_v57 = vpop.f32.mrf.mxu0  ;;  %v248_v47 = vld [vmem:[%s9974_s0 + $0x748] sm:$0xff] }
 0x399   :  { %10396 = vst [vmem:[#allocation13_spill] sm:$0xff] %v8336_v9 }
 0x39a   :  { %v2598_v24 = vpop.f32.mrf.mxu1  ;;  %v8338_v35 = vadd.f32 %v2596_v42, %v2518_v0  ;;  %v250_v0 = vld [vmem:[%s9974_s0 + $0x758] sm:$0xff] }
 0x39b   :  { %v468_v42 = vpack.c.bf16 %v250_v0, %v248_v47  ;;  %v312_v47 = vld [vmem:[%s9974_s0 + $0x948] sm:$0xff]  ;;  %v314_v0 = vld [vmem:[%s9974_s0 + $0x958] sm:$0xff] }
 0x39d   :  { %2927 = vmatpush.bf16.msrb.mxu2 %v468_v42 }
 0x39e   :  { %v2361_v53 = vpop.f32.mrf.mxu2 }
 0x39f   :  { %v8341_v12 = vadd.f32 %v2361_v53, %v7933_v59  ;;  %v2440_v63 = vpop.f32.mrf.mxu3  ;;  %v280_v59 = vld [vmem:[%s9974_s0 + $0x848] sm:$0xff] }
 0x3a0   :  { %v2520_v39 = vadd.f32 %v2519_v57, %v2440_v63  ;;  %v2522_v55 = vpop.f32.mrf.mxu0  ;;  %v10400_v57 = vld [vmem:[#allocation49_spill] sm:$0xff]  ;;  %v484_v33 = vpack.c.bf16 %v282_v44, %v280_v59  ;;  %v500_v59 = vpack.c.bf16 %v314_v0, %v312_v47 }
 0x3a1   :  { %10397 = vst [vmem:[#allocation11_spill] sm:$0xff] %v8341_v12 }
 0x3a2   :  { %v2601_v11 = vpop.f32.mrf.mxu1  ;;  %v8343_v4 = vadd.f32 %v2598_v24, %v2520_v39  ;;  %v10401_v24 = vld [vmem:[#allocation104_spill] sm:$0xff]  ;;  %3006 = vmatpush.bf16.msrb.mxu3 %v484_v33  ;;  %3085 = vmatpush.bf16.msrb.mxu0 %v500_v59  ;;  %v10404_v33 = vld [vmem:[#allocation54_spill] sm:$0xff] }
 0x3a3   :  { %2649 = vmatmul.bf16.gmra.mxu2 %v10398_v21  ;;  %2807 = vmatmul.bf16.gmra.mxu0 %v10399_v14 }
 0x3a4   :  { %2728 = vmatmul.bf16.gmra.mxu3 %v10400_v57 }
 0x3a5   :  { %2886 = vmatmul.bf16.gmra.mxu1 %v10401_v24 }
 0x3a6   :  { %v2364_v53 = vpop.f32.mrf.mxu2 }
 0x3a7   :  { %v8362_v63 = vadd.f32 %v2364_v53, %v7954_v16  ;;  %v2443_v39 = vpop.f32.mrf.mxu3  ;;  %v10405_v53 = vld [vmem:[#allocation55_spill] sm:$0xff] }
 0x3a8   :  { %v2523_v21 = vadd.f32 %v2522_v55, %v2443_v39  ;;  %v2524_v14 = vpop.f32.mrf.mxu0  ;;  %v10406_v39 = vld [vmem:[#allocation53_spill] sm:$0xff] }
 0x3a9   :  { %10402 = vst [vmem:[#allocation64_spill] sm:$0xff] %v8362_v63 }
 0x3aa   :  { %v2603_v12 = vpop.f32.mrf.mxu1  ;;  %v8364_v9 = vadd.f32 %v2601_v11, %v2523_v21  ;;  %v10407_v21 = vld [vmem:[#allocation108_spill] sm:$0xff] }
 0x3ae   :  { %v2366_v57 = vpop.f32.mrf.mxu2 }
 0x3af   :  { %v8373_v16 = vadd.f32 %v2366_v57, %v7964_v7  ;;  %v2445_v24 = vpop.f32.mrf.mxu3 }
 0x3b0   :  { %v2525_v55 = vadd.f32 %v2524_v14, %v2445_v24  ;;  %v2773_v42 = vpop.f32.mrf.mxu0  ;;  %v246_v24 = vld [vmem:[%s9974_s0 + $0x738] sm:$0xff] }
 0x3b1   :  { %10403 = vst [vmem:[#allocation17_spill] sm:$0xff] %v8373_v16 }
 0x3b2   :  { %v2852_v44 = vpop.f32.mrf.mxu1  ;;  %v8375_v11 = vadd.f32 %v2603_v12, %v2525_v55  ;;  %v244_v12 = vld [vmem:[%s9974_s0 + $0x728] sm:$0xff] }
 0x3b3   :  { %2654 = vmatmul.bf16.gmra.mxu2 %v10404_v33  ;;  %2812 = vmatmul.bf16.gmra.mxu0 %v10405_v53  ;;  %v276_v55 = vld [vmem:[%s9974_s0 + $0x828] sm:$0xff]  ;;  %v466_v33 = vpack.c.bf16 %v246_v24, %v244_v12  ;;  %v10410_v24 = vld [vmem:[#allocation57_spill] sm:$0xff] }
 0x3b4   :  { %2733 = vmatmul.bf16.gmra.mxu3 %v10406_v39  ;;  %v10409_v12 = vld [vmem:[#allocation59_spill] sm:$0xff] }
 0x3b5   :  { %2891 = vmatmul.bf16.gmra.mxu1 %v10407_v21  ;;  %2928 = vmatpush.bf16.msrb.mxu2 %v466_v33 }
 0x3b6   :  { %v2615_v47 = vpop.f32.mrf.mxu2 }
 0x3b7   :  { %v2616_v0 = vadd.f32 %v2615_v47, %v7981_v58  ;;  %v2694_v59 = vpop.f32.mrf.mxu3  ;;  %v278_v58 = vld [vmem:[%s9974_s0 + $0x838] sm:$0xff] }
 0x3b8   :  { %v2775_v7 = vpop.f32.mrf.mxu0  ;;  %v482_v53 = vpack.c.bf16 %v278_v58, %v276_v55 }
 0x3b9   :  { %v2695_v57 = vadd.f32 %v2694_v59, %v2616_v0 }
 0x3ba   :  { %v2854_v16 = vpop.f32.mrf.mxu1  ;;  %3007 = vmatpush.bf16.msrb.mxu3 %v482_v53 }
 0x3bb   :  { %v2774_v14 = vadd.f32 %v2773_v42, %v2695_v57 }
 0x3bd   :  { %v8394_v39 = vadd.f32 %v2852_v44, %v2774_v14  ;;  %v308_v44 = vld [vmem:[%s9974_s0 + $0x928] sm:$0xff] }
 0x3be   :  { %v2617_v42 = vpop.f32.mrf.mxu2 }
 0x3bf   :  { %v2618_v21 = vadd.f32 %v2617_v42, %v7994_v10  ;;  %v2696_v47 = vpop.f32.mrf.mxu3  ;;  %v310_v10 = vld [vmem:[%s9974_s0 + $0x938] sm:$0xff] }
 0x3c0   :  { %v2778_v0 = vpop.f32.mrf.mxu0  ;;  %v498_v14 = vpack.c.bf16 %v310_v10, %v308_v44 }
 0x3c1   :  { %v2697_v59 = vadd.f32 %v2696_v47, %v2618_v21  ;;  %v336_v21 = vld [vmem:[%s9974_s0 + $0xa08] sm:$0xff]  ;;  %v338_v47 = vld [vmem:[%s9974_s0 + $0xa18] sm:$0xff] }
 0x3c2   :  { %v2857_v57 = vpop.f32.mrf.mxu1  ;;  %3086 = vmatpush.bf16.msrb.mxu0 %v498_v14  ;;  %v10411_v14 = vld [vmem:[#allocation62_spill] sm:$0xff] }
 0x3c3   :  { %v2776_v63 = vadd.f32 %v2775_v7, %v2697_v59  ;;  %2659 = vmatmul.bf16.gmra.mxu2 %v10408_v51  ;;  %2817 = vmatmul.bf16.gmra.mxu0 %v10409_v12  ;;  %v512_v59 = vpack.c.bf16 %v338_v47, %v336_v21 }
 0x3c4   :  { %2738 = vmatmul.bf16.gmra.mxu3 %v10410_v24 }
 0x3c5   :  { %2896 = vmatmul.bf16.gmra.mxu1 %v7439_v29  ;;  %v8407_v55 = vadd.f32 %v2854_v16, %v2776_v63 }
 0x3c6   :  { %v2620_v7 = vpop.f32.mrf.mxu2  ;;  %3166 = vmatpush.bf16.msrb.mxu1 %v512_v59 }
 0x3c7   :  { %v2621_v51 = vadd.f32 %v2620_v7, %v8016_v2  ;;  %v2699_v33 = vpop.f32.mrf.mxu3  ;;  %v10412_v7 = vld [vmem:[#allocation63_spill] sm:$0xff] }
 0x3c8   :  { %v2780_v58 = vpop.f32.mrf.mxu0 }
 0x3c9   :  { %v2700_v53 = vadd.f32 %v2699_v33, %v2621_v51  ;;  %v10413_v51 = vld [vmem:[#allocation61_spill] sm:$0xff] }
 0x3ca   :  { %v2859_v42 = vpop.f32.mrf.mxu1 }
 0x3cb   :  { %v2779_v29 = vadd.f32 %v2778_v0, %v2700_v53 }
 0x3cd   :  { %v8416_v63 = vadd.f32 %v2857_v57, %v2779_v29 }
 0x3ce   :  { %v2622_v16 = vpop.f32.mrf.mxu2 }
 0x3cf   :  { %v2623_v2 = vadd.f32 %v2622_v16, %v8029_v38  ;;  %v2701_v12 = vpop.f32.mrf.mxu3  ;;  %v242_v16 = vld [vmem:[%s9974_s0 + $0x718] sm:$0xff] }
 0x3d0   :  { %v2783_v24 = vpop.f32.mrf.mxu0 }
 0x3d1   :  { %v2702_v44 = vadd.f32 %v2701_v12, %v2623_v2 }
 0x3d2   :  { %v2862_v10 = vpop.f32.mrf.mxu1 }
 0x3d3   :  { %v2781_v0 = vadd.f32 %v2780_v58, %v2702_v44  ;;  %2664 = vmatmul.bf16.gmra.mxu2 %v10411_v14  ;;  %2822 = vmatmul.bf16.gmra.mxu0 %v10412_v7  ;;  %v240_v58 = vld [vmem:[%s9974_s0 + $0x708] sm:$0xff] }
 0x3d4   :  { %2743 = vmatmul.bf16.gmra.mxu3 %v10413_v51 }
 0x3d5   :  { %2901 = vmatmul.bf16.gmra.mxu1 %v7493_v43  ;;  %v8423_v33 = vadd.f32 %v2859_v42, %v2781_v0  ;;  %v272_v43 = vld [vmem:[%s9974_s0 + $0x808] sm:$0xff]  ;;  %v464_v42 = vpack.c.bf16 %v242_v16, %v240_v58 }
 0x3d6   :  { %v2625_v57 = vpop.f32.mrf.mxu2 }
 0x3d7   :  { %v2626_v53 = vadd.f32 %v2625_v57, %v8051_v61  ;;  %v2704_v29 = vpop.f32.mrf.mxu3  ;;  %v274_v61 = vld [vmem:[%s9974_s0 + $0x818] sm:$0xff]  ;;  %2929 = vmatpush.bf16.msrb.mxu2 %v464_v42 }
 0x3d8   :  { %v2785_v38 = vpop.f32.mrf.mxu0  ;;  %v480_v2 = vpack.c.bf16 %v274_v61, %v272_v43 }
 0x3d9   :  { %v2705_v21 = vadd.f32 %v2704_v29, %v2626_v53  ;;  %v10414_v53 = vld [vmem:[#allocation66_spill] sm:$0xff]  ;;  %v10415_v29 = vld [vmem:[#allocation67_spill] sm:$0xff] }
 0x3da   :  { %v2864_v47 = vpop.f32.mrf.mxu1  ;;  %3008 = vmatpush.bf16.msrb.mxu3 %v480_v2 }
 0x3db   :  { %v2784_v59 = vadd.f32 %v2783_v24, %v2705_v21  ;;  %v304_v21 = vld [vmem:[%s9974_s0 + $0x908] sm:$0xff] }
 0x3dd   :  { %v8438_v12 = vadd.f32 %v2862_v10, %v2784_v59  ;;  %v306_v10 = vld [vmem:[%s9974_s0 + $0x918] sm:$0xff] }
 0x3de   :  { %v2627_v24 = vpop.f32.mrf.mxu2  ;;  %v10416_v59 = vld [vmem:[#allocation65_spill] sm:$0xff]  ;;  %v496_v58 = vpack.c.bf16 %v306_v10, %v304_v21  ;;  %v10419_v10 = vld [vmem:[#allocation71_spill] sm:$0xff] }
 0x3df   :  { %v2628_v44 = vadd.f32 %v2627_v24, %v8070_v50  ;;  %v2706_v0 = vpop.f32.mrf.mxu3  ;;  %v10417_v50 = vld [vmem:[#allocation118_spill] sm:$0xff] }
 0x3e0   :  { %v2788_v14 = vpop.f32.mrf.mxu0  ;;  %3087 = vmatpush.bf16.msrb.mxu0 %v496_v58  ;;  %v10421_v58 = vld [vmem:[#allocation122_spill] sm:$0xff] }
 0x3e1   :  { %v2707_v7 = vadd.f32 %v2706_v0, %v2628_v44 }
 0x3e2   :  { %v2867_v51 = vpop.f32.mrf.mxu1 }
 0x3e3   :  { %v2786_v57 = vadd.f32 %v2785_v38, %v2707_v7  ;;  %2669 = vmatmul.bf16.gmra.mxu2 %v10414_v53  ;;  %2827 = vmatmul.bf16.gmra.mxu0 %v10415_v29 }
 0x3e4   :  { %2748 = vmatmul.bf16.gmra.mxu3 %v10416_v59 }
 0x3e5   :  { %2906 = vmatmul.bf16.gmra.mxu1 %v10417_v50  ;;  %v8451_v16 = vadd.f32 %v2864_v47, %v2786_v57  ;;  %v10418_v57 = vld [vmem:[#allocation70_spill] sm:$0xff] }
 0x3e6   :  { %v2630_v38 = vpop.f32.mrf.mxu2 }
 0x3e7   :  { %v2631_v43 = vadd.f32 %v2630_v38, %v8086_v60  ;;  %v2709_v42 = vpop.f32.mrf.mxu3  ;;  %v10420_v60 = vld [vmem:[#allocation69_spill] sm:$0xff] }
 0x3e8   :  { %v2790_v61 = vpop.f32.mrf.mxu0 }
 0x3e9   :  { %v2710_v2 = vadd.f32 %v2709_v42, %v2631_v43 }
 0x3ea   :  { %v2869_v24 = vpop.f32.mrf.mxu1 }
 0x3eb   :  { %v2789_v44 = vadd.f32 %v2788_v14, %v2710_v2 }
 0x3ed   :  { %v8454_v0 = vadd.f32 %v2867_v51, %v2789_v44 }
 0x3ee   :  { %v2632_v7 = vpop.f32.mrf.mxu2 }
 0x3ef   :  { %v2633_v53 = vadd.f32 %v2632_v7, %v8099_v20  ;;  %v2711_v29 = vpop.f32.mrf.mxu3 }
 0x3f0   :  { %v2793_v59 = vpop.f32.mrf.mxu0 }
 0x3f1   :  { %v2712_v50 = vadd.f32 %v2711_v29, %v2633_v53 }
 0x3f2   :  { %v2872_v21 = vpop.f32.mrf.mxu1 }
 0x3f3   :  { %v2791_v47 = vadd.f32 %v2790_v61, %v2712_v50  ;;  %2674 = vmatmul.bf16.gmra.mxu2 %v10418_v57  ;;  %2832 = vmatmul.bf16.gmra.mxu0 %v10419_v10 }
 0x3f4   :  { %2753 = vmatmul.bf16.gmra.mxu3 %v10420_v60 }
 0x3f5   :  { %2911 = vmatmul.bf16.gmra.mxu1 %v10421_v58  ;;  %v8461_v38 = vadd.f32 %v2869_v24, %v2791_v47  ;;  %v10422_v24 = vld [vmem:[#allocation74_spill] sm:$0xff]  ;;  %v10423_v47 = vld [vmem:[#allocation75_spill] sm:$0xff] }
 0x3f6   :  { %v2635_v14 = vpop.f32.mrf.mxu2 }
 0x3f7   :  { %v2636_v51 = vadd.f32 %v2635_v14, %v8127_v18  ;;  %v2714_v43 = vpop.f32.mrf.mxu3  ;;  %v10424_v18 = vld [vmem:[#allocation73_spill] sm:$0xff] }
 0x3f8   :  { %v2795_v20 = vpop.f32.mrf.mxu0 }
 0x3f9   :  { %v2715_v42 = vadd.f32 %v2714_v43, %v2636_v51 }
 0x3fa   :  { %v2874_v2 = vpop.f32.mrf.mxu1 }
 0x3fb   :  { %v2794_v44 = vadd.f32 %v2793_v59, %v2715_v42 }
 0x3fd   :  { %v8464_v7 = vadd.f32 %v2872_v21, %v2794_v44 }
 0x3fe   :  { %v2637_v61 = vpop.f32.mrf.mxu2 }
 0x3ff   :  { %v2638_v53 = vadd.f32 %v2637_v61, %v8146_v19  ;;  %v2716_v29 = vpop.f32.mrf.mxu3 }
 0x400   :  { %v2798_v50 = vpop.f32.mrf.mxu0 }
 0x401   :  { %v2717_v57 = vadd.f32 %v2716_v29, %v2638_v53 }
 0x402   :  { %v2877_v10 = vpop.f32.mrf.mxu1 }
 0x403   :  { %v2796_v60 = vadd.f32 %v2795_v20, %v2717_v57  ;;  %2679 = vmatmul.bf16.gmra.mxu2 %v10422_v24  ;;  %2837 = vmatmul.bf16.gmra.mxu0 %v10423_v47 }
 0x404   :  { %2758 = vmatmul.bf16.gmra.mxu3 %v10424_v18 }
 0x405   :  { %2916 = vmatmul.bf16.gmra.mxu1 %v7655_v62  ;;  %v8471_v58 = vadd.f32 %v2874_v2, %v2796_v60  ;;  %v10425_v2 = vld [vmem:[#allocation78_spill] sm:$0xff]  ;;  %v10426_v60 = vld [vmem:[#allocation79_spill] sm:$0xff] }
 0x406   :  { %v2640_v59 = vpop.f32.mrf.mxu2 }
 0x407   :  { %v2641_v21 = vadd.f32 %v2640_v59, %v8156_v37  ;;  %v2719_v14 = vpop.f32.mrf.mxu3  ;;  %v10427_v37 = vld [vmem:[#allocation77_spill] sm:$0xff] }
 0x408   :  { %v2800_v19 = vpop.f32.mrf.mxu0 }
 0x409   :  { %v2720_v51 = vadd.f32 %v2719_v14, %v2641_v21 }
 0x40a   :  { %v2879_v43 = vpop.f32.mrf.mxu1 }
 0x40b   :  { %v2799_v42 = vadd.f32 %v2798_v50, %v2720_v51 }
 0x40d   :  { %v8474_v44 = vadd.f32 %v2877_v10, %v2799_v42 }
 0x40e   :  { %v2642_v20 = vpop.f32.mrf.mxu2 }
 0x40f   :  { %v2643_v61 = vadd.f32 %v2642_v20, %v8173_v31  ;;  %v2721_v53 = vpop.f32.mrf.mxu3 }
 0x410   :  { %v2803_v29 = vpop.f32.mrf.mxu0 }
 0x411   :  { %v2722_v57 = vadd.f32 %v2721_v53, %v2643_v61 }
 0x412   :  { %v2882_v24 = vpop.f32.mrf.mxu1 }
 0x413   :  { %v2801_v62 = vadd.f32 %v2800_v19, %v2722_v57  ;;  %2930 = vmatmul.bf16.vlgmr.msrb.gmra.mxu2 %v10425_v2  ;;  %3088 = vmatmul.bf16.vlgmr.msrb.gmra.mxu0 %v10426_v60 }
 0x414   :  { %3009 = vmatmul.bf16.vlgmr.msrb.gmra.mxu3 %v10427_v37 }
 0x415   :  { %5273 = vmatmul.msk.bf16.vlgmr.msrb.gmra.mxu1 %vm1457_vm0, %v7685_v56  ;;  %v8482_v50 = vadd.f32 %v2879_v43, %v2801_v62  ;;  %v10428_v43 = vld [vmem:[#allocation82_spill] sm:$0xff]  ;;  %v10429_v62 = vld [vmem:[#allocation83_spill] sm:$0xff] }
 0x416   :  { %v2645_v10 = vpop.f32.mrf.mxu2 }
 0x417   :  { %v2646_v47 = vadd.f32 %v2645_v10, %v8188_v25  ;;  %v2724_v31 = vpop.f32.mrf.mxu3  ;;  %v10430_v25 = vld [vmem:[#allocation81_spill] sm:$0xff] }
 0x418   :  { %v2805_v18 = vpop.f32.mrf.mxu0 }
 0x419   :  { %v2725_v59 = vadd.f32 %v2724_v31, %v2646_v47 }
 0x41a   :  { %v2884_v21 = vpop.f32.mrf.mxu1 }
 0x41b   :  { %v2804_v14 = vadd.f32 %v2803_v29, %v2725_v59 }
 0x41d   :  { %v8485_v19 = vadd.f32 %v2882_v24, %v2804_v14 }
 0x41e   :  { %v2647_v51 = vpop.f32.mrf.mxu2 }
 0x41f   :  { %v2648_v42 = vadd.f32 %v2647_v51, %v8193_v13  ;;  %v2726_v20 = vpop.f32.mrf.mxu3 }
 0x420   :  { %v2808_v61 = vpop.f32.mrf.mxu0 }
 0x421   :  { %v2727_v53 = vadd.f32 %v2726_v20, %v2648_v42 }
 0x422   :  { %v2887_v57 = vpop.f32.mrf.mxu1 }
 0x423   :  { %v2806_v56 = vadd.f32 %v2805_v18, %v2727_v53  ;;  %2935 = vmatmul.bf16.gmra.mxu2 %v10428_v43  ;;  %3093 = vmatmul.bf16.gmra.mxu0 %v10429_v62  ;;  %v10432_v53 = vld [vmem:[#allocation87_spill] sm:$0xff] }
 0x424   :  { %3014 = vmatmul.bf16.gmra.mxu3 %v10430_v25 }
 0x425   :  { %5274 = vmatmul.msk.bf16.gmra.mxu1 %vm1457_vm0, %v7728_v23  ;;  %v8493_v29 = vadd.f32 %v2884_v21, %v2806_v56  ;;  %v10431_v21 = vld [vmem:[#allocation86_spill] sm:$0xff] }
 0x426   :  { %v2650_v24 = vpop.f32.mrf.mxu2 }
 0x427   :  { %v2651_v2 = vadd.f32 %v2650_v24, %v8214_v22  ;;  %v2729_v13 = vpop.f32.mrf.mxu3  ;;  %v10433_v22 = vld [vmem:[#allocation85_spill] sm:$0xff] }
 0x428   :  { %v2810_v60 = vpop.f32.mrf.mxu0 }
 0x429   :  { %v2730_v37 = vadd.f32 %v2729_v13, %v2651_v2 }
 0x42a   :  { %v2889_v10 = vpop.f32.mrf.mxu1 }
 0x42b   :  { %v2809_v47 = vadd.f32 %v2808_v61, %v2730_v37 }
 0x42d   :  { %v8496_v31 = vadd.f32 %v2887_v57, %v2809_v47 }
 0x42e   :  { %v2652_v18 = vpop.f32.mrf.mxu2 }
 0x42f   :  { %v2653_v59 = vadd.f32 %v2652_v18, %v8219_v15  ;;  %v2731_v14 = vpop.f32.mrf.mxu3 }
 0x430   :  { %v2813_v51 = vpop.f32.mrf.mxu0 }
 0x431   :  { %v2732_v42 = vadd.f32 %v2731_v14, %v2653_v59  ;;  %v10435_v14 = vld [vmem:[#allocation91_spill] sm:$0xff] }
 0x432   :  { %v2892_v20 = vpop.f32.mrf.mxu1 }
 0x433   :  { %v2811_v23 = vadd.f32 %v2810_v60, %v2732_v42  ;;  %2940 = vmatmul.bf16.gmra.mxu2 %v10431_v21  ;;  %3098 = vmatmul.bf16.gmra.mxu0 %v10432_v53 }
 0x434   :  { %3019 = vmatmul.bf16.gmra.mxu3 %v10433_v22 }
 0x435   :  { %5275 = vmatmul.msk.bf16.gmra.mxu1 %vm1457_vm0, %v7759_v8  ;;  %v8504_v61 = vadd.f32 %v2889_v10, %v2811_v23  ;;  %v10434_v10 = vld [vmem:[#allocation90_spill] sm:$0xff] }
 0x436   :  { %v2655_v57 = vpop.f32.mrf.mxu2 }
 0x437   :  { %v2656_v56 = vadd.f32 %v2655_v57, %v8240_v27  ;;  %v2734_v15 = vpop.f32.mrf.mxu3  ;;  %v10436_v27 = vld [vmem:[#allocation89_spill] sm:$0xff] }
 0x438   :  { %v2815_v43 = vpop.f32.mrf.mxu0 }
 0x439   :  { %v2735_v62 = vadd.f32 %v2734_v15, %v2656_v56 }
 0x43a   :  { %v2894_v25 = vpop.f32.mrf.mxu1 }
 0x43b   :  { %v2814_v24 = vadd.f32 %v2813_v51, %v2735_v62 }
 0x43d   :  { %v8507_v2 = vadd.f32 %v2892_v20, %v2814_v24 }
 0x43e   :  { %v2657_v13 = vpop.f32.mrf.mxu2 }
 0x43f   :  { %v2658_v60 = vadd.f32 %v2657_v13, %v8245_v3  ;;  %v2736_v37 = vpop.f32.mrf.mxu3 }
 0x440   :  { %v2818_v47 = vpop.f32.mrf.mxu0 }
 0x441   :  { %v2737_v18 = vadd.f32 %v2736_v37, %v2658_v60  ;;  %v10438_v60 = vld [vmem:[#allocation95_spill] sm:$0xff] }
 0x442   :  { %v2897_v59 = vpop.f32.mrf.mxu1 }
 0x443   :  { %v2816_v8 = vadd.f32 %v2815_v43, %v2737_v18  ;;  %2945 = vmatmul.bf16.gmra.mxu2 %v10434_v10  ;;  %3103 = vmatmul.bf16.gmra.mxu0 %v10435_v14 }
 0x444   :  { %3024 = vmatmul.bf16.gmra.mxu3 %v10436_v27 }
 0x445   :  { %5276 = vmatmul.msk.bf16.gmra.mxu1 %vm1457_vm0, %v7790_v52  ;;  %v8515_v51 = vadd.f32 %v2894_v25, %v2816_v8  ;;  %v10437_v25 = vld [vmem:[#allocation94_spill] sm:$0xff] }
 0x446   :  { %v2660_v42 = vpop.f32.mrf.mxu2 }
 0x447   :  { %v2661_v20 = vadd.f32 %v2660_v42, %v8266_v5  ;;  %v2739_v3 = vpop.f32.mrf.mxu3  ;;  %v10439_v5 = vld [vmem:[#allocation93_spill] sm:$0xff] }
 0x448   :  { %v2820_v23 = vpop.f32.mrf.mxu0 }
 0x449   :  { %v2740_v21 = vadd.f32 %v2739_v3, %v2661_v20 }
 0x44a   :  { %v2899_v53 = vpop.f32.mrf.mxu1 }
 0x44b   :  { %v2819_v22 = vadd.f32 %v2818_v47, %v2740_v21 }
 0x44d   :  { %v8518_v57 = vadd.f32 %v2897_v59, %v2819_v22 }
 0x44e   :  { %v2662_v56 = vpop.f32.mrf.mxu2 }
 0x44f   :  { %v2663_v15 = vadd.f32 %v2662_v56, %v8277_v26  ;;  %v2741_v43 = vpop.f32.mrf.mxu3  ;;  %v10441_v56 = vld [vmem:[#allocation99_spill] sm:$0xff] }
 0x450   :  { %v2823_v62 = vpop.f32.mrf.mxu0 }
 0x451   :  { %v2742_v24 = vadd.f32 %v2741_v43, %v2663_v15 }
 0x452   :  { %v2902_v13 = vpop.f32.mrf.mxu1 }
 0x453   :  { %v2821_v52 = vadd.f32 %v2820_v23, %v2742_v24  ;;  %2950 = vmatmul.bf16.gmra.mxu2 %v10437_v25  ;;  %3108 = vmatmul.bf16.gmra.mxu0 %v10438_v60 }
 0x454   :  { %3029 = vmatmul.bf16.gmra.mxu3 %v10439_v5 }
 0x455   :  { %5277 = vmatmul.msk.bf16.gmra.mxu1 %vm1457_vm0, %v7821_v46  ;;  %v8526_v37 = vadd.f32 %v2899_v53, %v2821_v52  ;;  %v10440_v53 = vld [vmem:[#allocation98_spill] sm:$0xff] }
 0x456   :  { %v2665_v47 = vpop.f32.mrf.mxu2 }
 0x457   :  { %v2666_v18 = vadd.f32 %v2665_v47, %v8286_v54  ;;  %v2744_v26 = vpop.f32.mrf.mxu3  ;;  %v10442_v54 = vld [vmem:[#allocation97_spill] sm:$0xff] }
 0x458   :  { %v2825_v59 = vpop.f32.mrf.mxu0 }
 0x459   :  { %v2745_v8 = vadd.f32 %v2744_v26, %v2666_v18 }
 0x45a   :  { %v2904_v10 = vpop.f32.mrf.mxu1 }
 0x45b   :  { %v2824_v14 = vadd.f32 %v2823_v62, %v2745_v8 }
 0x45d   :  { %v8529_v27 = vadd.f32 %v2902_v13, %v2824_v14  ;;  %v10444_v14 = vld [vmem:[#allocation103_spill] sm:$0xff] }
 0x45e   :  { %v2667_v42 = vpop.f32.mrf.mxu2 }
 0x45f   :  { %v2668_v20 = vadd.f32 %v2667_v42, %v8291_v40  ;;  %v2746_v3 = vpop.f32.mrf.mxu3 }
 0x460   :  { %v2828_v23 = vpop.f32.mrf.mxu0 }
 0x461   :  { %v2747_v21 = vadd.f32 %v2746_v3, %v2668_v20 }
 0x462   :  { %v2907_v22 = vpop.f32.mrf.mxu1 }
 0x463   :  { %v2826_v46 = vadd.f32 %v2825_v59, %v2747_v21  ;;  %2955 = vmatmul.bf16.gmra.mxu2 %v10440_v53  ;;  %3113 = vmatmul.bf16.gmra.mxu0 %v10441_v56 }
 0x464   :  { %3034 = vmatmul.bf16.gmra.mxu3 %v10442_v54 }
 0x465   :  { %5278 = vmatmul.msk.bf16.gmra.mxu1 %vm1457_vm0, %v7852_v1  ;;  %v8537_v15 = vadd.f32 %v2904_v10, %v2826_v46  ;;  %v10443_v10 = vld [vmem:[#allocation102_spill] sm:$0xff] }
 0x466   :  { %v2670_v43 = vpop.f32.mrf.mxu2 }
 0x467   :  { %v2671_v62 = vadd.f32 %v2670_v43, %v8318_v49  ;;  %v2749_v40 = vpop.f32.mrf.mxu3  ;;  %v10445_v49 = vld [vmem:[#allocation101_spill] sm:$0xff] }
 0x468   :  { %v2830_v24 = vpop.f32.mrf.mxu0 }
 0x469   :  { %v2750_v13 = vadd.f32 %v2749_v40, %v2671_v62 }
 0x46a   :  { %v2909_v52 = vpop.f32.mrf.mxu1 }
 0x46b   :  { %v2829_v25 = vadd.f32 %v2828_v23, %v2750_v13  ;;  %v10446_v13 = vld [vmem:[#allocation106_spill] sm:$0xff] }
 0x46d   :  { %v8540_v60 = vadd.f32 %v2907_v22, %v2829_v25 }
 0x46e   :  { %v2672_v5 = vpop.f32.mrf.mxu2 }
 0x46f   :  { %v2673_v47 = vadd.f32 %v2672_v5, %v8329_v28  ;;  %v2751_v18 = vpop.f32.mrf.mxu3 }
 0x470   :  { %v2833_v26 = vpop.f32.mrf.mxu0 }
 0x471   :  { %v2752_v59 = vadd.f32 %v2751_v18, %v2673_v47 }
 0x472   :  { %v2912_v8 = vpop.f32.mrf.mxu1 }
 0x473   :  { %v2831_v1 = vadd.f32 %v2830_v24, %v2752_v59  ;;  %2960 = vmatmul.bf16.gmra.mxu2 %v10443_v10  ;;  %3118 = vmatmul.bf16.gmra.mxu0 %v10444_v14 }
 0x474   :  { %3039 = vmatmul.bf16.gmra.mxu3 %v10445_v49 }
 0x475   :  { %5279 = vmatmul.msk.bf16.gmra.mxu1 %vm1457_vm0, %v7889_v34  ;;  %v8548_v42 = vadd.f32 %v2909_v52, %v2831_v1  ;;  %v10447_v52 = vld [vmem:[#allocation107_spill] sm:$0xff] }
 0x476   :  { %v2675_v20 = vpop.f32.mrf.mxu2 }
 0x477   :  { %v2676_v3 = vadd.f32 %v2675_v20, %v8338_v35  ;;  %v2754_v28 = vpop.f32.mrf.mxu3  ;;  %v10448_v35 = vld [vmem:[#allocation105_spill] sm:$0xff] }
 0x478   :  { %v2835_v23 = vpop.f32.mrf.mxu0 }
 0x479   :  { %v2755_v21 = vadd.f32 %v2754_v28, %v2676_v3 }
 0x47a   :  { %v2914_v22 = vpop.f32.mrf.mxu1 }
 0x47b   :  { %v2834_v46 = vadd.f32 %v2833_v26, %v2755_v21  ;;  %v10450_v21 = vld [vmem:[#allocation111_spill] sm:$0xff] }
 0x47d   :  { %v8551_v53 = vadd.f32 %v2912_v8, %v2834_v46 }
 0x47e   :  { %v2677_v56 = vpop.f32.mrf.mxu2 }
 0x47f   :  { %v2678_v54 = vadd.f32 %v2677_v56, %v8343_v4  ;;  %v2756_v43 = vpop.f32.mrf.mxu3 }
 0x480   :  { %v2838_v62 = vpop.f32.mrf.mxu0 }
 0x481   :  { %v2757_v40 = vadd.f32 %v2756_v43, %v2678_v54 }
 0x482   :  { %v2917_v24 = vpop.f32.mrf.mxu1 }
 0x483   :  { %v2836_v34 = vadd.f32 %v2835_v23, %v2757_v40  ;;  %2965 = vmatmul.bf16.gmra.mxu2 %v10446_v13  ;;  %3123 = vmatmul.bf16.gmra.mxu0 %v10447_v52  ;;  %v10449_v23 = vld [vmem:[#allocation110_spill] sm:$0xff] }
 0x484   :  { %3044 = vmatmul.bf16.gmra.mxu3 %v10448_v35 }
 0x485   :  { %5280 = vmatmul.msk.bf16.gmra.mxu1 %vm1457_vm0, %v7914_v48  ;;  %v8559_v25 = vadd.f32 %v2914_v22, %v2836_v34 }
 0x486   :  { %v2680_v5 = vpop.f32.mrf.mxu2 }
 0x487   :  { %v2681_v47 = vadd.f32 %v2680_v5, %v8364_v9  ;;  %v2759_v4 = vpop.f32.mrf.mxu3  ;;  %v10451_v9 = vld [vmem:[#allocation109_spill] sm:$0xff] }
 0x488   :  { %v2840_v18 = vpop.f32.mrf.mxu0 }
 0x489   :  { %v2760_v26 = vadd.f32 %v2759_v4, %v2681_v47  ;;  %v3351_v47 = vmul.f32 %v7967_v30, %v7967_v30 }
 0x48a   :  { %v2919_v59 = vpop.f32.mrf.mxu1 }
 0x48b   :  { %v2839_v8 = vadd.f32 %v2838_v62, %v2760_v26 }
 0x48d   :  { %v8562_v1 = vadd.f32 %v2917_v24, %v2839_v8  ;;  %v10452_v8 = vld [vmem:[#allocation113_spill] sm:$0xff] }
 0x48e   :  { %v2682_v10 = vpop.f32.mrf.mxu2 }
 0x48f   :  { %v2683_v14 = vadd.f32 %v2682_v10, %v8375_v11  ;;  %v2761_v49 = vpop.f32.mrf.mxu3  ;;  %v10453_v10 = vld [vmem:[#allocation114_spill] sm:$0xff] }
 0x490   :  { %v3089_v20 = vpop.f32.mrf.mxu0 }
 0x491   :  { %v2762_v3 = vadd.f32 %v2761_v49, %v2683_v14  ;;  %v10454_v14 = vld [vmem:[#allocation112_spill] sm:$0xff] }
 0x492   :  { %v3168_v28 = vpop.f32.mrf.mxu1 }
 0x493   :  { %v2841_v48 = vadd.f32 %v2840_v18, %v2762_v3  ;;  %2970 = vmatmul.bf16.gmra.mxu2 %v10449_v23  ;;  %3128 = vmatmul.bf16.gmra.mxu0 %v10450_v21 }
 0x494   :  { %3049 = vmatmul.bf16.gmra.mxu3 %v10451_v9 }
 0x495   :  { %5281 = vmatmul.msk.bf16.gmra.mxu1 %vm1457_vm0, %v7957_v41  ;;  %v8570_v22 = vadd.f32 %v2919_v59, %v2841_v48 }
 0x496   :  { %v2931_v46 = vpop.f32.mrf.mxu2 }
 0x497   :  { %v2932_v56 = vadd.f32 %v2931_v46, %v8394_v39  ;;  %v3010_v11 = vpop.f32.mrf.mxu3  ;;  %v3353_v46 = vmul.f32 %v7990_v45, %v7990_v45 }
 0x498   :  { %v3091_v54 = vpop.f32.mrf.mxu0 }
 0x499   :  { %v3011_v43 = vadd.f32 %v3010_v11, %v2932_v56 }
 0x49a   :  { %v3170_v62 = vpop.f32.mrf.mxu1 }
 0x49b   :  { %v3090_v40 = vadd.f32 %v3089_v20, %v3011_v43 }
 0x49d   :  { %v8573_v24 = vadd.f32 %v3168_v28, %v3090_v40 }
 0x49e   :  { %v2933_v34 = vpop.f32.mrf.mxu2 }
 0x49f   :  { %v2934_v13 = vadd.f32 %v2933_v34, %v8407_v55  ;;  %v3012_v52 = vpop.f32.mrf.mxu3  ;;  %v3239_v41 = vsel %vm3238_vm1, %v8573_v24, 0.0  ;;  %v3352_v35 = vmul.f32 %v8573_v24, %v8573_v24 }
 0x4a0   :  { %v3094_v5 = vpop.f32.mrf.mxu0  ;;  %v3240_v39 = vadd.f32 %v3239_v41, %v7967_v30 }
 0x4a1   :  { %v3013_v4 = vadd.f32 %v3012_v52, %v2934_v13  ;;  %v3407_v26 = vsel %vm3238_vm1, %v3352_v35, 0.0 }
 0x4a2   :  { %v3173_v18 = vpop.f32.mrf.mxu1  ;;  %3241 = vadd.xlane.f32.xlu0 %v3240_v39  ;;  %v3408_v59 = vadd.f32 %v3407_v26, %v3351_v47  ;;  %v3355_v39 = vmul.f32 %v8008_v17, %v8008_v17  ;;  %v10456_v26 = vld [vmem:[#allocation116_spill] sm:$0xff] }
 0x4a3   :  { %v3092_v55 = vadd.f32 %v3091_v54, %v3013_v4  ;;  %2975 = vmatmul.bf16.gmra.mxu2 %v10452_v8  ;;  %3133 = vmatmul.bf16.gmra.mxu0 %v10453_v10 }
 0x4a4   :  { %3054 = vmatmul.bf16.gmra.mxu3 %v10454_v14  ;;  %3409 = vadd.xlane.f32.xlu1 %v3408_v59  ;;  %v10457_v59 = vld [vmem:[#allocation117_spill] sm:$0xff] }
 0x4a5   :  { %v8587_v49 = vadd.f32 %v3170_v62, %v3092_v55  ;;  %5282 = vmatmul.msk.bf16.gmra.mxu1 %vm1457_vm0, %v7992_v6  ;;  %v10458_v55 = vld [vmem:[#allocation115_spill] sm:$0xff] }
 0x4a6   :  { %v2936_v20 = vpop.f32.mrf.mxu2 }
 0x4a7   :  { %10455 = vst [vmem:[#allocation15_spill] sm:$0xff] %v8587_v49  ;;  %v2937_v3 = vadd.f32 %v2936_v20, %v8416_v63  ;;  %v3015_v28 = vpop.f32.mrf.mxu3  ;;  %v3243_v48 = vsel %vm3238_vm1, %v8587_v49, 0.0  ;;  %v3354_v23 = vmul.f32 %v8587_v49, %v8587_v49 }
 0x4a8   :  { %v3096_v21 = vpop.f32.mrf.mxu0  ;;  %v3244_v9 = vadd.f32 %v3243_v48, %v7990_v45 }
 0x4a9   :  { %v3016_v56 = vadd.f32 %v3015_v28, %v2937_v3  ;;  %v3411_v6 = vsel %vm3238_vm1, %v3354_v23, 0.0 }
 0x4aa   :  { %v3175_v11 = vpop.f32.mrf.mxu1  ;;  %3245 = vadd.xlane.f32.xlu0 %v3244_v9  ;;  %v3412_v54 = vadd.f32 %v3411_v6, %v3353_v46 }
 0x4ab   :  { %v3095_v63 = vadd.f32 %v3094_v5, %v3016_v56 }
 0x4ac   :  { %3413 = vadd.xlane.f32.xlu2 %v3412_v54 }
 0x4ad   :  { %v8600_v43 = vadd.f32 %v3173_v18, %v3095_v63 }
 0x4ae   :  { %v2938_v62 = vpop.f32.mrf.mxu2 }
 0x4af   :  { %v2939_v40 = vadd.f32 %v2938_v62, %v8423_v33  ;;  %v3017_v34 = vpop.f32.mrf.mxu3  ;;  %v3247_v13 = vsel %vm3238_vm1, %v8600_v43, 0.0  ;;  %v3356_v52 = vmul.f32 %v8600_v43, %v8600_v43 }
 0x4b0   :  { %v3099_v41 = vpop.f32.mrf.mxu0  ;;  %v3248_v35 = vadd.f32 %v3247_v13, %v8008_v17 }
 0x4b1   :  { %v3018_v5 = vadd.f32 %v3017_v34, %v2939_v40  ;;  %v3415_v4 = vsel %vm3238_vm1, %v3356_v52, 0.0  ;;  %v10459_v40 = vld [vmem:[#allocation9_spill] sm:$0xff] }
 0x4b2   :  { %v3178_v47 = vpop.f32.mrf.mxu1  ;;  %3249 = vadd.xlane.f32.xlu1 %v3248_v35  ;;  %v3416_v18 = vadd.f32 %v3415_v4, %v3355_v39 }
 0x4b3   :  { %v3097_v33 = vadd.f32 %v3096_v21, %v3018_v5  ;;  %2980 = vmatmul.bf16.gmra.mxu2 %v10456_v26  ;;  %3138 = vmatmul.bf16.gmra.mxu0 %v10457_v59  ;;  %v10460_v5 = vld [vmem:[#allocation120_spill] sm:$0xff]  ;;  %v3359_v59 = vmul.f32 %v10459_v40, %v10459_v40 }
 0x4b4   :  { %3417 = vadd.xlane.f32.xlu0 %v3416_v18  ;;  %3059 = vmatmul.bf16.gmra.mxu3 %v10458_v55 }
 0x4b5   :  { %v8614_v8 = vadd.f32 %v3175_v11, %v3097_v33  ;;  %5283 = vmatmul.msk.bf16.gmra.mxu1 %vm1457_vm0, %v8027_v32  ;;  %v10464_v33 = vld [vmem:[#allocation14_spill] sm:$0xff] }
 0x4b6   :  { %v2941_v10 = vpop.f32.mrf.mxu2 }
 0x4b7   :  { %v2942_v14 = vadd.f32 %v2941_v10, %v8438_v12  ;;  %v3020_v20 = vpop.f32.mrf.mxu3  ;;  %v3251_v3 = vsel %vm3238_vm1, %v8614_v8, 0.0  ;;  %v3358_v9 = vmul.f32 %v8614_v8, %v8614_v8  ;;  %v3357_v12 = vmul.f32 %v8025_v36, %v8025_v36 }
 0x4b8   :  { %v3101_v28 = vpop.f32.mrf.mxu0  ;;  %v3252_v48 = vadd.f32 %v3251_v3, %v8025_v36 }
 0x4b9   :  { %v3021_v23 = vadd.f32 %v3020_v20, %v2942_v14  ;;  %v3419_v32 = vsel %vm3238_vm1, %v3358_v9, 0.0 }
 0x4ba   :  { %v3180_v21 = vpop.f32.mrf.mxu1  ;;  %3253 = vadd.xlane.f32.xlu1 %v3252_v48  ;;  %v3420_v13 = vadd.f32 %v3419_v32, %v3357_v12 }
 0x4bb   :  { %v3100_v46 = vadd.f32 %v3099_v41, %v3021_v23 }
 0x4bd   :  { %v8624_v56 = vadd.f32 %v3178_v47, %v3100_v46  ;;  %v10461_v47 = vld [vmem:[#allocation121_spill] sm:$0xff] }
 0x4be   :  { %v2943_v11 = vpop.f32.mrf.mxu2 }
 0x4bf   :  { %v2944_v6 = vadd.f32 %v2943_v11, %v8451_v16  ;;  %v3022_v54 = vpop.f32.mrf.mxu3  ;;  %v3255_v63 = vsel %vm3238_vm1, %v8624_v56, 0.0  ;;  %v3360_v35 = vmul.f32 %v8624_v56, %v8624_v56  ;;  %v10462_v16 = vld [vmem:[#allocation119_spill] sm:$0xff] }
 0x4c0   :  { %v3104_v62 = vpop.f32.mrf.mxu0  ;;  %v3256_v34 = vadd.f32 %v3255_v63, %v10459_v40 }
 0x4c1   :  { %v3023_v52 = vadd.f32 %v3022_v54, %v2944_v6  ;;  %v3423_v18 = vsel %vm3238_vm1, %v3360_v35, 0.0 }
 0x4c2   :  { %v3183_v41 = vpop.f32.mrf.mxu1  ;;  %3257 = vadd.xlane.f32.xlu2 %v3256_v34  ;;  %3421 = vadd.xlane.f32.xlu1 %v3420_v13  ;;  %v3424_v3 = vadd.f32 %v3423_v18, %v3359_v59  ;;  %v10468_v18 = vld [vmem:[#allocation124_spill] sm:$0xff]  ;;  %v10471_v59 = vld [vmem:[#allocation123_spill] sm:$0xff] }
 0x4c3   :  { %v3102_v39 = vadd.f32 %v3101_v28, %v3023_v52  ;;  %2985 = vmatmul.bf16.gmra.mxu2 %v10460_v5  ;;  %3143 = vmatmul.bf16.gmra.mxu0 %v10461_v47  ;;  %v10465_v28 = vld [vmem:[#allocation32_spill] sm:$0xff] }
 0x4c4   :  { %3064 = vmatmul.bf16.gmra.mxu3 %v10462_v16  ;;  %v3361_v48 = vmul.f32 %v10465_v28, %v10465_v28 }
 0x4c5   :  { %v8638_v4 = vadd.f32 %v3180_v21, %v3102_v39  ;;  %5284 = vmatmul.msk.bf16.gmra.mxu1 %vm1457_vm0, %v10464_v33  ;;  %v10469_v33 = vld [vmem:[#allocation125_spill] sm:$0xff] }
 0x4c6   :  { %v2946_v26 = vpop.f32.mrf.mxu2 }
 0x4c7   :  { %10463 = vst [vmem:[#allocation68_spill] sm:$0xff] %v8638_v4  ;;  %v2947_v55 = vadd.f32 %v2946_v26, %v8454_v0  ;;  %v3025_v10 = vpop.f32.mrf.mxu3  ;;  %v3362_v14 = vmul.f32 %v8638_v4, %v8638_v4  ;;  %v3259_v0 = vsel %vm3238_vm1, %v8638_v4, 0.0 }
 0x4c8   :  { %v3106_v20 = vpop.f32.mrf.mxu0  ;;  %v3260_v52 = vadd.f32 %v3259_v0, %v10465_v28 }
 0x4c9   :  { %v3026_v23 = vadd.f32 %v3025_v10, %v2947_v55  ;;  %v3427_v9 = vsel %vm3238_vm1, %v3362_v14, 0.0  ;;  %v10472_v55 = vld [vmem:[#allocation18_spill] sm:$0xff] }
 0x4ca   :  { %v3185_v21 = vpop.f32.mrf.mxu1  ;;  %3425 = vadd.xlane.f32.xlu2 %v3424_v3  ;;  %v3428_v46 = vadd.f32 %v3427_v9, %v3361_v48  ;;  %v10473_v9 = vld [vmem:[#allocation36_spill] sm:$0xff] }
 0x4cb   :  { %v3105_v32 = vadd.f32 %v3104_v62, %v3026_v23  ;;  %v10467_v62 = vld [vmem:[#allocation12_spill] sm:$0xff] }
 0x4cc   :  { %3429 = vadd.xlane.f32.xlu0 %v3428_v46 }
 0x4cd   :  { %v8651_v11 = vadd.f32 %v3183_v41, %v3105_v32  ;;  %v3363_v41 = vmul.f32 %v10467_v62, %v10467_v62 }
 0x4ce   :  { %v2948_v12 = vpop.f32.mrf.mxu2 }
 0x4cf   :  { %10466 = vst [vmem:[#allocation21_spill] sm:$0xff] %v8651_v11  ;;  %v2949_v6 = vadd.f32 %v2948_v12, %v8461_v38  ;;  %v3027_v54 = vpop.f32.mrf.mxu3  ;;  %v3364_v63 = vmul.f32 %v8651_v11, %v8651_v11  ;;  %v3263_v34 = vsel %vm3238_vm1, %v8651_v11, 0.0 }
 0x4d0   :  { %v3109_v13 = vpop.f32.mrf.mxu0  ;;  %v3264_v38 = vadd.f32 %v3263_v34, %v10467_v62 }
 0x4d1   :  { %v3028_v35 = vadd.f32 %v3027_v54, %v2949_v6  ;;  %v3431_v5 = vsel %vm3238_vm1, %v3364_v63, 0.0 }
 0x4d2   :  { %v3188_v39 = vpop.f32.mrf.mxu1  ;;  %3261 = vadd.xlane.f32.xlu2 %v3260_v52  ;;  %v3432_v47 = vadd.f32 %v3431_v5, %v3363_v41 }
 0x4d3   :  { %v3107_v16 = vadd.f32 %v3106_v20, %v3028_v35  ;;  %2990 = vmatmul.bf16.gmra.mxu2 %v10468_v18  ;;  %3148 = vmatmul.bf16.gmra.mxu0 %v10469_v33 }
 0x4d4   :  { %3433 = vadd.xlane.f32.xlu1 %v3432_v47  ;;  %3265 = vadd.xlane.f32.xlu0 %v3264_v38  ;;  %v10475_v47 = vld [vmem:[#allocation16_spill] sm:$0xff] }
 0x4d5   :  { %v8667_v26 = vadd.f32 %v3185_v21, %v3107_v16  ;;  %3069 = vmatmul.bf16.gmra.mxu3 %v10471_v59  ;;  %5285 = vmatmul.msk.bf16.gmra.mxu1 %vm1457_vm0, %v10472_v55  ;;  %v3365_v21 = vmul.f32 %v10473_v9, %v10473_v9  ;;  %v3367_v38 = vmul.f32 %v10475_v47, %v10475_v47  ;;  %v10477_v55 = vld [vmem:[#allocation128_spill] sm:$0xff] }
 0x4d6   :  { %v2951_v10 = vpop.f32.mrf.mxu2 }
 0x4d7   :  { %10470 = vst [vmem:[#allocation19_spill] sm:$0xff] %v8667_v26  ;;  %v2952_v14 = vadd.f32 %v2951_v10, %v8464_v7  ;;  %v3030_v3 = vpop.f32.mrf.mxu3  ;;  %v3366_v20 = vmul.f32 %v8667_v26, %v8667_v26  ;;  %v3267_v48 = vsel %vm3238_vm1, %v8667_v26, 0.0 }
 0x4d8   :  { %v3111_v23 = vpop.f32.mrf.mxu0  ;;  %v3268_v6 = vadd.f32 %v3267_v48, %v10473_v9 }
 0x4d9   :  { %v3031_v46 = vadd.f32 %v3030_v3, %v2952_v14  ;;  %v3435_v0 = vsel %vm3238_vm1, %v3366_v20, 0.0  ;;  %v10479_v14 = vld [vmem:[#allocation126_spill] sm:$0xff] }
 0x4da   :  { %v3190_v32 = vpop.f32.mrf.mxu1  ;;  %v3436_v12 = vadd.f32 %v3435_v0, %v3365_v21  ;;  %v10480_v3 = vld [vmem:[#allocation22_spill] sm:$0xff] }
 0x4db   :  { %v3110_v54 = vadd.f32 %v3109_v13, %v3031_v46 }
 0x4dc   :  { %3437 = vadd.xlane.f32.xlu2 %v3436_v12  ;;  %3269 = vadd.xlane.f32.xlu1 %v3268_v6  ;;  %v10481_v12 = vld [vmem:[#allocation40_spill] sm:$0xff] }
 0x4dd   :  { %v8681_v7 = vadd.f32 %v3188_v39, %v3110_v54 }
 0x4de   :  { %v2953_v63 = vpop.f32.mrf.mxu2 }
 0x4df   :  { %10474 = vst [vmem:[#allocation72_spill] sm:$0xff] %v8681_v7  ;;  %v2954_v34 = vadd.f32 %v2953_v63, %v8471_v58  ;;  %v3032_v52 = vpop.f32.mrf.mxu3  ;;  %v3271_v41 = vsel %vm3238_vm1, %v8681_v7, 0.0  ;;  %v3368_v35 = vmul.f32 %v8681_v7, %v8681_v7  ;;  %v10476_v58 = vld [vmem:[#allocation127_spill] sm:$0xff] }
 0x4e0   :  { %v3114_v5 = vpop.f32.mrf.mxu0  ;;  %v3272_v39 = vadd.f32 %v3271_v41, %v10475_v47 }
 0x4e1   :  { %v3033_v16 = vadd.f32 %v3032_v52, %v2954_v34  ;;  %v3439_v18 = vsel %vm3238_vm1, %v3368_v35, 0.0 }
 0x4e2   :  { %v3193_v13 = vpop.f32.mrf.mxu1  ;;  %v3440_v33 = vadd.f32 %v3439_v18, %v3367_v38 }
 0x4e3   :  { %v3112_v59 = vadd.f32 %v3111_v23, %v3033_v16  ;;  %2995 = vmatmul.bf16.gmra.mxu2 %v10476_v58  ;;  %3153 = vmatmul.bf16.gmra.mxu0 %v10477_v55 }
 0x4e4   :  { %3273 = vadd.xlane.f32.xlu2 %v3272_v39  ;;  %3441 = vadd.xlane.f32.xlu0 %v3440_v33 }
 0x4e5   :  { %v8694_v10 = vadd.f32 %v3190_v32, %v3112_v59  ;;  %3074 = vmatmul.bf16.gmra.mxu3 %v10479_v14  ;;  %5286 = vmatmul.msk.bf16.gmra.mxu1 %vm1457_vm0, %v10480_v3  ;;  %v3369_v32 = vmul.f32 %v10481_v12, %v10481_v12  ;;  %v10483_v59 = vld [vmem:[#allocation20_spill] sm:$0xff] }
 0x4e6   :  { %v2956_v20 = vpop.f32.mrf.mxu2  ;;  %v3371_v58 = vmul.f32 %v10483_v59, %v10483_v59 }
 0x4e7   :  { %10478 = vst [vmem:[#allocation24_spill] sm:$0xff] %v8694_v10  ;;  %v2957_v48 = vadd.f32 %v2956_v20, %v8474_v44  ;;  %v3035_v21 = vpop.f32.mrf.mxu3  ;;  %v3370_v23 = vmul.f32 %v8694_v10, %v8694_v10  ;;  %v3275_v46 = vsel %vm3238_vm1, %v8694_v10, 0.0 }
 0x4e8   :  { %v3116_v0 = vpop.f32.mrf.mxu0  ;;  %v3276_v52 = vadd.f32 %v3275_v46, %v10481_v12 }
 0x4e9   :  { %v3036_v6 = vadd.f32 %v3035_v21, %v2957_v48  ;;  %v3443_v63 = vsel %vm3238_vm1, %v3370_v23, 0.0 }
 0x4ea   :  { %v3195_v54 = vpop.f32.mrf.mxu1  ;;  %v3444_v34 = vadd.f32 %v3443_v63, %v3369_v32  ;;  %v10485_v63 = vld [vmem:[#allocation44_spill] sm:$0xff] }
 0x4eb   :  { %v3115_v41 = vadd.f32 %v3114_v5, %v3036_v6 }
 0x4ec   :  { %3445 = vadd.xlane.f32.xlu1 %v3444_v34  ;;  %3277 = vadd.xlane.f32.xlu0 %v3276_v52  ;;  %v3373_v34 = vmul.f32 %v10485_v63, %v10485_v63 }
 0x4ed   :  { %v8708_v44 = vadd.f32 %v3193_v13, %v3115_v41 }
 0x4ee   :  { %v2958_v35 = vpop.f32.mrf.mxu2 }
 0x4ef   :  { %10482 = vst [vmem:[#allocation25_spill] sm:$0xff] %v8708_v44  ;;  %v2959_v38 = vadd.f32 %v2958_v35, %v8482_v50  ;;  %v3037_v16 = vpop.f32.mrf.mxu3  ;;  %v3372_v18 = vmul.f32 %v8708_v44, %v8708_v44  ;;  %v3279_v39 = vsel %vm3238_vm1, %v8708_v44, 0.0 }
 0x4f0   :  { %v3119_v33 = vpop.f32.mrf.mxu0  ;;  %v3280_v3 = vadd.f32 %v3279_v39, %v10483_v59 }
 0x4f1   :  { %v3038_v55 = vadd.f32 %v3037_v16, %v2959_v38  ;;  %v3447_v14 = vsel %vm3238_vm1, %v3372_v18, 0.0 }
 0x4f2   :  { %v3198_v5 = vpop.f32.mrf.mxu1  ;;  %v3448_v13 = vadd.f32 %v3447_v14, %v3371_v58  ;;  %v10487_v14 = vld [vmem:[#allocation3_spill] sm:$0xff] }
 0x4f3   :  { %v3117_v20 = vadd.f32 %v3116_v0, %v3038_v55 }
 0x4f4   :  { %3449 = vadd.xlane.f32.xlu2 %v3448_v13  ;;  %3281 = vadd.xlane.f32.xlu1 %v3280_v3  ;;  %v3375_v13 = vmul.f32 %v10487_v14, %v10487_v14 }
 0x4f5   :  { %v8719_v50 = vadd.f32 %v3195_v54, %v3117_v20 }
 0x4f6   :  { %v2961_v48 = vpop.f32.mrf.mxu2 }
 0x4f7   :  { %10484 = vst [vmem:[#allocation23_spill] sm:$0xff] %v8719_v50  ;;  %v2962_v21 = vadd.f32 %v2961_v48, %v8485_v19  ;;  %v3040_v23 = vpop.f32.mrf.mxu3  ;;  %v3283_v46 = vsel %vm3238_vm1, %v8719_v50, 0.0  ;;  %v3374_v32 = vmul.f32 %v8719_v50, %v8719_v50 }
 0x4f8   :  { %v3121_v6 = vpop.f32.mrf.mxu0  ;;  %v3284_v54 = vadd.f32 %v3283_v46, %v10485_v63 }
 0x4f9   :  { %v3041_v52 = vadd.f32 %v3040_v23, %v2962_v21  ;;  %v3451_v0 = vsel %vm3238_vm1, %v3374_v32, 0.0 }
 0x4fa   :  { %v3200_v41 = vpop.f32.mrf.mxu1  ;;  %v3452_v35 = vadd.f32 %v3451_v0, %v3373_v34 }
 0x4fb   :  { %v3120_v38 = vadd.f32 %v3119_v33, %v3041_v52 }
 0x4fc   :  { %3285 = vadd.xlane.f32.xlu2 %v3284_v54  ;;  %3453 = vadd.xlane.f32.xlu0 %v3452_v35  ;;  %v10489_v54 = vld [vmem:[#allocation2_spill] sm:$0xff] }
 0x4fd   :  { %v8730_v19 = vadd.f32 %v3198_v5, %v3120_v38  ;;  %v3377_v35 = vmul.f32 %v10489_v54, %v10489_v54 }
 0x4fe   :  { %v2963_v16 = vpop.f32.mrf.mxu2 }
 0x4ff   :  { %10486 = vst [vmem:[#allocation76_spill] sm:$0xff] %v8730_v19  ;;  %v2964_v18 = vadd.f32 %v2963_v16, %v8493_v29  ;;  %v3042_v39 = vpop.f32.mrf.mxu3  ;;  %v3376_v58 = vmul.f32 %v8730_v19, %v8730_v19  ;;  %v3287_v55 = vsel %vm3238_vm1, %v8730_v19, 0.0 }
 0x500   :  { %v3124_v20 = vpop.f32.mrf.mxu0  ;;  %v3288_v5 = vadd.f32 %v3287_v55, %v10487_v14 }
 0x501   :  { %v3043_v3 = vadd.f32 %v3042_v39, %v2964_v18  ;;  %v3455_v33 = vsel %vm3238_vm1, %v3376_v58, 0.0 }
 0x502   :  { %v3456_v48 = vadd.f32 %v3455_v33, %v3375_v13  ;;  %v3203_v23 = vpop.f32.mrf.mxu1 }
 0x503   :  { %v3122_v21 = vadd.f32 %v3121_v6, %v3043_v3 }
 0x504   :  { %3457 = vadd.xlane.f32.xlu1 %v3456_v48  ;;  %3289 = vadd.xlane.f32.xlu0 %v3288_v5  ;;  %v10491_v5 = vld [vmem:[#allocation48_spill] sm:$0xff] }
 0x505   :  { %v8741_v29 = vadd.f32 %v3200_v41, %v3122_v21  ;;  %v3379_v21 = vmul.f32 %v10491_v5, %v10491_v5 }
 0x506   :  { %v2966_v46 = vpop.f32.mrf.mxu2 }
 0x507   :  { %10488 = vst [vmem:[#allocation27_spill] sm:$0xff] %v8741_v29  ;;  %v2967_v32 = vadd.f32 %v2966_v46, %v8496_v31  ;;  %v3045_v34 = vpop.f32.mrf.mxu3  ;;  %v3378_v52 = vmul.f32 %v8741_v29, %v8741_v29  ;;  %v3291_v0 = vsel %vm3238_vm1, %v8741_v29, 0.0 }
 0x508   :  { %v3292_v41 = vadd.f32 %v3291_v0, %v10489_v54  ;;  %v3126_v39 = vpop.f32.mrf.mxu0 }
 0x509   :  { %v3046_v38 = vadd.f32 %v3045_v34, %v2967_v32  ;;  %v3459_v6 = vsel %vm3238_vm1, %v3378_v52, 0.0 }
 0x50a   :  { %v3460_v16 = vadd.f32 %v3459_v6, %v3377_v35  ;;  %v3205_v58 = vpop.f32.mrf.mxu1 }
 0x50b   :  { %v3125_v18 = vadd.f32 %v3124_v20, %v3046_v38 }
 0x50c   :  { %3461 = vadd.xlane.f32.xlu2 %v3460_v16  ;;  %3293 = vadd.xlane.f32.xlu1 %v3292_v41 }
 0x50d   :  { %v8752_v31 = vadd.f32 %v3203_v23, %v3125_v18 }
 0x50e   :  { %v2968_v55 = vpop.f32.mrf.mxu2 }
 0x50f   :  { %10490 = vst [vmem:[#allocation28_spill] sm:$0xff] %v8752_v31  ;;  %v2969_v13 = vadd.f32 %v2968_v55, %v8504_v61  ;;  %v3047_v3 = vpop.f32.mrf.mxu3  ;;  %v3380_v33 = vmul.f32 %v8752_v31, %v8752_v31  ;;  %v3295_v48 = vsel %vm3238_vm1, %v8752_v31, 0.0 }
 0x510   :  { %v3296_v23 = vadd.f32 %v3295_v48, %v10491_v5  ;;  %v3129_v0 = vpop.f32.mrf.mxu0 }
 0x511   :  { %v3048_v20 = vadd.f32 %v3047_v3, %v2969_v13  ;;  %v3463_v46 = vsel %vm3238_vm1, %v3380_v33, 0.0  ;;  %v10493_v3 = vld [vmem:[#allocation5_spill] sm:$0xff] }
 0x512   :  { %v3464_v32 = vadd.f32 %v3463_v46, %v3379_v21  ;;  %v3381_v33 = vmul.f32 %v10493_v3, %v10493_v3 }
 0x513   :  { %v3127_v34 = vadd.f32 %v3126_v39, %v3048_v20  ;;  %v3208_v39 = vpop.f32.mrf.mxu1 }
 0x514   :  { %3465 = vadd.xlane.f32.xlu0 %v3464_v32  ;;  %3297 = vadd.xlane.f32.xlu2 %v3296_v23 }
 0x515   :  { %v8763_v61 = vadd.f32 %v3205_v58, %v3127_v34  ;;  %v3242_v52 = vpop.xlane.xlu0 %3241 }
 0x516   :  { %v8765_v35 = vmul.f32 0.0051020407, %v3242_v52  ;;  %v2971_v38 = vpop.f32.mrf.mxu2 }
 0x517   :  { %10492 = vst [vmem:[#allocation26_spill] sm:$0xff] %v8763_v61  ;;  %v2972_v6 = vadd.f32 %v2971_v38, %v8507_v2  ;;  %v3050_v16 = vpop.f32.mrf.mxu3  ;;  %v3410_v41 = vpop.xlane.xlu1 %3409  ;;  %v3299_v18 = vsel %vm3238_vm1, %v8763_v61, 0.0  ;;  %v3382_v55 = vmul.f32 %v8763_v61, %v8763_v61 }
 0x518   :  { %v3575_v58 = vmul.f32 %v8765_v35, %v8765_v35  ;;  %v3547_v13 = vmul.f32 0.0051020407, %v3410_v41  ;;  %v3300_v20 = vadd.f32 %v3299_v18, %v10493_v3 }
 0x519   :  { %v3051_v48 = vadd.f32 %v3050_v16, %v2972_v6  ;;  %v3467_v21 = vsel %vm3238_vm1, %v3382_v55, 0.0 }
 0x51a   :  { %v3603_v2 = vsub.f32 %v3547_v13, %v3575_v58  ;;  %v3468_v46 = vadd.f32 %v3467_v21, %v3381_v33  ;;  %v10495_v33 = vld [vmem:[#allocation4_spill] sm:$0xff] }
 0x51b   :  { %v3130_v32 = vadd.f32 %v3129_v0, %v3051_v48  ;;  %v3383_v48 = vmul.f32 %v10495_v33, %v10495_v33 }
 0x51c   :  { %v3631_v23 = vmax.f32 %v3603_v2, 0.0  ;;  %3301 = vadd.xlane.f32.xlu0 %v3300_v20  ;;  %3469 = vadd.xlane.f32.xlu1 %v3468_v46 }
 0x51d   :  { %v8778_v34 = vadd.f32 %v3208_v39, %v3130_v32  ;;  %v3246_v52 = vpop.xlane.xlu0 %3245  ;;  %v3131_v39 = vpop.f32.mrf.mxu0 }
 0x51e   :  { %v8780_v38 = vadd.f32 0.001, %v3631_v23  ;;  %v8782_v41 = vmul.f32 0.0051020407, %v3246_v52  ;;  %v2973_v31 = vpop.f32.mrf.mxu2 }
 0x51f   :  { %10494 = vst [vmem:[#allocation80_spill] sm:$0xff] %v8778_v34  ;;  %v2974_v6 = vadd.f32 %v2973_v31, %v8515_v51  ;;  %v3052_v16 = vpop.f32.mrf.mxu3  ;;  %v3414_v55 = vpop.xlane.xlu2 %3413  ;;  %v3384_v18 = vmul.f32 %v8778_v34, %v8778_v34  ;;  %v3303_v0 = vsel %vm3238_vm1, %v8778_v34, 0.0 }
 0x520   :  { %5488 = vrsqrt.f32 %v8780_v38  ;;  %v3576_v58 = vmul.f32 %v8782_v41, %v8782_v41  ;;  %v3548_v13 = vmul.f32 0.0051020407, %v3414_v55  ;;  %v3210_v31 = vpop.f32.mrf.mxu1  ;;  %v3304_v46 = vadd.f32 %v3303_v0, %v10495_v33 }
 0x521   :  { %v3053_v21 = vadd.f32 %v3052_v16, %v2974_v6  ;;  %v3471_v51 = vsel %vm3238_vm1, %v3384_v18, 0.0  ;;  %vm3721_vm3 = vweird.f32 %v8780_v38 }
 0x522   :  { %v3604_v2 = vsub.f32 %v3548_v13, %v3576_v58  ;;  %v3472_v20 = vadd.f32 %v3471_v51, %v3383_v48  ;;  %v10497_v51 = vld [vmem:[#allocation52_spill] sm:$0xff] }
 0x523   :  { %v3132_v32 = vadd.f32 %v3131_v39, %v3053_v21 }
 0x524   :  { %v3632_v23 = vmax.f32 %v3604_v2, 0.0  ;;  %3473 = vadd.xlane.f32.xlu2 %v3472_v20  ;;  %3305 = vadd.xlane.f32.xlu1 %v3304_v46 }
 0x525   :  { %v8796_v52 = vadd.f32 %v3210_v31, %v3132_v32  ;;  %v3250_v5 = vpop.xlane.xlu1 %3249  ;;  %v3134_v13 = vpop.f32.mrf.mxu0 }
 0x526   :  { %v8798_v50 = vpop.eup %5488  ;;  %v8800_v55 = vadd.f32 0.001, %v3632_v23  ;;  %v8802_v63 = vmul.f32 0.0051020407, %v3250_v5  ;;  %v2976_v6 = vpop.f32.mrf.mxu2  ;;  %v3385_v5 = vmul.f32 %v10497_v51, %v10497_v51 }
 0x527   :  { %10496 = vst [vmem:[#allocation30_spill] sm:$0xff] %v8796_v52  ;;  %v3716_v16 = vmul.f32 %v8798_v50, %v8780_v38  ;;  %v2977_v18 = vadd.f32 %v2976_v6, %v8518_v57  ;;  %v3055_v0 = vpop.f32.mrf.mxu3  ;;  %v3418_v39 = vpop.xlane.xlu0 %3417  ;;  %v3386_v58 = vmul.f32 %v8796_v52, %v8796_v52  ;;  %v3307_v57 = vsel %vm3238_vm1, %v8796_v52, 0.0 }
 0x528   :  { %v3577_v48 = vmul.f32 %v8802_v63, %v8802_v63  ;;  %v3549_v21 = vmul.f32 0.0051020407, %v3418_v39  ;;  %5490 = vrsqrt.f32 %v8800_v55  ;;  %v3213_v20 = vpop.f32.mrf.mxu1  ;;  %v3308_v23 = vadd.f32 %v3307_v57, %v10497_v51 }
 0x529   :  { %v3056_v31 = vadd.f32 %v3055_v0, %v2977_v18  ;;  %v3475_v2 = vsel %vm3238_vm1, %v3386_v58, 0.0  ;;  %v3717_v6 = vmul.f32 %v8798_v50, %v3716_v16  ;;  %v10137_v39 = vmov 0  }
 0x52a   :  { %v3605_v46 = vsub.f32 %v3549_v21, %v3577_v48  ;;  %v3476_v32 = vadd.f32 %v3475_v2, %v3385_v5  ;;  %5460 = vset.pattern.permute.xlu0 %v10137_v39  ;;  %5462 = vset.pattern.permute.xlu1 %v10137_v39  ;;  %vm3722_vm2 = vweird.f32 %v8798_v50  ;;  %vm3731_vm6 = vweird.f32 %v8800_v55 }
 0x52b   :  { %v3135_v34 = vadd.f32 %v3134_v13, %v3056_v31  ;;  %5461 = vset.pattern.permute.xlu2 %v10137_v39  ;;  %v3718_v21 = vmul.f32 0.5, %v3717_v6  ;;  %vm3723_vm4 = vmor %vm3721_vm3, %vm3722_vm2 }
 0x52c   :  { %3477 = vadd.xlane.f32.xlu0 %v3476_v32  ;;  %3309 = vadd.xlane.f32.xlu2 %v3308_v23  ;;  %v3633_v0 = vmax.f32 %v3605_v46, 0.0 }
 0x52d   :  { %v8821_v18 = vadd.f32 %v3213_v20, %v3135_v34  ;;  %v3136_v32 = vpop.f32.mrf.mxu0  ;;  %v10499_v34 = vld [vmem:[#allocation7_spill] sm:$0xff]  ;;  %v3719_v23 = vsub.f32 1.5, %v3718_v21 }
 0x52e   :  { %v2978_v58 = vpop.f32.mrf.mxu2  ;;  %v5491_v48 = vpop.eup %5490  ;;  %v3689_v31 = vadd.f32 0.001, %v3633_v0  ;;  %v3387_v46 = vmul.f32 %v10499_v34, %v10499_v34 }
 0x52f   :  { %10498 = vst [vmem:[#allocation31_spill] sm:$0xff] %v8821_v18  ;;  %v2979_v5 = vadd.f32 %v2978_v58, %v8526_v37  ;;  %v3311_v16 = vsel %vm3238_vm1, %v8821_v18, 0.0  ;;  %v3057_v13 = vpop.f32.mrf.mxu3  ;;  %v3388_v57 = vmul.f32 %v8821_v18, %v8821_v18  ;;  %v3726_v6 = vmul.f32 %v5491_v48, %v8800_v55  ;;  %v3661_v55 = vld [vmem:[%s9976_s2 + $0x10] sm:$0xff] }
 0x530   :  { %v3312_v20 = vadd.f32 %v3311_v16, %v10499_v34  ;;  %v3215_v58 = vpop.f32.mrf.mxu1  ;;  %5492 = vrsqrt.f32 %v3689_v31  ;;  %v3720_v16 = vmul.f32 %v8798_v50, %v3719_v23  ;;  %vm3732_vm5 = vweird.f32 %v5491_v48 }
 0x531   :  { %v3058_v2 = vadd.f32 %v3057_v13, %v2979_v5  ;;  %v3479_v37 = vsel %vm3238_vm1, %v3388_v57, 0.0  ;;  %v3727_v5 = vmul.f32 %v5491_v48, %v3726_v6  ;;  %v3659_v57 = vld [vmem:[%s9976_s2] sm:$0xff]  ;;  %vm3733_vm7 = vmor %vm3731_vm6, %vm3732_vm5  ;;  %vm3741_vm9 = vweird.f32 %v3689_v31 }
 0x532   :  { %v3480_v52 = vadd.f32 %v3479_v37, %v3387_v46 }
 0x533   :  { %v3137_v39 = vadd.f32 %v3136_v32, %v3058_v2  ;;  %v3728_v2 = vmul.f32 0.5, %v3727_v5 }
 0x534   :  { %3313 = vadd.xlane.f32.xlu0 %v3312_v20  ;;  %3481 = vadd.xlane.f32.xlu1 %v3480_v52  ;;  %v10501_v52 = vld [vmem:[#allocation6_spill] sm:$0xff] }
 0x535   :  { %v8834_v0 = vadd.f32 %v3215_v58, %v3137_v39  ;;  %v3724_v39 = vsel %vm3723_vm4, %v8798_v50, %v3720_v16  ;;  %v3729_v23 = vsub.f32 1.5, %v3728_v2  ;;  %v3660_v50 = vld [vmem:[%s9976_s2 + $0x8] sm:$0xff] }
 0x536   :  { %v5493_v13 = vpop.eup %5492  ;;  %v3995_v46 = vmul.f32 %v3724_v39, %v3659_v57  ;;  %v3258_v39 = vpop.xlane.xlu2 %3257 }
 0x537   :  { %10500 = vst [vmem:[#allocation29_spill] sm:$0xff] %v8834_v0  ;;  %v3315_v21 = vsel %vm3238_vm1, %v8834_v0, 0.0  ;;  %v3736_v20 = vmul.f32 %v5493_v13, %v3689_v31  ;;  %v3730_v37 = vmul.f32 %v5491_v48, %v3729_v23  ;;  %vm3742_vm8 = vweird.f32 %v5493_v13 }
 0x538   :  { %v3316_v32 = vadd.f32 %v3315_v21, %v10501_v52  ;;  %v4023_v38 = vmul.f32 %v3995_v46, %v8765_v35  ;;  %vm3743_vm10 = vmor %vm3741_vm9, %vm3742_vm8 }
 0x539   :  { %v3737_v6 = vmul.f32 %v5493_v13, %v3736_v20  ;;  %v3734_v5 = vsel %vm3733_vm7, %v5491_v48, %v3730_v37 }
 0x53a   :  { %v8852_v21 = vmul.f32 %v3734_v5, %v3660_v50  ;;  %v3139_v50 = vpop.f32.mrf.mxu0 }
 0x53b   :  { %v3738_v58 = vmul.f32 0.5, %v3737_v6 }
 0x53c   :  { %3317 = vadd.xlane.f32.xlu1 %v3316_v32  ;;  %v4024_v35 = vmul.f32 %v8852_v21, %v8782_v41  ;;  %v2981_v41 = vpop.f32.mrf.mxu2 }
 0x53d   :  { %v3739_v16 = vsub.f32 1.5, %v3738_v58  ;;  %v2982_v23 = vadd.f32 %v2981_v41, %v8529_v27 }
 0x53e   :  { %v3426_v32 = vpop.xlane.xlu2 %3425 }
 0x53f   :  { %v3740_v2 = vmul.f32 %v5493_v13, %v3739_v16  ;;  %v3551_v31 = vmul.f32 0.0051020407, %v3426_v32 }
 0x541   :  { %v3744_v57 = vsel %vm3743_vm10, %v5493_v13, %v3740_v2  ;;  %v3390_v13 = vmul.f32 %v8834_v0, %v8834_v0  ;;  %v3218_v2 = vpop.f32.mrf.mxu1 }
 0x542   :  { %v3997_v48 = vmul.f32 %v3744_v57, %v3661_v55 }
 0x544   :  { %4079 = vrot.lane.b32.xlu2 %v4023_v38, %s5551_s28  ;;  %v4025_v20 = vmul.f32 %v3997_v48, %v8802_v63  ;;  %v3060_v38 = vpop.f32.mrf.mxu3  ;;  %v3483_v63 = vsel %vm3238_vm1, %v3390_v13, 0.0  ;;  %v2983_v55 = vpop.f32.mrf.mxu2  ;;  %v10503_v13 = vld [vmem:[#allocation56_spill] sm:$0xff] }
 0x545   :  { %v3061_v58 = vadd.f32 %v3060_v38, %v2982_v23 }
 0x547   :  { %v3140_v16 = vadd.f32 %v3139_v50, %v3061_v58  ;;  %v3391_v58 = vmul.f32 %v10503_v13, %v10503_v13 }
 0x548   :  { %4193 = vperm.xlu0 %5460, %v3995_v46   ;;  %v8861_v46 = vmul.f32 0.0051020407, %v3258_v39 }
 0x549   :  { %v8872_v39 = vadd.f32 %v3218_v2, %v3140_v16 }
 0x54a   :  { %v3579_v6 = vmul.f32 %v8861_v46, %v8861_v46 }
 0x54b   :  { %10502 = vst [vmem:[#allocation84_spill] sm:$0xff] %v8872_v39  ;;  %v3392_v41 = vmul.f32 %v8872_v39, %v8872_v39 }
 0x54c   :  { %v3607_v37 = vsub.f32 %v3551_v31, %v3579_v6  ;;  %v3062_v32 = vpop.f32.mrf.mxu3  ;;  %v3141_v31 = vpop.f32.mrf.mxu0 }
 0x54d   :  { %v3487_v6 = vsel %vm3238_vm1, %v3392_v41, 0.0 }
 0x54e   :  { %v3635_v5 = vmax.f32 %v3607_v37, 0.0  ;;  %v3220_v37 = vpop.f32.mrf.mxu1  ;;  %v3488_v50 = vadd.f32 %v3487_v6, %v3391_v58 }
 0x550   :  { %4081 = vrot.lane.b32.xlu0 %v4024_v35, %s5551_s28  ;;  %v3389_v35 = vmul.f32 %v10501_v52, %v10501_v52  ;;  %v3691_v57 = vadd.f32 0.001, %v3635_v5 }
 0x552   :  { %v3484_v27 = vadd.f32 %v3483_v63, %v3389_v35  ;;  %5494 = vrsqrt.f32 %v3691_v57  ;;  %vm3761_vm12 = vweird.f32 %v3691_v57 }
 0x554   :  { %v3065_v2 = vpop.f32.mrf.mxu3 }
 0x555   :  { %4203 = vperm.xlu1 %5462, %v3997_v48   ;;  %v2984_v48 = vadd.f32 %v2983_v55, %v8537_v15  ;;  %v2986_v15 = vpop.f32.mrf.mxu2 }
 0x556   :  { %v2987_v16 = vadd.f32 %v2986_v15, %v8540_v60  ;;  %v3223_v58 = vpop.f32.mrf.mxu1 }
 0x558   :  { %v5495_v38 = vpop.eup %5494 }
 0x559   :  { %v3756_v5 = vmul.f32 %v5495_v38, %v3691_v57  ;;  %vm3762_vm11 = vweird.f32 %v5495_v38 }
 0x55a   :  { %vm3763_vm13 = vmor %vm3761_vm12, %vm3762_vm11 }
 0x55b   :  { %v3757_v35 = vmul.f32 %v5495_v38, %v3756_v5 }
 0x55d   :  { %4083 = vrot.lane.b32.xlu1 %v4025_v20, %s5551_s28  ;;  %v3063_v20 = vadd.f32 %v3062_v32, %v2984_v48  ;;  %v10505_v48 = vld [vmem:[#allocation10_spill] sm:$0xff]  ;;  %v3758_v41 = vmul.f32 0.5, %v3757_v35 }
 0x55e   :  { %v3393_v60 = vmul.f32 %v10505_v48, %v10505_v48 }
 0x55f   :  { %v3142_v23 = vadd.f32 %v3141_v31, %v3063_v20  ;;  %v3144_v31 = vpop.f32.mrf.mxu0 }
 0x561   :  { %v8880_v63 = vadd.f32 %v3220_v37, %v3142_v23  ;;  %v3759_v37 = vsub.f32 1.5, %v3758_v41 }
 0x563   :  { %10504 = vst [vmem:[#allocation34_spill] sm:$0xff] %v8880_v63  ;;  %v3323_v55 = vsel %vm3238_vm1, %v8880_v63, 0.0  ;;  %v3394_v20 = vmul.f32 %v8880_v63, %v8880_v63 }
 0x564   :  { %v3324_v32 = vadd.f32 %v3323_v55, %v10505_v48  ;;  %v10507_v55 = vld [vmem:[#allocation8_spill] sm:$0xff]  ;;  %v3225_v48 = vpop.f32.mrf.mxu1 }
 0x565   :  { %v3491_v6 = vsel %vm3238_vm1, %v3394_v20, 0.0 }
 0x566   :  { %v3492_v5 = vadd.f32 %v3491_v6, %v3393_v60 }
 0x56d   :  { %3485 = vadd.xlane.f32.xlu2 %v3484_v27  ;;  %v3066_v27 = vadd.f32 %v3065_v2, %v2987_v16  ;;  %v3760_v16 = vmul.f32 %v5495_v38, %v3759_v37  ;;  %v3663_v2 = vld [vmem:[%s9976_s2 + $0x20] sm:$0xff]  ;;  %v3262_v37 = vpop.xlane.xlu2 %3261 }
 0x56e   :  { %v8906_v60 = vmul.f32 0.0051020407, %v3262_v37 }
 0x56f   :  { %v3145_v23 = vadd.f32 %v3144_v31, %v3066_v27 }
 0x571   :  { %v8892_v15 = vadd.f32 %v3223_v58, %v3145_v23 }
 0x573   :  { %10506 = vst [vmem:[#allocation35_spill] sm:$0xff] %v8892_v15  ;;  %v3327_v35 = vsel %vm3238_vm1, %v8892_v15, 0.0 }
 0x574   :  { %v3328_v27 = vadd.f32 %v3327_v35, %v10507_v55  ;;  %v2988_v35 = vpop.f32.mrf.mxu2 }
 0x57a   :  { %3489 = vadd.xlane.f32.xlu0 %v3488_v50  ;;  %v3254_v50 = vpop.xlane.xlu1 %3253 }
 0x57b   :  { %v8900_v41 = vmul.f32 0.0051020407, %v3254_v50 }
 0x57d   :  { %v3578_v57 = vmul.f32 %v8900_v41, %v8900_v41 }
 0x582   :  { %3325 = vadd.xlane.f32.xlu0 %v3324_v32  ;;  %v3422_v20 = vpop.xlane.xlu1 %3421 }
 0x583   :  { %v3550_v31 = vmul.f32 0.0051020407, %v3422_v20 }
 0x585   :  { %4198 = vperm.xlu2 %5461, %v8852_v21   ;;  %v3764_v21 = vsel %vm3763_vm13, %v5495_v38, %v3760_v16  ;;  %v3606_v6 = vsub.f32 %v3550_v31, %v3578_v57  ;;  %v3580_v16 = vmul.f32 %v8906_v60, %v8906_v60  ;;  %v3146_v57 = vpop.f32.mrf.mxu0 }
 0x586   :  { %v3999_v32 = vmul.f32 %v3764_v21, %v3663_v2  ;;  %v3067_v21 = vpop.f32.mrf.mxu3 }
 0x587   :  { %3493 = vadd.xlane.f32.xlu1 %v3492_v5  ;;  %v3634_v58 = vmax.f32 %v3606_v6, 0.0  ;;  %v3430_v5 = vpop.xlane.xlu0 %3429 }
 0x588   :  { %v4027_v23 = vmul.f32 %v3999_v32, %v8861_v46  ;;  %v3552_v50 = vmul.f32 0.0051020407, %v3430_v5  ;;  %v2989_v46 = vadd.f32 %v2988_v35, %v8548_v42 }
 0x589   :  { %v3690_v38 = vadd.f32 0.001, %v3634_v58 }
 0x58a   :  { %v3608_v2 = vsub.f32 %v3552_v50, %v3580_v16 }
 0x58b   :  { %5496 = vrsqrt.f32 %v3690_v38  ;;  %vm3751_vm15 = vweird.f32 %v3690_v38 }
 0x58c   :  { %v3636_v31 = vmax.f32 %v3608_v2, 0.0 }
 0x58d   :  { %v3149_v0 = vpop.f32.mrf.mxu0 }
 0x58e   :  { %v3692_v58 = vadd.f32 0.001, %v3636_v31 }
 0x58f   :  { %3329 = vadd.xlane.f32.xlu1 %v3328_v27  ;;  %v3319_v27 = vsel %vm3238_vm1, %v8872_v39, 0.0  ;;  %v3266_v5 = vpop.xlane.xlu0 %3265  ;;  %v3434_v39 = vpop.xlane.xlu1 %3433 }
 0x590   :  { %v3320_v6 = vadd.f32 %v3319_v27, %v10503_v13  ;;  %5498 = vrsqrt.f32 %v3692_v58  ;;  %v8914_v42 = vmul.f32 0.0051020407, %v3266_v5  ;;  %v3553_v31 = vmul.f32 0.0051020407, %v3434_v39 }
 0x591   :  { %v5497_v20 = vpop.eup %5496  ;;  %vm3771_vm3 = vweird.f32 %v3692_v58 }
 0x592   :  { %v3746_v37 = vmul.f32 %v5497_v20, %v3690_v38  ;;  %vm3752_vm14 = vweird.f32 %v5497_v20 }
 0x593   :  { %vm3753_vm0 = vmor %vm3751_vm15, %vm3752_vm14 }
 0x594   :  { %v3747_v16 = vmul.f32 %v5497_v20, %v3746_v37 }
 0x596   :  { %4087 = vrot.lane.b32.xlu0 %v4027_v23, %s5551_s28  ;;  %v3068_v23 = vadd.f32 %v3067_v21, %v2989_v46  ;;  %v3748_v35 = vmul.f32 0.5, %v3747_v16  ;;  %v5499_v46 = vpop.eup %5498  ;;  %v2991_v21 = vpop.f32.mrf.mxu2 }
 0x597   :  { %vm3772_vm2 = vweird.f32 %v5499_v46 }
 0x598   :  { %v3147_v63 = vadd.f32 %v3146_v57, %v3068_v23  ;;  %v3749_v27 = vsub.f32 1.5, %v3748_v35  ;;  %v3766_v23 = vmul.f32 %v5499_v46, %v3692_v58  ;;  %vm3773_vm4 = vmor %vm3771_vm3, %vm3772_vm2 }
 0x59a   :  { %v8916_v50 = vadd.f32 %v3225_v48, %v3147_v63  ;;  %v3070_v63 = vpop.f32.mrf.mxu3  ;;  %v10509_v48 = vld [vmem:[#allocation60_spill] sm:$0xff]  ;;  %v3750_v16 = vmul.f32 %v5497_v20, %v3749_v27  ;;  %v3767_v18 = vmul.f32 %v5499_v46, %v3766_v23 }
 0x59b   :  { %v3397_v5 = vmul.f32 %v10509_v48, %v10509_v48 }
 0x59c   :  { %10508 = vst [vmem:[#allocation33_spill] sm:$0xff] %v8916_v50  ;;  %v3398_v2 = vmul.f32 %v8916_v50, %v8916_v50  ;;  %v3754_v39 = vsel %vm3753_vm0, %v5497_v20, %v3750_v16  ;;  %v3768_v35 = vmul.f32 0.5, %v3767_v18  ;;  %v10511_v20 = vld [vmem:[#allocation13_spill] sm:$0xff] }
 0x59e   :  { %v3499_v37 = vsel %vm3238_vm1, %v3398_v2, 0.0  ;;  %v3769_v38 = vsub.f32 1.5, %v3768_v35  ;;  %v3438_v35 = vpop.xlane.xlu2 %3437 }
 0x59f   :  { %v3500_v13 = vadd.f32 %v3499_v37, %v3397_v5  ;;  %v3399_v37 = vmul.f32 %v10511_v20, %v10511_v20 }
 0x5a0   :  { %v3770_v23 = vmul.f32 %v5499_v46, %v3769_v38 }
 0x5a2   :  { %v3774_v18 = vsel %vm3773_vm4, %v5499_v46, %v3770_v23  ;;  %v3665_v23 = vld [vmem:[%s9976_s2 + $0x30] sm:$0xff] }
 0x5a8   :  { %4213 = vperm.xlu1 %5462, %v3999_v32   ;;  %v3581_v32 = vmul.f32 %v8914_v42, %v8914_v42 }
 0x5aa   :  { %v3609_v57 = vsub.f32 %v3553_v31, %v3581_v32 }
 0x5ac   :  { %v3637_v34 = vmax.f32 %v3609_v57, 0.0 }
 0x5ae   :  { %3321 = vadd.xlane.f32.xlu2 %v3320_v6  ;;  %v2992_v6 = vadd.f32 %v2991_v21, %v8551_v53  ;;  %v8929_v53 = vld [vmem:[%s9976_s2 + $0x18] sm:$0xff]  ;;  %v3693_v32 = vadd.f32 0.001, %v3637_v34  ;;  %v3228_v21 = vpop.f32.mrf.mxu1 }
 0x5af   :  { %v3998_v27 = vmul.f32 %v3754_v39, %v8929_v53 }
 0x5b0   :  { %v3071_v51 = vadd.f32 %v3070_v63, %v2992_v6  ;;  %5500 = vrsqrt.f32 %v3693_v32  ;;  %vm3781_vm6 = vweird.f32 %v3693_v32 }
 0x5b1   :  { %v4026_v57 = vmul.f32 %v3998_v27, %v8900_v41  ;;  %v3270_v41 = vpop.xlane.xlu1 %3269 }
 0x5b2   :  { %v3150_v2 = vadd.f32 %v3149_v0, %v3071_v51  ;;  %v3664_v51 = vld [vmem:[%s9976_s2 + $0x28] sm:$0xff]  ;;  %v3526_v39 = vmul.f32 0.0051020407, %v3270_v41 }
 0x5b3   :  { %v4000_v63 = vmul.f32 %v3774_v18, %v3664_v51 }
 0x5b4   :  { %v8932_v31 = vadd.f32 %v3228_v21, %v3150_v2  ;;  %v3582_v21 = vmul.f32 %v3526_v39, %v3526_v39 }
 0x5b6   :  { %10510 = vst [vmem:[#allocation88_spill] sm:$0xff] %v8932_v31  ;;  %v5501_v6 = vpop.eup %5500 }
 0x5b7   :  { %v3776_v0 = vmul.f32 %v5501_v6, %v3693_v32  ;;  %vm3782_vm5 = vweird.f32 %v5501_v6 }
 0x5b8   :  { %vm3783_vm7 = vmor %vm3781_vm6, %vm3782_vm5 }
 0x5b9   :  { %v3777_v16 = vmul.f32 %v5501_v6, %v3776_v0  ;;  %v3396_v0 = vmul.f32 %v8892_v15, %v8892_v15 }
 0x5bb   :  { %v3778_v58 = vmul.f32 0.5, %v3777_v16  ;;  %v3495_v32 = vsel %vm3238_vm1, %v3396_v0, 0.0  ;;  %v8964_v0 = vld [vmem:[%s9976_s2 + $0x38] sm:$0xff] }
 0x5bd   :  { %v3779_v2 = vsub.f32 1.5, %v3778_v58  ;;  %v3335_v58 = vsel %vm3238_vm1, %v8932_v31, 0.0 }
 0x5bf   :  { %v3780_v38 = vmul.f32 %v5501_v6, %v3779_v2 }
 0x5c0   :  { %3501 = vadd.xlane.f32.xlu0 %v3500_v13  ;;  %v3400_v13 = vmul.f32 %v8932_v31, %v8932_v31 }
 0x5c2   :  { %v3503_v34 = vsel %vm3238_vm1, %v3400_v13, 0.0  ;;  %v3784_v13 = vsel %vm3783_vm7, %v5501_v6, %v3780_v38 }
 0x5c3   :  { %v3504_v5 = vadd.f32 %v3503_v34, %v3399_v37  ;;  %v4001_v51 = vmul.f32 %v3784_v13, %v3665_v23  ;;  %v3072_v23 = vpop.f32.mrf.mxu3 }
 0x5c5   :  { %v4029_v34 = vmul.f32 %v4001_v51, %v8914_v42  ;;  %v3331_v42 = vsel %vm3238_vm1, %v8916_v50, 0.0 }
 0x5c6   :  { %4208 = vperm.xlu2 %5461, %v3998_v27   ;;  %v3554_v27 = vmul.f32 0.0051020407, %v3438_v35  ;;  %v3336_v35 = vadd.f32 %v3335_v58, %v10511_v20  ;;  %v4028_v58 = vmul.f32 %v4000_v63, %v8906_v60 }
 0x5c8   :  { %v3610_v46 = vsub.f32 %v3554_v27, %v3582_v21  ;;  %v3332_v21 = vadd.f32 %v3331_v42, %v10509_v48  ;;  %v2993_v27 = vpop.f32.mrf.mxu2  ;;  %v10513_v42 = vld [vmem:[#allocation11_spill] sm:$0xff] }
 0x5ce   :  { %4085 = vrot.lane.b32.xlu2 %v4026_v57, %s5551_s28  ;;  %v3638_v57 = vmax.f32 %v3610_v46, 0.0  ;;  %v2994_v46 = vadd.f32 %v2993_v27, %v8559_v25 }
 0x5d0   :  { %v3694_v18 = vadd.f32 0.001, %v3638_v57  ;;  %v3073_v57 = vadd.f32 %v3072_v23, %v2994_v46  ;;  %v2996_v46 = vpop.f32.mrf.mxu2 }
 0x5d1   :  { %v2997_v60 = vadd.f32 %v2996_v46, %v8562_v1  ;;  %v10515_v46 = vld [vmem:[#allocation64_spill] sm:$0xff] }
 0x5d2   :  { %3505 = vadd.xlane.f32.xlu1 %v3504_v5  ;;  %5502 = vrsqrt.f32 %v3694_v18  ;;  %v3395_v5 = vmul.f32 %v10507_v55, %v10507_v55  ;;  %vm3791_vm9 = vweird.f32 %v3694_v18 }
 0x5d4   :  { %4218 = vperm.xlu0 %5460, %v4000_v63   ;;  %v3496_v41 = vadd.f32 %v3495_v32, %v3395_v5  ;;  %v3075_v63 = vpop.f32.mrf.mxu3 }
 0x5d8   :  { %v5503_v37 = vpop.eup %5502 }
 0x5d9   :  { %v3786_v16 = vmul.f32 %v5503_v37, %v3694_v18  ;;  %vm3792_vm8 = vweird.f32 %v5503_v37 }
 0x5da   :  { %vm3793_vm10 = vmor %vm3791_vm9, %vm3792_vm8 }
 0x5db   :  { %v3787_v6 = vmul.f32 %v5503_v37, %v3786_v16  ;;  %v3230_v16 = vpop.f32.mrf.mxu1 }
 0x5dc   :  { %v3077_v50 = vpop.f32.mrf.mxu3 }
 0x5dd   :  { %v3788_v2 = vmul.f32 0.5, %v3787_v6 }
 0x5df   :  { %v3789_v38 = vsub.f32 1.5, %v3788_v2  ;;  %v3274_v2 = vpop.xlane.xlu2 %3273 }
 0x5e1   :  { %v3790_v13 = vmul.f32 %v5503_v37, %v3789_v38 }
 0x5e3   :  { %v3794_v32 = vsel %vm3793_vm10, %v5503_v37, %v3790_v13  ;;  %v8975_v37 = vmul.f32 0.0051020407, %v3274_v2 }
 0x5e5   :  { %v3583_v27 = vmul.f32 %v8975_v37, %v8975_v37 }
 0x5eb   :  { %4091 = vrot.lane.b32.xlu1 %v4029_v34, %s5551_s28  ;;  %v3151_v34 = vpop.f32.mrf.mxu0 }
 0x5ec   :  { %v3152_v5 = vadd.f32 %v3151_v34, %v3073_v57  ;;  %v3076_v34 = vadd.f32 %v3075_v63, %v2997_v60 }
 0x5ee   :  { %v8967_v6 = vadd.f32 %v3230_v16, %v3152_v5 }
 0x5f0   :  { %10512 = vst [vmem:[#allocation38_spill] sm:$0xff] %v8967_v6  ;;  %v3339_v18 = vsel %vm3238_vm1, %v8967_v6, 0.0 }
 0x5f7   :  { %3497 = vadd.xlane.f32.xlu2 %v3496_v41  ;;  %v4002_v41 = vmul.f32 %v3794_v32, %v8964_v0  ;;  %v3154_v32 = vpop.f32.mrf.mxu0 }
 0x5f9   :  { %v4030_v25 = vmul.f32 %v4002_v41, %v3526_v39  ;;  %v8979_v39 = vpop.xlane.xlu2 %3449 }
 0x5fe   :  { %3337 = vadd.xlane.f32.xlu0 %v3336_v35  ;;  %v3340_v35 = vadd.f32 %v3339_v18, %v10513_v42  ;;  %v3233_v18 = vpop.f32.mrf.mxu1 }
 0x5ff   :  { %3333 = vadd.xlane.f32.xlu2 %v3332_v21  ;;  %v3442_v21 = vpop.xlane.xlu0 %3441 }
 0x600   :  { %v3555_v38 = vmul.f32 0.0051020407, %v3442_v21 }
 0x601   :  { %v3286_v5 = vpop.xlane.xlu2 %3285 }
 0x602   :  { %v3611_v23 = vsub.f32 %v3555_v38, %v3583_v27  ;;  %v8995_v31 = vmul.f32 0.0051020407, %v3286_v5 }
 0x604   :  { %v3639_v13 = vmax.f32 %v3611_v23, 0.0  ;;  %v3403_v23 = vmul.f32 %v10515_v46, %v10515_v46 }
 0x606   :  { %v3695_v16 = vadd.f32 0.001, %v3639_v13 }
 0x607   :  { %v3278_v57 = vpop.xlane.xlu0 %3277 }
 0x608   :  { %5504 = vrsqrt.f32 %v3695_v16  ;;  %v8991_v60 = vmul.f32 0.0051020407, %v3278_v57  ;;  %vm3801_vm12 = vweird.f32 %v3695_v16 }
 0x609   :  { %v8984_v2 = vpop.xlane.xlu2 %3461 }
 0x60a   :  { %v3560_v3 = vmul.f32 0.0051020407, %v8984_v2 }
 0x60e   :  { %v5505_v21 = vpop.eup %5504 }
 0x60f   :  { %v3796_v27 = vmul.f32 %v5505_v21, %v3695_v16  ;;  %vm3802_vm11 = vweird.f32 %v5505_v21 }
 0x610   :  { %vm3803_vm13 = vmor %vm3801_vm12, %vm3802_vm11 }
 0x611   :  { %v3298_v13 = vpop.xlane.xlu2 %3297 }
 0x612   :  { %4093 = vrot.lane.b32.xlu0 %v4030_v25, %s5551_s28  ;;  %v3155_v25 = vadd.f32 %v3154_v32, %v3076_v34  ;;  %v3797_v32 = vmul.f32 %v5505_v21, %v3796_v27  ;;  %v3586_v27 = vmul.f32 %v8995_v31, %v8995_v31 }
 0x614   :  { %v3798_v20 = vmul.f32 0.5, %v3797_v32 }
 0x615   :  { %3341 = vadd.xlane.f32.xlu1 %v3340_v35  ;;  %v3454_v35 = vpop.xlane.xlu0 %3453 }
 0x616   :  { %v3558_v32 = vmul.f32 0.0051020407, %v3454_v35 }
 0x617   :  { %4089 = vrot.lane.b32.xlu2 %v4028_v58, %s5551_s28  ;;  %v8982_v58 = vadd.f32 %v3233_v18, %v3155_v25  ;;  %v2998_v18 = vpop.f32.mrf.mxu2 }
 0x618   :  { %v2999_v57 = vadd.f32 %v2998_v18, %v8570_v22  ;;  %v3614_v22 = vsub.f32 %v3558_v32, %v3586_v27  ;;  %v3156_v18 = vpop.f32.mrf.mxu0  ;;  %v9032_v32 = vmul.f32 0.0051020407, %v3298_v13 }
 0x619   :  { %10514 = vst [vmem:[#allocation39_spill] sm:$0xff] %v8982_v58  ;;  %v3404_v1 = vmul.f32 %v8982_v58, %v8982_v58 }
 0x61b   :  { %v3511_v38 = vsel %vm3238_vm1, %v3404_v1, 0.0  ;;  %v3402_v1 = vmul.f32 %v8967_v6, %v8967_v6  ;;  %v3401_v6 = vmul.f32 %v10513_v42, %v10513_v42  ;;  %v3642_v42 = vmax.f32 %v3614_v22, 0.0 }
 0x61c   :  { %v3512_v34 = vadd.f32 %v3511_v38, %v3403_v23  ;;  %v9002_v23 = vpop.xlane.xlu2 %3473 }
 0x61d   :  { %v3290_v63 = vpop.xlane.xlu0 %3289  ;;  %v3507_v48 = vsel %vm3238_vm1, %v3402_v1, 0.0  ;;  %v3557_v1 = vmul.f32 0.0051020407, %v8979_v39  ;;  %v9030_v27 = vadd.f32 0.001, %v3642_v42  ;;  %v3589_v42 = vmul.f32 %v9032_v32, %v9032_v32 }
 0x61e   :  { %v3508_v52 = vadd.f32 %v3507_v48, %v3401_v6  ;;  %v9013_v35 = vmul.f32 0.0051020407, %v3290_v63 }
 0x61f   :  { %4223 = vperm.xlu2 %5461, %v4001_v51   ;;  %v3446_v51 = vpop.xlane.xlu1 %3445  ;;  %vm3831_vm3 = vweird.f32 %v9030_v27 }
 0x620   :  { %v3556_v15 = vmul.f32 0.0051020407, %v3446_v51  ;;  %v3587_v39 = vmul.f32 %v9013_v35, %v9013_v35 }
 0x625   :  { %v3466_v38 = vpop.xlane.xlu0 %3465 }
 0x627   :  { %v3282_v25 = vpop.xlane.xlu1 %3281 }
 0x628   :  { %v9005_v5 = vmul.f32 0.0051020407, %v3282_v25 }
 0x62a   :  { %v3585_v61 = vmul.f32 %v9005_v5, %v9005_v5 }
 0x62c   :  { %v3613_v6 = vsub.f32 %v3557_v1, %v3585_v61 }
 0x62d   :  { %v3302_v16 = vpop.xlane.xlu0 %3301 }
 0x62e   :  { %4228 = vperm.xlu1 %5462, %v4002_v41   ;;  %v3584_v41 = vmul.f32 %v8991_v60, %v8991_v60 }
 0x62f   :  { %v3458_v51 = vpop.xlane.xlu1 %3457 }
 0x630   :  { %v3612_v55 = vsub.f32 %v3556_v15, %v3584_v41  ;;  %v3078_v41 = vadd.f32 %v3077_v50, %v2999_v57  ;;  %v9019_v50 = vld [vmem:[%s9976_s2 + $0x40] sm:$0xff]  ;;  %v9023_v57 = vpop.xlane.xlu2 %3309  ;;  %v3559_v61 = vmul.f32 0.0051020407, %v3458_v51 }
 0x632   :  { %v3640_v15 = vmax.f32 %v3612_v55, 0.0  ;;  %v3157_v25 = vadd.f32 %v3156_v18, %v3078_v41  ;;  %v3235_v55 = vpop.f32.mrf.mxu1  ;;  %v3615_v41 = vsub.f32 %v3559_v61, %v3587_v39  ;;  %v10517_v61 = vld [vmem:[#allocation17_spill] sm:$0xff] }
 0x634   :  { %v9026_v63 = vadd.f32 %v3235_v55, %v3157_v25  ;;  %v3561_v25 = vmul.f32 0.0051020407, %v3466_v38  ;;  %v3643_v51 = vmax.f32 %v3615_v41, 0.0 }
 0x635   :  { %v9045_v1 = vpop.xlane.xlu0 %3477 }
 0x636   :  { %10516 = vst [vmem:[#allocation37_spill] sm:$0xff] %v9026_v63  ;;  %v3406_v22 = vmul.f32 %v9026_v63, %v9026_v63  ;;  %v9059_v41 = vadd.f32 0.001, %v3643_v51 }
 0x638   :  { %vm3841_vm9 = vweird.f32 %v9059_v41 }
 0x63c   :  { %3513 = vadd.xlane.f32.xlu0 %v3512_v34  ;;  %v3799_v34 = vsub.f32 1.5, %v3798_v20  ;;  %v9011_v20 = vadd.f32 0.001, %v3640_v15  ;;  %v3641_v15 = vmax.f32 %v3613_v6, 0.0  ;;  %v3617_v6 = vsub.f32 %v3561_v25, %v3589_v42 }
 0x63d   :  { %v9064_v42 = vmul.f32 0.0051020407, %v3302_v16 }
 0x63e   :  { %v3800_v33 = vmul.f32 %v5505_v21, %v3799_v34  ;;  %5506 = vrsqrt.f32 %v9011_v20  ;;  %v3294_v34 = vpop.xlane.xlu1 %3293  ;;  %v9043_v13 = vadd.f32 0.001, %v3641_v15  ;;  %vm3811_vm15 = vweird.f32 %v9011_v20 }
 0x63f   :  { %5508 = vrsqrt.f32 %v9030_v27  ;;  %v9047_v55 = vmul.f32 0.0051020407, %v3294_v34 }
 0x640   :  { %v3804_v48 = vsel %vm3803_vm13, %v5505_v21, %v3800_v33  ;;  %5510 = vrsqrt.f32 %v9043_v13  ;;  %vm3821_vm6 = vweird.f32 %v9043_v13 }
 0x641   :  { %v4003_v33 = vmul.f32 %v3804_v48, %v9019_v50  ;;  %v3515_v48 = vsel %vm3238_vm1, %v3406_v22, 0.0  ;;  %v3588_v34 = vmul.f32 %v9047_v55, %v9047_v55  ;;  %5512 = vrsqrt.f32 %v9059_v41 }
 0x643   :  { %v3616_v19 = vsub.f32 %v3560_v3, %v3588_v34 }
 0x644   :  { %v9041_v18 = vpop.eup %5506 }
 0x645   :  { %v9056_v15 = vpop.eup %5508  ;;  %v3644_v3 = vmax.f32 %v3616_v19, 0.0  ;;  %vm3812_vm14 = vweird.f32 %v9041_v18 }
 0x646   :  { %v3470_v39 = vpop.xlane.xlu1 %3469  ;;  %v3826_v25 = vmul.f32 %v9056_v15, %v9030_v27  ;;  %vm3813_vm0 = vmor %vm3811_vm15, %vm3812_vm14  ;;  %vm3832_vm2 = vweird.f32 %v9056_v15  ;;  %v9141_v27 = vld [vmem:[%s9976_s2 + $0x58] sm:$0xff] }
 0x647   :  { %v3562_v14 = vmul.f32 0.0051020407, %v3470_v39  ;;  %v9088_v12 = vadd.f32 0.001, %v3644_v3  ;;  %vm9128_vm4 = vmor %vm3831_vm3, %vm3832_vm2 }
 0x648   :  { %3509 = vadd.xlane.f32.xlu2 %v3508_v52  ;;  %v3343_v52 = vsel %vm3238_vm1, %v8982_v58, 0.0  ;;  %v3405_v58 = vmul.f32 %v10517_v61, %v10517_v61 }
 0x649   :  { %v3344_v21 = vadd.f32 %v3343_v52, %v10515_v46  ;;  %v3806_v52 = vmul.f32 %v9041_v18, %v9011_v20  ;;  %v3645_v46 = vmax.f32 %v3617_v6, 0.0  ;;  %v9076_v6 = vpop.xlane.xlu0 %3313  ;;  %vm3851_vm15 = vweird.f32 %v9088_v12 }
 0x64a   :  { %v3516_v38 = vadd.f32 %v3515_v48, %v3405_v58  ;;  %v9070_v58 = vpop.eup %5510 }
 0x64b   :  { %v3807_v22 = vmul.f32 %v9041_v18, %v3806_v52  ;;  %v9072_v48 = vadd.f32 0.001, %v3645_v46  ;;  %v3590_v52 = vmul.f32 %v9064_v42, %v9064_v42  ;;  %v3816_v2 = vmul.f32 %v9070_v58, %v9043_v13  ;;  %v9181_v13 = vld [vmem:[%s9976_s2 + $0x50] sm:$0xff] }
 0x64c   :  { %vm3822_vm5 = vweird.f32 %v9070_v58 }
 0x64d   :  { %v3808_v51 = vmul.f32 0.5, %v3807_v22  ;;  %5514 = vrsqrt.f32 %v9072_v48  ;;  %v3618_v46 = vsub.f32 %v3562_v14, %v3590_v52  ;;  %v9084_v22 = vpop.eup %5512  ;;  %v3817_v10 = vmul.f32 %v9070_v58, %v3816_v2  ;;  %vm9167_vm7 = vmor %vm3821_vm6, %vm3822_vm5 }
 0x64e   :  { %v3306_v29 = vpop.xlane.xlu1 %3305  ;;  %v9097_v52 = vmul.f32 0.0051020407, %v9023_v57  ;;  %5516 = vrsqrt.f32 %v9088_v12  ;;  %vm3842_vm8 = vweird.f32 %v9084_v22  ;;  %vm3861_vm12 = vweird.f32 %v9072_v48 }
 0x64f   :  { %v3809_v34 = vsub.f32 1.5, %v3808_v51  ;;  %v3646_v44 = vmax.f32 %v3618_v46, 0.0  ;;  %v4031_v51 = vmul.f32 %v4003_v33, %v8975_v37  ;;  %vm3843_vm10 = vmor %vm3841_vm9, %vm3842_vm8 }
 0x650   :  { %4233 = vperm.xlu0 %5460, %v4003_v33   ;;  %3345 = vadd.xlane.f32.xlu2 %v3344_v21  ;;  %v9052_v21 = vpop.permute.xlu2 %4079 }
 0x651   :  { %v3810_v39 = vmul.f32 %v9041_v18, %v3809_v34  ;;  %v9093_v19 = vpop.permute.xlu0 %4193  ;;  %v3818_v34 = vmul.f32 0.5, %v3817_v10  ;;  %v9117_v57 = vadd.f32 0.001, %v3646_v44  ;;  %v3592_v10 = vmul.f32 %v9097_v52, %v9097_v52 }
 0x653   :  { %v3814_v37 = vsel %vm3813_vm0, %v9041_v18, %v3810_v39  ;;  %v3819_v59 = vsub.f32 1.5, %v3818_v34  ;;  %v3564_v18 = vmul.f32 0.0051020407, %v9045_v1  ;;  %5518 = vrsqrt.f32 %v9117_v57 }
 0x654   :  { %vm3871_vm3 = vweird.f32 %v9117_v57 }
 0x655   :  { %v3620_v47 = vsub.f32 %v3564_v18, %v3592_v10 }
 0x656   :  { %v9102_v2 = vpop.xlane.xlu1 %3481 }
 0x658   :  { %3517 = vadd.xlane.f32.xlu1 %v3516_v38  ;;  %v9078_v16 = vpop.xlane.xlu2 %3485  ;;  %v3827_v38 = vmul.f32 %v9056_v15, %v3826_v25  ;;  %v3836_v25 = vmul.f32 %v9084_v22, %v9059_v41 }
 0x659   :  { %v9146_v34 = vpop.permute.xlu0 %4081 }
 0x65a   :  { %v3828_v54 = vmul.f32 0.5, %v3827_v38  ;;  %v9099_v38 = vpop.eup %5514  ;;  %v3837_v20 = vmul.f32 %v9084_v22, %v3836_v25  ;;  %v9133_v25 = vmul.f32 0.0051020407, %v3306_v29 }
 0x65b   :  { %v3856_v33 = vmul.f32 %v9099_v38, %v9072_v48  ;;  %v9135_v7 = vpop.eup %5516  ;;  %vm3862_vm11 = vweird.f32 %v9099_v38 }
 0x65c   :  { %v3829_v14 = vsub.f32 1.5, %v3828_v54  ;;  %v9113_v54 = vld [vmem:[%s9976_s2 + $0x48] sm:$0xff]  ;;  %v3838_v39 = vmul.f32 0.5, %v3837_v20  ;;  %v3820_v20 = vmul.f32 %v9070_v58, %v3819_v59  ;;  %v3846_v10 = vmul.f32 %v9135_v7, %v9088_v12  ;;  %vm3863_vm13 = vmor %vm3861_vm12, %vm3862_vm11 }
 0x65d   :  { %v3591_v18 = vmul.f32 %v9133_v25, %v9133_v25  ;;  %v9162_v59 = vmul.f32 0.0051020407, %v9076_v6  ;;  %vm3852_vm14 = vweird.f32 %v9135_v7 }
 0x65e   :  { %v3830_v46 = vmul.f32 %v9056_v15, %v3829_v14  ;;  %v3857_v14 = vmul.f32 %v9099_v38, %v3856_v33  ;;  %v3839_v33 = vsub.f32 1.5, %v3838_v39  ;;  %v9155_v11 = vpop.xlane.xlu1 %3317  ;;  %v3563_v39 = vmul.f32 0.0051020407, %v9002_v23  ;;  %vm3853_vm0 = vmor %vm3851_vm15, %vm3852_vm14 }
 0x660   :  { %v9104_v3 = vpop.permute.xlu2 %4198  ;;  %v3834_v1 = vsel %vm9128_vm4, %v9056_v15, %v3830_v46  ;;  %v3858_v46 = vmul.f32 0.5, %v3857_v14  ;;  %v3840_v6 = vmul.f32 %v9084_v22, %v3839_v33  ;;  %v3847_v14 = vmul.f32 %v9135_v7, %v3846_v10 }
 0x661   :  { %v9158_v15 = vmul.f32 %v3834_v1, %v9141_v27  ;;  %v3824_v1 = vsel %vm9167_vm7, %v9070_v58, %v3820_v20  ;;  %v3490_v62 = vpop.xlane.xlu0 %3489 }
 0x662   :  { %v3859_v44 = vsub.f32 1.5, %v3858_v46  ;;  %v9197_v10 = vmul.f32 %v3824_v1, %v9181_v13  ;;  %v3844_v41 = vsel %vm3843_vm10, %v9084_v22, %v3840_v6  ;;  %v3848_v46 = vmul.f32 0.5, %v3847_v14 }
 0x663   :  { %v4034_v23 = vmul.f32 %v9158_v15, %v8995_v31  ;;  %v3565_v31 = vmul.f32 0.0051020407, %v9102_v2 }
 0x664   :  { %v3849_v6 = vsub.f32 1.5, %v3848_v46 }
 0x668   :  { %4095 = vrot.lane.b32.xlu2 %v4031_v51, %s5551_s28  ;;  %v4004_v51 = vmul.f32 %v3814_v37, %v9113_v54  ;;  %v3322_v37 = vpop.xlane.xlu2 %3321 }
 0x66a   :  { %v4032_v29 = vmul.f32 %v4004_v51, %v8991_v60  ;;  %v3648_v60 = vmax.f32 %v3620_v47, 0.0  ;;  %v3347_v47 = vsel %vm3238_vm1, %v9026_v63, 0.0  ;;  %v3593_v63 = vmul.f32 %v9162_v59, %v9162_v59 }
 0x66b   :  { %v3348_v33 = vadd.f32 %v3347_v47, %v10517_v61  ;;  %v3860_v47 = vmul.f32 %v9099_v38, %v3859_v44 }
 0x66c   :  { %v9189_v20 = vadd.f32 0.001, %v3648_v60 }
 0x66d   :  { %v3864_v44 = vsel %vm3863_vm13, %v9099_v38, %v3860_v47 }
 0x66e   :  { %5520 = vrsqrt.f32 %v9189_v20  ;;  %vm3891_vm6 = vweird.f32 %v9189_v20 }
 0x670   :  { %4238 = vperm.xlu2 %5461, %v4004_v51   ;;  %v9165_v51 = vpop.eup %5518  ;;  %v9211_v1 = vpop.permute.xlu2 %4208 }
 0x671   :  { %4097 = vrot.lane.b32.xlu1 %v4032_v29, %s5551_s28  ;;  %v3619_v29 = vsub.f32 %v3563_v39, %v3591_v18  ;;  %v3866_v58 = vmul.f32 %v9165_v51, %v9117_v57  ;;  %v9205_v18 = vld [vmem:[%s9976_s2 + $0x60] sm:$0xff]  ;;  %v9209_v39 = vpop.permute.xlu1 %4203  ;;  %vm3872_vm2 = vweird.f32 %v9165_v51 }
 0x672   :  { %v4007_v22 = vmul.f32 %v3844_v41, %v9205_v18  ;;  %v3850_v41 = vmul.f32 %v9135_v7, %v3849_v6  ;;  %vm3873_vm4 = vmor %vm3871_vm3, %vm3872_vm2 }
 0x673   :  { %v3647_v60 = vmax.f32 %v3619_v29, 0.0  ;;  %v3867_v2 = vmul.f32 %v9165_v51, %v3866_v58  ;;  %v9224_v29 = vld [vmem:[%s9976_s2 + $0x70] sm:$0xff] }
 0x674   :  { %v4035_v48 = vmul.f32 %v4007_v22, %v9013_v35  ;;  %v9235_v46 = vmul.f32 %v3864_v44, %v9224_v29  ;;  %v3854_v6 = vsel %vm3853_vm0, %v9135_v7, %v3850_v41  ;;  %v3567_v44 = vmul.f32 0.0051020407, %v3490_v62 }
 0x675   :  { %v9219_v14 = vadd.f32 0.001, %v3647_v60  ;;  %v3868_v58 = vmul.f32 0.5, %v3867_v2  ;;  %v3326_v60 = vpop.xlane.xlu0 %3325  ;;  %v9270_v62 = vmul.f32 0.0051020407, %v9155_v11  ;;  %v4033_v11 = vmul.f32 %v9197_v10, %v9005_v5 }
 0x676   :  { %v4037_v12 = vmul.f32 %v9235_v46, %v9032_v32  ;;  %v3566_v41 = vmul.f32 0.0051020407, %v9078_v16  ;;  %v9292_v28 = vmul.f32 0.0051020407, %v3326_v60  ;;  %v5544_v60 = vld [vmem:[%s9976_s2] sm:$0xff] }
 0x677   :  { %5522 = vrsqrt.f32 %v9219_v14  ;;  %v3869_v38 = vsub.f32 1.5, %v3868_v58  ;;  %v3594_v16 = vmul.f32 %v9270_v62, %v9270_v62  ;;  %vm3881_vm9 = vweird.f32 %v9219_v14 }
 0x678   :  { %4101 = vrot.lane.b32.xlu2 %v4034_v23, %s5551_s28  ;;  %v3621_v23 = vsub.f32 %v3565_v31, %v3593_v63  ;;  %v9227_v63 = vmul.f32 0.0051020407, %v3322_v37  ;;  %v9229_v31 = vpop.eup %5520  ;;  %v3596_v9 = vmul.f32 %v9292_v28, %v9292_v28 }
 0x679   :  { %4243 = vperm.xlu1 %5462, %v9197_v10   ;;  %v3886_v35 = vmul.f32 %v9229_v31, %v9189_v20  ;;  %v9244_v37 = vpop.permute.xlu1 %4083  ;;  %v3870_v58 = vmul.f32 %v9165_v51, %v3869_v38  ;;  %v9281_v38 = vld [vmem:[%s9976_s2 + $0x78] sm:$0xff]  ;;  %vm3892_vm5 = vweird.f32 %v9229_v31  ;;  %v9327_v20 = vld [vmem:[%s9976_s2 + $0x88] sm:$0xff] }
 0x67a   :  { %3349 = vadd.xlane.f32.xlu0 %v3348_v33  ;;  %v3649_v33 = vmax.f32 %v3621_v23, 0.0  ;;  %v3595_v2 = vmul.f32 %v9227_v63, %v9227_v63  ;;  %v9248_v23 = vpop.permute.xlu2 %4085  ;;  %vm9314_vm7 = vmor %vm3891_vm6, %vm3892_vm5 }
 0x67b   :  { %v3874_v57 = vsel %vm3873_vm4, %v9165_v51, %v3870_v58  ;;  %v3622_v58 = vsub.f32 %v3566_v41, %v3594_v16 }
 0x67c   :  { %v9238_v47 = vadd.f32 0.001, %v3649_v33  ;;  %v3623_v61 = vsub.f32 %v3567_v44, %v3595_v2  ;;  %v4010_v26 = vmul.f32 %v3874_v57, %v9281_v38  ;;  %v4163_v57 = vsub.f32 %v5544_v60, %v9052_v21 }
 0x67d   :  { %v9261_v33 = vpop.eup %5522  ;;  %v9272_v7 = vpop.permute.xlu0 %4087  ;;  %v3650_v41 = vmax.f32 %v3622_v58, 0.0 }
 0x67e   :  { %5524 = vrsqrt.f32 %v9238_v47  ;;  %v3876_v32 = vmul.f32 %v9261_v33, %v9219_v14  ;;  %vm3882_vm8 = vweird.f32 %v9261_v33  ;;  %vm3901_vm12 = vweird.f32 %v9238_v47 }
 0x67f   :  { %vm3883_vm10 = vmor %vm3881_vm9, %vm3882_vm8 }
 0x680   :  { %4253 = vperm.xlu2 %5461, %v4007_v22   ;;  %v9253_v22 = vld [vmem:[%s9976_s2 + $0x68] sm:$0xff]  ;;  %v3877_v51 = vmul.f32 %v9261_v33, %v3876_v32 }
 0x681   :  { %4103 = vrot.lane.b32.xlu1 %v4035_v48, %s5551_s28  ;;  %v3887_v48 = vmul.f32 %v9229_v31, %v3886_v35  ;;  %v9266_v4 = vmul.f32 %v3854_v6, %v9253_v22  ;;  %v3494_v2 = vpop.xlane.xlu1 %3493  ;;  %v3651_v6 = vmax.f32 %v3623_v61, 0.0 }
 0x682   :  { %v3568_v5 = vmul.f32 0.0051020407, %v3494_v2  ;;  %v3878_v32 = vmul.f32 0.5, %v3877_v51  ;;  %v5545_v51 = vld [vmem:[%s9976_s2 + $0x10] sm:$0xff] }
 0x683   :  { %v3888_v35 = vmul.f32 0.5, %v3887_v48  ;;  %v9299_v48 = vadd.f32 0.001, %v3651_v6  ;;  %v4165_v58 = vsub.f32 %v5545_v51, %v9244_v37 }
 0x684   :  { %v9288_v44 = vpop.eup %5524  ;;  %v3624_v2 = vsub.f32 %v3568_v5, %v3596_v9  ;;  %v3879_v21 = vsub.f32 1.5, %v3878_v32  ;;  %v9322_v5 = vadd.f32 0.001, %v3650_v41  ;;  %v4038_v41 = vmul.f32 %v4010_v26, %v9064_v42 }
 0x685   :  { %v3889_v10 = vsub.f32 1.5, %v3888_v35  ;;  %v3896_v61 = vmul.f32 %v9288_v44, %v9238_v47  ;;  %v10181_v35 = vmov 1   ;;  %5526 = vrsqrt.f32 %v9299_v48 }
 0x686   :  { %5528 = vrsqrt.f32 %v9322_v5  ;;  %vm3902_vm11 = vweird.f32 %v9288_v44  ;;  %vm3921_vm15 = vweird.f32 %v9299_v48  ;;  %vm3911_vm3 = vweird.f32 %v9322_v5 }
 0x687   :  { %v3890_v6 = vmul.f32 %v9229_v31, %v3889_v10  ;;  %v3897_v16 = vmul.f32 %v9288_v44, %v3896_v61  ;;  %v3652_v10 = vmax.f32 %v3624_v2, 0.0  ;;  %v3880_v2 = vmul.f32 %v9261_v33, %v3879_v21  ;;  %vm3903_vm13 = vmor %vm3901_vm12, %vm3902_vm11 }
 0x688   :  { %4107 = vrot.lane.b32.xlu2 %v4037_v12, %s5551_s28  ;;  %v9286_v12 = vpop.xlane.xlu2 %3497 }
 0x689   :  { %4258 = vperm.xlu1 %5462, %v9266_v4   ;;  %v3898_v61 = vmul.f32 0.5, %v3897_v16  ;;  %v3330_v60 = vpop.xlane.xlu1 %3329  ;;  %v10525_v16 = vmov 0  }
 0x68b   :  { %v9335_v37 = vpop.eup %5526 }
 0x68c   :  { %vm3922_vm14 = vweird.f32 %v9335_v37 }
 0x68d   :  { %vm3923_vm0 = vmor %vm3921_vm15, %vm3922_vm14 }
 0x68e   :  { %4099 = vrot.lane.b32.xlu0 %v4033_v11, %s5551_s28  ;;  %v3502_v11 = vpop.xlane.xlu0 %3501 }
 0x68f   :  { %v3570_v21 = vmul.f32 0.0051020407, %v3502_v11 }
 0x690   :  { %4268 = vperm.xlu2 %5461, %v4010_v26   ;;  %v3334_v49 = vpop.xlane.xlu2 %3333  ;;  %v3916_v26 = vmul.f32 %v9335_v37, %v9299_v48 }
 0x691   :  { %5463 = vset.pattern.permute.xlu1 %v10181_v35  ;;  %v9367_v51 = vpop.permute.xlu1 %4213 }
 0x692   :  { %4389 = vperm.xlu1 %5463, %v4163_v57   ;;  %v9333_v57 = vmul.f32 0.0051020407, %v3334_v49  ;;  %v4036_v49 = vmul.f32 %v9266_v4, %v9047_v55  ;;  %v9361_v4 = vld [vmem:[%s9976_s2 + $0x80] sm:$0xff]  ;;  %v3884_v55 = vsel %vm3883_vm10, %v9261_v33, %v3880_v2  ;;  %v3569_v2 = vmul.f32 0.0051020407, %v9286_v12 }
 0x693   :  { %10526 = vst [vmem:[#allocation42_spill] sm:$0xff] %v9361_v4  ;;  %v4011_v33 = vmul.f32 %v3884_v55, %v9361_v4  ;;  %v10528_v4 = vmov 1  }
 0x694   :  { %v3598_v42 = vmul.f32 %v9333_v57, %v9333_v57 }
 0x696   :  { %4248 = vperm.xlu0 %5460, %v9158_v15   ;;  %v3894_v15 = vsel %vm9314_vm7, %v9229_v31, %v3890_v6  ;;  %v9338_v32 = vpop.permute.xlu0 %4218  ;;  %v9346_v31 = vadd.f32 0.001, %v3652_v10  ;;  %v3899_v6 = vsub.f32 1.5, %v3898_v61  ;;  %v9371_v10 = vpop.eup %5528  ;;  %v3626_v61 = vsub.f32 %v3570_v21, %v3598_v42 }
 0x697   :  { %10524 = vst [vmem:[#allocation92_spill] sm:$0xff] %v9338_v32  ;;  %v9343_v9 = vmul.f32 %v3894_v15, %v9327_v20  ;;  %v3917_v15 = vmul.f32 %v9335_v37, %v3916_v26  ;;  %vm3912_vm2 = vweird.f32 %v9371_v10 }
 0x698   :  { %5466 = vset.pattern.permute.xlu2 %v10181_v35  ;;  %5530 = vrsqrt.f32 %v9346_v31  ;;  %v3654_v42 = vmax.f32 %v3626_v61, 0.0  ;;  %v9404_v61 = vpop.permute.xlu2 %4089  ;;  %vm3913_vm4 = vmor %vm3911_vm3, %vm3912_vm2  ;;  %vm3931_vm6 = vweird.f32 %v9346_v31 }
 0x699   :  { %4399 = vperm.xlu2 %5466, %v4165_v58   ;;  %v4040_v14 = vmul.f32 %v9343_v9, %v9097_v52  ;;  %v3900_v58 = vmul.f32 %v9288_v44, %v3899_v6  ;;  %v9377_v52 = vmul.f32 0.0051020407, %v3330_v60  ;;  %v3918_v60 = vmul.f32 0.5, %v3917_v15  ;;  %v3506_v35 = vpop.xlane.xlu1 %3505 }
 0x69a   :  { %4109 = vrot.lane.b32.xlu1 %v4038_v41, %s5551_s28  ;;  %v3906_v41 = vmul.f32 %v9371_v10, %v9322_v5 }
 0x69b   :  { %5465 = vset.pattern.permute.xlu1 %v10525_v16  ;;  %v3904_v6 = vsel %vm3903_vm13, %v9288_v44, %v3900_v58  ;;  %v3597_v55 = vmul.f32 %v9377_v52, %v9377_v52  ;;  %v3919_v58 = vsub.f32 1.5, %v3918_v60 }
 0x69d   :  { %v3625_v44 = vsub.f32 %v3569_v2, %v3597_v55 }
 0x69e   :  { %4105 = vrot.lane.b32.xlu0 %v4036_v49, %s5551_s28  ;;  %v3338_v11 = vpop.xlane.xlu0 %3337  ;;  %v9386_v49 = vld [vmem:[%s9976_s2 + $0x90] sm:$0xff]  ;;  %v9389_v47 = vpop.eup %5530 }
 0x69f   :  { %10527 = vst [vmem:[#allocation43_spill] sm:$0xff] %v9386_v49  ;;  %v9391_v26 = vmul.f32 0.0051020407, %v3338_v11  ;;  %v4013_v12 = vmul.f32 %v3904_v6, %v9386_v49  ;;  %v3926_v21 = vmul.f32 %v9389_v47, %v9346_v31  ;;  %v9402_v11 = vadd.f32 0.001, %v3654_v42 }
 0x6a0   :  { %v3571_v6 = vmul.f32 0.0051020407, %v3506_v35  ;;  %v3653_v55 = vmax.f32 %v3625_v44, 0.0  ;;  %v3920_v42 = vmul.f32 %v9335_v37, %v3919_v58  ;;  %v9430_v44 = vld [vmem:[%s9976_s2 + $0xa0] sm:$0xff]  ;;  %vm3932_vm5 = vweird.f32 %v9389_v47 }
 0x6a1   :  { %4113 = vrot.lane.b32.xlu2 %v4040_v14, %s5551_s28  ;;  %v3907_v14 = vmul.f32 %v9371_v10, %v3906_v41  ;;  %v3599_v15 = vmul.f32 %v9391_v26, %v9391_v26  ;;  %v5546_v41 = vld [vmem:[%s9976_s2 + $0x8] sm:$0xff]  ;;  %v3927_v60 = vmul.f32 %v9389_v47, %v3926_v21  ;;  %5532 = vrsqrt.f32 %v9402_v11  ;;  %v9423_v35 = vpop.permute.xlu1 %4091  ;;  %vm3933_vm7 = vmor %vm3931_vm6, %vm3932_vm5 }
 0x6a2   :  { %5469 = vset.pattern.permute.xlu2 %v10525_v16  ;;  %4273 = vperm.xlu1 %5465, %v4011_v33   ;;  %v4164_v32 = vsub.f32 %v5546_v41, %v9146_v34  ;;  %v5547_v34 = vld [vmem:[%s9976_s2 + $0x20] sm:$0xff]  ;;  %v3924_v48 = vsel %vm3923_vm0, %v9335_v37, %v3920_v42  ;;  %v4039_v37 = vmul.f32 %v4011_v33, %v9133_v25  ;;  %v9459_v25 = vld [vmem:[%s9976_s2 + $0x98] sm:$0xff]  ;;  %vm3951_vm9 = vweird.f32 %v9402_v11 }
 0x6a3   :  { %v3908_v2 = vmul.f32 0.5, %v3907_v14  ;;  %v3627_v49 = vsub.f32 %v3571_v6, %v3599_v15  ;;  %v9425_v14 = vadd.f32 0.001, %v3653_v55  ;;  %v3928_v21 = vmul.f32 0.5, %v3927_v60 }
 0x6a4   :  { %v4041_v15 = vmul.f32 %v4013_v12, %v9162_v59 }
 0x6a5   :  { %5534 = vrsqrt.f32 %v9425_v14  ;;  %vm3941_vm12 = vweird.f32 %v9425_v14 }
 0x6a6   :  { %4263 = vperm.xlu0 %5460, %v9235_v46   ;;  %v4166_v46 = vsub.f32 %v8929_v53, %v9248_v23  ;;  %v3909_v53 = vsub.f32 1.5, %v3908_v2  ;;  %v4167_v23 = vsub.f32 %v5547_v34, %v9272_v7  ;;  %v9436_v7 = vpop.permute.xlu2 %4223 }
 0x6a7   :  { %v9434_v58 = vpop.eup %5532 }
 0x6a8   :  { %v3910_v6 = vmul.f32 %v9371_v10, %v3909_v53  ;;  %v3946_v59 = vmul.f32 %v9434_v58, %v9402_v11  ;;  %vm3952_vm8 = vweird.f32 %v9434_v58 }
 0x6a9   :  { %4283 = vperm.xlu2 %5469, %v4013_v12   ;;  %v3342_v2 = vpop.xlane.xlu1 %3341  ;;  %vm3953_vm10 = vmor %vm3951_vm9, %vm3952_vm8 }
 0x6aa   :  { %5468 = vset.pattern.permute.xlu1 %v10528_v4  ;;  %v3914_v33 = vsel %vm3913_vm4, %v9371_v10, %v3910_v6  ;;  %v9471_v55 = vmul.f32 0.0051020407, %v3342_v2 }
 0x6ab   :  { %4404 = vperm.xlu1 %5468, %v4166_v46   ;;  %v9440_v46 = vmul.f32 %v3924_v48, %v9430_v44  ;;  %v9466_v60 = vpop.eup %5534  ;;  %v4014_v10 = vmul.f32 %v3914_v33, %v9459_v25 }
 0x6ac   :  { %v3936_v53 = vmul.f32 %v9466_v60, %v9425_v14  ;;  %vm3942_vm11 = vweird.f32 %v9466_v60 }
 0x6ad   :  { %v4043_v12 = vmul.f32 %v9440_v46, %v9227_v63  ;;  %v3947_v63 = vmul.f32 %v9434_v58, %v3946_v59  ;;  %vm3943_vm13 = vmor %vm3941_vm12, %vm3942_vm11 }
 0x6ae   :  { %5464 = vset.pattern.permute.xlu0 %v10528_v4  ;;  %v3937_v6 = vmul.f32 %v9466_v60, %v3936_v53  ;;  %v4094_v53 = vpop.permute.xlu0 %4093 }
 0x6af   :  { %4394 = vperm.xlu0 %5464, %v4164_v32   ;;  %v3655_v32 = vmax.f32 %v3627_v49, 0.0  ;;  %v3929_v49 = vsub.f32 1.5, %v3928_v21  ;;  %v3948_v21 = vmul.f32 0.5, %v3947_v63 }
 0x6b0   :  { %v3938_v33 = vmul.f32 0.5, %v3937_v6 }
 0x6b1   :  { %5470 = vset.pattern.permute.xlu2 %v10528_v4  ;;  %v9446_v41 = vadd.f32 0.001, %v3655_v32  ;;  %v3930_v5 = vmul.f32 %v9389_v47, %v3929_v49  ;;  %v3600_v32 = vmul.f32 %v9471_v55, %v9471_v55  ;;  %v3949_v59 = vsub.f32 1.5, %v3948_v21 }
 0x6b2   :  { %4409 = vperm.xlu2 %5470, %v4167_v23   ;;  %v9480_v23 = vld [vmem:[%s9976_s2 + $0xa8] sm:$0xff] }
 0x6b3   :  { %4115 = vrot.lane.b32.xlu1 %v4041_v15, %s5551_s28  ;;  %5536 = vrsqrt.f32 %v9446_v41  ;;  %v3934_v31 = vsel %vm3933_vm7, %v9389_v47, %v3930_v5  ;;  %v5548_v47 = vld [vmem:[%s9976_s2 + $0x28] sm:$0xff]  ;;  %vm3961_vm15 = vweird.f32 %v9446_v41 }
 0x6b4   :  { %5471 = vset.pattern.permute.xlu1 %v10525_v16  ;;  %v4016_v15 = vmul.f32 %v3934_v31, %v9480_v23  ;;  %v4168_v2 = vsub.f32 %v5548_v47, %v9404_v61  ;;  %v4170_v61 = vsub.f32 %v8964_v0, %v4094_v53 }
 0x6b6   :  { %v4044_v11 = vmul.f32 %v4016_v15, %v9292_v28 }
 0x6b7   :  { %4111 = vrot.lane.b32.xlu0 %v4039_v37, %s5551_s28 }
 0x6b8   :  { %5467 = vset.pattern.permute.xlu0 %v10525_v16 }
 0x6b9   :  { %v9483_v48 = vpop.eup %5536 }
 0x6ba   :  { %4119 = vrot.lane.b32.xlu2 %v4043_v12, %s5551_s28  ;;  %v3956_v49 = vmul.f32 %v9483_v48, %v9446_v41  ;;  %vm3962_vm14 = vweird.f32 %v9483_v48 }
 0x6bb   :  { %v3510_v42 = vpop.xlane.xlu2 %3509  ;;  %5474 = vset.pattern.permute.xlu2 %v10525_v16  ;;  %4288 = vperm.xlu1 %5471, %v4014_v10   ;;  %vm3963_vm0 = vmor %vm3961_vm15, %vm3962_vm14 }
 0x6bc   :  { %v3572_v34 = vmul.f32 0.0051020407, %v3510_v42  ;;  %v3957_v63 = vmul.f32 %v9483_v48, %v3956_v49  ;;  %v3950_v42 = vmul.f32 %v9434_v58, %v3949_v59  ;;  %v3514_v59 = vpop.xlane.xlu0 %3513 }
 0x6be   :  { %v3628_v37 = vsub.f32 %v3572_v34, %v3600_v32  ;;  %v3939_v34 = vsub.f32 1.5, %v3938_v33  ;;  %v3958_v21 = vmul.f32 0.5, %v3957_v63  ;;  %v9550_v63 = vld [vmem:[%s9976_s2 + $0xc0] sm:$0xff] }
 0x6bf   :  { %4278 = vperm.xlu0 %5467, %v9343_v9   ;;  %v4042_v9 = vmul.f32 %v4014_v10, %v9270_v62  ;;  %v9509_v62 = vld [vmem:[%s9976_s2 + $0xb8] sm:$0xff]  ;;  %v3954_v10 = vsel %vm3953_vm10, %v9434_v58, %v3950_v42 }
 0x6c0   :  { %v3656_v5 = vmax.f32 %v3628_v37, 0.0  ;;  %v4018_v0 = vmul.f32 %v3954_v10, %v9509_v62  ;;  %v3940_v37 = vmul.f32 %v9466_v60, %v3939_v34  ;;  %v3959_v49 = vsub.f32 1.5, %v3958_v21 }
 0x6c2   :  { %4298 = vperm.xlu2 %5474, %v4016_v15   ;;  %v9504_v31 = vadd.f32 0.001, %v3656_v5  ;;  %v4046_v28 = vmul.f32 %v4018_v0, %v9333_v57  ;;  %v3573_v15 = vmul.f32 0.0051020407, %v3514_v59  ;;  %v3944_v47 = vsel %vm3943_vm13, %v9466_v60, %v3940_v37  ;;  %v9541_v5 = vpop.permute.xlu1 %4228  ;;  %v5549_v60 = vld [vmem:[%s9976_s2 + $0x30] sm:$0xff] }
 0x6c3   :  { %v3346_v12 = vpop.xlane.xlu2 %3345  ;;  %5472 = vset.pattern.permute.xlu1 %v10528_v4  ;;  %v3960_v14 = vmul.f32 %v9483_v48, %v3959_v49 }
 0x6c4   :  { %4414 = vperm.xlu1 %5472, %v4168_v2   ;;  %v9513_v32 = vmul.f32 0.0051020407, %v3346_v12  ;;  %5538 = vrsqrt.f32 %v9504_v31  ;;  %v9530_v12 = vld [vmem:[%s9976_s2 + $0xb0] sm:$0xff]  ;;  %vm3971_vm3 = vweird.f32 %v9504_v31 }
 0x6c5   :  { %v4017_v57 = vmul.f32 %v3944_v47, %v9530_v12  ;;  %v3964_v41 = vsel %vm3963_vm0, %v9483_v48, %v3960_v14  ;;  %v9575_v47 = vld [vmem:[%s9976_s2 + $0xc8] sm:$0xff] }
 0x6c6   :  { %v3601_v58 = vmul.f32 %v9513_v32, %v9513_v32  ;;  %v4019_v34 = vmul.f32 %v3964_v41, %v9550_v63 }
 0x6c7   :  { %4117 = vrot.lane.b32.xlu0 %v4042_v9, %s5551_s28  ;;  %v4169_v9 = vsub.f32 %v5549_v60, %v9423_v35  ;;  %v4045_v48 = vmul.f32 %v4017_v57, %v9377_v52 }
 0x6c8   :  { %v3629_v33 = vsub.f32 %v3573_v15, %v3601_v58 }
 0x6ca   :  { %5475 = vset.pattern.permute.xlu2 %v10528_v4  ;;  %v5539_v2 = vpop.eup %5538  ;;  %v3657_v53 = vmax.f32 %v3629_v33, 0.0 }
 0x6cb   :  { %v4096_v6 = vpop.permute.xlu2 %4095  ;;  %4424 = vperm.xlu2 %5475, %v4170_v61   ;;  %v3966_v42 = vmul.f32 %v5539_v2, %v9504_v31  ;;  %vm3972_vm2 = vweird.f32 %v5539_v2 }
 0x6cc   :  { %4121 = vrot.lane.b32.xlu1 %v4044_v11, %s5551_s28  ;;  %v3713_v21 = vadd.f32 0.001, %v3657_v53  ;;  %v4171_v35 = vsub.f32 %v9019_v50, %v4096_v6  ;;  %v3518_v11 = vpop.xlane.xlu1 %3517  ;;  %v4047_v50 = vmul.f32 %v4019_v34, %v9391_v26  ;;  %v9567_v6 = vpop.permute.xlu0 %4233  ;;  %vm3973_vm4 = vmor %vm3971_vm3, %vm3972_vm2 }
 0x6cd   :  { %5476 = vset.pattern.permute.xlu1 %v10525_v16  ;;  %v3967_v61 = vmul.f32 %v5539_v2, %v3966_v42  ;;  %v3574_v42 = vmul.f32 0.0051020407, %v3518_v11  ;;  %v4335_v11 = vmul.f32 %v9209_v39, %v8008_v17 }
 0x6ce   :  { %5540 = vrsqrt.f32 %v3713_v21  ;;  %vm3981_vm6 = vweird.f32 %v3713_v21 }
 0x6cf   :  { %4293 = vperm.xlu0 %5467, %v9440_v46   ;;  %v3968_v37 = vmul.f32 0.5, %v3967_v61 }
 0x6d1   :  { %v3969_v49 = vsub.f32 1.5, %v3968_v37 }
 0x6d3   :  { %v9535_v46 = vpop.permute.xlu2 %4238  ;;  %4125 = vrot.lane.b32.xlu2 %v4046_v28, %s5551_s28  ;;  %v3970_v15 = vmul.f32 %v5539_v2, %v3969_v49 }
 0x6d4   :  { %5480 = vset.pattern.permute.xlu2 %v10525_v16  ;;  %4303 = vperm.xlu1 %5476, %v4017_v57   ;;  %v5541_v58 = vpop.eup %5540 }
 0x6d5   :  { %v3976_v52 = vmul.f32 %v5541_v58, %v3713_v21  ;;  %v3974_v26 = vsel %vm3973_vm4, %v5539_v2, %v3970_v15  ;;  %vm3982_vm5 = vweird.f32 %v5541_v58 }
 0x6d6   :  { %vm3983_vm7 = vmor %vm3981_vm6, %vm3982_vm5 }
 0x6d7   :  { %5473 = vset.pattern.permute.xlu0 %v10528_v4  ;;  %v3977_v33 = vmul.f32 %v5541_v58, %v3976_v52 }
 0x6d8   :  { %4419 = vperm.xlu0 %5473, %v4169_v9   ;;  %v4020_v9 = vmul.f32 %v3974_v26, %v9575_v47 }
 0x6d9   :  { %v3978_v41 = vmul.f32 0.5, %v3977_v33 }
 0x6da   :  { %v4048_v49 = vmul.f32 %v4020_v9, %v9471_v55  ;;  %v9601_v55 = vld [vmem:[%s9976_s2 + $0xd0] sm:$0xff] }
 0x6db   :  { %v9556_v10 = vpop.permute.xlu2 %4101  ;;  %4313 = vperm.xlu2 %5480, %v4019_v34   ;;  %v3979_v61 = vsub.f32 1.5, %v3978_v41  ;;  %v4331_v41 = vmul.f32 %v9093_v19, %v7967_v30 }
 0x6dc   :  { %5477 = vset.pattern.permute.xlu1 %v10528_v4 }
 0x6dd   :  { %4429 = vperm.xlu1 %5477, %v4171_v35  }
 0x6e0   :  { %4123 = vrot.lane.b32.xlu0 %v4045_v48, %s5551_s28 }
 0x6e1   :  { %5478 = vset.pattern.permute.xlu0 %v10525_v16 }
 0x6e3   :  { %v9563_v59 = vpop.permute.xlu2 %4253  ;;  %5481 = vset.pattern.permute.xlu2 %v10528_v4  ;;  %v4098_v28 = vpop.permute.xlu1 %4097 }
 0x6e5   :  { %4127 = vrot.lane.b32.xlu1 %v4047_v50, %s5551_s28  ;;  %v4336_v50 = vmul.f32 %v9209_v39, %v8600_v43 }
 0x6e6   :  { %5482 = vset.pattern.permute.xlu1 %v10525_v16 }
 0x6e8   :  { %4308 = vperm.xlu0 %5478, %v4018_v0   ;;  %v4172_v0 = vsub.f32 %v9113_v54, %v4098_v28  ;;  %v3980_v54 = vmul.f32 %v5541_v58, %v3979_v61  ;;  %v9623_v61 = vld [vmem:[%s9976_s2 + $0xd8] sm:$0xff] }
 0x6ea   :  { %v3984_v15 = vsel %vm3983_vm7, %v5541_v58, %v3980_v54 }
 0x6eb   :  { %v9577_v14 = vpop.permute.xlu2 %4107  ;;  %v9579_v57 = vpop.permute.xlu1 %4243  ;;  %v4021_v17 = vmul.f32 %v3984_v15, %v9601_v55  ;;  %v4340_v15 = vmul.f32 %v9367_v51, %v8624_v56 }
 0x6ed   :  { %v3350_v60 = vpop.xlane.xlu0 %3349  ;;  %4318 = vperm.xlu1 %5482, %v4020_v9   ;;  %v4049_v30 = vmul.f32 %v4021_v17, %v9513_v32 }
 0x6ee   :  { %v9582_v31 = vmul.f32 0.0051020407, %v3350_v60 }
 0x6f0   :  { %v3602_v53 = vmul.f32 %v9582_v31, %v9582_v31  ;;  %5479 = vset.pattern.permute.xlu0 %v10528_v4 }
 0x6f1   :  { %4434 = vperm.xlu0 %5479, %v4172_v0  }
 0x6f2   :  { %v3630_v2 = vsub.f32 %v3574_v42, %v3602_v53  ;;  %v4332_v42 = vmul.f32 %v9093_v19, %v8573_v24 }
 0x6f3   :  { %v9588_v34 = vpop.permute.xlu2 %4268  ;;  %v4104_v37 = vpop.permute.xlu1 %4103 }
 0x6f4   :  { %v3658_v35 = vmax.f32 %v3630_v2, 0.0  ;;  %v4175_v54 = vsub.f32 %v9205_v18, %v4104_v37 }
 0x6f5   :  { %5485 = vset.pattern.permute.xlu1 %v10528_v4 }
 0x6f6   :  { %v3714_v48 = vadd.f32 0.001, %v3658_v35 }
 0x6f8   :  { %5542 = vrsqrt.f32 %v3714_v48  ;;  %vm3991_vm9 = vweird.f32 %v3714_v48 }
 0x6f9   :  { %4129 = vrot.lane.b32.xlu0 %v4048_v49, %s5551_s28 }
 0x6fa   :  { %5483 = vset.pattern.permute.xlu0 %v10525_v16 }
 0x6fb   :  { %v4400_v28 = vpop.permute.xlu2 %4399  ;;  %v9603_v33 = vpop.permute.xlu1 %4258 }
 0x6fc   :  { %v4531_v52 = vadd.f32 %v4400_v28, %v4335_v11  ;;  %v4532_v26 = vadd.f32 %v4400_v28, %v4336_v50  ;;  %v4339_v28 = vmul.f32 %v9367_v51, %v10459_v40 }
 0x6fe   :  { %v5543_v60 = vpop.eup %5542  ;;  %4587 = vst [vmem:[%s9977_s3 + $0x20] sm:$0xff] %v4531_v52 }
 0x6ff   :  { %v3986_v43 = vmul.f32 %v5543_v60, %v3714_v48  ;;  %4588 = vst.msk [vmem:[%s9977_s3 + $0x28] sm:$0xff] %vm3238_vm1, %v4532_v26  ;;  %vm3992_vm8 = vweird.f32 %v5543_v60 }
 0x700   :  { %v4100_v39 = vpop.permute.xlu0 %4099  ;;  %vm3993_vm10 = vmor %vm3991_vm9, %vm3992_vm8 }
 0x701   :  { %v3987_v21 = vmul.f32 %v5543_v60, %v3986_v43  ;;  %v4173_v58 = vsub.f32 %v9181_v13, %v4100_v39  ;;  %4323 = vperm.xlu0 %5483, %v4021_v17   ;;  %v4333_v43 = vmul.f32 %v9104_v3, %v7990_v45  ;;  %v10529_v39 = vld [vmem:[#allocation15_spill] sm:$0xff] }
 0x703   :  { %v3988_v9 = vmul.f32 0.5, %v3987_v21  ;;  %v9614_v0 = vpop.permute.xlu2 %4113  ;;  %4439 = vperm.xlu2 %5481, %v4173_v58  }
 0x704   :  { %v4390_v2 = vpop.permute.xlu1 %4389  ;;  %v4180_v45 = vsub.f32 %v9327_v20, %v9614_v0  ;;  %v10533_v0 = vld [vmem:[#allocation42_spill] sm:$0xff] }
 0x705   :  { %v3989_v53 = vsub.f32 1.5, %v3988_v9  ;;  %v4527_v35 = vadd.f32 %v4390_v2, %v4331_v41  ;;  %v4528_v49 = vadd.f32 %v4390_v2, %v4332_v42  ;;  %v10531_v41 = vld [vmem:[#allocation36_spill] sm:$0xff] }
 0x706   :  { %v4345_v42 = vmul.f32 %v9541_v5, %v10531_v41  ;;  %v10542_v41 = vld [vmem:[#allocation25_spill] sm:$0xff] }
 0x707   :  { %v3990_v13 = vmul.f32 %v5543_v60, %v3989_v53  ;;  %4583 = vst [vmem:[%s9977_s3] sm:$0xff] %v4527_v35  ;;  %v10532_v53 = vld [vmem:[#allocation19_spill] sm:$0xff] }
 0x708   :  { %v9626_v11 = vpop.permute.xlu0 %4248  ;;  %4584 = vst.msk [vmem:[%s9977_s3 + $0x8] sm:$0xff] %vm3238_vm1, %v4528_v49  ;;  %v4346_v20 = vmul.f32 %v9541_v5, %v10532_v53 }
 0x709   :  { %v3994_v24 = vsel %vm3993_vm10, %v5543_v60, %v3990_v13  ;;  %5486 = vset.pattern.permute.xlu0 %v10528_v4  ;;  %v4338_v60 = vmul.f32 %v9211_v1, %v8614_v8 }
 0x70a   :  { %v4022_v19 = vmul.f32 %v3994_v24, %v9623_v61  ;;  %4449 = vperm.xlu0 %5486, %v4175_v54  }
 0x70b   :  { %v9638_v18 = vpop.permute.xlu2 %4283  ;;  %4131 = vrot.lane.b32.xlu2 %v4049_v30, %s5551_s28 }
 0x70c   :  { %v4050_v32 = vmul.f32 %v4022_v19, %v9582_v31  ;;  %5484 = vset.pattern.permute.xlu2 %v10525_v16  ;;  %v4110_v37 = vpop.permute.xlu1 %4109  ;;  %v4174_v31 = vsub.f32 %v9141_v27, %v9556_v10  ;;  %v4177_v27 = vsub.f32 %v9224_v29, %v9577_v14  ;;  %v4337_v10 = vmul.f32 %v9211_v1, %v8025_v36  ;;  %v10530_v1 = vld [vmem:[#allocation43_spill] sm:$0xff] }
 0x70d   :  { %v4178_v48 = vsub.f32 %v9281_v38, %v4110_v37 }
 0x70e   :  { %4133 = vrot.lane.b32.xlu1 %v4050_v32, %s5551_s28  ;;  %v10535_v32 = vld [vmem:[#allocation92_spill] sm:$0xff] }
 0x710   :  { %v4106_v50 = vpop.permute.xlu0 %4105 }
 0x711   :  { %v4176_v40 = vsub.f32 %v9253_v22, %v4106_v50  ;;  %v4334_v22 = vmul.f32 %v9104_v3, %v10529_v39 }
 0x712   :  { %4464 = vperm.xlu0 %5486, %v4178_v48   ;;  %v10536_v48 = vld [vmem:[#allocation68_spill] sm:$0xff] }
 0x713   :  { %v4410_v52 = vpop.permute.xlu2 %4409  ;;  %4328 = vperm.xlu2 %5484, %v4022_v19   ;;  %v10534_v19 = vld [vmem:[#allocation32_spill] sm:$0xff]  ;;  %v4342_v50 = vmul.f32 %v10535_v32, %v10536_v48  ;;  %v10545_v48 = vld [vmem:[#allocation2_spill] sm:$0xff] }
 0x714   :  { %v4535_v26 = vadd.f32 %v4410_v52, %v4339_v28  ;;  %v4536_v16 = vadd.f32 %v4410_v52, %v4340_v15  ;;  %v9654_v38 = vpop.permute.xlu1 %4273  ;;  %v4341_v37 = vmul.f32 %v10535_v32, %v10534_v19 }
 0x716   :  { %4591 = vst [vmem:[%s9977_s3 + $0x40] sm:$0xff] %v4535_v26  ;;  %4444 = vperm.xlu1 %5485, %v4174_v31  }
 0x717   :  { %4592 = vst.msk [vmem:[%s9977_s3 + $0x48] sm:$0xff] %vm3238_vm1, %v4536_v16 }
 0x718   :  { %v9660_v56 = vpop.permute.xlu0 %4263 }
 0x71b   :  { %v4120_v51 = vpop.permute.xlu2 %4119  ;;  %5487 = vset.pattern.permute.xlu2 %v10528_v4 }
 0x71c   :  { %4454 = vperm.xlu2 %5487, %v4176_v40   ;;  %v4183_v35 = vsub.f32 %v9430_v44, %v4120_v51 }
 0x71d   :  { %v4405_v17 = vpop.permute.xlu1 %4404 }
 0x71e   :  { %4459 = vperm.xlu1 %5485, %v4177_v27   ;;  %v4533_v21 = vadd.f32 %v4405_v17, %v4337_v10  ;;  %v4534_v4 = vadd.f32 %v4405_v17, %v4338_v60  ;;  %v10537_v27 = vld [vmem:[#allocation12_spill] sm:$0xff]  ;;  %v10538_v10 = vld [vmem:[#allocation21_spill] sm:$0xff] }
 0x71f   :  { %v4344_v60 = vmul.f32 %v9436_v7, %v10538_v10 }
 0x720   :  { %4589 = vst [vmem:[%s9977_s3 + $0x30] sm:$0xff] %v4533_v21  ;;  %v10540_v21 = vld [vmem:[#allocation72_spill] sm:$0xff] }
 0x721   :  { %v4395_v58 = vpop.permute.xlu0 %4394  ;;  %4590 = vst.msk [vmem:[%s9977_s3 + $0x38] sm:$0xff] %vm3238_vm1, %v4534_v4  ;;  %v4348_v4 = vmul.f32 %v9567_v6, %v10540_v21  ;;  %v10551_v21 = vld [vmem:[#allocation4_spill] sm:$0xff] }
 0x722   :  { %v4529_v29 = vadd.f32 %v4395_v58, %v4333_v43  ;;  %v4530_v36 = vadd.f32 %v4395_v58, %v4334_v22 }
 0x723   :  { %v9681_v8 = vpop.permute.xlu2 %4298 }
 0x724   :  { %4585 = vst [vmem:[%s9977_s3 + $0x10] sm:$0xff] %v4529_v29 }
 0x725   :  { %4586 = vst.msk [vmem:[%s9977_s3 + $0x18] sm:$0xff] %vm3238_vm1, %v4530_v36  ;;  %v4116_v3 = vpop.permute.xlu1 %4115 }
 0x726   :  { %4474 = vperm.xlu1 %5485, %v4180_v45   ;;  %v4181_v14 = vsub.f32 %v10530_v1, %v4116_v3 }
 0x728   :  { %4479 = vperm.xlu0 %5486, %v4181_v14  }
 0x729   :  { %v4112_v9 = vpop.permute.xlu0 %4111 }
 0x72a   :  { %v4179_v2 = vsub.f32 %v10533_v0, %v4112_v9  ;;  %v10541_v9 = vld [vmem:[#allocation20_spill] sm:$0xff] }
 0x72b   :  { %v4425_v13 = vpop.permute.xlu2 %4424 }
 0x72c   :  { %v4541_v49 = vadd.f32 %v4425_v13, %v4345_v42  ;;  %v4542_v54 = vadd.f32 %v4425_v13, %v4346_v20  ;;  %4469 = vperm.xlu2 %5487, %v4179_v2   ;;  %v4352_v42 = vmul.f32 %v9579_v57, %v10542_v41  ;;  %v10544_v13 = vld [vmem:[#allocation24_spill] sm:$0xff] }
 0x72d   :  { %v9706_v5 = vpop.permute.xlu1 %4288 }
 0x72e   :  { %4597 = vst [vmem:[%s9977_s3 + $0x70] sm:$0xff] %v4541_v49  ;;  %4489 = vperm.xlu1 %5485, %v4183_v35   ;;  %v4350_v35 = vmul.f32 %v9535_v46, %v10544_v13 }
 0x72f   :  { %4598 = vst.msk [vmem:[%s9977_s3 + $0x78] sm:$0xff] %vm3238_vm1, %v4542_v54 }
 0x731   :  { %v9708_v30 = vpop.permute.xlu0 %4278 }
 0x733   :  { %v4126_v24 = vpop.permute.xlu2 %4125 }
 0x734   :  { %v4186_v44 = vsub.f32 %v9509_v62, %v4126_v24 }
 0x736   :  { %4504 = vperm.xlu1 %5485, %v4186_v44   ;;  %v4415_v28 = vpop.permute.xlu1 %4414 }
 0x737   :  { %v4537_v15 = vadd.f32 %v4415_v28, %v4341_v37  ;;  %v4538_v52 = vadd.f32 %v4415_v28, %v4342_v50  ;;  %v4357_v50 = vmul.f32 %v9603_v33, %v10545_v48  ;;  %v10546_v28 = vld [vmem:[#allocation27_spill] sm:$0xff] }
 0x739   :  { %v4118_v31 = vpop.permute.xlu0 %4117  ;;  %4593 = vst [vmem:[%s9977_s3 + $0x50] sm:$0xff] %v4537_v15 }
 0x73a   :  { %v4182_v26 = vsub.f32 %v9459_v25, %v4118_v31  ;;  %4594 = vst.msk [vmem:[%s9977_s3 + $0x58] sm:$0xff] %vm3238_vm1, %v4538_v52  ;;  %v4343_v25 = vmul.f32 %v9436_v7, %v10537_v27 }
 0x73b   :  { %v9747_v3 = vpop.permute.xlu2 %4313 }
 0x73c   :  { %4484 = vperm.xlu2 %5487, %v4182_v26  }
 0x73e   :  { %v4122_v62 = vpop.permute.xlu1 %4121 }
 0x73f   :  { %v4184_v16 = vsub.f32 %v9480_v23, %v4122_v62  ;;  %v10539_v23 = vld [vmem:[#allocation16_spill] sm:$0xff] }
 0x740   :  { %v4347_v22 = vmul.f32 %v9567_v6, %v10539_v23  ;;  %v10550_v23 = vld [vmem:[#allocation26_spill] sm:$0xff] }
 0x741   :  { %v9724_v40 = vpop.permute.xlu0 %4293  ;;  %4494 = vperm.xlu0 %5486, %v4184_v16   ;;  %v10548_v16 = vld [vmem:[#allocation76_spill] sm:$0xff] }
 0x746   :  { %v9726_v51 = vpop.permute.xlu1 %4303 }
 0x74a   :  { %v4420_v17 = vpop.permute.xlu0 %4419 }
 0x74b   :  { %v4539_v43 = vadd.f32 %v4420_v17, %v4343_v25  ;;  %v4540_v39 = vadd.f32 %v4420_v17, %v4344_v60 }
 0x74d   :  { %4595 = vst [vmem:[%s9977_s3 + $0x60] sm:$0xff] %v4539_v43  ;;  %v10549_v43 = vld [vmem:[#allocation5_spill] sm:$0xff] }
 0x74e   :  { %4596 = vst.msk [vmem:[%s9977_s3 + $0x68] sm:$0xff] %vm3238_vm1, %v4540_v39  ;;  %v4361_v39 = vmul.f32 %v9588_v34, %v10549_v43 }
 0x74f   :  { %v4430_v58 = vpop.permute.xlu1 %4429 }
 0x750   :  { %v4543_v7 = vadd.f32 %v4430_v58, %v4347_v22  ;;  %v4544_v29 = vadd.f32 %v4430_v58, %v4348_v4  ;;  %v4363_v4 = vmul.f32 %v9654_v38, %v10551_v21  ;;  %v10552_v58 = vld [vmem:[#allocation80_spill] sm:$0xff] }
 0x752   :  { %v4124_v36 = vpop.permute.xlu0 %4123  ;;  %4599 = vst [vmem:[%s9977_s3 + $0x80] sm:$0xff] %v4543_v7  ;;  %v4364_v7 = vmul.f32 %v9654_v38, %v10552_v58 }
 0x753   :  { %v4185_v45 = vsub.f32 %v9530_v12, %v4124_v36  ;;  %4600 = vst.msk [vmem:[%s9977_s3 + $0x88] sm:$0xff] %vm3238_vm1, %v4544_v29  ;;  %v4351_v12 = vmul.f32 %v9579_v57, %v10541_v9 }
 0x755   :  { %4499 = vperm.xlu2 %5487, %v4185_v45  }
 0x757   :  { %v4128_v1 = vpop.permute.xlu1 %4127 }
 0x758   :  { %v4187_v6 = vsub.f32 %v9550_v63, %v4128_v1  ;;  %v10543_v63 = vld [vmem:[#allocation40_spill] sm:$0xff] }
 0x759   :  { %v4349_v2 = vmul.f32 %v9535_v46, %v10543_v63  ;;  %v10553_v1 = vld [vmem:[#allocation44_spill] sm:$0xff] }
 0x75a   :  { %v9754_v14 = vpop.permute.xlu0 %4308  ;;  %4509 = vperm.xlu0 %5486, %v4187_v6   ;;  %v10554_v6 = vld [vmem:[#allocation23_spill] sm:$0xff] }
 0x75b   :  { %v4354_v9 = vmul.f32 %v9626_v11, %v10554_v6  ;;  %v10570_v6 = vld [vmem:[#allocation34_spill] sm:$0xff] }
 0x75d   :  { %v4440_v53 = vpop.permute.xlu2 %4439 }
 0x75e   :  { %v4547_v20 = vadd.f32 %v4440_v53, %v4351_v12  ;;  %v4548_v0 = vadd.f32 %v4440_v53, %v4352_v42 }
 0x75f   :  { %v9788_v26 = vpop.permute.xlu1 %4318 }
 0x760   :  { %4603 = vst [vmem:[%s9977_s3 + $0xa0] sm:$0xff] %v4547_v20  ;;  %v10556_v20 = vld [vmem:[#allocation28_spill] sm:$0xff] }
 0x761   :  { %4604 = vst.msk [vmem:[%s9977_s3 + $0xa8] sm:$0xff] %vm3238_vm1, %v4548_v0  ;;  %v4360_v0 = vmul.f32 %v9660_v56, %v10556_v20 }
 0x763   :  { %v4435_v57 = vpop.permute.xlu0 %4434 }
 0x764   :  { %v4545_v49 = vadd.f32 %v4435_v57, %v4349_v2  ;;  %v4546_v54 = vadd.f32 %v4435_v57, %v4350_v35  ;;  %v10557_v35 = vld [vmem:[#allocation6_spill] sm:$0xff] }
 0x765   :  { %v4132_v24 = vpop.permute.xlu2 %4131  ;;  %v4369_v57 = vmul.f32 %v9706_v5, %v10557_v35 }
 0x766   :  { %4601 = vst [vmem:[%s9977_s3 + $0x90] sm:$0xff] %v4545_v49  ;;  %v4189_v44 = vsub.f32 %v9601_v55, %v4132_v24  ;;  %v4358_v55 = vmul.f32 %v9603_v33, %v10546_v28  ;;  %v4356_v33 = vmul.f32 %v9563_v59, %v10548_v16  ;;  %v10558_v49 = vld [vmem:[#allocation29_spill] sm:$0xff] }
 0x767   :  { %4602 = vst.msk [vmem:[%s9977_s3 + $0x98] sm:$0xff] %vm3238_vm1, %v4546_v54  ;;  %v4370_v54 = vmul.f32 %v9706_v5, %v10558_v49  ;;  %v10561_v5 = vld [vmem:[#allocation7_spill] sm:$0xff]  ;;  %v10575_v49 = vld [vmem:[#allocation64_spill] sm:$0xff] }
 0x768   :  { %4519 = vperm.xlu1 %5485, %v4189_v44  }
 0x76b   :  { %v4130_v19 = vpop.permute.xlu0 %4129 }
 0x76c   :  { %v4188_v32 = vsub.f32 %v9575_v47, %v4130_v19  ;;  %v10547_v47 = vld [vmem:[#allocation3_spill] sm:$0xff]  ;;  %v10560_v19 = vld [vmem:[#allocation30_spill] sm:$0xff] }
 0x76d   :  { %v9780_v46 = vpop.permute.xlu2 %4328  ;;  %v4355_v62 = vmul.f32 %v9563_v59, %v10547_v47  ;;  %v4362_v59 = vmul.f32 %v9588_v34, %v10550_v23 }
 0x76e   :  { %4514 = vperm.xlu2 %5487, %v4188_v32   ;;  %v4366_v32 = vmul.f32 %v9708_v30, %v10560_v19 }
 0x773   :  { %v9782_v37 = vpop.permute.xlu0 %4323 }
 0x776   :  { %v4455_v15 = vpop.permute.xlu2 %4454 }
 0x777   :  { %v4553_v52 = vadd.f32 %v4455_v15, %v4357_v50  ;;  %v4554_v31 = vadd.f32 %v4455_v15, %v4358_v55 }
 0x779   :  { %4609 = vst [vmem:[%s9977_s3 + $0xd0] sm:$0xff] %v4553_v52  ;;  %v4367_v52 = vmul.f32 %v9638_v18, %v10561_v5 }
 0x77a   :  { %4610 = vst.msk [vmem:[%s9977_s3 + $0xd8] sm:$0xff] %vm3238_vm1, %v4554_v31  ;;  %v10562_v31 = vld [vmem:[#allocation31_spill] sm:$0xff] }
 0x77c   :  { %v4450_v27 = vpop.permute.xlu0 %4449 }
 0x77d   :  { %v4551_v25 = vadd.f32 %v4450_v27, %v4355_v62  ;;  %v4552_v10 = vadd.f32 %v4450_v27, %v4356_v33  ;;  %v10563_v33 = vld [vmem:[#allocation56_spill] sm:$0xff] }
 0x77e   :  { %v4371_v27 = vmul.f32 %v9724_v40, %v10563_v33 }
 0x77f   :  { %4607 = vst [vmem:[%s9977_s3 + $0xc0] sm:$0xff] %v4551_v25  ;;  %v10564_v25 = vld [vmem:[#allocation84_spill] sm:$0xff] }
 0x780   :  { %4608 = vst.msk [vmem:[%s9977_s3 + $0xc8] sm:$0xff] %vm3238_vm1, %v4552_v10  ;;  %v4134_v60 = vpop.permute.xlu1 %4133  ;;  %v4372_v10 = vmul.f32 %v9724_v40, %v10564_v25  ;;  %v10565_v40 = vld [vmem:[#allocation60_spill] sm:$0xff] }
 0x781   :  { %v4190_v17 = vsub.f32 %v9623_v61, %v4134_v60  ;;  %v4353_v61 = vmul.f32 %v9626_v11, %v10553_v1  ;;  %v10555_v11 = vld [vmem:[#allocation48_spill] sm:$0xff]  ;;  %v4377_v43 = vmul.f32 %v9754_v14, %v10565_v40  ;;  %v10569_v1 = vld [vmem:[#allocation10_spill] sm:$0xff] }
 0x782   :  { %v4359_v53 = vmul.f32 %v9660_v56, %v10555_v11  ;;  %v10559_v56 = vld [vmem:[#allocation52_spill] sm:$0xff] }
 0x783   :  { %4524 = vperm.xlu0 %5486, %v4190_v17   ;;  %v4365_v44 = vmul.f32 %v9708_v30, %v10559_v56  ;;  %v4368_v30 = vmul.f32 %v9638_v18, %v10562_v31 }
 0x784   :  { %v4465_v22 = vpop.permute.xlu0 %4464 }
 0x785   :  { %v4557_v29 = vadd.f32 %v4465_v22, %v4361_v39  ;;  %v4558_v36 = vadd.f32 %v4465_v22, %v4362_v59  ;;  %v10566_v39 = vld [vmem:[#allocation33_spill] sm:$0xff] }
 0x786   :  { %v4470_v45 = vpop.permute.xlu2 %4469  ;;  %v4378_v23 = vmul.f32 %v9754_v14, %v10566_v39 }
 0x787   :  { %4613 = vst [vmem:[%s9977_s3 + $0xf0] sm:$0xff] %v4557_v29  ;;  %v4559_v34 = vadd.f32 %v4470_v45, %v4363_v4  ;;  %v4560_v12 = vadd.f32 %v4470_v45, %v4364_v7  ;;  %v10567_v4 = vld [vmem:[#allocation8_spill] sm:$0xff]  ;;  %v10568_v7 = vld [vmem:[#allocation35_spill] sm:$0xff] }
 0x788   :  { %4614 = vst.msk [vmem:[%s9977_s3 + $0xf8] sm:$0xff] %vm3238_vm1, %v4558_v36  ;;  %v4445_v38 = vpop.permute.xlu1 %4444  ;;  %v4375_v58 = vmul.f32 %v9726_v51, %v10567_v4  ;;  %v4376_v29 = vmul.f32 %v9726_v51, %v10568_v7 }
 0x789   :  { %4615 = vst [vmem:[%s9977_s3 + $0x100] sm:$0xff] %v4559_v34  ;;  %v4549_v41 = vadd.f32 %v4445_v38, %v4353_v61  ;;  %v4550_v42 = vadd.f32 %v4445_v38, %v4354_v9  ;;  %v4373_v61 = vmul.f32 %v9681_v8, %v10569_v1  ;;  %v4374_v9 = vmul.f32 %v9681_v8, %v10570_v6  ;;  %v10571_v38 = vld [vmem:[#allocation11_spill] sm:$0xff] }
 0x78a   :  { %4616 = vst.msk [vmem:[%s9977_s3 + $0x108] sm:$0xff] %vm3238_vm1, %v4560_v12 }
 0x78b   :  { %4605 = vst [vmem:[%s9977_s3 + $0xb0] sm:$0xff] %v4549_v41  ;;  %v4381_v41 = vmul.f32 %v9788_v26, %v10571_v38 }
 0x78c   :  { %4606 = vst.msk [vmem:[%s9977_s3 + $0xb8] sm:$0xff] %vm3238_vm1, %v4550_v42  ;;  %v10572_v42 = vld [vmem:[#allocation38_spill] sm:$0xff] }
 0x78d   :  { %v4382_v11 = vmul.f32 %v9788_v26, %v10572_v42 }
 0x790   :  { %v4460_v63 = vpop.permute.xlu1 %4459 }
 0x791   :  { %v4555_v2 = vadd.f32 %v4460_v63, %v4359_v53  ;;  %v4556_v13 = vadd.f32 %v4460_v63, %v4360_v0  ;;  %v10573_v0 = vld [vmem:[#allocation13_spill] sm:$0xff] }
 0x792   :  { %v4379_v63 = vmul.f32 %v9747_v3, %v10573_v0 }
 0x793   :  { %4611 = vst [vmem:[%s9977_s3 + $0xe0] sm:$0xff] %v4555_v2  ;;  %v10574_v2 = vld [vmem:[#allocation88_spill] sm:$0xff] }
 0x794   :  { %4612 = vst.msk [vmem:[%s9977_s3 + $0xe8] sm:$0xff] %vm3238_vm1, %v4556_v13  ;;  %v4380_v13 = vmul.f32 %v9747_v3, %v10574_v2 }
 0x796   :  { %v4485_v24 = vpop.permute.xlu2 %4484 }
 0x797   :  { %v4565_v48 = vadd.f32 %v4485_v24, %v4369_v57  ;;  %v4566_v50 = vadd.f32 %v4485_v24, %v4370_v54  ;;  %v4383_v54 = vmul.f32 %v9782_v37, %v10575_v49  ;;  %v10576_v24 = vld [vmem:[#allocation39_spill] sm:$0xff] }
 0x798   :  { %v4475_v28 = vpop.permute.xlu1 %4474  ;;  %v4384_v56 = vmul.f32 %v9782_v37, %v10576_v24 }
 0x799   :  { %4621 = vst [vmem:[%s9977_s3 + $0x130] sm:$0xff] %v4565_v48  ;;  %v4561_v55 = vadd.f32 %v4475_v28, %v4365_v44  ;;  %v4562_v15 = vadd.f32 %v4475_v28, %v4366_v32  ;;  %v10577_v32 = vld [vmem:[#allocation17_spill] sm:$0xff] }
 0x79a   :  { %4622 = vst.msk [vmem:[%s9977_s3 + $0x138] sm:$0xff] %vm3238_vm1, %v4566_v50  ;;  %v4480_v47 = vpop.permute.xlu0 %4479  ;;  %v4385_v48 = vmul.f32 %v9780_v46, %v10577_v32  ;;  %v10578_v50 = vld [vmem:[#allocation37_spill] sm:$0xff] }
 0x79b   :  { %4617 = vst [vmem:[%s9977_s3 + $0x110] sm:$0xff] %v4561_v55  ;;  %v4563_v62 = vadd.f32 %v4480_v47, %v4367_v52  ;;  %v4564_v16 = vadd.f32 %v4480_v47, %v4368_v30  ;;  %v4386_v28 = vmul.f32 %v9780_v46, %v10578_v50 }
 0x79c   :  { %4618 = vst.msk [vmem:[%s9977_s3 + $0x118] sm:$0xff] %vm3238_vm1, %v4562_v15 }
 0x79d   :  { %4619 = vst [vmem:[%s9977_s3 + $0x120] sm:$0xff] %v4563_v62 }
 0x79e   :  { %4620 = vst.msk [vmem:[%s9977_s3 + $0x128] sm:$0xff] %vm3238_vm1, %v4564_v16 }
 0x7a0   :  { %v4490_v18 = vpop.permute.xlu1 %4489 }
 0x7a1   :  { %v4567_v60 = vadd.f32 %v4490_v18, %v4371_v27  ;;  %v4568_v17 = vadd.f32 %v4490_v18, %v4372_v10 }
 0x7a3   :  { %4623 = vst [vmem:[%s9977_s3 + $0x140] sm:$0xff] %v4567_v60 }
 0x7a4   :  { %4624 = vst.msk [vmem:[%s9977_s3 + $0x148] sm:$0xff] %vm3238_vm1, %v4568_v17 }
 0x7a8   :  { %v4505_v59 = vpop.permute.xlu1 %4504 }
 0x7a9   :  { %v4573_v22 = vadd.f32 %v4505_v59, %v4377_v43  ;;  %v4574_v21 = vadd.f32 %v4505_v59, %v4378_v23 }
 0x7ab   :  { %4629 = vst [vmem:[%s9977_s3 + $0x170] sm:$0xff] %v4573_v22 }
 0x7ac   :  { %4630 = vst.msk [vmem:[%s9977_s3 + $0x178] sm:$0xff] %vm3238_vm1, %v4574_v21 }
 0x7af   :  { %v4500_v36 = vpop.permute.xlu2 %4499 }
 0x7b0   :  { %v4571_v14 = vadd.f32 %v4500_v36, %v4375_v58  ;;  %v4572_v45 = vadd.f32 %v4500_v36, %v4376_v29 }
 0x7b2   :  { %4627 = vst [vmem:[%s9977_s3 + $0x160] sm:$0xff] %v4571_v14 }
 0x7b3   :  { %4628 = vst.msk [vmem:[%s9977_s3 + $0x168] sm:$0xff] %vm3238_vm1, %v4572_v45  ;;  %v4495_v34 = vpop.permute.xlu0 %4494 }
 0x7b4   :  { %v4569_v51 = vadd.f32 %v4495_v34, %v4373_v61  ;;  %v4570_v12 = vadd.f32 %v4495_v34, %v4374_v9 }
 0x7b6   :  { %4625 = vst [vmem:[%s9977_s3 + $0x150] sm:$0xff] %v4569_v51 }
 0x7b7   :  { %4626 = vst.msk [vmem:[%s9977_s3 + $0x158] sm:$0xff] %vm3238_vm1, %v4570_v12 }
 0x7c8   :  { %v4515_v53 = vpop.permute.xlu2 %4514 }
 0x7c9   :  { %v4577_v8 = vadd.f32 %v4515_v53, %v4381_v41  ;;  %v4578_v20 = vadd.f32 %v4515_v53, %v4382_v11 }
 0x7cb   :  { %4633 = vst [vmem:[%s9977_s3 + $0x190] sm:$0xff] %v4577_v8 }
 0x7cc   :  { %4634 = vst.msk [vmem:[%s9977_s3 + $0x198] sm:$0xff] %vm3238_vm1, %v4578_v20  ;;  %v4510_v35 = vpop.permute.xlu0 %4509 }
 0x7cd   :  { %v4575_v26 = vadd.f32 %v4510_v35, %v4379_v63  ;;  %v4576_v57 = vadd.f32 %v4510_v35, %v4380_v13 }
 0x7cf   :  { %4631 = vst [vmem:[%s9977_s3 + $0x180] sm:$0xff] %v4575_v26 }
 0x7d0   :  { %4632 = vst.msk [vmem:[%s9977_s3 + $0x188] sm:$0xff] %vm3238_vm1, %v4576_v57 }
 0x7da   :  { %v4520_v44 = vpop.permute.xlu1 %4519 }
 0x7db   :  { %v4579_v3 = vadd.f32 %v4520_v44, %v4383_v54  ;;  %v4580_v19 = vadd.f32 %v4520_v44, %v4384_v56 }
 0x7dd   :  { %4635 = vst [vmem:[%s9977_s3 + $0x1a0] sm:$0xff] %v4579_v3 }
 0x7de   :  { %4636 = vst.msk [vmem:[%s9977_s3 + $0x1a8] sm:$0xff] %vm3238_vm1, %v4580_v19 }
 0x7f5   :  { %v4525_v55 = vpop.permute.xlu0 %4524 }
 0x7f6   :  { %v4581_v37 = vadd.f32 %v4525_v55, %v4385_v48  ;;  %v4582_v15 = vadd.f32 %v4525_v55, %v4386_v28 }
 0x7f8   :  { %4637 = vst [vmem:[%s9977_s3 + $0x1b0] sm:$0xff] %v4581_v37 }
 0x7f9   :  { %4638 = vst.msk [vmem:[%s9977_s3 + $0x1b8] sm:$0xff] %vm3238_vm1, %v4582_v15 }

</bundles_post_ra>
